<compile_context>
chip_gen: v6e
topology: v6e:2x2x1
jax: 0.10.0
libtpu: 0.0.40
codegen_flags: <defaults>
</compile_context>

<pallas_src>
import functools

import jax
import jax.numpy as jnp
from jax.experimental import pallas as pl
from jax.experimental.pallas import tpu as pltpu


_MiB = 1024 * 1024


# --------------------------------------------------------------------------
# Kernels
# --------------------------------------------------------------------------
def _ffn_resident_kernel(x_ref, w1_ref, b1_ref, w2_ref, b2_ref, o_ref):
    # x_ref : (tm, d_model)       w1_ref: (d_model, d_ff)  b1_ref: (1, d_ff)
    # w2_ref: (d_ff, d_model)     b2_ref: (1, d_model)     o_ref : (tm, d_model)
    # Weights are fully VMEM-resident (constant index_map -> DMA'd once).
    h = jnp.dot(x_ref[...], w1_ref[...], preferred_element_type=jnp.float32)
    h = jnp.maximum(h + b1_ref[...].astype(jnp.float32), 0.0)
    out = jnp.dot(h.astype(w2_ref.dtype), w2_ref[...],
                  preferred_element_type=jnp.float32)
    o_ref[...] = (out + b2_ref[...].astype(jnp.float32)).astype(o_ref.dtype)


def _ffn_streaming_kernel(x_ref, w1_ref, b1_ref, w2_ref, b2_ref, o_ref, acc_ref):
    # x_ref : (tm, d_model)       w1_ref: (d_model, tf)    b1_ref: (1, tf)
    # w2_ref: (tf, d_model)       b2_ref: (1, d_model)
    # o_ref : (tm, d_model)       acc_ref: (tm, d_model) f32 scratch
    f = pl.program_id(1)

    @pl.when(f == 0)
    def _init():
        acc_ref[...] = jnp.zeros_like(acc_ref)

    # h_f = relu(x @ W1[:, f-tile] + b1[f-tile])  -- (tm, tf), f32 math
    h = jnp.dot(x_ref[...], w1_ref[...], preferred_element_type=jnp.float32)
    h = jnp.maximum(h + b1_ref[...].astype(jnp.float32), 0.0)

    # acc += h_f @ W2[f-tile, :]                  -- (tm, d_model), f32 acc
    acc_ref[...] += jnp.dot(h.astype(w2_ref.dtype), w2_ref[...],
                            preferred_element_type=jnp.float32)

    @pl.when(f == pl.num_programs(1) - 1)
    def _finalize():
        o_ref[...] = (acc_ref[...]
                      + b2_ref[...].astype(jnp.float32)).astype(o_ref.dtype)


# --------------------------------------------------------------------------
# Per-generation tile / VMEM policy
# --------------------------------------------------------------------------
def _vmem_limit_bytes():
    """48 MiB on v7x (64 MiB/TC), ~96 MiB on v5e/v6e (128 MiB)."""
    try:
        cap = int(pltpu.get_tpu_info().vmem_capacity_bytes)
    except Exception:  # pragma: no cover - conservative fallback
        cap = 64 * _MiB
    return int(min(100 * _MiB, cap * 3 // 4))


def _tile_candidates(total, target, align):
    """Divisor tiles of `total`, aligned to `align`, capped at `target`, descending.
    The full extent is always a legal last-resort candidate (8,128 rule)."""
    cap = min(target, total)
    cands = [t for t in range(align, cap + 1, align) if total % t == 0]
    if total <= target or not cands:
        cands.append(total)
    return sorted(set(cands), reverse=True)


def _pick_tiles(M, d_model, d_ff, x_item, w_item, budget, tm, tf, weights_resident):
    """Choose (resident?, tm, tf) so the working set fits the VMEM budget."""
    align_m = max(8, 32 // x_item)  # sublane pack: f32->8, bf16->16, 8-bit->32
    tm_cands = _tile_candidates(M, tm if tm is not None else 1024, align_m)
    tf_cands = _tile_candidates(d_ff, tf if tf is not None else 1024, 128)

    w_bytes = (2 * d_model * d_ff + d_ff + d_model) * w_item

    def resident_bytes(t):
        return (2 * w_bytes                       # weights + biases (buffered)
                + 4 * t * d_model * x_item        # x + out blocks, double-buffered
                + t * d_ff * 4                    # f32 hidden intermediate
                + t * d_model * 4)                # f32 result before downcast

    def streaming_bytes(t, f):
        return (4 * t * d_model * x_item          # x + out blocks, double-buffered
                + t * d_model * 4                 # f32 accumulator scratch
                + 2 * (2 * d_model * f + f) * w_item  # W1/W2/b1 tiles, double-buffered
                + 2 * d_model * w_item            # b2
                + t * f * 4)                      # f32 hidden tile

    if weights_resident is not False:
        for t in tm_cands:
            if resident_bytes(t) <= budget:
                return True, t, d_ff
        if weights_resident:  # explicitly requested but does not fit
            raise ValueError("weights do not fit in VMEM for the resident path")

    for t in tm_cands:
        for f in tf_cands:
            if streaming_bytes(t, f) <= budget:
                return False, t, f
    # Last resort: smallest tiles even if over the (conservative) estimate.
    return False, tm_cands[-1], tf_cands[-1]


# --------------------------------------------------------------------------
# Public wrapper
# --------------------------------------------------------------------------
@functools.partial(
    jax.jit, static_argnames=("tm", "tf", "weights_resident", "weight_buffers"))
def position_wise_feed_forward(x, w1, b1, w2, b2, *, tm=None, tf=None,
                               weights_resident=None, weight_buffers=2):
    """x: (batch, seq, d_model) -> (batch, seq, d_model).

    Weights are stored pre-transposed: w1 (d_model, d_ff), w2 (d_ff, d_model),
    biases as (1, d_ff) / (1, d_model).  tm/tf/weights_resident default to an
    auto per-TPU-generation policy.  weight_buffers>2 deepens pipelining of the
    two streaming weight specs (only relevant on the streaming path).
    """
    B, S, d_model = x.shape
    d_ff = w1.shape[1]
    M = B * S
    x2d = x.reshape(M, d_model)

    x_item = x.dtype.itemsize
    w_item = w1.dtype.itemsize
    vmem_limit = _vmem_limit_bytes()
    budget = int(vmem_limit * 0.85)

    resident, tm_, tf_ = _pick_tiles(M, d_model, d_ff, x_item, w_item, budget,
                                     tm, tf, weights_resident)

    flops = 4 * M * d_model * d_ff  # two matmuls, 2*M*K*N each

    if resident:
        # Weights are read from HBM exactly once.
        bytes_accessed = (2 * M * d_model * x_item
                          + (2 * d_model * d_ff + d_ff + d_model) * w_item)
        cost = pl.CostEstimate(flops=flops, transcendentals=0,
                               bytes_accessed=int(bytes_accessed))
        out2d = pl.pallas_call(
            _ffn_resident_kernel,
            out_shape=jax.ShapeDtypeStruct((M, d_model), x.dtype),
            grid_spec=pltpu.PrefetchScalarGridSpec(
                num_scalar_prefetch=0,
                grid=(M // tm_,),
                in_specs=[
                    pl.BlockSpec((tm_, d_model), lambda i: (i, 0)),   # x rows
                    pl.BlockSpec((d_model, d_ff), lambda i: (0, 0)),  # W1 (resident)
                    pl.BlockSpec((1, d_ff),       lambda i: (0, 0)),  # b1 (resident)
                    pl.BlockSpec((d_ff, d_model), lambda i: (0, 0)),  # W2 (resident)
                    pl.BlockSpec((1, d_model),    lambda i: (0, 0)),  # b2 (resident)
                ],
                out_specs=pl.BlockSpec((tm_, d_model), lambda i: (i, 0)),
            ),
            compiler_params=pltpu.CompilerParams(
                dimension_semantics=("parallel",),
                vmem_limit_bytes=vmem_limit,
            ),
            cost_estimate=cost,
        )(x2d, w1, b1, w2, b2)
    else:
        n_row_tiles = M // tm_
        # Actual HBM traffic: W1/W2/b1 are re-streamed once per token tile.
        bytes_accessed = (2 * M * d_model * x_item
                          + n_row_tiles * (2 * d_model * d_ff + d_ff) * w_item
                          + d_model * w_item)
        cost = pl.CostEstimate(flops=flops, transcendentals=0,
                               bytes_accessed=int(bytes_accessed))
        w_kwargs = ({"pipeline_mode": pl.Buffered(weight_buffers)}
                    if weight_buffers > 2 else {})
        out2d = pl.pallas_call(
            _ffn_streaming_kernel,
            out_shape=jax.ShapeDtypeStruct((M, d_model), x.dtype),
            grid_spec=pltpu.PrefetchScalarGridSpec(
                num_scalar_prefetch=0,
                grid=(n_row_tiles, d_ff // tf_),
                in_specs=[
                    pl.BlockSpec((tm_, d_model), lambda i, f: (i, 0)),  # x (resident across f)
                    pl.BlockSpec((d_model, tf_), lambda i, f: (0, f), **w_kwargs),  # W1 tile
                    pl.BlockSpec((1, tf_),       lambda i, f: (0, f)),              # b1 tile
                    pl.BlockSpec((tf_, d_model), lambda i, f: (f, 0), **w_kwargs),  # W2 tile
                    pl.BlockSpec((1, d_model),   lambda i, f: (0, 0)),              # b2
                ],
                out_specs=pl.BlockSpec((tm_, d_model), lambda i, f: (i, 0)),
                scratch_shapes=[pltpu.VMEM((tm_, d_model), jnp.float32)],
            ),
            compiler_params=pltpu.CompilerParams(
                dimension_semantics=("parallel", "arbitrary"),
                vmem_limit_bytes=vmem_limit,
            ),
            cost_estimate=cost,
        )(x2d, w1, b1, w2, b2)

    return out2d.reshape(B, S, d_model)


def init_params(key, d_model, d_ff, dtype=jnp.float32):
    """Deterministic init mimicking nn.Linear (uniform(-1/sqrt(fan_in), ..))."""
    k1, k2, k3, k4 = jax.random.split(key, 4)
    lim1 = 1.0 / jnp.sqrt(jnp.float32(d_model))
    lim2 = 1.0 / jnp.sqrt(jnp.float32(d_ff))
    # Stored pre-transposed: (in, out).
    w1 = jax.random.uniform(k1, (d_model, d_ff), dtype, -lim1, lim1)
    b1 = jax.random.uniform(k2, (1, d_ff), dtype, -lim1, lim1)
    w2 = jax.random.uniform(k3, (d_ff, d_model), dtype, -lim2, lim2)
    b2 = jax.random.uniform(k4, (1, d_model), dtype, -lim2, lim2)
    return w1, b1, w2, b2


if __name__ == "__main__":
    # Small but tiling-exercising shapes: M = 512 tokens, d_model=256, d_ff=1024.
    batch, seq, dm, dff = 4, 128, 256, 1024

    key = jax.random.PRNGKey(0)
    kx, kp = jax.random.split(key)
    x = jax.random.normal(kx, (batch, seq, dm), jnp.float32)
    w1, b1, w2, b2 = init_params(kp, dm, dff, jnp.float32)

    # Pure-JAX reference.
    ref = jnp.maximum(x @ w1 + b1[0], 0.0) @ w2 + b2[0]

    # Auto config (weights-resident path is selected at these sizes): tight check.
    out = jax.block_until_ready(position_wise_feed_forward(x, w1, b1, w2, b2))
    assert out.shape == (batch, seq, dm)
    assert jnp.allclose(out, ref, atol=1e-4, rtol=1e-4), "resident f32 mismatch"

    # Force the streaming (2-D grid) fallback so that path is exercised too.
    out_s = jax.block_until_ready(position_wise_feed_forward(
        x, w1, b1, w2, b2, tm=256, tf=512, weights_resident=False))
    assert jnp.allclose(out_s, ref, atol=1e-4, rtol=1e-4), "streaming f32 mismatch"

    # bf16 matmul-operand path (recommended at production sizes): loose check.
    # Note: the activation is intentionally downcast to the weight dtype (bf16)
    # before the second matmul, so precision differs slightly from fp32 torch.
    xb, w1b, b1b, w2b, b2b = (a.astype(jnp.bfloat16) for a in (x, w1, b1, w2, b2))
    out_b = jax.block_until_ready(
        position_wise_feed_forward(xb, w1b, b1b, w2b, b2b))
    assert jnp.allclose(out_b.astype(jnp.float32), ref, atol=5e-2, rtol=5e-2), \
        "bf16 mismatch vs reference"

    print("KERNEL_OK")
</pallas_src>

<mosaic_0001>
module attributes {stable_mosaic.version = 11 : i64} {
  func.func @_ffn_resident_kernel(%arg0: i32, %arg1: memref<512x256xf32, #tpu.memory_space<vmem>>, %arg2: memref<256x1024xf32, #tpu.memory_space<vmem>>, %arg3: memref<1x1024xf32, #tpu.memory_space<vmem>>, %arg4: memref<1024x256xf32, #tpu.memory_space<vmem>>, %arg5: memref<1x256xf32, #tpu.memory_space<vmem>>, %arg6: memref<512x256xf32, #tpu.memory_space<vmem>>) attributes {dimension_semantics = [#tpu.dimension_semantics<parallel>], iteration_bounds = array<i64: 1>, scalar_prefetch = 0 : i64, scratch_operands = 0 : i64, tpu.core_type = #tpu.core_type<tc>, window_params = [{transform_indices = @transform_0, window_bounds = array<i64: 512, 256>}, {pipeline_mode = #tpu.pipeline_mode<synchronous>, transform_indices = @transform_1, window_bounds = array<i64: 256, 1024>}, {pipeline_mode = #tpu.pipeline_mode<synchronous>, transform_indices = @transform_2, window_bounds = array<i64: 1, 1024>}, {pipeline_mode = #tpu.pipeline_mode<synchronous>, transform_indices = @transform_3, window_bounds = array<i64: 1024, 256>}, {pipeline_mode = #tpu.pipeline_mode<synchronous>, transform_indices = @transform_4, window_bounds = array<i64: 1, 256>}, {transform_indices = @transform_5, window_bounds = array<i64: 512, 256>}]} {
    %c0 = arith.constant 0 : index
    %c0_0 = arith.constant 0 : index
    %0 = vector.load %arg1[%c0, %c0_0] : memref<512x256xf32, #tpu.memory_space<vmem>>, vector<512x256xf32>
    %c0_1 = arith.constant 0 : index
    %c0_2 = arith.constant 0 : index
    %1 = vector.load %arg2[%c0_1, %c0_2] : memref<256x1024xf32, #tpu.memory_space<vmem>>, vector<256x1024xf32>
    %cst = arith.constant dense<0.000000e+00> : vector<512x1024xf32>
    %2 = tpu.matmul %0, %1, %cst {dimension_numbers = #tpu.dot_dimension_numbers<[1], [0], [0], [1], [0, 0, 1, 1], [], []>} : vector<512x256xf32>, vector<256x1024xf32>, vector<512x1024xf32> -> vector<512x1024xf32>
    %c0_3 = arith.constant 0 : index
    %c0_4 = arith.constant 0 : index
    %3 = vector.load %arg3[%c0_3, %c0_4] : memref<1x1024xf32, #tpu.memory_space<vmem>>, vector<1x1024xf32>
    %4 = vector.broadcast %3 : vector<1x1024xf32> to vector<512x1024xf32>
    %5 = arith.addf %2, %4 : vector<512x1024xf32>
    %cst_5 = arith.constant 0.000000e+00 : f32
    %6 = vector.broadcast %cst_5 : f32 to vector<512x1024xf32>
    %7 = arith.maximumf %5, %6 : vector<512x1024xf32>
    %c0_6 = arith.constant 0 : index
    %c0_7 = arith.constant 0 : index
    %8 = vector.load %arg4[%c0_6, %c0_7] : memref<1024x256xf32, #tpu.memory_space<vmem>>, vector<1024x256xf32>
    %cst_8 = arith.constant dense<0.000000e+00> : vector<512x256xf32>
    %9 = tpu.matmul %7, %8, %cst_8 {dimension_numbers = #tpu.dot_dimension_numbers<[1], [0], [0], [1], [0, 0, 1, 1], [], []>} : vector<512x1024xf32>, vector<1024x256xf32>, vector<512x256xf32> -> vector<512x256xf32>
    %c0_9 = arith.constant 0 : index
    %c0_10 = arith.constant 0 : index
    %10 = vector.load %arg5[%c0_9, %c0_10] : memref<1x256xf32, #tpu.memory_space<vmem>>, vector<1x256xf32>
    %11 = vector.broadcast %10 : vector<1x256xf32> to vector<512x256xf32>
    %12 = arith.addf %9, %11 : vector<512x256xf32>
    %c0_11 = arith.constant 0 : index
    %c0_12 = arith.constant 0 : index
    %13 = vector.load %arg6[%c0_11, %c0_12] : memref<512x256xf32, #tpu.memory_space<vmem>>, vector<512x256xf32>
    tpu.vector_store %arg6[%c0_11, %c0_12], %12 {strides = array<i32>} : memref<512x256xf32, #tpu.memory_space<vmem>>, vector<512x256xf32>,
    return
  }
  func.func @transform_0(%arg0: i32) -> (i32, i32) {
    %c0_i32 = arith.constant 0 : i32
    %c0_i32_0 = arith.constant 0 : i32
    return %arg0, %c0_i32 : i32, i32
  }
  func.func @transform_1(%arg0: i32) -> (i32, i32) {
    %c0_i32 = arith.constant 0 : i32
    %c0_i32_0 = arith.constant 0 : i32
    %c0_i32_1 = arith.constant 0 : i32
    return %c0_i32, %c0_i32_0 : i32, i32
  }
  func.func @transform_2(%arg0: i32) -> (i32, i32) {
    %c0_i32 = arith.constant 0 : i32
    %c0_i32_0 = arith.constant 0 : i32
    %c0_i32_1 = arith.constant 0 : i32
    return %c0_i32, %c0_i32_0 : i32, i32
  }
  func.func @transform_3(%arg0: i32) -> (i32, i32) {
    %c0_i32 = arith.constant 0 : i32
    %c0_i32_0 = arith.constant 0 : i32
    %c0_i32_1 = arith.constant 0 : i32
    return %c0_i32, %c0_i32_0 : i32, i32
  }
  func.func @transform_4(%arg0: i32) -> (i32, i32) {
    %c0_i32 = arith.constant 0 : i32
    %c0_i32_0 = arith.constant 0 : i32
    %c0_i32_1 = arith.constant 0 : i32
    return %c0_i32, %c0_i32_0 : i32, i32
  }
  func.func @transform_5(%arg0: i32) -> (i32, i32) {
    %c0_i32 = arith.constant 0 : i32
    %c0_i32_0 = arith.constant 0 : i32
    return %arg0, %c0_i32 : i32, i32
  }
}

</mosaic_0001>

<bundles_post_ra>
// kernel: position_wise_feed_forward.1
= control target key start
LH: loop header
LB: loop body
LE: loop exit
PB: predicated region body
PF: predicated region fallthrough
CT: control target
= control target key end

     0   :  { %10 = vsyncpa [#allocation3], 0  ;;  %s7929_s0 = inlined_call_operand.hbm [shape: f32[512,256], index: 0, kind: input, shape index: {}]   ;;  %s7930_s1 = inlined_call_operand.hbm [shape: f32[256,1024], index: 1, kind: input, shape index: {}]   ;;  %s7931_s2 = inlined_call_operand.hbm [shape: f32[1,1024], index: 2, kind: input, shape index: {}]   ;;  %s7932_s3 = inlined_call_operand.hbm [shape: f32[1024,256], index: 3, kind: input, shape index: {}]   ;;  %s7933_s4 = inlined_call_operand.vmem [shape: f32[1,256], index: 4, kind: input, shape index: {}]   ;;  %s7934_s5 = inlined_call_operand.hbm [shape: f32[512,256], index: 5, kind: output, shape index: {}]  }
   0x1   :  { %11 = vsyncpa [#allocation6], 0 }
   0x2   :  { %12 = vsyncpa [#allocation9], 0 }
   0x3   :  { %13 = vsyncpa [#allocation4], 0  ;;  %s5265_s18 = smov [#allocation5]  }
   0x4   :  { %s31_s19 = sshll.u32 %s5265_s18, 4  ;;  %s32_s19 = int_to_ptr.vmem [resolvable:$true] %s31_s19 }
   0x5   :  { %s5165_s20 = scalar_lea.vmem %s32_s19, 32768  ;;  %p5170_p1 = scmp.lt.s32.totalorder %s32_s19, %s32_s19 }
   0x6   :  { %p5166_p0 = scmp.ne.s32.totalorder %s32_s19, %s5165_s20  ;;  %p5171_p2 = scmp.lt.s32.totalorder %s5165_s20, %s5165_s20 }
   0x8   :  { %p5172_p3 = por %p5171_p2, %p5170_p1 }
   0xa   :  { %p5173_p4 = pnand %p5172_p3, %p5166_p0 }
   0xc   :  { %5176 = shalt.err (!%p5173_p4)
}
   0xd   :  { %s5266_s21 = smov 1024   ;;  %s5267_s22 = smov 64  }
   0xe   :  { %37 = dma.hbm_to_vmem [thread:$0]  %s7930_s1, 32768, %s32_s19, [#allocation6], %s5266_s21, %s5266_s21, %s5267_s22  }
   0xf   :  { %s5268_s25 = smov [#allocation2]  }
  0x10   :  { %s19_s26 = sshll.u32 %s5268_s25, 4  ;;  %s20_s26 = int_to_ptr.vmem [resolvable:$true] %s19_s26 }
  0x11   :  { %s5185_s27 = scalar_lea.vmem %s20_s26, 16384  ;;  %p5190_p6 = scmp.lt.s32.totalorder %s20_s26, %s20_s26 }
  0x12   :  { %p5186_p5 = scmp.ne.s32.totalorder %s20_s26, %s5185_s27  ;;  %p5191_p7 = scmp.lt.s32.totalorder %s5185_s27, %s5185_s27 }
  0x14   :  { %p5192_p8 = por %p5191_p7, %p5190_p6 }
  0x16   :  { %p5193_p9 = pnand %p5192_p8, %p5186_p5 }
  0x18   :  { %5196 = shalt.err (!%p5193_p9)
}
  0x19   :  { %s5269_s28 = smov 256   ;;  %s5270_s29 = smov 16  }
  0x1a   :  { %25 = dma.hbm_to_vmem [thread:$0]  %s7929_s0, 16384, %s20_s26, [#allocation3], %s5269_s28, %s5269_s28, %s5270_s29  }
  0x1b   :  { %s5271_s1 = smov [#allocation7]   ;;  %s5272_s8 = smov [#allocation8]  }
  0x1c   :  { %s44_s7 = sshll.u32 %s5271_s1, 4  ;;  %s53_s9 = sshll.u32 %s5272_s8, 4  ;;  %s45_s7 = int_to_ptr.vmem [resolvable:$true] %s44_s7  ;;  %s54_s9 = int_to_ptr.vmem [resolvable:$true] %s53_s9 }
  0x1d   :  { %s5205_s10 = scalar_lea.vmem %s45_s7, 128  ;;  %p5210_p11 = scmp.lt.s32.totalorder %s45_s7, %s45_s7 }
  0x1e   :  { %p5206_p10 = scmp.ne.s32.totalorder %s45_s7, %s5205_s10  ;;  %p5211_p12 = scmp.lt.s32.totalorder %s5205_s10, %s5205_s10 }
  0x20   :  { %p5212_p13 = por %p5211_p12, %p5210_p11 }
  0x22   :  { %p5213_p0 = pnand %p5212_p13, %p5206_p10 }
  0x24   :  { %5216 = shalt.err (!%p5213_p0)
}
  0x25   :  { %47 = dma.hbm_to_vmem [thread:$0]  %s7931_s2, 128, %s45_s7, [#allocation6]  }
  0x26   :  { %s5225_s13 = scalar_lea.vmem %s54_s9, 32768  ;;  %p5230_p2 = scmp.lt.s32.totalorder %s54_s9, %s54_s9 }
  0x27   :  { %p5226_p1 = scmp.ne.s32.totalorder %s54_s9, %s5225_s13  ;;  %p5231_p3 = scmp.lt.s32.totalorder %s5225_s13, %s5225_s13 }
  0x29   :  { %p5232_p4 = por %p5231_p3, %p5230_p2 }
  0x2b   :  { %p5233_p5 = pnand %p5232_p4, %p5226_p1 }
  0x2d   :  { %5236 = shalt.err (!%p5233_p5)
}
  0x2e   :  { %59 = dma.hbm_to_vmem [thread:$0]  %s7932_s3, 32768, %s54_s9, [#allocation9], %s5269_s28, %s5269_s28, %s5270_s29  }
  0x2f   :  { %5257 = dma.done.wait [#allocation3], 16384  }
  0x30   :  { %5258 = vsyncadd [#allocation3], 4294950912 }
  0x31   :  { %5259 = dma.done.wait [#allocation6], 32896  }
  0x32   :  { %5260 = vsyncadd [#allocation6], 4294934400 }
  0x33   :  { %5261 = dma.done.wait [#allocation9], 32768  }
  0x34   :  { %5262 = vsyncadd [#allocation9], 4294934528  ;;  %v323_v0 = vld [vmem:[#allocation5 + $0x3c8] sm:$0xff]  ;;  %v325_v1 = vld [vmem:[#allocation5 + $0x3d8] sm:$0xff] }
  0x35   :  { %v322_v2 = vld [vmem:[#allocation5 + $0x3c0] sm:$0xff]  ;;  %500 = vmatprep.subr.mxu0 %v323_v0  ;;  %949 = vmatprep.subr.mxu1 %v325_v1  ;;  %v324_v3 = vld [vmem:[#allocation5 + $0x3d0] sm:$0xff]  ;;  %v315_v4 = vld [vmem:[#allocation5 + $0x388] sm:$0xff] }
  0x36   :  { %v317_v5 = vld [vmem:[#allocation5 + $0x398] sm:$0xff]  ;;  %501 = vmatpush1.msra.mxu0 %v322_v2  ;;  %950 = vmatpush1.msra.mxu1 %v324_v3  ;;  %v314_v6 = vld [vmem:[#allocation5 + $0x380] sm:$0xff]  ;;  %v316_v7 = vld [vmem:[#allocation5 + $0x390] sm:$0xff] }
  0x37   :  { %v307_v8 = vld [vmem:[#allocation5 + $0x348] sm:$0xff]  ;;  %502 = vmatprep.subr.mxu0 %v315_v4  ;;  %951 = vmatprep.subr.mxu1 %v317_v5  ;;  %v309_v9 = vld [vmem:[#allocation5 + $0x358] sm:$0xff]  ;;  %v306_v10 = vld [vmem:[#allocation5 + $0x340] sm:$0xff] }
  0x38   :  { %v308_v11 = vld [vmem:[#allocation5 + $0x350] sm:$0xff]  ;;  %503 = vmatpush1.msra.mxu0 %v314_v6  ;;  %952 = vmatpush1.msra.mxu1 %v316_v7  ;;  %v299_v12 = vld [vmem:[#allocation5 + $0x308] sm:$0xff]  ;;  %v301_v13 = vld [vmem:[#allocation5 + $0x318] sm:$0xff] }
  0x39   :  { %504 = vmatprep.subr.mxu0 %v307_v8  ;;  %953 = vmatprep.subr.mxu1 %v309_v9  ;;  %v298_v14 = vld [vmem:[#allocation5 + $0x300] sm:$0xff]  ;;  %v300_v15 = vld [vmem:[#allocation5 + $0x310] sm:$0xff]  ;;  %v291_v16 = vld [vmem:[#allocation5 + $0x2c8] sm:$0xff] }
  0x3a   :  { %505 = vmatpush1.msra.mxu0 %v306_v10  ;;  %954 = vmatpush1.msra.mxu1 %v308_v11  ;;  %v293_v17 = vld [vmem:[#allocation5 + $0x2d8] sm:$0xff]  ;;  %v290_v18 = vld [vmem:[#allocation5 + $0x2c0] sm:$0xff]  ;;  %v292_v19 = vld [vmem:[#allocation5 + $0x2d0] sm:$0xff] }
  0x3b   :  { %506 = vmatprep.subr.mxu0 %v299_v12  ;;  %955 = vmatprep.subr.mxu1 %v301_v13  ;;  %v283_v20 = vld [vmem:[#allocation5 + $0x288] sm:$0xff]  ;;  %v285_v21 = vld [vmem:[#allocation5 + $0x298] sm:$0xff]  ;;  %v282_v22 = vld [vmem:[#allocation5 + $0x280] sm:$0xff] }
  0x3c   :  { %507 = vmatpush1.msra.mxu0 %v298_v14  ;;  %956 = vmatpush1.msra.mxu1 %v300_v15  ;;  %v284_v23 = vld [vmem:[#allocation5 + $0x290] sm:$0xff]  ;;  %v275_v24 = vld [vmem:[#allocation5 + $0x248] sm:$0xff]  ;;  %v277_v25 = vld [vmem:[#allocation5 + $0x258] sm:$0xff] }
  0x3d   :  { %508 = vmatprep.subr.mxu0 %v291_v16  ;;  %957 = vmatprep.subr.mxu1 %v293_v17  ;;  %v274_v26 = vld [vmem:[#allocation5 + $0x240] sm:$0xff]  ;;  %v276_v27 = vld [vmem:[#allocation5 + $0x250] sm:$0xff]  ;;  %v267_v28 = vld [vmem:[#allocation5 + $0x208] sm:$0xff] }
  0x3e   :  { %509 = vmatpush1.msra.mxu0 %v290_v18  ;;  %958 = vmatpush1.msra.mxu1 %v292_v19  ;;  %v269_v29 = vld [vmem:[#allocation5 + $0x218] sm:$0xff]  ;;  %v266_v30 = vld [vmem:[#allocation5 + $0x200] sm:$0xff]  ;;  %v268_v31 = vld [vmem:[#allocation5 + $0x210] sm:$0xff] }
  0x3f   :  { %510 = vmatprep.subr.mxu0 %v283_v20  ;;  %959 = vmatprep.subr.mxu1 %v285_v21  ;;  %v259_v32 = vld [vmem:[#allocation5 + $0x1c8] sm:$0xff]  ;;  %v261_v33 = vld [vmem:[#allocation5 + $0x1d8] sm:$0xff]  ;;  %v258_v34 = vld [vmem:[#allocation5 + $0x1c0] sm:$0xff] }
  0x40   :  { %511 = vmatpush1.msra.mxu0 %v282_v22  ;;  %960 = vmatpush1.msra.mxu1 %v284_v23  ;;  %v260_v35 = vld [vmem:[#allocation5 + $0x1d0] sm:$0xff]  ;;  %v251_v36 = vld [vmem:[#allocation5 + $0x188] sm:$0xff]  ;;  %v253_v37 = vld [vmem:[#allocation5 + $0x198] sm:$0xff] }
  0x41   :  { %512 = vmatprep.subr.mxu0 %v275_v24  ;;  %961 = vmatprep.subr.mxu1 %v277_v25  ;;  %v250_v38 = vld [vmem:[#allocation5 + $0x180] sm:$0xff]  ;;  %v252_v39 = vld [vmem:[#allocation5 + $0x190] sm:$0xff]  ;;  %v243_v40 = vld [vmem:[#allocation5 + $0x148] sm:$0xff] }
  0x42   :  { %513 = vmatpush1.msra.mxu0 %v274_v26  ;;  %962 = vmatpush1.msra.mxu1 %v276_v27  ;;  %v245_v41 = vld [vmem:[#allocation5 + $0x158] sm:$0xff]  ;;  %v242_v42 = vld [vmem:[#allocation5 + $0x140] sm:$0xff]  ;;  %v244_v43 = vld [vmem:[#allocation5 + $0x150] sm:$0xff] }
  0x43   :  { %514 = vmatprep.subr.mxu0 %v267_v28  ;;  %963 = vmatprep.subr.mxu1 %v269_v29  ;;  %v235_v44 = vld [vmem:[#allocation5 + $0x108] sm:$0xff]  ;;  %v237_v45 = vld [vmem:[#allocation5 + $0x118] sm:$0xff]  ;;  %v234_v46 = vld [vmem:[#allocation5 + $0x100] sm:$0xff] }
  0x44   :  { %515 = vmatpush1.msra.mxu0 %v266_v30  ;;  %964 = vmatpush1.msra.mxu1 %v268_v31  ;;  %v236_v47 = vld [vmem:[#allocation5 + $0x110] sm:$0xff]  ;;  %v227_v48 = vld [vmem:[#allocation5 + $0xc8] sm:$0xff]  ;;  %v229_v49 = vld [vmem:[#allocation5 + $0xd8] sm:$0xff] }
  0x45   :  { %516 = vmatprep.subr.mxu0 %v259_v32  ;;  %965 = vmatprep.subr.mxu1 %v261_v33  ;;  %v226_v50 = vld [vmem:[#allocation5 + $0xc0] sm:$0xff]  ;;  %v228_v51 = vld [vmem:[#allocation5 + $0xd0] sm:$0xff]  ;;  %v219_v52 = vld [vmem:[#allocation5 + $0x88] sm:$0xff] }
  0x46   :  { %517 = vmatpush1.msra.mxu0 %v258_v34  ;;  %966 = vmatpush1.msra.mxu1 %v260_v35  ;;  %v221_v53 = vld [vmem:[#allocation5 + $0x98] sm:$0xff]  ;;  %v218_v54 = vld [vmem:[#allocation5 + $0x80] sm:$0xff]  ;;  %v220_v55 = vld [vmem:[#allocation5 + $0x90] sm:$0xff] }
  0x47   :  { %518 = vmatprep.subr.mxu0 %v251_v36  ;;  %967 = vmatprep.subr.mxu1 %v253_v37  ;;  %v211_v56 = vld [vmem:[#allocation5 + $0x48] sm:$0xff]  ;;  %v213_v57 = vld [vmem:[#allocation5 + $0x58] sm:$0xff]  ;;  %v210_v58 = vld [vmem:[#allocation5 + $0x40] sm:$0xff] }
  0x48   :  { %519 = vmatpush1.msra.mxu0 %v250_v38  ;;  %968 = vmatpush1.msra.mxu1 %v252_v39  ;;  %v212_v59 = vld [vmem:[#allocation5 + $0x50] sm:$0xff]  ;;  %v203_v60 = vld [vmem:[#allocation5 + $0x8] sm:$0xff]  ;;  %v205_v61 = vld [vmem:[#allocation5 + $0x18] sm:$0xff] }
  0x49   :  { %520 = vmatprep.subr.mxu0 %v243_v40  ;;  %969 = vmatprep.subr.mxu1 %v245_v41  ;;  %v202_v62 = vld [vmem:[#allocation5] sm:$0xff]  ;;  %v204_v63 = vld [vmem:[#allocation5 + $0x10] sm:$0xff]  ;;  %v451_v0 = vld [vmem:[#allocation5 + $0x7c8] sm:$0xff] }
  0x4a   :  { %521 = vmatpush1.msra.mxu0 %v242_v42  ;;  %970 = vmatpush1.msra.mxu1 %v244_v43  ;;  %v453_v1 = vld [vmem:[#allocation5 + $0x7d8] sm:$0xff]  ;;  %v450_v2 = vld [vmem:[#allocation5 + $0x7c0] sm:$0xff]  ;;  %v452_v3 = vld [vmem:[#allocation5 + $0x7d0] sm:$0xff] }
  0x4b   :  { %522 = vmatprep.subr.mxu0 %v235_v44  ;;  %971 = vmatprep.subr.mxu1 %v237_v45  ;;  %v443_v4 = vld [vmem:[#allocation5 + $0x788] sm:$0xff]  ;;  %v445_v5 = vld [vmem:[#allocation5 + $0x798] sm:$0xff]  ;;  %v442_v6 = vld [vmem:[#allocation5 + $0x780] sm:$0xff] }
  0x4c   :  { %523 = vmatpush1.msra.mxu0 %v234_v46  ;;  %972 = vmatpush1.msra.mxu1 %v236_v47  ;;  %v444_v7 = vld [vmem:[#allocation5 + $0x790] sm:$0xff]  ;;  %v435_v8 = vld [vmem:[#allocation5 + $0x748] sm:$0xff]  ;;  %v437_v9 = vld [vmem:[#allocation5 + $0x758] sm:$0xff] }
  0x4d   :  { %524 = vmatprep.subr.mxu0 %v227_v48  ;;  %973 = vmatprep.subr.mxu1 %v229_v49  ;;  %v434_v10 = vld [vmem:[#allocation5 + $0x740] sm:$0xff]  ;;  %v436_v11 = vld [vmem:[#allocation5 + $0x750] sm:$0xff]  ;;  %v427_v12 = vld [vmem:[#allocation5 + $0x708] sm:$0xff] }
  0x4e   :  { %525 = vmatpush1.msra.mxu0 %v226_v50  ;;  %974 = vmatpush1.msra.mxu1 %v228_v51  ;;  %v429_v13 = vld [vmem:[#allocation5 + $0x718] sm:$0xff]  ;;  %v426_v14 = vld [vmem:[#allocation5 + $0x700] sm:$0xff]  ;;  %v428_v15 = vld [vmem:[#allocation5 + $0x710] sm:$0xff] }
  0x4f   :  { %526 = vmatprep.subr.mxu0 %v219_v52  ;;  %975 = vmatprep.subr.mxu1 %v221_v53  ;;  %v419_v16 = vld [vmem:[#allocation5 + $0x6c8] sm:$0xff]  ;;  %v421_v17 = vld [vmem:[#allocation5 + $0x6d8] sm:$0xff]  ;;  %v418_v18 = vld [vmem:[#allocation5 + $0x6c0] sm:$0xff] }
  0x50   :  { %527 = vmatpush1.msra.mxu0 %v218_v54  ;;  %976 = vmatpush1.msra.mxu1 %v220_v55  ;;  %v420_v19 = vld [vmem:[#allocation5 + $0x6d0] sm:$0xff]  ;;  %v411_v20 = vld [vmem:[#allocation5 + $0x688] sm:$0xff]  ;;  %v413_v21 = vld [vmem:[#allocation5 + $0x698] sm:$0xff] }
  0x51   :  { %528 = vmatprep.subr.mxu0 %v211_v56  ;;  %977 = vmatprep.subr.mxu1 %v213_v57  ;;  %v410_v22 = vld [vmem:[#allocation5 + $0x680] sm:$0xff]  ;;  %v412_v23 = vld [vmem:[#allocation5 + $0x690] sm:$0xff]  ;;  %v403_v24 = vld [vmem:[#allocation5 + $0x648] sm:$0xff] }
  0x52   :  { %529 = vmatpush1.msra.mxu0 %v210_v58  ;;  %978 = vmatpush1.msra.mxu1 %v212_v59  ;;  %v405_v25 = vld [vmem:[#allocation5 + $0x658] sm:$0xff]  ;;  %v402_v26 = vld [vmem:[#allocation5 + $0x640] sm:$0xff]  ;;  %v404_v27 = vld [vmem:[#allocation5 + $0x650] sm:$0xff] }
  0x53   :  { %530 = vmatprep.subr.mxu0 %v203_v60  ;;  %979 = vmatprep.subr.mxu1 %v205_v61  ;;  %v395_v28 = vld [vmem:[#allocation5 + $0x608] sm:$0xff]  ;;  %v397_v29 = vld [vmem:[#allocation5 + $0x618] sm:$0xff]  ;;  %v394_v30 = vld [vmem:[#allocation5 + $0x600] sm:$0xff] }
  0x54   :  { %531 = vmatpush1.msra.mxu0 %v202_v62  ;;  %980 = vmatpush1.msra.mxu1 %v204_v63  ;;  %v396_v31 = vld [vmem:[#allocation5 + $0x610] sm:$0xff]  ;;  %v387_v32 = vld [vmem:[#allocation5 + $0x5c8] sm:$0xff]  ;;  %v389_v33 = vld [vmem:[#allocation5 + $0x5d8] sm:$0xff] }
  0x55   :  { %532 = vmatprep.subr.mxu0 %v451_v0  ;;  %981 = vmatprep.subr.mxu1 %v453_v1  ;;  %v386_v34 = vld [vmem:[#allocation5 + $0x5c0] sm:$0xff]  ;;  %v388_v35 = vld [vmem:[#allocation5 + $0x5d0] sm:$0xff]  ;;  %v379_v36 = vld [vmem:[#allocation5 + $0x588] sm:$0xff] }
  0x56   :  { %533 = vmatpush2.msra.mxu0 %v450_v2  ;;  %982 = vmatpush2.msra.mxu1 %v452_v3  ;;  %v381_v37 = vld [vmem:[#allocation5 + $0x598] sm:$0xff]  ;;  %v378_v38 = vld [vmem:[#allocation5 + $0x580] sm:$0xff]  ;;  %v380_v39 = vld [vmem:[#allocation5 + $0x590] sm:$0xff] }
  0x57   :  { %534 = vmatprep.subr.mxu0 %v443_v4  ;;  %983 = vmatprep.subr.mxu1 %v445_v5  ;;  %v371_v40 = vld [vmem:[#allocation5 + $0x548] sm:$0xff]  ;;  %v373_v41 = vld [vmem:[#allocation5 + $0x558] sm:$0xff]  ;;  %v370_v42 = vld [vmem:[#allocation5 + $0x540] sm:$0xff] }
  0x58   :  { %535 = vmatpush2.msra.mxu0 %v442_v6  ;;  %984 = vmatpush2.msra.mxu1 %v444_v7  ;;  %v372_v43 = vld [vmem:[#allocation5 + $0x550] sm:$0xff]  ;;  %v363_v44 = vld [vmem:[#allocation5 + $0x508] sm:$0xff]  ;;  %v365_v45 = vld [vmem:[#allocation5 + $0x518] sm:$0xff] }
  0x59   :  { %536 = vmatprep.subr.mxu0 %v435_v8  ;;  %985 = vmatprep.subr.mxu1 %v437_v9  ;;  %v362_v46 = vld [vmem:[#allocation5 + $0x500] sm:$0xff]  ;;  %v364_v47 = vld [vmem:[#allocation5 + $0x510] sm:$0xff]  ;;  %v355_v48 = vld [vmem:[#allocation5 + $0x4c8] sm:$0xff] }
  0x5a   :  { %537 = vmatpush2.msra.mxu0 %v434_v10  ;;  %986 = vmatpush2.msra.mxu1 %v436_v11  ;;  %v357_v49 = vld [vmem:[#allocation5 + $0x4d8] sm:$0xff]  ;;  %v354_v50 = vld [vmem:[#allocation5 + $0x4c0] sm:$0xff]  ;;  %v356_v51 = vld [vmem:[#allocation5 + $0x4d0] sm:$0xff] }
  0x5b   :  { %538 = vmatprep.subr.mxu0 %v427_v12  ;;  %987 = vmatprep.subr.mxu1 %v429_v13  ;;  %v347_v52 = vld [vmem:[#allocation5 + $0x488] sm:$0xff]  ;;  %v349_v53 = vld [vmem:[#allocation5 + $0x498] sm:$0xff]  ;;  %v346_v54 = vld [vmem:[#allocation5 + $0x480] sm:$0xff] }
  0x5c   :  { %539 = vmatpush2.msra.mxu0 %v426_v14  ;;  %988 = vmatpush2.msra.mxu1 %v428_v15  ;;  %v348_v55 = vld [vmem:[#allocation5 + $0x490] sm:$0xff]  ;;  %v339_v56 = vld [vmem:[#allocation5 + $0x448] sm:$0xff]  ;;  %v341_v57 = vld [vmem:[#allocation5 + $0x458] sm:$0xff] }
  0x5d   :  { %540 = vmatprep.subr.mxu0 %v419_v16  ;;  %989 = vmatprep.subr.mxu1 %v421_v17  ;;  %v338_v58 = vld [vmem:[#allocation5 + $0x440] sm:$0xff]  ;;  %v340_v59 = vld [vmem:[#allocation5 + $0x450] sm:$0xff]  ;;  %v331_v60 = vld [vmem:[#allocation5 + $0x408] sm:$0xff] }
  0x5e   :  { %541 = vmatpush2.msra.mxu0 %v418_v18  ;;  %990 = vmatpush2.msra.mxu1 %v420_v19  ;;  %v333_v61 = vld [vmem:[#allocation5 + $0x418] sm:$0xff]  ;;  %v330_v62 = vld [vmem:[#allocation5 + $0x400] sm:$0xff]  ;;  %v75_v63 = vld [vmem:[#allocation2 + $0x8] sm:$0xff] }
  0x5f   :  { %542 = vmatprep.subr.mxu0 %v411_v20  ;;  %991 = vmatprep.subr.mxu1 %v413_v21  ;;  %v332_v0 = vld [vmem:[#allocation5 + $0x410] sm:$0xff]  ;;  %v74_v1 = vld [vmem:[#allocation2] sm:$0xff]  ;;  %v327_v2 = vld [vmem:[#allocation5 + $0x3e8] sm:$0xff] }
  0x60   :  { %543 = vmatpush2.msra.mxu0 %v410_v22  ;;  %992 = vmatpush2.msra.mxu1 %v412_v23  ;;  %v329_v3 = vld [vmem:[#allocation5 + $0x3f8] sm:$0xff]  ;;  %v326_v4 = vld [vmem:[#allocation5 + $0x3e0] sm:$0xff]  ;;  %v328_v6 = vld [vmem:[#allocation5 + $0x3f0] sm:$0xff] }
  0x61   :  { %544 = vmatprep.subr.mxu0 %v403_v24  ;;  %993 = vmatprep.subr.mxu1 %v405_v25  ;;  %v77_v5 = vld [vmem:[#allocation2 + $0x18] sm:$0xff]  ;;  %v76_v7 = vld [vmem:[#allocation2 + $0x10] sm:$0xff]  ;;  %v79_v8 = vld [vmem:[#allocation2 + $0x28] sm:$0xff] }
  0x62   :  { %545 = vmatpush2.msra.mxu0 %v402_v26  ;;  %994 = vmatpush2.msra.mxu1 %v404_v27  ;;  %v319_v9 = vld [vmem:[#allocation5 + $0x3a8] sm:$0xff]  ;;  %v321_v10 = vld [vmem:[#allocation5 + $0x3b8] sm:$0xff]  ;;  %v318_v11 = vld [vmem:[#allocation5 + $0x3a0] sm:$0xff] }
  0x63   :  { %546 = vmatprep.subr.mxu0 %v395_v28  ;;  %995 = vmatprep.subr.mxu1 %v397_v29  ;;  %v320_v12 = vld [vmem:[#allocation5 + $0x3b0] sm:$0xff]  ;;  %v78_v13 = vld [vmem:[#allocation2 + $0x20] sm:$0xff]  ;;  %v81_v14 = vld [vmem:[#allocation2 + $0x38] sm:$0xff] }
  0x64   :  { %547 = vmatpush2.msra.mxu0 %v394_v30  ;;  %996 = vmatpush2.msra.mxu1 %v396_v31  ;;  %v311_v15 = vld [vmem:[#allocation5 + $0x368] sm:$0xff]  ;;  %v313_v16 = vld [vmem:[#allocation5 + $0x378] sm:$0xff]  ;;  %v310_v17 = vld [vmem:[#allocation5 + $0x360] sm:$0xff] }
  0x65   :  { %548 = vmatprep.subr.mxu0 %v387_v32  ;;  %997 = vmatprep.subr.mxu1 %v389_v33  ;;  %v312_v18 = vld [vmem:[#allocation5 + $0x370] sm:$0xff]  ;;  %v83_v20 = vld [vmem:[#allocation2 + $0x48] sm:$0xff]  ;;  %v305_v22 = vld [vmem:[#allocation5 + $0x338] sm:$0xff] }
  0x66   :  { %549 = vmatpush2.msra.mxu0 %v386_v34  ;;  %998 = vmatpush2.msra.mxu1 %v388_v35  ;;  %v80_v19 = vld [vmem:[#allocation2 + $0x30] sm:$0xff]  ;;  %v303_v21 = vld [vmem:[#allocation5 + $0x328] sm:$0xff]  ;;  %v302_v23 = vld [vmem:[#allocation5 + $0x320] sm:$0xff] }
  0x67   :  { %550 = vmatprep.subr.mxu0 %v379_v36  ;;  %999 = vmatprep.subr.mxu1 %v381_v37  ;;  %v304_v24 = vld [vmem:[#allocation5 + $0x330] sm:$0xff]  ;;  %v82_v25 = vld [vmem:[#allocation2 + $0x40] sm:$0xff]  ;;  %v85_v26 = vld [vmem:[#allocation2 + $0x58] sm:$0xff] }
  0x68   :  { %551 = vmatpush2.msra.mxu0 %v378_v38  ;;  %1000 = vmatpush2.msra.mxu1 %v380_v39  ;;  %v295_v27 = vld [vmem:[#allocation5 + $0x2e8] sm:$0xff]  ;;  %v297_v28 = vld [vmem:[#allocation5 + $0x2f8] sm:$0xff]  ;;  %v294_v29 = vld [vmem:[#allocation5 + $0x2e0] sm:$0xff] }
  0x69   :  { %552 = vmatprep.subr.mxu0 %v371_v40  ;;  %1001 = vmatprep.subr.mxu1 %v373_v41  ;;  %v296_v30 = vld [vmem:[#allocation5 + $0x2f0] sm:$0xff]  ;;  %v87_v32 = vld [vmem:[#allocation2 + $0x68] sm:$0xff]  ;;  %v289_v34 = vld [vmem:[#allocation5 + $0x2b8] sm:$0xff] }
  0x6a   :  { %553 = vmatpush2.msra.mxu0 %v370_v42  ;;  %1002 = vmatpush2.msra.mxu1 %v372_v43  ;;  %v84_v31 = vld [vmem:[#allocation2 + $0x50] sm:$0xff]  ;;  %v287_v33 = vld [vmem:[#allocation5 + $0x2a8] sm:$0xff]  ;;  %v286_v35 = vld [vmem:[#allocation5 + $0x2a0] sm:$0xff] }
  0x6b   :  { %554 = vmatprep.subr.mxu0 %v363_v44  ;;  %1003 = vmatprep.subr.mxu1 %v365_v45  ;;  %v288_v36 = vld [vmem:[#allocation5 + $0x2b0] sm:$0xff]  ;;  %v86_v37 = vld [vmem:[#allocation2 + $0x60] sm:$0xff]  ;;  %v89_v38 = vld [vmem:[#allocation2 + $0x78] sm:$0xff] }
  0x6c   :  { %555 = vmatpush2.msra.mxu0 %v362_v46  ;;  %1004 = vmatpush2.msra.mxu1 %v364_v47  ;;  %v279_v39 = vld [vmem:[#allocation5 + $0x268] sm:$0xff]  ;;  %v281_v40 = vld [vmem:[#allocation5 + $0x278] sm:$0xff]  ;;  %v278_v41 = vld [vmem:[#allocation5 + $0x260] sm:$0xff] }
  0x6d   :  { %556 = vmatprep.subr.mxu0 %v355_v48  ;;  %1005 = vmatprep.subr.mxu1 %v357_v49  ;;  %v280_v42 = vld [vmem:[#allocation5 + $0x270] sm:$0xff]  ;;  %v91_v44 = vld [vmem:[#allocation2 + $0x88] sm:$0xff]  ;;  %v273_v46 = vld [vmem:[#allocation5 + $0x238] sm:$0xff] }
  0x6e   :  { %557 = vmatpush2.msra.mxu0 %v354_v50  ;;  %1006 = vmatpush2.msra.mxu1 %v356_v51  ;;  %v88_v43 = vld [vmem:[#allocation2 + $0x70] sm:$0xff]  ;;  %v271_v45 = vld [vmem:[#allocation5 + $0x228] sm:$0xff]  ;;  %v270_v47 = vld [vmem:[#allocation5 + $0x220] sm:$0xff] }
  0x6f   :  { %558 = vmatprep.subr.mxu0 %v347_v52  ;;  %1007 = vmatprep.subr.mxu1 %v349_v53  ;;  %v272_v48 = vld [vmem:[#allocation5 + $0x230] sm:$0xff]  ;;  %v90_v49 = vld [vmem:[#allocation2 + $0x80] sm:$0xff]  ;;  %v93_v50 = vld [vmem:[#allocation2 + $0x98] sm:$0xff] }
  0x70   :  { %559 = vmatpush2.msra.mxu0 %v346_v54  ;;  %1008 = vmatpush2.msra.mxu1 %v348_v55  ;;  %v263_v51 = vld [vmem:[#allocation5 + $0x1e8] sm:$0xff]  ;;  %v265_v52 = vld [vmem:[#allocation5 + $0x1f8] sm:$0xff]  ;;  %v262_v53 = vld [vmem:[#allocation5 + $0x1e0] sm:$0xff] }
  0x71   :  { %560 = vmatprep.subr.mxu0 %v339_v56  ;;  %1009 = vmatprep.subr.mxu1 %v341_v57  ;;  %v264_v54 = vld [vmem:[#allocation5 + $0x1f0] sm:$0xff]  ;;  %v95_v56 = vld [vmem:[#allocation2 + $0xa8] sm:$0xff] }
  0x72   :  { %561 = vmatpush2.msra.mxu0 %v338_v58  ;;  %1010 = vmatpush2.msra.mxu1 %v340_v59  ;;  %v92_v55 = vld [vmem:[#allocation2 + $0x90] sm:$0xff]  ;;  %v255_v57 = vld [vmem:[#allocation5 + $0x1a8] sm:$0xff]  ;;  %v257_v58 = vld [vmem:[#allocation5 + $0x1b8] sm:$0xff] }
  0x73   :  { %562 = vmatprep.subr.mxu0 %v331_v60  ;;  %1011 = vmatprep.subr.mxu1 %v333_v61  ;;  %v254_v59 = vld [vmem:[#allocation5 + $0x1a0] sm:$0xff]  ;;  %v256_v60 = vld [vmem:[#allocation5 + $0x1b0] sm:$0xff] }
  0x74   :  { %563 = vmatpush2.msra.mxu0 %v330_v62  ;;  %564 = vmatprep.mubr.f32.mxu0 %v75_v63  ;;  %v94_v61 = vld [vmem:[#allocation2 + $0xa0] sm:$0xff]  ;;  %v97_v62 = vld [vmem:[#allocation2 + $0xb8] sm:$0xff] }
  0x75   :  { %1012 = vmatpush2.msra.mxu1 %v332_v0  ;;  %1013 = vmatprep.mubr.f32.mxu1 %v75_v63  ;;  %v247_v63 = vld [vmem:[#allocation5 + $0x168] sm:$0xff]  ;;  %v249_v0 = vld [vmem:[#allocation5 + $0x178] sm:$0xff] }
  0x76   :  { %565 = vmatmul.mubr.f32.vlgmr.msra.gmra.mxu0 %v74_v1  ;;  %1014 = vmatmul.mubr.f32.vlgmr.msra.gmra.mxu1 %v74_v1  ;;  %v246_v1 = vld [vmem:[#allocation5 + $0x160] sm:$0xff] }
  0x77   :  { %1398 = vmatprep.subr.mxu0 %v327_v2  ;;  %1847 = vmatprep.subr.mxu1 %v329_v3  ;;  %v248_v2 = vld [vmem:[#allocation5 + $0x170] sm:$0xff] }
  0x78   :  { %1399 = vmatpush1.msra.mxu0 %v326_v4  ;;  %570 = vmatprep.mubr.f32.mxu0 %v77_v5  ;;  %v96_v3 = vld [vmem:[#allocation2 + $0xb0] sm:$0xff]  ;;  %v99_v4 = vld [vmem:[#allocation2 + $0xc8] sm:$0xff] }
  0x79   :  { %1019 = vmatprep.mubr.f32.mxu1 %v77_v5  ;;  %1848 = vmatpush1.msra.mxu1 %v328_v6  ;;  %v239_v5 = vld [vmem:[#allocation5 + $0x128] sm:$0xff]  ;;  %v241_v6 = vld [vmem:[#allocation5 + $0x138] sm:$0xff] }
  0x7a   :  { %571 = vmatmul.mubr.f32.gmra.mxu0 %v76_v7  ;;  %1020 = vmatmul.mubr.f32.gmra.mxu1 %v76_v7  ;;  %v238_v7 = vld [vmem:[#allocation5 + $0x120] sm:$0xff] }
  0x7b   :  { %576 = vmatprep.mubr.f32.mxu0 %v79_v8  ;;  %1025 = vmatprep.mubr.f32.mxu1 %v79_v8  ;;  %v240_v8 = vld [vmem:[#allocation5 + $0x130] sm:$0xff] }
  0x7c   :  { %1400 = vmatprep.subr.mxu0 %v319_v9  ;;  %1849 = vmatprep.subr.mxu1 %v321_v10  ;;  %v98_v9 = vld [vmem:[#allocation2 + $0xc0] sm:$0xff]  ;;  %v101_v10 = vld [vmem:[#allocation2 + $0xd8] sm:$0xff] }
  0x7d   :  { %1401 = vmatpush1.msra.mxu0 %v318_v11  ;;  %1850 = vmatpush1.msra.mxu1 %v320_v12  ;;  %v231_v11 = vld [vmem:[#allocation5 + $0xe8] sm:$0xff]  ;;  %v233_v12 = vld [vmem:[#allocation5 + $0xf8] sm:$0xff] }
  0x7e   :  { %577 = vmatmul.mubr.f32.gmra.mxu0 %v78_v13  ;;  %1026 = vmatmul.mubr.f32.gmra.mxu1 %v78_v13  ;;  %v230_v13 = vld [vmem:[#allocation5 + $0xe0] sm:$0xff] }
  0x7f   :  { %582 = vmatprep.mubr.f32.mxu0 %v81_v14  ;;  %1031 = vmatprep.mubr.f32.mxu1 %v81_v14  ;;  %v232_v14 = vld [vmem:[#allocation5 + $0xf0] sm:$0xff] }
  0x80   :  { %1402 = vmatprep.subr.mxu0 %v311_v15  ;;  %1851 = vmatprep.subr.mxu1 %v313_v16  ;;  %v100_v15 = vld [vmem:[#allocation2 + $0xd0] sm:$0xff]  ;;  %v103_v16 = vld [vmem:[#allocation2 + $0xe8] sm:$0xff] }
  0x81   :  { %1403 = vmatpush1.msra.mxu0 %v310_v17  ;;  %1852 = vmatpush1.msra.mxu1 %v312_v18  ;;  %v223_v17 = vld [vmem:[#allocation5 + $0xa8] sm:$0xff]  ;;  %v225_v18 = vld [vmem:[#allocation5 + $0xb8] sm:$0xff] }
  0x82   :  { %583 = vmatmul.mubr.f32.gmra.mxu0 %v80_v19  ;;  %1032 = vmatmul.mubr.f32.gmra.mxu1 %v80_v19  ;;  %v222_v19 = vld [vmem:[#allocation5 + $0xa0] sm:$0xff] }
  0x83   :  { %588 = vmatprep.mubr.f32.mxu0 %v83_v20  ;;  %1037 = vmatprep.mubr.f32.mxu1 %v83_v20  ;;  %v224_v20 = vld [vmem:[#allocation5 + $0xb0] sm:$0xff] }
  0x84   :  { %1404 = vmatprep.subr.mxu0 %v303_v21  ;;  %1853 = vmatprep.subr.mxu1 %v305_v22  ;;  %v102_v21 = vld [vmem:[#allocation2 + $0xe0] sm:$0xff]  ;;  %v105_v22 = vld [vmem:[#allocation2 + $0xf8] sm:$0xff] }
  0x85   :  { %1405 = vmatpush1.msra.mxu0 %v302_v23  ;;  %1854 = vmatpush1.msra.mxu1 %v304_v24  ;;  %v215_v23 = vld [vmem:[#allocation5 + $0x68] sm:$0xff]  ;;  %v217_v24 = vld [vmem:[#allocation5 + $0x78] sm:$0xff] }
  0x86   :  { %589 = vmatmul.mubr.f32.gmra.mxu0 %v82_v25  ;;  %1038 = vmatmul.mubr.f32.gmra.mxu1 %v82_v25  ;;  %v214_v25 = vld [vmem:[#allocation5 + $0x60] sm:$0xff] }
  0x87   :  { %594 = vmatprep.mubr.f32.mxu0 %v85_v26  ;;  %1043 = vmatprep.mubr.f32.mxu1 %v85_v26  ;;  %v216_v26 = vld [vmem:[#allocation5 + $0x70] sm:$0xff] }
  0x88   :  { %1406 = vmatprep.subr.mxu0 %v295_v27  ;;  %1855 = vmatprep.subr.mxu1 %v297_v28  ;;  %v104_v27 = vld [vmem:[#allocation2 + $0xf0] sm:$0xff]  ;;  %v107_v28 = vld [vmem:[#allocation2 + $0x108] sm:$0xff] }
  0x89   :  { %1407 = vmatpush1.msra.mxu0 %v294_v29  ;;  %1856 = vmatpush1.msra.mxu1 %v296_v30  ;;  %v207_v29 = vld [vmem:[#allocation5 + $0x28] sm:$0xff]  ;;  %v209_v30 = vld [vmem:[#allocation5 + $0x38] sm:$0xff] }
  0x8a   :  { %595 = vmatmul.mubr.f32.gmra.mxu0 %v84_v31  ;;  %1044 = vmatmul.mubr.f32.gmra.mxu1 %v84_v31  ;;  %v206_v31 = vld [vmem:[#allocation5 + $0x20] sm:$0xff] }
  0x8b   :  { %600 = vmatprep.mubr.f32.mxu0 %v87_v32  ;;  %1049 = vmatprep.mubr.f32.mxu1 %v87_v32  ;;  %v208_v32 = vld [vmem:[#allocation5 + $0x30] sm:$0xff] }
  0x8c   :  { %1408 = vmatprep.subr.mxu0 %v287_v33  ;;  %1857 = vmatprep.subr.mxu1 %v289_v34  ;;  %v106_v33 = vld [vmem:[#allocation2 + $0x100] sm:$0xff]  ;;  %v109_v34 = vld [vmem:[#allocation2 + $0x118] sm:$0xff] }
  0x8d   :  { %1409 = vmatpush1.msra.mxu0 %v286_v35  ;;  %1858 = vmatpush1.msra.mxu1 %v288_v36  ;;  %v455_v35 = vld [vmem:[#allocation5 + $0x7e8] sm:$0xff]  ;;  %v457_v36 = vld [vmem:[#allocation5 + $0x7f8] sm:$0xff] }
  0x8e   :  { %601 = vmatmul.mubr.f32.gmra.mxu0 %v86_v37  ;;  %1050 = vmatmul.mubr.f32.gmra.mxu1 %v86_v37  ;;  %v454_v37 = vld [vmem:[#allocation5 + $0x7e0] sm:$0xff] }
  0x8f   :  { %606 = vmatprep.mubr.f32.mxu0 %v89_v38  ;;  %1055 = vmatprep.mubr.f32.mxu1 %v89_v38  ;;  %v456_v38 = vld [vmem:[#allocation5 + $0x7f0] sm:$0xff] }
  0x90   :  { %1410 = vmatprep.subr.mxu0 %v279_v39  ;;  %1859 = vmatprep.subr.mxu1 %v281_v40  ;;  %v108_v39 = vld [vmem:[#allocation2 + $0x110] sm:$0xff]  ;;  %v111_v40 = vld [vmem:[#allocation2 + $0x128] sm:$0xff] }
  0x91   :  { %1411 = vmatpush1.msra.mxu0 %v278_v41  ;;  %1860 = vmatpush1.msra.mxu1 %v280_v42  ;;  %v447_v41 = vld [vmem:[#allocation5 + $0x7a8] sm:$0xff]  ;;  %v449_v42 = vld [vmem:[#allocation5 + $0x7b8] sm:$0xff] }
  0x92   :  { %607 = vmatmul.mubr.f32.gmra.mxu0 %v88_v43  ;;  %1056 = vmatmul.mubr.f32.gmra.mxu1 %v88_v43  ;;  %v446_v43 = vld [vmem:[#allocation5 + $0x7a0] sm:$0xff] }
  0x93   :  { %612 = vmatprep.mubr.f32.mxu0 %v91_v44  ;;  %1061 = vmatprep.mubr.f32.mxu1 %v91_v44  ;;  %v448_v44 = vld [vmem:[#allocation5 + $0x7b0] sm:$0xff] }
  0x94   :  { %1412 = vmatprep.subr.mxu0 %v271_v45  ;;  %1861 = vmatprep.subr.mxu1 %v273_v46  ;;  %v110_v45 = vld [vmem:[#allocation2 + $0x120] sm:$0xff]  ;;  %v113_v46 = vld [vmem:[#allocation2 + $0x138] sm:$0xff] }
  0x95   :  { %1413 = vmatpush1.msra.mxu0 %v270_v47  ;;  %1862 = vmatpush1.msra.mxu1 %v272_v48  ;;  %v439_v47 = vld [vmem:[#allocation5 + $0x768] sm:$0xff]  ;;  %v441_v48 = vld [vmem:[#allocation5 + $0x778] sm:$0xff] }
  0x96   :  { %613 = vmatmul.mubr.f32.gmra.mxu0 %v90_v49  ;;  %1062 = vmatmul.mubr.f32.gmra.mxu1 %v90_v49  ;;  %v438_v49 = vld [vmem:[#allocation5 + $0x760] sm:$0xff] }
  0x97   :  { %618 = vmatprep.mubr.f32.mxu0 %v93_v50  ;;  %1067 = vmatprep.mubr.f32.mxu1 %v93_v50  ;;  %v440_v50 = vld [vmem:[#allocation5 + $0x770] sm:$0xff] }
  0x98   :  { %1414 = vmatprep.subr.mxu0 %v263_v51  ;;  %1863 = vmatprep.subr.mxu1 %v265_v52  ;;  %v112_v51 = vld [vmem:[#allocation2 + $0x130] sm:$0xff]  ;;  %v115_v52 = vld [vmem:[#allocation2 + $0x148] sm:$0xff] }
  0x99   :  { %1415 = vmatpush1.msra.mxu0 %v262_v53  ;;  %1864 = vmatpush1.msra.mxu1 %v264_v54  ;;  %v431_v53 = vld [vmem:[#allocation5 + $0x728] sm:$0xff]  ;;  %v433_v54 = vld [vmem:[#allocation5 + $0x738] sm:$0xff] }
  0x9a   :  { %619 = vmatmul.mubr.f32.gmra.mxu0 %v92_v55  ;;  %1068 = vmatmul.mubr.f32.gmra.mxu1 %v92_v55  ;;  %v430_v55 = vld [vmem:[#allocation5 + $0x720] sm:$0xff] }
  0x9b   :  { %624 = vmatprep.mubr.f32.mxu0 %v95_v56  ;;  %1073 = vmatprep.mubr.f32.mxu1 %v95_v56  ;;  %v432_v56 = vld [vmem:[#allocation5 + $0x730] sm:$0xff] }
  0x9c   :  { %1416 = vmatprep.subr.mxu0 %v255_v57  ;;  %1865 = vmatprep.subr.mxu1 %v257_v58  ;;  %v114_v57 = vld [vmem:[#allocation2 + $0x140] sm:$0xff]  ;;  %v117_v58 = vld [vmem:[#allocation2 + $0x158] sm:$0xff] }
  0x9d   :  { %1417 = vmatpush1.msra.mxu0 %v254_v59  ;;  %1866 = vmatpush1.msra.mxu1 %v256_v60  ;;  %v423_v59 = vld [vmem:[#allocation5 + $0x6e8] sm:$0xff]  ;;  %v425_v60 = vld [vmem:[#allocation5 + $0x6f8] sm:$0xff] }
  0x9e   :  { %625 = vmatmul.mubr.f32.gmra.mxu0 %v94_v61  ;;  %1074 = vmatmul.mubr.f32.gmra.mxu1 %v94_v61  ;;  %v422_v61 = vld [vmem:[#allocation5 + $0x6e0] sm:$0xff] }
  0x9f   :  { %630 = vmatprep.mubr.f32.mxu0 %v97_v62  ;;  %1079 = vmatprep.mubr.f32.mxu1 %v97_v62  ;;  %v424_v62 = vld [vmem:[#allocation5 + $0x6f0] sm:$0xff] }
  0xa0   :  { %1418 = vmatprep.subr.mxu0 %v247_v63  ;;  %1867 = vmatprep.subr.mxu1 %v249_v0  ;;  %v116_v63 = vld [vmem:[#allocation2 + $0x150] sm:$0xff]  ;;  %v119_v0 = vld [vmem:[#allocation2 + $0x168] sm:$0xff] }
  0xa1   :  { %1419 = vmatpush1.msra.mxu0 %v246_v1  ;;  %1868 = vmatpush1.msra.mxu1 %v248_v2  ;;  %v415_v1 = vld [vmem:[#allocation5 + $0x6a8] sm:$0xff]  ;;  %v417_v2 = vld [vmem:[#allocation5 + $0x6b8] sm:$0xff] }
  0xa2   :  { %631 = vmatmul.mubr.f32.gmra.mxu0 %v96_v3  ;;  %1080 = vmatmul.mubr.f32.gmra.mxu1 %v96_v3  ;;  %v414_v3 = vld [vmem:[#allocation5 + $0x6a0] sm:$0xff] }
  0xa3   :  { %636 = vmatprep.mubr.f32.mxu0 %v99_v4  ;;  %1085 = vmatprep.mubr.f32.mxu1 %v99_v4  ;;  %v416_v4 = vld [vmem:[#allocation5 + $0x6b0] sm:$0xff] }
  0xa4   :  { %1420 = vmatprep.subr.mxu0 %v239_v5  ;;  %1869 = vmatprep.subr.mxu1 %v241_v6  ;;  %v118_v5 = vld [vmem:[#allocation2 + $0x160] sm:$0xff]  ;;  %v121_v6 = vld [vmem:[#allocation2 + $0x178] sm:$0xff] }
  0xa5   :  { %1421 = vmatpush1.msra.mxu0 %v238_v7  ;;  %1870 = vmatpush1.msra.mxu1 %v240_v8  ;;  %v407_v7 = vld [vmem:[#allocation5 + $0x668] sm:$0xff]  ;;  %v409_v8 = vld [vmem:[#allocation5 + $0x678] sm:$0xff] }
  0xa6   :  { %637 = vmatmul.mubr.f32.gmra.mxu0 %v98_v9  ;;  %1086 = vmatmul.mubr.f32.gmra.mxu1 %v98_v9  ;;  %v406_v9 = vld [vmem:[#allocation5 + $0x660] sm:$0xff] }
  0xa7   :  { %642 = vmatprep.mubr.f32.mxu0 %v101_v10  ;;  %1091 = vmatprep.mubr.f32.mxu1 %v101_v10  ;;  %v408_v10 = vld [vmem:[#allocation5 + $0x670] sm:$0xff] }
  0xa8   :  { %1422 = vmatprep.subr.mxu0 %v231_v11  ;;  %1871 = vmatprep.subr.mxu1 %v233_v12  ;;  %v120_v11 = vld [vmem:[#allocation2 + $0x170] sm:$0xff]  ;;  %v123_v12 = vld [vmem:[#allocation2 + $0x188] sm:$0xff] }
  0xa9   :  { %1423 = vmatpush1.msra.mxu0 %v230_v13  ;;  %1872 = vmatpush1.msra.mxu1 %v232_v14  ;;  %v399_v13 = vld [vmem:[#allocation5 + $0x628] sm:$0xff]  ;;  %v401_v14 = vld [vmem:[#allocation5 + $0x638] sm:$0xff] }
  0xaa   :  { %643 = vmatmul.mubr.f32.gmra.mxu0 %v100_v15  ;;  %1092 = vmatmul.mubr.f32.gmra.mxu1 %v100_v15  ;;  %v398_v15 = vld [vmem:[#allocation5 + $0x620] sm:$0xff] }
  0xab   :  { %648 = vmatprep.mubr.f32.mxu0 %v103_v16  ;;  %1097 = vmatprep.mubr.f32.mxu1 %v103_v16  ;;  %v400_v16 = vld [vmem:[#allocation5 + $0x630] sm:$0xff] }
  0xac   :  { %1424 = vmatprep.subr.mxu0 %v223_v17  ;;  %1873 = vmatprep.subr.mxu1 %v225_v18  ;;  %v122_v17 = vld [vmem:[#allocation2 + $0x180] sm:$0xff]  ;;  %v125_v18 = vld [vmem:[#allocation2 + $0x198] sm:$0xff] }
  0xad   :  { %1425 = vmatpush1.msra.mxu0 %v222_v19  ;;  %1874 = vmatpush1.msra.mxu1 %v224_v20  ;;  %v391_v19 = vld [vmem:[#allocation5 + $0x5e8] sm:$0xff]  ;;  %v393_v20 = vld [vmem:[#allocation5 + $0x5f8] sm:$0xff] }
  0xae   :  { %649 = vmatmul.mubr.f32.gmra.mxu0 %v102_v21  ;;  %1098 = vmatmul.mubr.f32.gmra.mxu1 %v102_v21  ;;  %v390_v21 = vld [vmem:[#allocation5 + $0x5e0] sm:$0xff] }
  0xaf   :  { %654 = vmatprep.mubr.f32.mxu0 %v105_v22  ;;  %1103 = vmatprep.mubr.f32.mxu1 %v105_v22  ;;  %v392_v22 = vld [vmem:[#allocation5 + $0x5f0] sm:$0xff] }
  0xb0   :  { %1426 = vmatprep.subr.mxu0 %v215_v23  ;;  %1875 = vmatprep.subr.mxu1 %v217_v24  ;;  %v124_v23 = vld [vmem:[#allocation2 + $0x190] sm:$0xff]  ;;  %v127_v24 = vld [vmem:[#allocation2 + $0x1a8] sm:$0xff] }
  0xb1   :  { %1427 = vmatpush1.msra.mxu0 %v214_v25  ;;  %1876 = vmatpush1.msra.mxu1 %v216_v26  ;;  %v383_v25 = vld [vmem:[#allocation5 + $0x5a8] sm:$0xff]  ;;  %v385_v26 = vld [vmem:[#allocation5 + $0x5b8] sm:$0xff] }
  0xb2   :  { %655 = vmatmul.mubr.f32.gmra.mxu0 %v104_v27  ;;  %1104 = vmatmul.mubr.f32.gmra.mxu1 %v104_v27  ;;  %v382_v27 = vld [vmem:[#allocation5 + $0x5a0] sm:$0xff] }
  0xb3   :  { %660 = vmatprep.mubr.f32.mxu0 %v107_v28  ;;  %1109 = vmatprep.mubr.f32.mxu1 %v107_v28  ;;  %v384_v28 = vld [vmem:[#allocation5 + $0x5b0] sm:$0xff] }
  0xb4   :  { %1428 = vmatprep.subr.mxu0 %v207_v29  ;;  %1877 = vmatprep.subr.mxu1 %v209_v30  ;;  %v126_v29 = vld [vmem:[#allocation2 + $0x1a0] sm:$0xff]  ;;  %v129_v30 = vld [vmem:[#allocation2 + $0x1b8] sm:$0xff] }
  0xb5   :  { %1429 = vmatpush1.msra.mxu0 %v206_v31  ;;  %1878 = vmatpush1.msra.mxu1 %v208_v32  ;;  %v375_v31 = vld [vmem:[#allocation5 + $0x568] sm:$0xff]  ;;  %v377_v32 = vld [vmem:[#allocation5 + $0x578] sm:$0xff] }
  0xb6   :  { %661 = vmatmul.mubr.f32.gmra.mxu0 %v106_v33  ;;  %1110 = vmatmul.mubr.f32.gmra.mxu1 %v106_v33  ;;  %v374_v33 = vld [vmem:[#allocation5 + $0x560] sm:$0xff] }
  0xb7   :  { %666 = vmatprep.mubr.f32.mxu0 %v109_v34  ;;  %1115 = vmatprep.mubr.f32.mxu1 %v109_v34  ;;  %v376_v34 = vld [vmem:[#allocation5 + $0x570] sm:$0xff] }
  0xb8   :  { %1430 = vmatprep.subr.mxu0 %v455_v35  ;;  %1879 = vmatprep.subr.mxu1 %v457_v36  ;;  %v128_v35 = vld [vmem:[#allocation2 + $0x1b0] sm:$0xff]  ;;  %v131_v36 = vld [vmem:[#allocation2 + $0x1c8] sm:$0xff] }
  0xb9   :  { %1431 = vmatpush2.msra.mxu0 %v454_v37  ;;  %1880 = vmatpush2.msra.mxu1 %v456_v38  ;;  %v367_v37 = vld [vmem:[#allocation5 + $0x528] sm:$0xff]  ;;  %v369_v38 = vld [vmem:[#allocation5 + $0x538] sm:$0xff] }
  0xba   :  { %667 = vmatmul.mubr.f32.gmra.mxu0 %v108_v39  ;;  %1116 = vmatmul.mubr.f32.gmra.mxu1 %v108_v39  ;;  %v366_v39 = vld [vmem:[#allocation5 + $0x520] sm:$0xff] }
  0xbb   :  { %672 = vmatprep.mubr.f32.mxu0 %v111_v40  ;;  %1121 = vmatprep.mubr.f32.mxu1 %v111_v40  ;;  %v368_v40 = vld [vmem:[#allocation5 + $0x530] sm:$0xff] }
  0xbc   :  { %1432 = vmatprep.subr.mxu0 %v447_v41  ;;  %1881 = vmatprep.subr.mxu1 %v449_v42  ;;  %v130_v41 = vld [vmem:[#allocation2 + $0x1c0] sm:$0xff]  ;;  %v133_v42 = vld [vmem:[#allocation2 + $0x1d8] sm:$0xff] }
  0xbd   :  { %1433 = vmatpush2.msra.mxu0 %v446_v43  ;;  %1882 = vmatpush2.msra.mxu1 %v448_v44  ;;  %v359_v43 = vld [vmem:[#allocation5 + $0x4e8] sm:$0xff]  ;;  %v361_v44 = vld [vmem:[#allocation5 + $0x4f8] sm:$0xff] }
  0xbe   :  { %673 = vmatmul.mubr.f32.gmra.mxu0 %v110_v45  ;;  %1122 = vmatmul.mubr.f32.gmra.mxu1 %v110_v45  ;;  %v358_v45 = vld [vmem:[#allocation5 + $0x4e0] sm:$0xff] }
  0xbf   :  { %678 = vmatprep.mubr.f32.mxu0 %v113_v46  ;;  %1127 = vmatprep.mubr.f32.mxu1 %v113_v46  ;;  %v360_v46 = vld [vmem:[#allocation5 + $0x4f0] sm:$0xff] }
  0xc0   :  { %1434 = vmatprep.subr.mxu0 %v439_v47  ;;  %1883 = vmatprep.subr.mxu1 %v441_v48  ;;  %v132_v47 = vld [vmem:[#allocation2 + $0x1d0] sm:$0xff]  ;;  %v135_v48 = vld [vmem:[#allocation2 + $0x1e8] sm:$0xff] }
  0xc1   :  { %1435 = vmatpush2.msra.mxu0 %v438_v49  ;;  %1884 = vmatpush2.msra.mxu1 %v440_v50  ;;  %v351_v49 = vld [vmem:[#allocation5 + $0x4a8] sm:$0xff]  ;;  %v353_v50 = vld [vmem:[#allocation5 + $0x4b8] sm:$0xff] }
  0xc2   :  { %679 = vmatmul.mubr.f32.gmra.mxu0 %v112_v51  ;;  %1128 = vmatmul.mubr.f32.gmra.mxu1 %v112_v51  ;;  %v350_v51 = vld [vmem:[#allocation5 + $0x4a0] sm:$0xff] }
  0xc3   :  { %684 = vmatprep.mubr.f32.mxu0 %v115_v52  ;;  %1133 = vmatprep.mubr.f32.mxu1 %v115_v52  ;;  %v352_v52 = vld [vmem:[#allocation5 + $0x4b0] sm:$0xff] }
  0xc4   :  { %1436 = vmatprep.subr.mxu0 %v431_v53  ;;  %1885 = vmatprep.subr.mxu1 %v433_v54  ;;  %v134_v53 = vld [vmem:[#allocation2 + $0x1e0] sm:$0xff]  ;;  %v137_v54 = vld [vmem:[#allocation2 + $0x1f8] sm:$0xff] }
  0xc5   :  { %1437 = vmatpush2.msra.mxu0 %v430_v55  ;;  %1886 = vmatpush2.msra.mxu1 %v432_v56  ;;  %v343_v55 = vld [vmem:[#allocation5 + $0x468] sm:$0xff]  ;;  %v345_v56 = vld [vmem:[#allocation5 + $0x478] sm:$0xff] }
  0xc6   :  { %685 = vmatmul.mubr.f32.gmra.mxu0 %v114_v57  ;;  %1134 = vmatmul.mubr.f32.gmra.mxu1 %v114_v57  ;;  %v342_v57 = vld [vmem:[#allocation5 + $0x460] sm:$0xff] }
  0xc7   :  { %690 = vmatprep.mubr.f32.mxu0 %v117_v58  ;;  %1139 = vmatprep.mubr.f32.mxu1 %v117_v58  ;;  %v344_v58 = vld [vmem:[#allocation5 + $0x470] sm:$0xff] }
  0xc8   :  { %1438 = vmatprep.subr.mxu0 %v423_v59  ;;  %1887 = vmatprep.subr.mxu1 %v425_v60  ;;  %v136_v59 = vld [vmem:[#allocation2 + $0x1f0] sm:$0xff]  ;;  %v139_v60 = vld [vmem:[#allocation2 + $0x208] sm:$0xff] }
  0xc9   :  { %1439 = vmatpush2.msra.mxu0 %v422_v61  ;;  %1888 = vmatpush2.msra.mxu1 %v424_v62  ;;  %v335_v61 = vld [vmem:[#allocation5 + $0x428] sm:$0xff]  ;;  %v334_v62 = vld [vmem:[#allocation5 + $0x420] sm:$0xff] }
  0xca   :  { %691 = vmatmul.mubr.f32.gmra.mxu0 %v116_v63  ;;  %1140 = vmatmul.mubr.f32.gmra.mxu1 %v116_v63  ;;  %v138_v63 = vld [vmem:[#allocation2 + $0x200] sm:$0xff] }
  0xcb   :  { %696 = vmatprep.mubr.f32.mxu0 %v119_v0  ;;  %1145 = vmatprep.mubr.f32.mxu1 %v119_v0  ;;  %v337_v0 = vld [vmem:[#allocation5 + $0x438] sm:$0xff] }
  0xcc   :  { %1440 = vmatprep.subr.mxu0 %v415_v1  ;;  %1889 = vmatprep.subr.mxu1 %v417_v2  ;;  %v336_v1 = vld [vmem:[#allocation5 + $0x430] sm:$0xff]  ;;  %v141_v2 = vld [vmem:[#allocation2 + $0x218] sm:$0xff] }
  0xcd   :  { %1441 = vmatpush2.msra.mxu0 %v414_v3  ;;  %1890 = vmatpush2.msra.mxu1 %v416_v4  ;;  %v140_v3 = vld [vmem:[#allocation2 + $0x210] sm:$0xff]  ;;  %v143_v4 = vld [vmem:[#allocation2 + $0x228] sm:$0xff] }
  0xce   :  { %697 = vmatmul.mubr.f32.gmra.mxu0 %v118_v5  ;;  %1146 = vmatmul.mubr.f32.gmra.mxu1 %v118_v5  ;;  %v2839_v5 = vld [vmem:[#allocation8 + $0xf8] sm:$0xff] }
  0xcf   :  { %702 = vmatprep.mubr.f32.mxu0 %v121_v6  ;;  %1151 = vmatprep.mubr.f32.mxu1 %v121_v6  ;;  %v142_v6 = vld [vmem:[#allocation2 + $0x220] sm:$0xff] }
  0xd0   :  { %1442 = vmatprep.subr.mxu0 %v407_v7  ;;  %1891 = vmatprep.subr.mxu1 %v409_v8  ;;  %v2903_v7 = vld [vmem:[#allocation8 + $0x2f8] sm:$0xff]  ;;  %v145_v8 = vld [vmem:[#allocation2 + $0x238] sm:$0xff] }
  0xd1   :  { %1443 = vmatpush2.msra.mxu0 %v406_v9  ;;  %1892 = vmatpush2.msra.mxu1 %v408_v10  ;;  %v144_v9 = vld [vmem:[#allocation2 + $0x230] sm:$0xff]  ;;  %v147_v10 = vld [vmem:[#allocation2 + $0x248] sm:$0xff] }
  0xd2   :  { %703 = vmatmul.mubr.f32.gmra.mxu0 %v120_v11  ;;  %1152 = vmatmul.mubr.f32.gmra.mxu1 %v120_v11  ;;  %v146_v11 = vld [vmem:[#allocation2 + $0x240] sm:$0xff] }
  0xd3   :  { %708 = vmatprep.mubr.f32.mxu0 %v123_v12  ;;  %1157 = vmatprep.mubr.f32.mxu1 %v123_v12  ;;  %v149_v12 = vld [vmem:[#allocation2 + $0x258] sm:$0xff] }
  0xd4   :  { %1444 = vmatprep.subr.mxu0 %v399_v13  ;;  %1893 = vmatprep.subr.mxu1 %v401_v14  ;;  %v148_v13 = vld [vmem:[#allocation2 + $0x250] sm:$0xff]  ;;  %v151_v14 = vld [vmem:[#allocation2 + $0x268] sm:$0xff] }
  0xd5   :  { %1445 = vmatpush2.msra.mxu0 %v398_v15  ;;  %1894 = vmatpush2.msra.mxu1 %v400_v16  ;;  %v150_v15 = vld [vmem:[#allocation2 + $0x260] sm:$0xff]  ;;  %v153_v16 = vld [vmem:[#allocation2 + $0x278] sm:$0xff] }
  0xd6   :  { %709 = vmatmul.mubr.f32.gmra.mxu0 %v122_v17  ;;  %1158 = vmatmul.mubr.f32.gmra.mxu1 %v122_v17  ;;  %v152_v17 = vld [vmem:[#allocation2 + $0x270] sm:$0xff] }
  0xd7   :  { %714 = vmatprep.mubr.f32.mxu0 %v125_v18  ;;  %1163 = vmatprep.mubr.f32.mxu1 %v125_v18  ;;  %v155_v18 = vld [vmem:[#allocation2 + $0x288] sm:$0xff] }
  0xd8   :  { %1446 = vmatprep.subr.mxu0 %v391_v19  ;;  %1895 = vmatprep.subr.mxu1 %v393_v20  ;;  %v154_v19 = vld [vmem:[#allocation2 + $0x280] sm:$0xff]  ;;  %v157_v20 = vld [vmem:[#allocation2 + $0x298] sm:$0xff] }
  0xd9   :  { %1447 = vmatpush2.msra.mxu0 %v390_v21  ;;  %1896 = vmatpush2.msra.mxu1 %v392_v22  ;;  %v156_v21 = vld [vmem:[#allocation2 + $0x290] sm:$0xff]  ;;  %v159_v22 = vld [vmem:[#allocation2 + $0x2a8] sm:$0xff] }
  0xda   :  { %715 = vmatmul.mubr.f32.gmra.mxu0 %v124_v23  ;;  %1164 = vmatmul.mubr.f32.gmra.mxu1 %v124_v23  ;;  %v158_v23 = vld [vmem:[#allocation2 + $0x2a0] sm:$0xff] }
  0xdb   :  { %720 = vmatprep.mubr.f32.mxu0 %v127_v24  ;;  %1169 = vmatprep.mubr.f32.mxu1 %v127_v24  ;;  %v161_v24 = vld [vmem:[#allocation2 + $0x2b8] sm:$0xff] }
  0xdc   :  { %1448 = vmatprep.subr.mxu0 %v383_v25  ;;  %1897 = vmatprep.subr.mxu1 %v385_v26  ;;  %v160_v25 = vld [vmem:[#allocation2 + $0x2b0] sm:$0xff]  ;;  %v163_v26 = vld [vmem:[#allocation2 + $0x2c8] sm:$0xff] }
  0xdd   :  { %1449 = vmatpush2.msra.mxu0 %v382_v27  ;;  %1898 = vmatpush2.msra.mxu1 %v384_v28  ;;  %v162_v27 = vld [vmem:[#allocation2 + $0x2c0] sm:$0xff]  ;;  %v165_v28 = vld [vmem:[#allocation2 + $0x2d8] sm:$0xff] }
  0xde   :  { %721 = vmatmul.mubr.f32.gmra.mxu0 %v126_v29  ;;  %1170 = vmatmul.mubr.f32.gmra.mxu1 %v126_v29  ;;  %v164_v29 = vld [vmem:[#allocation2 + $0x2d0] sm:$0xff] }
  0xdf   :  { %726 = vmatprep.mubr.f32.mxu0 %v129_v30  ;;  %1175 = vmatprep.mubr.f32.mxu1 %v129_v30  ;;  %v167_v30 = vld [vmem:[#allocation2 + $0x2e8] sm:$0xff] }
  0xe0   :  { %1450 = vmatprep.subr.mxu0 %v375_v31  ;;  %1899 = vmatprep.subr.mxu1 %v377_v32  ;;  %v166_v31 = vld [vmem:[#allocation2 + $0x2e0] sm:$0xff]  ;;  %v169_v32 = vld [vmem:[#allocation2 + $0x2f8] sm:$0xff] }
  0xe1   :  { %1451 = vmatpush2.msra.mxu0 %v374_v33  ;;  %1900 = vmatpush2.msra.mxu1 %v376_v34  ;;  %v168_v33 = vld [vmem:[#allocation2 + $0x2f0] sm:$0xff]  ;;  %v171_v34 = vld [vmem:[#allocation2 + $0x308] sm:$0xff] }
  0xe2   :  { %727 = vmatmul.mubr.f32.gmra.mxu0 %v128_v35  ;;  %1176 = vmatmul.mubr.f32.gmra.mxu1 %v128_v35  ;;  %v170_v35 = vld [vmem:[#allocation2 + $0x300] sm:$0xff] }
  0xe3   :  { %732 = vmatprep.mubr.f32.mxu0 %v131_v36  ;;  %1181 = vmatprep.mubr.f32.mxu1 %v131_v36  ;;  %v173_v36 = vld [vmem:[#allocation2 + $0x318] sm:$0xff] }
  0xe4   :  { %1452 = vmatprep.subr.mxu0 %v367_v37  ;;  %1901 = vmatprep.subr.mxu1 %v369_v38 }
  0xe5   :  { %1453 = vmatpush2.msra.mxu0 %v366_v39  ;;  %1902 = vmatpush2.msra.mxu1 %v368_v40  ;;  %v172_v39 = vld [vmem:[#allocation2 + $0x310] sm:$0xff] }
  0xe6   :  { %733 = vmatmul.mubr.f32.gmra.mxu0 %v130_v41  ;;  %1182 = vmatmul.mubr.f32.gmra.mxu1 %v130_v41 }
  0xe7   :  { %738 = vmatprep.mubr.f32.mxu0 %v133_v42  ;;  %1187 = vmatprep.mubr.f32.mxu1 %v133_v42  ;;  %v175_v42 = vld [vmem:[#allocation2 + $0x328] sm:$0xff] }
  0xe8   :  { %1454 = vmatprep.subr.mxu0 %v359_v43  ;;  %1903 = vmatprep.subr.mxu1 %v361_v44 }
  0xe9   :  { %1455 = vmatpush2.msra.mxu0 %v358_v45  ;;  %1904 = vmatpush2.msra.mxu1 %v360_v46  ;;  %v174_v45 = vld [vmem:[#allocation2 + $0x320] sm:$0xff] }
  0xea   :  { %739 = vmatmul.mubr.f32.gmra.mxu0 %v132_v47  ;;  %1188 = vmatmul.mubr.f32.gmra.mxu1 %v132_v47 }
  0xeb   :  { %744 = vmatprep.mubr.f32.mxu0 %v135_v48  ;;  %1193 = vmatprep.mubr.f32.mxu1 %v135_v48  ;;  %v177_v48 = vld [vmem:[#allocation2 + $0x338] sm:$0xff] }
  0xec   :  { %1456 = vmatprep.subr.mxu0 %v351_v49  ;;  %1905 = vmatprep.subr.mxu1 %v353_v50 }
  0xed   :  { %1457 = vmatpush2.msra.mxu0 %v350_v51  ;;  %1906 = vmatpush2.msra.mxu1 %v352_v52  ;;  %v176_v51 = vld [vmem:[#allocation2 + $0x330] sm:$0xff] }
  0xee   :  { %745 = vmatmul.mubr.f32.gmra.mxu0 %v134_v53  ;;  %1194 = vmatmul.mubr.f32.gmra.mxu1 %v134_v53 }
  0xef   :  { %750 = vmatprep.mubr.f32.mxu0 %v137_v54  ;;  %1199 = vmatprep.mubr.f32.mxu1 %v137_v54  ;;  %v179_v54 = vld [vmem:[#allocation2 + $0x348] sm:$0xff] }
  0xf0   :  { %1458 = vmatprep.subr.mxu0 %v343_v55  ;;  %1907 = vmatprep.subr.mxu1 %v345_v56 }
  0xf1   :  { %1459 = vmatpush2.msra.mxu0 %v342_v57  ;;  %1908 = vmatpush2.msra.mxu1 %v344_v58  ;;  %v178_v57 = vld [vmem:[#allocation2 + $0x340] sm:$0xff] }
  0xf2   :  { %751 = vmatmul.mubr.f32.gmra.mxu0 %v136_v59  ;;  %1200 = vmatmul.mubr.f32.gmra.mxu1 %v136_v59 }
  0xf3   :  { %756 = vmatprep.mubr.f32.mxu0 %v139_v60  ;;  %1205 = vmatprep.mubr.f32.mxu1 %v139_v60  ;;  %v181_v60 = vld [vmem:[#allocation2 + $0x358] sm:$0xff] }
  0xf4   :  { %1460 = vmatprep.subr.mxu0 %v335_v61  ;;  %1909 = vmatprep.subr.mxu1 %v337_v0 }
  0xf5   :  { %1461 = vmatpush2.msra.mxu0 %v334_v62  ;;  %1910 = vmatpush2.msra.mxu1 %v336_v1 }
  0xf6   :  { %757 = vmatmul.mubr.f32.gmra.mxu0 %v138_v63  ;;  %1206 = vmatmul.mubr.f32.gmra.mxu1 %v138_v63  ;;  %v180_v63 = vld [vmem:[#allocation2 + $0x350] sm:$0xff] }
  0xf7   :  { %762 = vmatprep.mubr.f32.mxu0 %v141_v2  ;;  %1211 = vmatprep.mubr.f32.mxu1 %v141_v2  ;;  %v183_v2 = vld [vmem:[#allocation2 + $0x368] sm:$0xff] }
  0xf8   :  { %3076 = vmatprep.subr.mxu0 %v2839_v5  ;;  %3525 = vmatprep.subr.mxu1 %v2903_v7  ;;  %v182_v5 = vld [vmem:[#allocation2 + $0x360] sm:$0xff] }
  0xfa   :  { %763 = vmatmul.mubr.f32.gmra.mxu0 %v140_v3  ;;  %1212 = vmatmul.mubr.f32.gmra.mxu1 %v140_v3 }
  0xfb   :  { %768 = vmatprep.mubr.f32.mxu0 %v143_v4  ;;  %1217 = vmatprep.mubr.f32.mxu1 %v143_v4 }
  0xfe   :  { %769 = vmatmul.mubr.f32.gmra.mxu0 %v142_v6  ;;  %1218 = vmatmul.mubr.f32.gmra.mxu1 %v142_v6 }
  0xff   :  { %774 = vmatprep.mubr.f32.mxu0 %v145_v8  ;;  %1223 = vmatprep.mubr.f32.mxu1 %v145_v8  ;;  %v185_v8 = vld [vmem:[#allocation2 + $0x378] sm:$0xff] }
 0x102   :  { %775 = vmatmul.mubr.f32.gmra.mxu0 %v144_v9  ;;  %1224 = vmatmul.mubr.f32.gmra.mxu1 %v144_v9 }
 0x103   :  { %780 = vmatprep.mubr.f32.mxu0 %v147_v10  ;;  %1229 = vmatprep.mubr.f32.mxu1 %v147_v10 }
 0x106   :  { %781 = vmatmul.mubr.f32.gmra.mxu0 %v146_v11  ;;  %1230 = vmatmul.mubr.f32.gmra.mxu1 %v146_v11  ;;  %v184_v11 = vld [vmem:[#allocation2 + $0x370] sm:$0xff] }
 0x107   :  { %786 = vmatprep.mubr.f32.mxu0 %v149_v12  ;;  %1235 = vmatprep.mubr.f32.mxu1 %v149_v12 }
 0x10a   :  { %787 = vmatmul.mubr.f32.gmra.mxu0 %v148_v13  ;;  %1236 = vmatmul.mubr.f32.gmra.mxu1 %v148_v13 }
 0x10b   :  { %792 = vmatprep.mubr.f32.mxu0 %v151_v14  ;;  %1241 = vmatprep.mubr.f32.mxu1 %v151_v14  ;;  %v187_v14 = vld [vmem:[#allocation2 + $0x388] sm:$0xff] }
 0x10e   :  { %793 = vmatmul.mubr.f32.gmra.mxu0 %v150_v15  ;;  %1242 = vmatmul.mubr.f32.gmra.mxu1 %v150_v15 }
 0x10f   :  { %798 = vmatprep.mubr.f32.mxu0 %v153_v16  ;;  %1247 = vmatprep.mubr.f32.mxu1 %v153_v16 }
 0x112   :  { %799 = vmatmul.mubr.f32.gmra.mxu0 %v152_v17  ;;  %1248 = vmatmul.mubr.f32.gmra.mxu1 %v152_v17  ;;  %v186_v17 = vld [vmem:[#allocation2 + $0x380] sm:$0xff] }
 0x113   :  { %804 = vmatprep.mubr.f32.mxu0 %v155_v18  ;;  %1253 = vmatprep.mubr.f32.mxu1 %v155_v18 }
 0x116   :  { %805 = vmatmul.mubr.f32.gmra.mxu0 %v154_v19  ;;  %1254 = vmatmul.mubr.f32.gmra.mxu1 %v154_v19 }
 0x117   :  { %810 = vmatprep.mubr.f32.mxu0 %v157_v20  ;;  %1259 = vmatprep.mubr.f32.mxu1 %v157_v20  ;;  %v189_v20 = vld [vmem:[#allocation2 + $0x398] sm:$0xff] }
 0x11a   :  { %811 = vmatmul.mubr.f32.gmra.mxu0 %v156_v21  ;;  %1260 = vmatmul.mubr.f32.gmra.mxu1 %v156_v21 }
 0x11b   :  { %816 = vmatprep.mubr.f32.mxu0 %v159_v22  ;;  %1265 = vmatprep.mubr.f32.mxu1 %v159_v22 }
 0x11e   :  { %817 = vmatmul.mubr.f32.gmra.mxu0 %v158_v23  ;;  %1266 = vmatmul.mubr.f32.gmra.mxu1 %v158_v23  ;;  %v188_v23 = vld [vmem:[#allocation2 + $0x390] sm:$0xff] }
 0x11f   :  { %822 = vmatprep.mubr.f32.mxu0 %v161_v24  ;;  %1271 = vmatprep.mubr.f32.mxu1 %v161_v24 }
 0x122   :  { %823 = vmatmul.mubr.f32.gmra.mxu0 %v160_v25  ;;  %1272 = vmatmul.mubr.f32.gmra.mxu1 %v160_v25 }
 0x123   :  { %828 = vmatprep.mubr.f32.mxu0 %v163_v26  ;;  %1277 = vmatprep.mubr.f32.mxu1 %v163_v26  ;;  %v191_v26 = vld [vmem:[#allocation2 + $0x3a8] sm:$0xff] }
 0x126   :  { %829 = vmatmul.mubr.f32.gmra.mxu0 %v162_v27  ;;  %1278 = vmatmul.mubr.f32.gmra.mxu1 %v162_v27 }
 0x127   :  { %834 = vmatprep.mubr.f32.mxu0 %v165_v28  ;;  %1283 = vmatprep.mubr.f32.mxu1 %v165_v28 }
 0x12a   :  { %835 = vmatmul.mubr.f32.gmra.mxu0 %v164_v29  ;;  %1284 = vmatmul.mubr.f32.gmra.mxu1 %v164_v29  ;;  %v190_v29 = vld [vmem:[#allocation2 + $0x3a0] sm:$0xff] }
 0x12b   :  { %840 = vmatprep.mubr.f32.mxu0 %v167_v30  ;;  %1289 = vmatprep.mubr.f32.mxu1 %v167_v30 }
 0x12e   :  { %841 = vmatmul.mubr.f32.gmra.mxu0 %v166_v31  ;;  %1290 = vmatmul.mubr.f32.gmra.mxu1 %v166_v31 }
 0x12f   :  { %846 = vmatprep.mubr.f32.mxu0 %v169_v32  ;;  %1295 = vmatprep.mubr.f32.mxu1 %v169_v32  ;;  %v193_v32 = vld [vmem:[#allocation2 + $0x3b8] sm:$0xff] }
 0x132   :  { %847 = vmatmul.mubr.f32.gmra.mxu0 %v168_v33  ;;  %1296 = vmatmul.mubr.f32.gmra.mxu1 %v168_v33 }
 0x133   :  { %852 = vmatprep.mubr.f32.mxu0 %v171_v34  ;;  %1301 = vmatprep.mubr.f32.mxu1 %v171_v34 }
 0x136   :  { %v5322_v37 = vpop.f32.mrf.mxu0  ;;  %853 = vmatmul.mubr.f32.gmra.mxu0 %v170_v35  ;;  %v5324_v38 = vpop.f32.mrf.mxu1  ;;  %1302 = vmatmul.mubr.f32.gmra.mxu1 %v170_v35  ;;  %v192_v35 = vld [vmem:[#allocation2 + $0x3b0] sm:$0xff] }
 0x137   :  { %858 = vmatprep.mubr.f32.mxu0 %v173_v36  ;;  %1307 = vmatprep.mubr.f32.mxu1 %v173_v36 }
 0x138   :  { %v5326_v40 = vpop.f32.mrf.mxu0  ;;  %v5328_v41 = vpop.f32.mrf.mxu1 }
 0x13a   :  { %v5330_v43 = vpop.f32.mrf.mxu0  ;;  %859 = vmatmul.mubr.f32.gmra.mxu0 %v172_v39  ;;  %v5332_v44 = vpop.f32.mrf.mxu1  ;;  %1308 = vmatmul.mubr.f32.gmra.mxu1 %v172_v39 }
 0x13b   :  { %864 = vmatprep.mubr.f32.mxu0 %v175_v42  ;;  %1313 = vmatprep.mubr.f32.mxu1 %v175_v42  ;;  %v195_v42 = vld [vmem:[#allocation2 + $0x3c8] sm:$0xff] }
 0x13c   :  { %v5334_v46 = vpop.f32.mrf.mxu0  ;;  %v5336_v47 = vpop.f32.mrf.mxu1 }
 0x13e   :  { %v5338_v49 = vpop.f32.mrf.mxu0  ;;  %865 = vmatmul.mubr.f32.gmra.mxu0 %v174_v45  ;;  %v5340_v50 = vpop.f32.mrf.mxu1  ;;  %1314 = vmatmul.mubr.f32.gmra.mxu1 %v174_v45 }
 0x13f   :  { %870 = vmatprep.mubr.f32.mxu0 %v177_v48  ;;  %1319 = vmatprep.mubr.f32.mxu1 %v177_v48 }
 0x140   :  { %v5342_v52 = vpop.f32.mrf.mxu0  ;;  %v5344_v53 = vpop.f32.mrf.mxu1 }
 0x142   :  { %v5346_v55 = vpop.f32.mrf.mxu0  ;;  %871 = vmatmul.mubr.f32.gmra.mxu0 %v176_v51  ;;  %v5348_v56 = vpop.f32.mrf.mxu1  ;;  %1320 = vmatmul.mubr.f32.gmra.mxu1 %v176_v51  ;;  %v194_v51 = vld [vmem:[#allocation2 + $0x3c0] sm:$0xff] }
 0x143   :  { %876 = vmatprep.mubr.f32.mxu0 %v179_v54  ;;  %1325 = vmatprep.mubr.f32.mxu1 %v179_v54 }
 0x144   :  { %v5350_v58 = vpop.f32.mrf.mxu0  ;;  %v5352_v59 = vpop.f32.mrf.mxu1 }
 0x146   :  { %v5354_v61 = vpop.f32.mrf.mxu0  ;;  %877 = vmatmul.mubr.f32.gmra.mxu0 %v178_v57  ;;  %v5356_v62 = vpop.f32.mrf.mxu1  ;;  %1326 = vmatmul.mubr.f32.gmra.mxu1 %v178_v57 }
 0x147   :  { %882 = vmatprep.mubr.f32.mxu0 %v181_v60  ;;  %1331 = vmatprep.mubr.f32.mxu1 %v181_v60  ;;  %v197_v60 = vld [vmem:[#allocation2 + $0x3d8] sm:$0xff] }
 0x148   :  { %v5358_v0 = vpop.f32.mrf.mxu0  ;;  %v5360_v1 = vpop.f32.mrf.mxu1 }
 0x14a   :  { %v5362_v3 = vpop.f32.mrf.mxu0  ;;  %883 = vmatmul.mubr.f32.gmra.mxu0 %v180_v63  ;;  %v5364_v4 = vpop.f32.mrf.mxu1  ;;  %1332 = vmatmul.mubr.f32.gmra.mxu1 %v180_v63 }
 0x14b   :  { %888 = vmatprep.mubr.f32.mxu0 %v183_v2  ;;  %1337 = vmatprep.mubr.f32.mxu1 %v183_v2 }
 0x14c   :  { %v5366_v6 = vpop.f32.mrf.mxu0  ;;  %v5368_v7 = vpop.f32.mrf.mxu1 }
 0x14e   :  { %v5370_v9 = vpop.f32.mrf.mxu0  ;;  %889 = vmatmul.mubr.f32.gmra.mxu0 %v182_v5  ;;  %v5372_v10 = vpop.f32.mrf.mxu1  ;;  %1338 = vmatmul.mubr.f32.gmra.mxu1 %v182_v5  ;;  %v196_v5 = vld [vmem:[#allocation2 + $0x3d0] sm:$0xff] }
 0x14f   :  { %894 = vmatprep.mubr.f32.mxu0 %v185_v8  ;;  %1343 = vmatprep.mubr.f32.mxu1 %v185_v8 }
 0x150   :  { %v5374_v12 = vpop.f32.mrf.mxu0  ;;  %v5376_v13 = vpop.f32.mrf.mxu1 }
 0x152   :  { %v5378_v15 = vpop.f32.mrf.mxu0  ;;  %895 = vmatmul.mubr.f32.gmra.mxu0 %v184_v11  ;;  %v5380_v16 = vpop.f32.mrf.mxu1  ;;  %1344 = vmatmul.mubr.f32.gmra.mxu1 %v184_v11 }
 0x153   :  { %900 = vmatprep.mubr.f32.mxu0 %v187_v14  ;;  %1349 = vmatprep.mubr.f32.mxu1 %v187_v14  ;;  %v199_v14 = vld [vmem:[#allocation2 + $0x3e8] sm:$0xff] }
 0x154   :  { %v5382_v18 = vpop.f32.mrf.mxu0  ;;  %v5384_v19 = vpop.f32.mrf.mxu1 }
 0x156   :  { %v5386_v21 = vpop.f32.mrf.mxu0  ;;  %901 = vmatmul.mubr.f32.gmra.mxu0 %v186_v17  ;;  %v5388_v22 = vpop.f32.mrf.mxu1  ;;  %1350 = vmatmul.mubr.f32.gmra.mxu1 %v186_v17 }
 0x157   :  { %906 = vmatprep.mubr.f32.mxu0 %v189_v20  ;;  %1355 = vmatprep.mubr.f32.mxu1 %v189_v20 }
 0x158   :  { %v5390_v24 = vpop.f32.mrf.mxu0  ;;  %v5392_v25 = vpop.f32.mrf.mxu1 }
 0x15a   :  { %v5394_v27 = vpop.f32.mrf.mxu0  ;;  %907 = vmatmul.mubr.f32.gmra.mxu0 %v188_v23  ;;  %v5396_v28 = vpop.f32.mrf.mxu1  ;;  %1356 = vmatmul.mubr.f32.gmra.mxu1 %v188_v23  ;;  %v198_v23 = vld [vmem:[#allocation2 + $0x3e0] sm:$0xff] }
 0x15b   :  { %912 = vmatprep.mubr.f32.mxu0 %v191_v26  ;;  %1361 = vmatprep.mubr.f32.mxu1 %v191_v26 }
 0x15c   :  { %v5398_v30 = vpop.f32.mrf.mxu0  ;;  %v5400_v31 = vpop.f32.mrf.mxu1 }
 0x15e   :  { %v5402_v33 = vpop.f32.mrf.mxu0  ;;  %913 = vmatmul.mubr.f32.gmra.mxu0 %v190_v29  ;;  %v5404_v34 = vpop.f32.mrf.mxu1  ;;  %1362 = vmatmul.mubr.f32.gmra.mxu1 %v190_v29 }
 0x15f   :  { %918 = vmatprep.mubr.f32.mxu0 %v193_v32  ;;  %1367 = vmatprep.mubr.f32.mxu1 %v193_v32  ;;  %v201_v32 = vld [vmem:[#allocation2 + $0x3f8] sm:$0xff] }
 0x160   :  { %v5406_v36 = vpop.f32.mrf.mxu0  ;;  %v5408_v39 = vpop.f32.mrf.mxu1 }
 0x162   :  { %v5410_v45 = vpop.f32.mrf.mxu0  ;;  %919 = vmatmul.mubr.f32.gmra.mxu0 %v192_v35  ;;  %v5412_v48 = vpop.f32.mrf.mxu1  ;;  %1368 = vmatmul.mubr.f32.gmra.mxu1 %v192_v35 }
 0x163   :  { %924 = vmatprep.mubr.f32.mxu0 %v195_v42  ;;  %1373 = vmatprep.mubr.f32.mxu1 %v195_v42 }
 0x164   :  { %v5414_v54 = vpop.f32.mrf.mxu0  ;;  %v5416_v57 = vpop.f32.mrf.mxu1 }
 0x166   :  { %v5418_v63 = vpop.f32.mrf.mxu0  ;;  %925 = vmatmul.mubr.f32.gmra.mxu0 %v194_v51  ;;  %v5420_v2 = vpop.f32.mrf.mxu1  ;;  %1374 = vmatmul.mubr.f32.gmra.mxu1 %v194_v51  ;;  %v200_v51 = vld [vmem:[#allocation2 + $0x3f0] sm:$0xff] }
 0x167   :  { %7935 = vst [vmem:[#allocation15_spill] sm:$0xff] %v5418_v63  ;;  %7936 = vst [vmem:[#allocation16_spill] sm:$0xff] %v5420_v2  ;;  %930 = vmatprep.mubr.f32.mxu0 %v197_v60  ;;  %1379 = vmatprep.mubr.f32.mxu1 %v197_v60  ;;  %v2899_v2 = vld [vmem:[#allocation8 + $0x2d8] sm:$0xff]  ;;  %v5032_v63 = vld [vmem:[#allocation2 + $0x28] sm:$0xff] }
 0x168   :  { %v5422_v8 = vpop.f32.mrf.mxu0  ;;  %v5424_v11 = vpop.f32.mrf.mxu1 }
 0x169   :  { %7937 = vst [vmem:[#allocation17_spill] sm:$0xff] %v5424_v11  ;;  %v5153_v11 = vld [vmem:[#allocation2 + $0x3e0] sm:$0xff] }
 0x16a   :  { %v5426_v17 = vpop.f32.mrf.mxu0  ;;  %931 = vmatmul.mubr.f32.gmra.mxu0 %v196_v5  ;;  %v5428_v20 = vpop.f32.mrf.mxu1  ;;  %1380 = vmatmul.mubr.f32.gmra.mxu1 %v196_v5 }
 0x16b   :  { %7938 = vst [vmem:[#allocation18_spill] sm:$0xff] %v5426_v17  ;;  %7939 = vst [vmem:[#allocation19_spill] sm:$0xff] %v5428_v20  ;;  %936 = vmatprep.mubr.f32.mxu0 %v199_v14  ;;  %1385 = vmatprep.mubr.f32.mxu1 %v199_v14  ;;  %v5028_v17 = vld [vmem:[#allocation2 + $0x8] sm:$0xff] }
 0x16c   :  { %v5430_v26 = vpop.f32.mrf.mxu0  ;;  %v5432_v29 = vpop.f32.mrf.mxu1 }
 0x16d   :  { %7940 = vst [vmem:[#allocation20_spill] sm:$0xff] %v5430_v26  ;;  %7941 = vst [vmem:[#allocation21_spill] sm:$0xff] %v5432_v29  ;;  %v2901_v26 = vld [vmem:[#allocation8 + $0x2e8] sm:$0xff] }
 0x16e   :  { %v5434_v35 = vpop.f32.mrf.mxu0  ;;  %937 = vmatmul.mubr.f32.gmra.mxu0 %v198_v23  ;;  %v5436_v42 = vpop.f32.mrf.mxu1  ;;  %1386 = vmatmul.mubr.f32.gmra.mxu1 %v198_v23  ;;  %v2838_v23 = vld [vmem:[#allocation8 + $0xf0] sm:$0xff] }
 0x16f   :  { %7942 = vst [vmem:[#allocation22_spill] sm:$0xff] %v5434_v35  ;;  %7943 = vst [vmem:[#allocation23_spill] sm:$0xff] %v5436_v42  ;;  %942 = vmatprep.mubr.f32.mxu0 %v201_v32  ;;  %1391 = vmatprep.mubr.f32.mxu1 %v201_v32  ;;  %v2902_v32 = vld [vmem:[#allocation8 + $0x2f0] sm:$0xff] }
 0x170   :  { %v5438_v60 = vpop.f32.mrf.mxu0  ;;  %v5440_v5 = vpop.f32.mrf.mxu1 }
 0x171   :  { %7944 = vst [vmem:[#allocation24_spill] sm:$0xff] %v5438_v60  ;;  %7945 = vst [vmem:[#allocation25_spill] sm:$0xff] %v5440_v5  ;;  %v5029_v5 = vld [vmem:[#allocation2] sm:$0xff] }
 0x172   :  { %v5442_v14 = vpop.f32.mrf.mxu0  ;;  %943 = vmatmul.mubr.f32.gmra.mxu0 %v200_v51  ;;  %v5444_v20 = vpop.f32.mrf.mxu1  ;;  %1392 = vmatmul.mubr.f32.gmra.mxu1 %v200_v51  ;;  %v5030_v51 = vld [vmem:[#allocation2 + $0x18] sm:$0xff] }
 0x173   :  { %7946 = vst [vmem:[#allocation26_spill] sm:$0xff] %v5442_v14  ;;  %7947 = vst [vmem:[#allocation27_spill] sm:$0xff] %v5444_v20  ;;  %1462 = vmatprep.mubr.f32.mxu0 %v5028_v17  ;;  %1911 = vmatprep.mubr.f32.mxu1 %v5028_v17  ;;  %v2837_v14 = vld [vmem:[#allocation8 + $0xe8] sm:$0xff] }
 0x174   :  { %v5446_v35 = vpop.f32.mrf.mxu0  ;;  %v5448_v42 = vpop.f32.mrf.mxu1 }
 0x175   :  { %7948 = vst [vmem:[#allocation28_spill] sm:$0xff] %v5446_v35  ;;  %7949 = vst [vmem:[#allocation29_spill] sm:$0xff] %v5448_v42  ;;  %v2836_v42 = vld [vmem:[#allocation8 + $0xe0] sm:$0xff] }
 0x176   :  { %v5450_v29 = vpop.f32.mrf.mxu0  ;;  %v5452_v60 = vpop.f32.mrf.mxu1  ;;  %1463 = vmatmul.mubr.f32.vlgmr.msra.gmra.mxu0 %v5029_v5  ;;  %1912 = vmatmul.mubr.f32.vlgmr.msra.gmra.mxu1 %v5029_v5  ;;  %v5031_v5 = vld [vmem:[#allocation2 + $0x10] sm:$0xff] }
 0x177   :  { %7950 = vst [vmem:[#allocation30_spill] sm:$0xff] %v5450_v29  ;;  %7951 = vst [vmem:[#allocation31_spill] sm:$0xff] %v5452_v60  ;;  %3077 = vmatpush1.msra.mxu0 %v2838_v23  ;;  %1468 = vmatprep.mubr.f32.mxu0 %v5030_v51  ;;  %v2900_v29 = vld [vmem:[#allocation8 + $0x2e0] sm:$0xff]  ;;  %v2835_v23 = vld [vmem:[#allocation8 + $0xd8] sm:$0xff] }
 0x178   :  { %v5454_v20 = vpop.f32.mrf.mxu0  ;;  %v5456_v17 = vpop.f32.mrf.mxu1  ;;  %1917 = vmatprep.mubr.f32.mxu1 %v5030_v51  ;;  %3526 = vmatpush1.msra.mxu1 %v2902_v32 }
 0x179   :  { %7952 = vst [vmem:[#allocation32_spill] sm:$0xff] %v5454_v20  ;;  %7953 = vst [vmem:[#allocation33_spill] sm:$0xff] %v5456_v17  ;;  %3078 = vmatprep.subr.mxu0 %v2837_v14  ;;  %3527 = vmatprep.subr.mxu1 %v2901_v26  ;;  %v2834_v26 = vld [vmem:[#allocation8 + $0xd0] sm:$0xff]  ;;  %v2897_v17 = vld [vmem:[#allocation8 + $0x2c8] sm:$0xff] }
 0x17a   :  { %v5458_v35 = vpop.f32.mrf.mxu0  ;;  %v5460_v60 = vpop.f32.mrf.mxu1  ;;  %1469 = vmatmul.mubr.f32.gmra.mxu0 %v5031_v5  ;;  %1918 = vmatmul.mubr.f32.gmra.mxu1 %v5031_v5  ;;  %v2898_v14 = vld [vmem:[#allocation8 + $0x2d0] sm:$0xff]  ;;  %v5033_v5 = vld [vmem:[#allocation2 + $0x20] sm:$0xff] }
 0x17b   :  { %7954 = vst [vmem:[#allocation34_spill] sm:$0xff] %v5458_v35  ;;  %7955 = vst [vmem:[#allocation35_spill] sm:$0xff] %v5460_v60  ;;  %1474 = vmatprep.mubr.f32.mxu0 %v5032_v63  ;;  %1923 = vmatprep.mubr.f32.mxu1 %v5032_v63  ;;  %v2833_v35 = vld [vmem:[#allocation8 + $0xc8] sm:$0xff]  ;;  %v5034_v63 = vld [vmem:[#allocation2 + $0x38] sm:$0xff] }
 0x17c   :  { %v5462_v20 = vpop.f32.mrf.mxu0  ;;  %v5464_v51 = vpop.f32.mrf.mxu1  ;;  %3079 = vmatpush1.msra.mxu0 %v2836_v42  ;;  %3528 = vmatpush1.msra.mxu1 %v2900_v29  ;;  %v2896_v29 = vld [vmem:[#allocation8 + $0x2c0] sm:$0xff] }
 0x17d   :  { %7956 = vst [vmem:[#allocation36_spill] sm:$0xff] %v5462_v20  ;;  %7957 = vst [vmem:[#allocation37_spill] sm:$0xff] %v5464_v51  ;;  %3080 = vmatprep.subr.mxu0 %v2835_v23  ;;  %3529 = vmatprep.subr.mxu1 %v2899_v2  ;;  %v2832_v2 = vld [vmem:[#allocation8 + $0xc0] sm:$0xff]  ;;  %v2895_v51 = vld [vmem:[#allocation8 + $0x2b8] sm:$0xff] }
 0x17e   :  { %v5466_v32 = vpop.f32.mrf.mxu0  ;;  %v5468_v60 = vpop.f32.mrf.mxu1  ;;  %1475 = vmatmul.mubr.f32.gmra.mxu0 %v5033_v5  ;;  %1924 = vmatmul.mubr.f32.gmra.mxu1 %v5033_v5  ;;  %v5035_v5 = vld [vmem:[#allocation2 + $0x30] sm:$0xff] }
 0x17f   :  { %7958 = vst [vmem:[#allocation38_spill] sm:$0xff] %v5466_v32  ;;  %7959 = vst [vmem:[#allocation39_spill] sm:$0xff] %v5468_v60  ;;  %1480 = vmatprep.mubr.f32.mxu0 %v5034_v63  ;;  %1929 = vmatprep.mubr.f32.mxu1 %v5034_v63  ;;  %v2831_v32 = vld [vmem:[#allocation8 + $0xb8] sm:$0xff]  ;;  %v5036_v63 = vld [vmem:[#allocation2 + $0x48] sm:$0xff] }
 0x180   :  { %v5470_v20 = vpop.f32.mrf.mxu0  ;;  %v5472_v42 = vpop.f32.mrf.mxu1  ;;  %3081 = vmatpush1.msra.mxu0 %v2834_v26  ;;  %3530 = vmatpush1.msra.mxu1 %v2898_v14 }
 0x181   :  { %7960 = vst [vmem:[#allocation40_spill] sm:$0xff] %v5470_v20  ;;  %7961 = vst [vmem:[#allocation41_spill] sm:$0xff] %v5472_v42  ;;  %3082 = vmatprep.subr.mxu0 %v2833_v35  ;;  %3531 = vmatprep.subr.mxu1 %v2897_v17  ;;  %v2830_v35 = vld [vmem:[#allocation8 + $0xb0] sm:$0xff]  ;;  %v2893_v42 = vld [vmem:[#allocation8 + $0x2a8] sm:$0xff] }
 0x182   :  { %v5474_v23 = vpop.f32.mrf.mxu0  ;;  %v5476_v60 = vpop.f32.mrf.mxu1  ;;  %1481 = vmatmul.mubr.f32.gmra.mxu0 %v5035_v5  ;;  %1930 = vmatmul.mubr.f32.gmra.mxu1 %v5035_v5  ;;  %v2894_v17 = vld [vmem:[#allocation8 + $0x2b0] sm:$0xff]  ;;  %v5037_v5 = vld [vmem:[#allocation2 + $0x40] sm:$0xff] }
 0x183   :  { %7962 = vst [vmem:[#allocation42_spill] sm:$0xff] %v5474_v23  ;;  %7963 = vst [vmem:[#allocation43_spill] sm:$0xff] %v5476_v60  ;;  %1486 = vmatprep.mubr.f32.mxu0 %v5036_v63  ;;  %1935 = vmatprep.mubr.f32.mxu1 %v5036_v63  ;;  %v2829_v23 = vld [vmem:[#allocation8 + $0xa8] sm:$0xff]  ;;  %v5038_v63 = vld [vmem:[#allocation2 + $0x58] sm:$0xff] }
 0x184   :  { %v5478_v20 = vpop.f32.mrf.mxu0  ;;  %v5480_v26 = vpop.f32.mrf.mxu1  ;;  %3083 = vmatpush1.msra.mxu0 %v2832_v2  ;;  %3532 = vmatpush1.msra.mxu1 %v2896_v29 }
 0x185   :  { %7964 = vst [vmem:[#allocation44_spill] sm:$0xff] %v5478_v20  ;;  %7965 = vst [vmem:[#allocation45_spill] sm:$0xff] %v5480_v26  ;;  %3084 = vmatprep.subr.mxu0 %v2831_v32  ;;  %3533 = vmatprep.subr.mxu1 %v2895_v51  ;;  %v2828_v51 = vld [vmem:[#allocation8 + $0xa0] sm:$0xff]  ;;  %v2891_v26 = vld [vmem:[#allocation8 + $0x298] sm:$0xff] }
 0x186   :  { %v5482_v14 = vpop.f32.mrf.mxu0  ;;  %v5484_v60 = vpop.f32.mrf.mxu1  ;;  %1487 = vmatmul.mubr.f32.gmra.mxu0 %v5037_v5  ;;  %1936 = vmatmul.mubr.f32.gmra.mxu1 %v5037_v5  ;;  %v2892_v32 = vld [vmem:[#allocation8 + $0x2a0] sm:$0xff]  ;;  %v5039_v5 = vld [vmem:[#allocation2 + $0x50] sm:$0xff] }
 0x187   :  { %7966 = vst [vmem:[#allocation46_spill] sm:$0xff] %v5482_v14  ;;  %7967 = vst [vmem:[#allocation47_spill] sm:$0xff] %v5484_v60  ;;  %1492 = vmatprep.mubr.f32.mxu0 %v5038_v63  ;;  %1941 = vmatprep.mubr.f32.mxu1 %v5038_v63  ;;  %v2827_v14 = vld [vmem:[#allocation8 + $0x98] sm:$0xff]  ;;  %v5040_v63 = vld [vmem:[#allocation2 + $0x68] sm:$0xff] }
 0x188   :  { %v5486_v20 = vpop.f32.mrf.mxu0  ;;  %v5488_v2 = vpop.f32.mrf.mxu1  ;;  %3085 = vmatpush1.msra.mxu0 %v2830_v35  ;;  %3534 = vmatpush1.msra.mxu1 %v2894_v17 }
 0x189   :  { %7968 = vst [vmem:[#allocation48_spill] sm:$0xff] %v5486_v20  ;;  %7969 = vst [vmem:[#allocation49_spill] sm:$0xff] %v5488_v2  ;;  %3086 = vmatprep.subr.mxu0 %v2829_v23  ;;  %3535 = vmatprep.subr.mxu1 %v2893_v42  ;;  %v2826_v42 = vld [vmem:[#allocation8 + $0x90] sm:$0xff]  ;;  %v2889_v2 = vld [vmem:[#allocation8 + $0x288] sm:$0xff] }
 0x18a   :  { %v5490_v29 = vpop.f32.mrf.mxu0  ;;  %v5492_v60 = vpop.f32.mrf.mxu1  ;;  %1493 = vmatmul.mubr.f32.gmra.mxu0 %v5039_v5  ;;  %1942 = vmatmul.mubr.f32.gmra.mxu1 %v5039_v5  ;;  %v2890_v23 = vld [vmem:[#allocation8 + $0x290] sm:$0xff]  ;;  %v5041_v5 = vld [vmem:[#allocation2 + $0x60] sm:$0xff] }
 0x18b   :  { %7970 = vst [vmem:[#allocation50_spill] sm:$0xff] %v5490_v29  ;;  %7971 = vst [vmem:[#allocation51_spill] sm:$0xff] %v5492_v60  ;;  %1498 = vmatprep.mubr.f32.mxu0 %v5040_v63  ;;  %1947 = vmatprep.mubr.f32.mxu1 %v5040_v63  ;;  %v2825_v29 = vld [vmem:[#allocation8 + $0x88] sm:$0xff]  ;;  %v5042_v63 = vld [vmem:[#allocation2 + $0x78] sm:$0xff] }
 0x18c   :  { %v5494_v20 = vpop.f32.mrf.mxu0  ;;  %v5496_v35 = vpop.f32.mrf.mxu1  ;;  %3087 = vmatpush1.msra.mxu0 %v2828_v51  ;;  %3536 = vmatpush1.msra.mxu1 %v2892_v32 }
 0x18d   :  { %7972 = vst [vmem:[#allocation52_spill] sm:$0xff] %v5494_v20  ;;  %7973 = vst [vmem:[#allocation53_spill] sm:$0xff] %v5496_v35  ;;  %3088 = vmatprep.subr.mxu0 %v2827_v14  ;;  %3537 = vmatprep.subr.mxu1 %v2891_v26  ;;  %v2824_v26 = vld [vmem:[#allocation8 + $0x80] sm:$0xff]  ;;  %v2887_v35 = vld [vmem:[#allocation8 + $0x278] sm:$0xff] }
 0x18e   :  { %v5498_v17 = vpop.f32.mrf.mxu0  ;;  %v5500_v60 = vpop.f32.mrf.mxu1  ;;  %1499 = vmatmul.mubr.f32.gmra.mxu0 %v5041_v5  ;;  %1948 = vmatmul.mubr.f32.gmra.mxu1 %v5041_v5  ;;  %v2888_v14 = vld [vmem:[#allocation8 + $0x280] sm:$0xff]  ;;  %v5043_v5 = vld [vmem:[#allocation2 + $0x70] sm:$0xff] }
 0x18f   :  { %7974 = vst [vmem:[#allocation54_spill] sm:$0xff] %v5498_v17  ;;  %7975 = vst [vmem:[#allocation55_spill] sm:$0xff] %v5500_v60  ;;  %1504 = vmatprep.mubr.f32.mxu0 %v5042_v63  ;;  %1953 = vmatprep.mubr.f32.mxu1 %v5042_v63  ;;  %v2823_v17 = vld [vmem:[#allocation8 + $0x78] sm:$0xff]  ;;  %v5044_v63 = vld [vmem:[#allocation2 + $0x88] sm:$0xff] }
 0x190   :  { %v5502_v20 = vpop.f32.mrf.mxu0  ;;  %v5504_v51 = vpop.f32.mrf.mxu1  ;;  %3089 = vmatpush1.msra.mxu0 %v2826_v42  ;;  %3538 = vmatpush1.msra.mxu1 %v2890_v23 }
 0x191   :  { %7976 = vst [vmem:[#allocation56_spill] sm:$0xff] %v5502_v20  ;;  %7977 = vst [vmem:[#allocation57_spill] sm:$0xff] %v5504_v51  ;;  %3090 = vmatprep.subr.mxu0 %v2825_v29  ;;  %3539 = vmatprep.subr.mxu1 %v2889_v2  ;;  %v2822_v2 = vld [vmem:[#allocation8 + $0x70] sm:$0xff]  ;;  %v2885_v51 = vld [vmem:[#allocation8 + $0x268] sm:$0xff] }
 0x192   :  { %v5506_v32 = vpop.f32.mrf.mxu0  ;;  %v5508_v60 = vpop.f32.mrf.mxu1  ;;  %1505 = vmatmul.mubr.f32.gmra.mxu0 %v5043_v5  ;;  %1954 = vmatmul.mubr.f32.gmra.mxu1 %v5043_v5  ;;  %v2886_v29 = vld [vmem:[#allocation8 + $0x270] sm:$0xff]  ;;  %v5045_v5 = vld [vmem:[#allocation2 + $0x80] sm:$0xff] }
 0x193   :  { %7978 = vst [vmem:[#allocation58_spill] sm:$0xff] %v5506_v32  ;;  %7979 = vst [vmem:[#allocation59_spill] sm:$0xff] %v5508_v60  ;;  %1510 = vmatprep.mubr.f32.mxu0 %v5044_v63  ;;  %1959 = vmatprep.mubr.f32.mxu1 %v5044_v63  ;;  %v2821_v32 = vld [vmem:[#allocation8 + $0x68] sm:$0xff]  ;;  %v5046_v63 = vld [vmem:[#allocation2 + $0x98] sm:$0xff] }
 0x194   :  { %v5510_v20 = vpop.f32.mrf.mxu0  ;;  %v5512_v42 = vpop.f32.mrf.mxu1  ;;  %3091 = vmatpush1.msra.mxu0 %v2824_v26  ;;  %3540 = vmatpush1.msra.mxu1 %v2888_v14 }
 0x195   :  { %7980 = vst [vmem:[#allocation60_spill] sm:$0xff] %v5510_v20  ;;  %7981 = vst [vmem:[#allocation61_spill] sm:$0xff] %v5512_v42  ;;  %3092 = vmatprep.subr.mxu0 %v2823_v17  ;;  %3541 = vmatprep.subr.mxu1 %v2887_v35  ;;  %v2820_v35 = vld [vmem:[#allocation8 + $0x60] sm:$0xff]  ;;  %v2883_v42 = vld [vmem:[#allocation8 + $0x258] sm:$0xff] }
 0x196   :  { %v5514_v23 = vpop.f32.mrf.mxu0  ;;  %v5516_v60 = vpop.f32.mrf.mxu1  ;;  %1511 = vmatmul.mubr.f32.gmra.mxu0 %v5045_v5  ;;  %1960 = vmatmul.mubr.f32.gmra.mxu1 %v5045_v5  ;;  %v2884_v17 = vld [vmem:[#allocation8 + $0x260] sm:$0xff]  ;;  %v5047_v5 = vld [vmem:[#allocation2 + $0x90] sm:$0xff] }
 0x197   :  { %7982 = vst [vmem:[#allocation62_spill] sm:$0xff] %v5514_v23  ;;  %7983 = vst [vmem:[#allocation63_spill] sm:$0xff] %v5516_v60  ;;  %1516 = vmatprep.mubr.f32.mxu0 %v5046_v63  ;;  %1965 = vmatprep.mubr.f32.mxu1 %v5046_v63  ;;  %v2819_v23 = vld [vmem:[#allocation8 + $0x58] sm:$0xff]  ;;  %v5048_v63 = vld [vmem:[#allocation2 + $0xa8] sm:$0xff] }
 0x198   :  { %v5518_v20 = vpop.f32.mrf.mxu0  ;;  %v5520_v26 = vpop.f32.mrf.mxu1  ;;  %3093 = vmatpush1.msra.mxu0 %v2822_v2  ;;  %3542 = vmatpush1.msra.mxu1 %v2886_v29 }
 0x199   :  { %7984 = vst [vmem:[#allocation64_spill] sm:$0xff] %v5518_v20  ;;  %7985 = vst [vmem:[#allocation65_spill] sm:$0xff] %v5520_v26  ;;  %3094 = vmatprep.subr.mxu0 %v2821_v32  ;;  %3543 = vmatprep.subr.mxu1 %v2885_v51  ;;  %v2818_v51 = vld [vmem:[#allocation8 + $0x50] sm:$0xff]  ;;  %v2881_v26 = vld [vmem:[#allocation8 + $0x248] sm:$0xff] }
 0x19a   :  { %v5522_v14 = vpop.f32.mrf.mxu0  ;;  %v5524_v60 = vpop.f32.mrf.mxu1  ;;  %1517 = vmatmul.mubr.f32.gmra.mxu0 %v5047_v5  ;;  %1966 = vmatmul.mubr.f32.gmra.mxu1 %v5047_v5  ;;  %v2882_v32 = vld [vmem:[#allocation8 + $0x250] sm:$0xff]  ;;  %v5049_v5 = vld [vmem:[#allocation2 + $0xa0] sm:$0xff] }
 0x19b   :  { %7986 = vst [vmem:[#allocation66_spill] sm:$0xff] %v5522_v14  ;;  %7987 = vst [vmem:[#allocation67_spill] sm:$0xff] %v5524_v60  ;;  %1522 = vmatprep.mubr.f32.mxu0 %v5048_v63  ;;  %1971 = vmatprep.mubr.f32.mxu1 %v5048_v63  ;;  %v2817_v14 = vld [vmem:[#allocation8 + $0x48] sm:$0xff]  ;;  %v5050_v63 = vld [vmem:[#allocation2 + $0xb8] sm:$0xff] }
 0x19c   :  { %v5526_v20 = vpop.f32.mrf.mxu0  ;;  %v5528_v2 = vpop.f32.mrf.mxu1  ;;  %3095 = vmatpush1.msra.mxu0 %v2820_v35  ;;  %3544 = vmatpush1.msra.mxu1 %v2884_v17 }
 0x19d   :  { %7988 = vst [vmem:[#allocation68_spill] sm:$0xff] %v5526_v20  ;;  %7989 = vst [vmem:[#allocation69_spill] sm:$0xff] %v5528_v2  ;;  %3096 = vmatprep.subr.mxu0 %v2819_v23  ;;  %3545 = vmatprep.subr.mxu1 %v2883_v42  ;;  %v2816_v42 = vld [vmem:[#allocation8 + $0x40] sm:$0xff]  ;;  %v2879_v2 = vld [vmem:[#allocation8 + $0x238] sm:$0xff] }
 0x19e   :  { %v5530_v29 = vpop.f32.mrf.mxu0  ;;  %v5532_v60 = vpop.f32.mrf.mxu1  ;;  %1523 = vmatmul.mubr.f32.gmra.mxu0 %v5049_v5  ;;  %1972 = vmatmul.mubr.f32.gmra.mxu1 %v5049_v5  ;;  %v2880_v23 = vld [vmem:[#allocation8 + $0x240] sm:$0xff]  ;;  %v5051_v5 = vld [vmem:[#allocation2 + $0xb0] sm:$0xff] }
 0x19f   :  { %7990 = vst [vmem:[#allocation70_spill] sm:$0xff] %v5530_v29  ;;  %7991 = vst [vmem:[#allocation71_spill] sm:$0xff] %v5532_v60  ;;  %1528 = vmatprep.mubr.f32.mxu0 %v5050_v63  ;;  %1977 = vmatprep.mubr.f32.mxu1 %v5050_v63  ;;  %v2815_v29 = vld [vmem:[#allocation8 + $0x38] sm:$0xff]  ;;  %v5052_v63 = vld [vmem:[#allocation2 + $0xc8] sm:$0xff] }
 0x1a0   :  { %v5534_v20 = vpop.f32.mrf.mxu0  ;;  %v5536_v35 = vpop.f32.mrf.mxu1  ;;  %3097 = vmatpush1.msra.mxu0 %v2818_v51  ;;  %3546 = vmatpush1.msra.mxu1 %v2882_v32 }
 0x1a1   :  { %7992 = vst [vmem:[#allocation72_spill] sm:$0xff] %v5534_v20  ;;  %7993 = vst [vmem:[#allocation73_spill] sm:$0xff] %v5536_v35  ;;  %3098 = vmatprep.subr.mxu0 %v2817_v14  ;;  %3547 = vmatprep.subr.mxu1 %v2881_v26  ;;  %v2814_v26 = vld [vmem:[#allocation8 + $0x30] sm:$0xff]  ;;  %v2877_v35 = vld [vmem:[#allocation8 + $0x228] sm:$0xff] }
 0x1a2   :  { %v5538_v17 = vpop.f32.mrf.mxu0  ;;  %v5540_v60 = vpop.f32.mrf.mxu1  ;;  %1529 = vmatmul.mubr.f32.gmra.mxu0 %v5051_v5  ;;  %1978 = vmatmul.mubr.f32.gmra.mxu1 %v5051_v5  ;;  %v2878_v14 = vld [vmem:[#allocation8 + $0x230] sm:$0xff]  ;;  %v5053_v5 = vld [vmem:[#allocation2 + $0xc0] sm:$0xff] }
 0x1a3   :  { %7994 = vst [vmem:[#allocation74_spill] sm:$0xff] %v5538_v17  ;;  %7995 = vst [vmem:[#allocation75_spill] sm:$0xff] %v5540_v60  ;;  %1534 = vmatprep.mubr.f32.mxu0 %v5052_v63  ;;  %1983 = vmatprep.mubr.f32.mxu1 %v5052_v63  ;;  %v2813_v17 = vld [vmem:[#allocation8 + $0x28] sm:$0xff]  ;;  %v5054_v63 = vld [vmem:[#allocation2 + $0xd8] sm:$0xff] }
 0x1a4   :  { %v5542_v20 = vpop.f32.mrf.mxu0  ;;  %v5544_v51 = vpop.f32.mrf.mxu1  ;;  %3099 = vmatpush1.msra.mxu0 %v2816_v42  ;;  %3548 = vmatpush1.msra.mxu1 %v2880_v23 }
 0x1a5   :  { %7996 = vst [vmem:[#allocation76_spill] sm:$0xff] %v5542_v20  ;;  %7997 = vst [vmem:[#allocation77_spill] sm:$0xff] %v5544_v51  ;;  %3100 = vmatprep.subr.mxu0 %v2815_v29  ;;  %3549 = vmatprep.subr.mxu1 %v2879_v2  ;;  %v2812_v2 = vld [vmem:[#allocation8 + $0x20] sm:$0xff]  ;;  %v2875_v51 = vld [vmem:[#allocation8 + $0x218] sm:$0xff] }
 0x1a6   :  { %v5546_v32 = vpop.f32.mrf.mxu0  ;;  %v5548_v60 = vpop.f32.mrf.mxu1  ;;  %1535 = vmatmul.mubr.f32.gmra.mxu0 %v5053_v5  ;;  %1984 = vmatmul.mubr.f32.gmra.mxu1 %v5053_v5  ;;  %v2876_v29 = vld [vmem:[#allocation8 + $0x220] sm:$0xff]  ;;  %v5055_v5 = vld [vmem:[#allocation2 + $0xd0] sm:$0xff] }
 0x1a7   :  { %7998 = vst [vmem:[#allocation78_spill] sm:$0xff] %v5546_v32  ;;  %7999 = vst [vmem:[#allocation79_spill] sm:$0xff] %v5548_v60  ;;  %1540 = vmatprep.mubr.f32.mxu0 %v5054_v63  ;;  %1989 = vmatprep.mubr.f32.mxu1 %v5054_v63  ;;  %v2811_v32 = vld [vmem:[#allocation8 + $0x18] sm:$0xff]  ;;  %v5056_v63 = vld [vmem:[#allocation2 + $0xe8] sm:$0xff] }
 0x1a8   :  { %v5550_v20 = vpop.f32.mrf.mxu0  ;;  %v5552_v42 = vpop.f32.mrf.mxu1  ;;  %3101 = vmatpush1.msra.mxu0 %v2814_v26  ;;  %3550 = vmatpush1.msra.mxu1 %v2878_v14 }
 0x1a9   :  { %8000 = vst [vmem:[#allocation80_spill] sm:$0xff] %v5550_v20  ;;  %8001 = vst [vmem:[#allocation81_spill] sm:$0xff] %v5552_v42  ;;  %3102 = vmatprep.subr.mxu0 %v2813_v17  ;;  %3551 = vmatprep.subr.mxu1 %v2877_v35  ;;  %v2810_v35 = vld [vmem:[#allocation8 + $0x10] sm:$0xff]  ;;  %v2873_v42 = vld [vmem:[#allocation8 + $0x208] sm:$0xff] }
 0x1aa   :  { %v5554_v23 = vpop.f32.mrf.mxu0  ;;  %v5556_v60 = vpop.f32.mrf.mxu1  ;;  %1541 = vmatmul.mubr.f32.gmra.mxu0 %v5055_v5  ;;  %1990 = vmatmul.mubr.f32.gmra.mxu1 %v5055_v5  ;;  %v2874_v17 = vld [vmem:[#allocation8 + $0x210] sm:$0xff]  ;;  %v5057_v5 = vld [vmem:[#allocation2 + $0xe0] sm:$0xff] }
 0x1ab   :  { %8002 = vst [vmem:[#allocation82_spill] sm:$0xff] %v5554_v23  ;;  %8003 = vst [vmem:[#allocation83_spill] sm:$0xff] %v5556_v60  ;;  %1546 = vmatprep.mubr.f32.mxu0 %v5056_v63  ;;  %1995 = vmatprep.mubr.f32.mxu1 %v5056_v63  ;;  %v2809_v23 = vld [vmem:[#allocation8 + $0x8] sm:$0xff]  ;;  %v5058_v63 = vld [vmem:[#allocation2 + $0xf8] sm:$0xff] }
 0x1ac   :  { %v5558_v20 = vpop.f32.mrf.mxu0  ;;  %v5560_v26 = vpop.f32.mrf.mxu1  ;;  %3103 = vmatpush1.msra.mxu0 %v2812_v2  ;;  %3552 = vmatpush1.msra.mxu1 %v2876_v29 }
 0x1ad   :  { %8004 = vst [vmem:[#allocation84_spill] sm:$0xff] %v5558_v20  ;;  %8005 = vst [vmem:[#allocation85_spill] sm:$0xff] %v5560_v26  ;;  %3104 = vmatprep.subr.mxu0 %v2811_v32  ;;  %3553 = vmatprep.subr.mxu1 %v2875_v51  ;;  %v2808_v51 = vld [vmem:[#allocation8] sm:$0xff]  ;;  %v2935_v26 = vld [vmem:[#allocation8 + $0x3f8] sm:$0xff] }
 0x1ae   :  { %v5562_v14 = vpop.f32.mrf.mxu0  ;;  %v5564_v60 = vpop.f32.mrf.mxu1  ;;  %1547 = vmatmul.mubr.f32.gmra.mxu0 %v5057_v5  ;;  %1996 = vmatmul.mubr.f32.gmra.mxu1 %v5057_v5  ;;  %v2872_v32 = vld [vmem:[#allocation8 + $0x200] sm:$0xff]  ;;  %v5059_v5 = vld [vmem:[#allocation2 + $0xf0] sm:$0xff] }
 0x1af   :  { %8006 = vst [vmem:[#allocation86_spill] sm:$0xff] %v5562_v14  ;;  %8007 = vst [vmem:[#allocation87_spill] sm:$0xff] %v5564_v60  ;;  %1552 = vmatprep.mubr.f32.mxu0 %v5058_v63  ;;  %2001 = vmatprep.mubr.f32.mxu1 %v5058_v63  ;;  %v2871_v14 = vld [vmem:[#allocation8 + $0x1f8] sm:$0xff]  ;;  %v5060_v63 = vld [vmem:[#allocation2 + $0x108] sm:$0xff] }
 0x1b0   :  { %v5566_v20 = vpop.f32.mrf.mxu0  ;;  %v5568_v2 = vpop.f32.mrf.mxu1  ;;  %3105 = vmatpush1.msra.mxu0 %v2810_v35  ;;  %3554 = vmatpush1.msra.mxu1 %v2874_v17 }
 0x1b1   :  { %8008 = vst [vmem:[#allocation88_spill] sm:$0xff] %v5566_v20  ;;  %8009 = vst [vmem:[#allocation89_spill] sm:$0xff] %v5568_v2  ;;  %3106 = vmatprep.subr.mxu0 %v2809_v23  ;;  %3555 = vmatprep.subr.mxu1 %v2873_v42  ;;  %v2870_v42 = vld [vmem:[#allocation8 + $0x1f0] sm:$0xff]  ;;  %v2933_v2 = vld [vmem:[#allocation8 + $0x3e8] sm:$0xff] }
 0x1b2   :  { %v5570_v29 = vpop.f32.mrf.mxu0  ;;  %v5572_v60 = vpop.f32.mrf.mxu1  ;;  %1553 = vmatmul.mubr.f32.gmra.mxu0 %v5059_v5  ;;  %2002 = vmatmul.mubr.f32.gmra.mxu1 %v5059_v5  ;;  %v2934_v23 = vld [vmem:[#allocation8 + $0x3f0] sm:$0xff]  ;;  %v5061_v5 = vld [vmem:[#allocation2 + $0x100] sm:$0xff] }
 0x1b3   :  { %8010 = vst [vmem:[#allocation90_spill] sm:$0xff] %v5570_v29  ;;  %8011 = vst [vmem:[#allocation91_spill] sm:$0xff] %v5572_v60  ;;  %1558 = vmatprep.mubr.f32.mxu0 %v5060_v63  ;;  %2007 = vmatprep.mubr.f32.mxu1 %v5060_v63  ;;  %v2869_v29 = vld [vmem:[#allocation8 + $0x1e8] sm:$0xff]  ;;  %v5062_v63 = vld [vmem:[#allocation2 + $0x118] sm:$0xff] }
 0x1b4   :  { %v5574_v20 = vpop.f32.mrf.mxu0  ;;  %v5576_v35 = vpop.f32.mrf.mxu1  ;;  %3107 = vmatpush1.msra.mxu0 %v2808_v51  ;;  %3556 = vmatpush1.msra.mxu1 %v2872_v32 }
 0x1b5   :  { %8012 = vst [vmem:[#allocation92_spill] sm:$0xff] %v5574_v20  ;;  %8013 = vst [vmem:[#allocation93_spill] sm:$0xff] %v5576_v35  ;;  %3108 = vmatprep.subr.mxu0 %v2871_v14  ;;  %3557 = vmatprep.subr.mxu1 %v2935_v26  ;;  %v2868_v26 = vld [vmem:[#allocation8 + $0x1e0] sm:$0xff]  ;;  %v2931_v35 = vld [vmem:[#allocation8 + $0x3d8] sm:$0xff] }
 0x1b6   :  { %v5578_v17 = vpop.f32.mrf.mxu0  ;;  %v5580_v60 = vpop.f32.mrf.mxu1  ;;  %1559 = vmatmul.mubr.f32.gmra.mxu0 %v5061_v5  ;;  %2008 = vmatmul.mubr.f32.gmra.mxu1 %v5061_v5  ;;  %v2932_v14 = vld [vmem:[#allocation8 + $0x3e0] sm:$0xff]  ;;  %v5063_v5 = vld [vmem:[#allocation2 + $0x110] sm:$0xff] }
 0x1b7   :  { %8014 = vst [vmem:[#allocation94_spill] sm:$0xff] %v5578_v17  ;;  %8015 = vst [vmem:[#allocation95_spill] sm:$0xff] %v5580_v60  ;;  %1564 = vmatprep.mubr.f32.mxu0 %v5062_v63  ;;  %2013 = vmatprep.mubr.f32.mxu1 %v5062_v63  ;;  %v2867_v17 = vld [vmem:[#allocation8 + $0x1d8] sm:$0xff]  ;;  %v5064_v63 = vld [vmem:[#allocation2 + $0x128] sm:$0xff] }
 0x1b8   :  { %v5582_v20 = vpop.f32.mrf.mxu0  ;;  %v5584_v51 = vpop.f32.mrf.mxu1  ;;  %3109 = vmatpush2.msra.mxu0 %v2870_v42  ;;  %3558 = vmatpush2.msra.mxu1 %v2934_v23 }
 0x1b9   :  { %8016 = vst [vmem:[#allocation96_spill] sm:$0xff] %v5582_v20  ;;  %8017 = vst [vmem:[#allocation97_spill] sm:$0xff] %v5584_v51  ;;  %3110 = vmatprep.subr.mxu0 %v2869_v29  ;;  %3559 = vmatprep.subr.mxu1 %v2933_v2  ;;  %v2866_v2 = vld [vmem:[#allocation8 + $0x1d0] sm:$0xff]  ;;  %v2929_v51 = vld [vmem:[#allocation8 + $0x3c8] sm:$0xff] }
 0x1ba   :  { %v5586_v32 = vpop.f32.mrf.mxu0  ;;  %v5588_v60 = vpop.f32.mrf.mxu1  ;;  %1565 = vmatmul.mubr.f32.gmra.mxu0 %v5063_v5  ;;  %2014 = vmatmul.mubr.f32.gmra.mxu1 %v5063_v5  ;;  %v2930_v29 = vld [vmem:[#allocation8 + $0x3d0] sm:$0xff]  ;;  %v5065_v5 = vld [vmem:[#allocation2 + $0x120] sm:$0xff] }
 0x1bb   :  { %8018 = vst [vmem:[#allocation98_spill] sm:$0xff] %v5586_v32  ;;  %8019 = vst [vmem:[#allocation99_spill] sm:$0xff] %v5588_v60  ;;  %1570 = vmatprep.mubr.f32.mxu0 %v5064_v63  ;;  %2019 = vmatprep.mubr.f32.mxu1 %v5064_v63  ;;  %v2865_v32 = vld [vmem:[#allocation8 + $0x1c8] sm:$0xff]  ;;  %v5066_v63 = vld [vmem:[#allocation2 + $0x138] sm:$0xff] }
 0x1bc   :  { %v5590_v20 = vpop.f32.mrf.mxu0  ;;  %v5592_v42 = vpop.f32.mrf.mxu1  ;;  %3111 = vmatpush2.msra.mxu0 %v2868_v26  ;;  %3560 = vmatpush2.msra.mxu1 %v2932_v14 }
 0x1bd   :  { %8020 = vst [vmem:[#allocation100_spill] sm:$0xff] %v5590_v20  ;;  %8021 = vst [vmem:[#allocation101_spill] sm:$0xff] %v5592_v42  ;;  %3112 = vmatprep.subr.mxu0 %v2867_v17  ;;  %3561 = vmatprep.subr.mxu1 %v2931_v35  ;;  %v2864_v35 = vld [vmem:[#allocation8 + $0x1c0] sm:$0xff]  ;;  %v2927_v42 = vld [vmem:[#allocation8 + $0x3b8] sm:$0xff] }
 0x1be   :  { %v5594_v23 = vpop.f32.mrf.mxu0  ;;  %v5596_v60 = vpop.f32.mrf.mxu1  ;;  %1571 = vmatmul.mubr.f32.gmra.mxu0 %v5065_v5  ;;  %2020 = vmatmul.mubr.f32.gmra.mxu1 %v5065_v5  ;;  %v2928_v17 = vld [vmem:[#allocation8 + $0x3c0] sm:$0xff]  ;;  %v5067_v5 = vld [vmem:[#allocation2 + $0x130] sm:$0xff] }
 0x1bf   :  { %8022 = vst [vmem:[#allocation102_spill] sm:$0xff] %v5594_v23  ;;  %8023 = vst [vmem:[#allocation103_spill] sm:$0xff] %v5596_v60  ;;  %1576 = vmatprep.mubr.f32.mxu0 %v5066_v63  ;;  %2025 = vmatprep.mubr.f32.mxu1 %v5066_v63  ;;  %v2863_v23 = vld [vmem:[#allocation8 + $0x1b8] sm:$0xff]  ;;  %v5068_v63 = vld [vmem:[#allocation2 + $0x148] sm:$0xff] }
 0x1c0   :  { %v5598_v20 = vpop.f32.mrf.mxu0  ;;  %v5600_v26 = vpop.f32.mrf.mxu1  ;;  %3113 = vmatpush2.msra.mxu0 %v2866_v2  ;;  %3562 = vmatpush2.msra.mxu1 %v2930_v29 }
 0x1c1   :  { %8024 = vst [vmem:[#allocation104_spill] sm:$0xff] %v5598_v20  ;;  %8025 = vst [vmem:[#allocation105_spill] sm:$0xff] %v5600_v26  ;;  %3114 = vmatprep.subr.mxu0 %v2865_v32  ;;  %3563 = vmatprep.subr.mxu1 %v2929_v51  ;;  %v2862_v51 = vld [vmem:[#allocation8 + $0x1b0] sm:$0xff]  ;;  %v2925_v26 = vld [vmem:[#allocation8 + $0x3a8] sm:$0xff] }
 0x1c2   :  { %v5602_v14 = vpop.f32.mrf.mxu0  ;;  %v5604_v60 = vpop.f32.mrf.mxu1  ;;  %1577 = vmatmul.mubr.f32.gmra.mxu0 %v5067_v5  ;;  %2026 = vmatmul.mubr.f32.gmra.mxu1 %v5067_v5  ;;  %v2926_v32 = vld [vmem:[#allocation8 + $0x3b0] sm:$0xff]  ;;  %v5069_v5 = vld [vmem:[#allocation2 + $0x140] sm:$0xff] }
 0x1c3   :  { %8026 = vst [vmem:[#allocation106_spill] sm:$0xff] %v5602_v14  ;;  %8027 = vst [vmem:[#allocation107_spill] sm:$0xff] %v5604_v60  ;;  %1582 = vmatprep.mubr.f32.mxu0 %v5068_v63  ;;  %2031 = vmatprep.mubr.f32.mxu1 %v5068_v63  ;;  %v2861_v14 = vld [vmem:[#allocation8 + $0x1a8] sm:$0xff]  ;;  %v5070_v63 = vld [vmem:[#allocation2 + $0x158] sm:$0xff] }
 0x1c4   :  { %v5606_v20 = vpop.f32.mrf.mxu0  ;;  %v5608_v2 = vpop.f32.mrf.mxu1  ;;  %3115 = vmatpush2.msra.mxu0 %v2864_v35  ;;  %3564 = vmatpush2.msra.mxu1 %v2928_v17 }
 0x1c5   :  { %8028 = vst [vmem:[#allocation108_spill] sm:$0xff] %v5606_v20  ;;  %8029 = vst [vmem:[#allocation109_spill] sm:$0xff] %v5608_v2  ;;  %3116 = vmatprep.subr.mxu0 %v2863_v23  ;;  %3565 = vmatprep.subr.mxu1 %v2927_v42  ;;  %v2860_v42 = vld [vmem:[#allocation8 + $0x1a0] sm:$0xff]  ;;  %v2923_v2 = vld [vmem:[#allocation8 + $0x398] sm:$0xff] }
 0x1c6   :  { %v5610_v29 = vpop.f32.mrf.mxu0  ;;  %v5612_v60 = vpop.f32.mrf.mxu1  ;;  %1583 = vmatmul.mubr.f32.gmra.mxu0 %v5069_v5  ;;  %2032 = vmatmul.mubr.f32.gmra.mxu1 %v5069_v5  ;;  %v2924_v23 = vld [vmem:[#allocation8 + $0x3a0] sm:$0xff]  ;;  %v5071_v5 = vld [vmem:[#allocation2 + $0x150] sm:$0xff] }
 0x1c7   :  { %8030 = vst [vmem:[#allocation110_spill] sm:$0xff] %v5610_v29  ;;  %8031 = vst [vmem:[#allocation111_spill] sm:$0xff] %v5612_v60  ;;  %1588 = vmatprep.mubr.f32.mxu0 %v5070_v63  ;;  %2037 = vmatprep.mubr.f32.mxu1 %v5070_v63  ;;  %v2859_v29 = vld [vmem:[#allocation8 + $0x198] sm:$0xff]  ;;  %v5072_v63 = vld [vmem:[#allocation2 + $0x168] sm:$0xff] }
 0x1c8   :  { %v5614_v20 = vpop.f32.mrf.mxu0  ;;  %v5616_v35 = vpop.f32.mrf.mxu1  ;;  %3117 = vmatpush2.msra.mxu0 %v2862_v51  ;;  %3566 = vmatpush2.msra.mxu1 %v2926_v32 }
 0x1c9   :  { %8032 = vst [vmem:[#allocation112_spill] sm:$0xff] %v5614_v20  ;;  %8033 = vst [vmem:[#allocation113_spill] sm:$0xff] %v5616_v35  ;;  %3118 = vmatprep.subr.mxu0 %v2861_v14  ;;  %3567 = vmatprep.subr.mxu1 %v2925_v26  ;;  %v2858_v26 = vld [vmem:[#allocation8 + $0x190] sm:$0xff]  ;;  %v2921_v35 = vld [vmem:[#allocation8 + $0x388] sm:$0xff] }
 0x1ca   :  { %v5618_v17 = vpop.f32.mrf.mxu0  ;;  %v5620_v60 = vpop.f32.mrf.mxu1  ;;  %1589 = vmatmul.mubr.f32.gmra.mxu0 %v5071_v5  ;;  %2038 = vmatmul.mubr.f32.gmra.mxu1 %v5071_v5  ;;  %v2922_v14 = vld [vmem:[#allocation8 + $0x390] sm:$0xff]  ;;  %v5073_v5 = vld [vmem:[#allocation2 + $0x160] sm:$0xff] }
 0x1cb   :  { %8034 = vst [vmem:[#allocation114_spill] sm:$0xff] %v5618_v17  ;;  %8035 = vst [vmem:[#allocation115_spill] sm:$0xff] %v5620_v60  ;;  %1594 = vmatprep.mubr.f32.mxu0 %v5072_v63  ;;  %2043 = vmatprep.mubr.f32.mxu1 %v5072_v63  ;;  %v2857_v17 = vld [vmem:[#allocation8 + $0x188] sm:$0xff]  ;;  %v5074_v63 = vld [vmem:[#allocation2 + $0x178] sm:$0xff] }
 0x1cc   :  { %v5622_v20 = vpop.f32.mrf.mxu0  ;;  %v5624_v51 = vpop.f32.mrf.mxu1  ;;  %3119 = vmatpush2.msra.mxu0 %v2860_v42  ;;  %3568 = vmatpush2.msra.mxu1 %v2924_v23 }
 0x1cd   :  { %8036 = vst [vmem:[#allocation116_spill] sm:$0xff] %v5622_v20  ;;  %8037 = vst [vmem:[#allocation117_spill] sm:$0xff] %v5624_v51  ;;  %3120 = vmatprep.subr.mxu0 %v2859_v29  ;;  %3569 = vmatprep.subr.mxu1 %v2923_v2  ;;  %v2856_v2 = vld [vmem:[#allocation8 + $0x180] sm:$0xff]  ;;  %v2919_v51 = vld [vmem:[#allocation8 + $0x378] sm:$0xff] }
 0x1ce   :  { %v5626_v32 = vpop.f32.mrf.mxu0  ;;  %v5628_v60 = vpop.f32.mrf.mxu1  ;;  %1595 = vmatmul.mubr.f32.gmra.mxu0 %v5073_v5  ;;  %2044 = vmatmul.mubr.f32.gmra.mxu1 %v5073_v5  ;;  %v2920_v29 = vld [vmem:[#allocation8 + $0x380] sm:$0xff]  ;;  %v5075_v5 = vld [vmem:[#allocation2 + $0x170] sm:$0xff] }
 0x1cf   :  { %8038 = vst [vmem:[#allocation118_spill] sm:$0xff] %v5626_v32  ;;  %8039 = vst [vmem:[#allocation119_spill] sm:$0xff] %v5628_v60  ;;  %1600 = vmatprep.mubr.f32.mxu0 %v5074_v63  ;;  %2049 = vmatprep.mubr.f32.mxu1 %v5074_v63  ;;  %v2855_v32 = vld [vmem:[#allocation8 + $0x178] sm:$0xff]  ;;  %v5076_v63 = vld [vmem:[#allocation2 + $0x188] sm:$0xff] }
 0x1d0   :  { %v5630_v20 = vpop.f32.mrf.mxu0  ;;  %v5632_v42 = vpop.f32.mrf.mxu1  ;;  %3121 = vmatpush2.msra.mxu0 %v2858_v26  ;;  %3570 = vmatpush2.msra.mxu1 %v2922_v14 }
 0x1d1   :  { %8040 = vst [vmem:[#allocation120_spill] sm:$0xff] %v5630_v20  ;;  %8041 = vst [vmem:[#allocation121_spill] sm:$0xff] %v5632_v42  ;;  %3122 = vmatprep.subr.mxu0 %v2857_v17  ;;  %3571 = vmatprep.subr.mxu1 %v2921_v35  ;;  %v2854_v35 = vld [vmem:[#allocation8 + $0x170] sm:$0xff]  ;;  %v2917_v42 = vld [vmem:[#allocation8 + $0x368] sm:$0xff] }
 0x1d2   :  { %v5634_v23 = vpop.f32.mrf.mxu0  ;;  %v5636_v60 = vpop.f32.mrf.mxu1  ;;  %1601 = vmatmul.mubr.f32.gmra.mxu0 %v5075_v5  ;;  %2050 = vmatmul.mubr.f32.gmra.mxu1 %v5075_v5  ;;  %v2918_v17 = vld [vmem:[#allocation8 + $0x370] sm:$0xff]  ;;  %v5077_v5 = vld [vmem:[#allocation2 + $0x180] sm:$0xff] }
 0x1d3   :  { %8042 = vst [vmem:[#allocation122_spill] sm:$0xff] %v5634_v23  ;;  %8043 = vst [vmem:[#allocation123_spill] sm:$0xff] %v5636_v60  ;;  %1606 = vmatprep.mubr.f32.mxu0 %v5076_v63  ;;  %2055 = vmatprep.mubr.f32.mxu1 %v5076_v63  ;;  %v2853_v23 = vld [vmem:[#allocation8 + $0x168] sm:$0xff]  ;;  %v5078_v63 = vld [vmem:[#allocation2 + $0x198] sm:$0xff] }
 0x1d4   :  { %v5638_v20 = vpop.f32.mrf.mxu0  ;;  %v5640_v26 = vpop.f32.mrf.mxu1  ;;  %3123 = vmatpush2.msra.mxu0 %v2856_v2  ;;  %3572 = vmatpush2.msra.mxu1 %v2920_v29 }
 0x1d5   :  { %8044 = vst [vmem:[#allocation124_spill] sm:$0xff] %v5638_v20  ;;  %8045 = vst [vmem:[#allocation125_spill] sm:$0xff] %v5640_v26  ;;  %3124 = vmatprep.subr.mxu0 %v2855_v32  ;;  %3573 = vmatprep.subr.mxu1 %v2919_v51  ;;  %v2852_v51 = vld [vmem:[#allocation8 + $0x160] sm:$0xff]  ;;  %v2915_v26 = vld [vmem:[#allocation8 + $0x358] sm:$0xff] }
 0x1d6   :  { %v5642_v14 = vpop.f32.mrf.mxu0  ;;  %v5644_v60 = vpop.f32.mrf.mxu1  ;;  %1607 = vmatmul.mubr.f32.gmra.mxu0 %v5077_v5  ;;  %2056 = vmatmul.mubr.f32.gmra.mxu1 %v5077_v5  ;;  %v2916_v32 = vld [vmem:[#allocation8 + $0x360] sm:$0xff]  ;;  %v5079_v5 = vld [vmem:[#allocation2 + $0x190] sm:$0xff] }
 0x1d7   :  { %8046 = vst [vmem:[#allocation126_spill] sm:$0xff] %v5642_v14  ;;  %8047 = vst [vmem:[#allocation127_spill] sm:$0xff] %v5644_v60  ;;  %1612 = vmatprep.mubr.f32.mxu0 %v5078_v63  ;;  %2061 = vmatprep.mubr.f32.mxu1 %v5078_v63  ;;  %v2851_v14 = vld [vmem:[#allocation8 + $0x158] sm:$0xff]  ;;  %v5080_v63 = vld [vmem:[#allocation2 + $0x1a8] sm:$0xff] }
 0x1d8   :  { %v5646_v20 = vpop.f32.mrf.mxu0  ;;  %v5648_v2 = vpop.f32.mrf.mxu1  ;;  %3125 = vmatpush2.msra.mxu0 %v2854_v35  ;;  %3574 = vmatpush2.msra.mxu1 %v2918_v17 }
 0x1d9   :  { %8048 = vst [vmem:[#allocation128_spill] sm:$0xff] %v5646_v20  ;;  %8049 = vst [vmem:[#allocation129_spill] sm:$0xff] %v5648_v2  ;;  %3126 = vmatprep.subr.mxu0 %v2853_v23  ;;  %3575 = vmatprep.subr.mxu1 %v2917_v42  ;;  %v2850_v42 = vld [vmem:[#allocation8 + $0x150] sm:$0xff]  ;;  %v2913_v2 = vld [vmem:[#allocation8 + $0x348] sm:$0xff] }
 0x1da   :  { %v5650_v29 = vpop.f32.mrf.mxu0  ;;  %v5652_v60 = vpop.f32.mrf.mxu1  ;;  %1613 = vmatmul.mubr.f32.gmra.mxu0 %v5079_v5  ;;  %2062 = vmatmul.mubr.f32.gmra.mxu1 %v5079_v5  ;;  %v2914_v23 = vld [vmem:[#allocation8 + $0x350] sm:$0xff]  ;;  %v5081_v5 = vld [vmem:[#allocation2 + $0x1a0] sm:$0xff] }
 0x1db   :  { %8050 = vst [vmem:[#allocation130_spill] sm:$0xff] %v5650_v29  ;;  %8051 = vst [vmem:[#allocation131_spill] sm:$0xff] %v5652_v60  ;;  %1618 = vmatprep.mubr.f32.mxu0 %v5080_v63  ;;  %2067 = vmatprep.mubr.f32.mxu1 %v5080_v63  ;;  %v2849_v29 = vld [vmem:[#allocation8 + $0x148] sm:$0xff]  ;;  %v5082_v63 = vld [vmem:[#allocation2 + $0x1b8] sm:$0xff] }
 0x1dc   :  { %v5654_v20 = vpop.f32.mrf.mxu0  ;;  %v5656_v35 = vpop.f32.mrf.mxu1  ;;  %3127 = vmatpush2.msra.mxu0 %v2852_v51  ;;  %3576 = vmatpush2.msra.mxu1 %v2916_v32 }
 0x1dd   :  { %8052 = vst [vmem:[#allocation132_spill] sm:$0xff] %v5654_v20  ;;  %8053 = vst [vmem:[#allocation133_spill] sm:$0xff] %v5656_v35  ;;  %3128 = vmatprep.subr.mxu0 %v2851_v14  ;;  %3577 = vmatprep.subr.mxu1 %v2915_v26  ;;  %v2848_v26 = vld [vmem:[#allocation8 + $0x140] sm:$0xff]  ;;  %v2911_v35 = vld [vmem:[#allocation8 + $0x338] sm:$0xff] }
 0x1de   :  { %v5658_v17 = vpop.f32.mrf.mxu0  ;;  %v5660_v60 = vpop.f32.mrf.mxu1  ;;  %1619 = vmatmul.mubr.f32.gmra.mxu0 %v5081_v5  ;;  %2068 = vmatmul.mubr.f32.gmra.mxu1 %v5081_v5  ;;  %v2912_v14 = vld [vmem:[#allocation8 + $0x340] sm:$0xff]  ;;  %v5083_v5 = vld [vmem:[#allocation2 + $0x1b0] sm:$0xff] }
 0x1df   :  { %8054 = vst [vmem:[#allocation134_spill] sm:$0xff] %v5658_v17  ;;  %8055 = vst [vmem:[#allocation135_spill] sm:$0xff] %v5660_v60  ;;  %1624 = vmatprep.mubr.f32.mxu0 %v5082_v63  ;;  %2073 = vmatprep.mubr.f32.mxu1 %v5082_v63  ;;  %v2847_v17 = vld [vmem:[#allocation8 + $0x138] sm:$0xff]  ;;  %v5084_v63 = vld [vmem:[#allocation2 + $0x1c8] sm:$0xff] }
 0x1e0   :  { %v5662_v20 = vpop.f32.mrf.mxu0  ;;  %v5664_v51 = vpop.f32.mrf.mxu1  ;;  %3129 = vmatpush2.msra.mxu0 %v2850_v42  ;;  %3578 = vmatpush2.msra.mxu1 %v2914_v23 }
 0x1e1   :  { %8056 = vst [vmem:[#allocation136_spill] sm:$0xff] %v5662_v20  ;;  %8057 = vst [vmem:[#allocation137_spill] sm:$0xff] %v5664_v51  ;;  %3130 = vmatprep.subr.mxu0 %v2849_v29  ;;  %3579 = vmatprep.subr.mxu1 %v2913_v2  ;;  %v2846_v2 = vld [vmem:[#allocation8 + $0x130] sm:$0xff]  ;;  %v2909_v51 = vld [vmem:[#allocation8 + $0x328] sm:$0xff] }
 0x1e2   :  { %v5666_v32 = vpop.f32.mrf.mxu0  ;;  %v5668_v60 = vpop.f32.mrf.mxu1  ;;  %1625 = vmatmul.mubr.f32.gmra.mxu0 %v5083_v5  ;;  %2074 = vmatmul.mubr.f32.gmra.mxu1 %v5083_v5  ;;  %v2910_v29 = vld [vmem:[#allocation8 + $0x330] sm:$0xff]  ;;  %v5085_v5 = vld [vmem:[#allocation2 + $0x1c0] sm:$0xff] }
 0x1e3   :  { %8058 = vst [vmem:[#allocation138_spill] sm:$0xff] %v5666_v32  ;;  %8059 = vst [vmem:[#allocation139_spill] sm:$0xff] %v5668_v60  ;;  %1630 = vmatprep.mubr.f32.mxu0 %v5084_v63  ;;  %2079 = vmatprep.mubr.f32.mxu1 %v5084_v63  ;;  %v2845_v32 = vld [vmem:[#allocation8 + $0x128] sm:$0xff]  ;;  %v5086_v63 = vld [vmem:[#allocation2 + $0x1d8] sm:$0xff] }
 0x1e4   :  { %v5670_v20 = vpop.f32.mrf.mxu0  ;;  %v5672_v42 = vpop.f32.mrf.mxu1  ;;  %3131 = vmatpush2.msra.mxu0 %v2848_v26  ;;  %3580 = vmatpush2.msra.mxu1 %v2912_v14 }
 0x1e5   :  { %8060 = vst [vmem:[#allocation140_spill] sm:$0xff] %v5670_v20  ;;  %8061 = vst [vmem:[#allocation141_spill] sm:$0xff] %v5672_v42  ;;  %3132 = vmatprep.subr.mxu0 %v2847_v17  ;;  %3581 = vmatprep.subr.mxu1 %v2911_v35  ;;  %v2844_v35 = vld [vmem:[#allocation8 + $0x120] sm:$0xff] }
 0x1e6   :  { %v5674_v23 = vpop.f32.mrf.mxu0  ;;  %v5676_v60 = vpop.f32.mrf.mxu1  ;;  %1631 = vmatmul.mubr.f32.gmra.mxu0 %v5085_v5  ;;  %2080 = vmatmul.mubr.f32.gmra.mxu1 %v5085_v5  ;;  %v2908_v17 = vld [vmem:[#allocation8 + $0x320] sm:$0xff]  ;;  %v5087_v5 = vld [vmem:[#allocation2 + $0x1d0] sm:$0xff] }
 0x1e7   :  { %8062 = vst [vmem:[#allocation142_spill] sm:$0xff] %v5674_v23  ;;  %8063 = vst [vmem:[#allocation143_spill] sm:$0xff] %v5676_v60  ;;  %1636 = vmatprep.mubr.f32.mxu0 %v5086_v63  ;;  %2085 = vmatprep.mubr.f32.mxu1 %v5086_v63  ;;  %v2843_v23 = vld [vmem:[#allocation8 + $0x118] sm:$0xff]  ;;  %v5088_v42 = vld [vmem:[#allocation2 + $0x1e8] sm:$0xff] }
 0x1e8   :  { %v5678_v20 = vpop.f32.mrf.mxu0  ;;  %v5680_v26 = vpop.f32.mrf.mxu1  ;;  %3133 = vmatpush2.msra.mxu0 %v2846_v2  ;;  %3582 = vmatpush2.msra.mxu1 %v2910_v29  ;;  %v2907_v63 = vld [vmem:[#allocation8 + $0x318] sm:$0xff] }
 0x1e9   :  { %8064 = vst [vmem:[#allocation144_spill] sm:$0xff] %v5678_v20  ;;  %8065 = vst [vmem:[#allocation145_spill] sm:$0xff] %v5680_v26  ;;  %3134 = vmatprep.subr.mxu0 %v2845_v32  ;;  %3583 = vmatprep.subr.mxu1 %v2909_v51  ;;  %v2842_v51 = vld [vmem:[#allocation8 + $0x110] sm:$0xff] }
 0x1ea   :  { %v5682_v14 = vpop.f32.mrf.mxu0  ;;  %v5684_v60 = vpop.f32.mrf.mxu1  ;;  %1637 = vmatmul.mubr.f32.gmra.mxu0 %v5087_v5  ;;  %2086 = vmatmul.mubr.f32.gmra.mxu1 %v5087_v5  ;;  %v2906_v32 = vld [vmem:[#allocation8 + $0x310] sm:$0xff]  ;;  %v5089_v5 = vld [vmem:[#allocation2 + $0x1e0] sm:$0xff] }
 0x1eb   :  { %8066 = vst [vmem:[#allocation146_spill] sm:$0xff] %v5682_v14  ;;  %8067 = vst [vmem:[#allocation147_spill] sm:$0xff] %v5684_v60  ;;  %1642 = vmatprep.mubr.f32.mxu0 %v5088_v42  ;;  %2091 = vmatprep.mubr.f32.mxu1 %v5088_v42  ;;  %v5090_v14 = vld [vmem:[#allocation2 + $0x1f8] sm:$0xff] }
 0x1ec   :  { %v5686_v20 = vpop.f32.mrf.mxu0  ;;  %v5688_v2 = vpop.f32.mrf.mxu1  ;;  %3135 = vmatpush2.msra.mxu0 %v2844_v35  ;;  %3584 = vmatpush2.msra.mxu1 %v2908_v17 }
 0x1ed   :  { %8068 = vst [vmem:[#allocation148_spill] sm:$0xff] %v5686_v20  ;;  %8069 = vst [vmem:[#allocation149_spill] sm:$0xff] %v5688_v2  ;;  %3136 = vmatprep.subr.mxu0 %v2843_v23  ;;  %3585 = vmatprep.subr.mxu1 %v2907_v63  ;;  %v2841_v23 = vld [vmem:[#allocation8 + $0x108] sm:$0xff] }
 0x1ee   :  { %v5690_v29 = vpop.f32.mrf.mxu0  ;;  %v5692_v60 = vpop.f32.mrf.mxu1  ;;  %1643 = vmatmul.mubr.f32.gmra.mxu0 %v5089_v5  ;;  %2092 = vmatmul.mubr.f32.gmra.mxu1 %v5089_v5  ;;  %v5091_v63 = vld [vmem:[#allocation2 + $0x1f0] sm:$0xff] }
 0x1ef   :  { %8070 = vst [vmem:[#allocation150_spill] sm:$0xff] %v5690_v29  ;;  %8071 = vst [vmem:[#allocation151_spill] sm:$0xff] %v5692_v60  ;;  %1648 = vmatprep.mubr.f32.mxu0 %v5090_v14  ;;  %2097 = vmatprep.mubr.f32.mxu1 %v5090_v14  ;;  %v2840_v60 = vld [vmem:[#allocation8 + $0x100] sm:$0xff]  ;;  %v2905_v5 = vld [vmem:[#allocation8 + $0x308] sm:$0xff] }
 0x1f0   :  { %v5694_v42 = vpop.f32.mrf.mxu0  ;;  %v5696_v20 = vpop.f32.mrf.mxu1  ;;  %3137 = vmatpush2.msra.mxu0 %v2842_v51  ;;  %3586 = vmatpush2.msra.mxu1 %v2906_v32  ;;  %v5092_v29 = vld [vmem:[#allocation2 + $0x208] sm:$0xff] }
 0x1f1   :  { %8072 = vst [vmem:[#allocation152_spill] sm:$0xff] %v5694_v42  ;;  %8073 = vst [vmem:[#allocation153_spill] sm:$0xff] %v5696_v20  ;;  %v2904_v14 = vld [vmem:[#allocation8 + $0x300] sm:$0xff]  ;;  %3138 = vmatprep.subr.mxu0 %v2841_v23  ;;  %3587 = vmatprep.subr.mxu1 %v2905_v5 }
 0x1f2   :  { %v5698_v35 = vpop.f32.mrf.mxu0  ;;  %v5700_v17 = vpop.f32.mrf.mxu1  ;;  %1649 = vmatmul.mubr.f32.gmra.mxu0 %v5091_v63  ;;  %2098 = vmatmul.mubr.f32.gmra.mxu1 %v5091_v63  ;;  %v5094_v63 = vld [vmem:[#allocation2 + $0x218] sm:$0xff]  ;;  %v5096_v5 = vld [vmem:[#allocation2 + $0x228] sm:$0xff] }
 0x1f3   :  { %8074 = vst [vmem:[#allocation154_spill] sm:$0xff] %v5698_v35  ;;  %8075 = vst [vmem:[#allocation155_spill] sm:$0xff] %v5700_v17  ;;  %1654 = vmatprep.mubr.f32.mxu0 %v5092_v29  ;;  %2103 = vmatprep.mubr.f32.mxu1 %v5092_v29  ;;  %v5093_v17 = vld [vmem:[#allocation2 + $0x200] sm:$0xff] }
 0x1f4   :  { %v5702_v2 = vpop.f32.mrf.mxu0  ;;  %v5704_v42 = vpop.f32.mrf.mxu1  ;;  %3139 = vmatpush2.msra.mxu0 %v2840_v60  ;;  %3588 = vmatpush2.msra.mxu1 %v2904_v14  ;;  %v5095_v60 = vld [vmem:[#allocation2 + $0x210] sm:$0xff]  ;;  %v3031_v14 = vld [vmem:[#allocation8 + $0x6f8] sm:$0xff] }
 0x1f5   :  { %8076 = vst [vmem:[#allocation156_spill] sm:$0xff] %v5702_v2  ;;  %8077 = vst [vmem:[#allocation157_spill] sm:$0xff] %v5704_v42  ;;  %v2967_v2 = vld [vmem:[#allocation8 + $0x4f8] sm:$0xff]  ;;  %4423 = vmatprep.subr.mxu1 %v3031_v14  ;;  %v5100_v14 = vld [vmem:[#allocation2 + $0x248] sm:$0xff] }
 0x1f6   :  { %v5706_v51 = vpop.f32.mrf.mxu0  ;;  %v5708_v32 = vpop.f32.mrf.mxu1  ;;  %1655 = vmatmul.mubr.f32.gmra.mxu0 %v5093_v17  ;;  %2104 = vmatmul.mubr.f32.gmra.mxu1 %v5093_v17 }
 0x1f7   :  { %8078 = vst [vmem:[#allocation158_spill] sm:$0xff] %v5706_v51  ;;  %8079 = vst [vmem:[#allocation159_spill] sm:$0xff] %v5708_v32  ;;  %1660 = vmatprep.mubr.f32.mxu0 %v5094_v63  ;;  %2109 = vmatprep.mubr.f32.mxu1 %v5094_v63 }
 0x1f8   :  { %v5710_v29 = vpop.f32.mrf.mxu0  ;;  %v5712_v35 = vpop.f32.mrf.mxu1  ;;  %3974 = vmatprep.subr.mxu0 %v2967_v2  ;;  %v5099_v2 = vld [vmem:[#allocation2 + $0x230] sm:$0xff] }
 0x1f9   :  { %8080 = vst [vmem:[#allocation160_spill] sm:$0xff] %v5710_v29  ;;  %8081 = vst [vmem:[#allocation161_spill] sm:$0xff] %v5712_v35 }
 0x1fa   :  { %v5714_v42 = vpop.f32.mrf.mxu0  ;;  %v5716_v23 = vpop.f32.mrf.mxu1  ;;  %1661 = vmatmul.mubr.f32.gmra.mxu0 %v5095_v60  ;;  %2110 = vmatmul.mubr.f32.gmra.mxu1 %v5095_v60 }
 0x1fb   :  { %8082 = vst [vmem:[#allocation162_spill] sm:$0xff] %v5714_v42  ;;  %8083 = vst [vmem:[#allocation163_spill] sm:$0xff] %v5716_v23  ;;  %1666 = vmatprep.mubr.f32.mxu0 %v5096_v5  ;;  %2115 = vmatprep.mubr.f32.mxu1 %v5096_v5  ;;  %v5097_v42 = vld [vmem:[#allocation2 + $0x220] sm:$0xff]  ;;  %v5098_v23 = vld [vmem:[#allocation2 + $0x238] sm:$0xff] }
 0x1fc   :  { %v5718_v17 = vpop.f32.mrf.mxu0  ;;  %v5720_v32 = vpop.f32.mrf.mxu1 }
 0x1fd   :  { %8084 = vst [vmem:[#allocation164_spill] sm:$0xff] %v5718_v17  ;;  %8085 = vst [vmem:[#allocation165_spill] sm:$0xff] %v5720_v32  ;;  %v5148_v32 = vld [vmem:[#allocation2 + $0x3c8] sm:$0xff] }
 0x1fe   :  { %v5722_v63 = vpop.f32.mrf.mxu0  ;;  %v5724_v51 = vpop.f32.mrf.mxu1  ;;  %1667 = vmatmul.mubr.f32.gmra.mxu0 %v5097_v42  ;;  %2116 = vmatmul.mubr.f32.gmra.mxu1 %v5097_v42 }
 0x1ff   :  { %8086 = vst [vmem:[#allocation166_spill] sm:$0xff] %v5722_v63  ;;  %8087 = vst [vmem:[#allocation167_spill] sm:$0xff] %v5724_v51  ;;  %1672 = vmatprep.mubr.f32.mxu0 %v5098_v23  ;;  %2121 = vmatprep.mubr.f32.mxu1 %v5098_v23 }
 0x200   :  { %v5726_v60 = vpop.f32.mrf.mxu0  ;;  %v5728_v5 = vpop.f32.mrf.mxu1 }
 0x201   :  { %8088 = vst [vmem:[#allocation168_spill] sm:$0xff] %v5726_v60  ;;  %8089 = vst [vmem:[#allocation169_spill] sm:$0xff] %v5728_v5  ;;  %v5101_v60 = vld [vmem:[#allocation2 + $0x240] sm:$0xff] }
 0x202   :  { %v5730_v35 = vpop.f32.mrf.mxu0  ;;  %v5732_v17 = vpop.f32.mrf.mxu1  ;;  %1673 = vmatmul.mubr.f32.gmra.mxu0 %v5099_v2  ;;  %2122 = vmatmul.mubr.f32.gmra.mxu1 %v5099_v2 }
 0x203   :  { %8090 = vst [vmem:[#allocation170_spill] sm:$0xff] %v5730_v35  ;;  %8091 = vst [vmem:[#allocation171_spill] sm:$0xff] %v5732_v17  ;;  %1678 = vmatprep.mubr.f32.mxu0 %v5100_v14  ;;  %2127 = vmatprep.mubr.f32.mxu1 %v5100_v14  ;;  %v5102_v35 = vld [vmem:[#allocation2 + $0x258] sm:$0xff] }
 0x204   :  { %v5734_v51 = vpop.f32.mrf.mxu0  ;;  %v5736_v42 = vpop.f32.mrf.mxu1 }
 0x205   :  { %8092 = vst [vmem:[#allocation172_spill] sm:$0xff] %v5734_v51  ;;  %8093 = vst [vmem:[#allocation173_spill] sm:$0xff] %v5736_v42  ;;  %v5103_v51 = vld [vmem:[#allocation2 + $0x250] sm:$0xff] }
 0x206   :  { %v5738_v63 = vpop.f32.mrf.mxu0  ;;  %v5740_v23 = vpop.f32.mrf.mxu1  ;;  %1679 = vmatmul.mubr.f32.gmra.mxu0 %v5101_v60  ;;  %2128 = vmatmul.mubr.f32.gmra.mxu1 %v5101_v60 }
 0x207   :  { %8094 = vst [vmem:[#allocation174_spill] sm:$0xff] %v5738_v63  ;;  %8095 = vst [vmem:[#allocation175_spill] sm:$0xff] %v5740_v23  ;;  %1684 = vmatprep.mubr.f32.mxu0 %v5102_v35  ;;  %2133 = vmatprep.mubr.f32.mxu1 %v5102_v35  ;;  %v5104_v63 = vld [vmem:[#allocation2 + $0x268] sm:$0xff] }
 0x208   :  { %v5742_v17 = vpop.f32.mrf.mxu0  ;;  %v5744_v2 = vpop.f32.mrf.mxu1 }
 0x209   :  { %8096 = vst [vmem:[#allocation176_spill] sm:$0xff] %v5742_v17  ;;  %8097 = vst [vmem:[#allocation177_spill] sm:$0xff] %v5744_v2  ;;  %v5105_v17 = vld [vmem:[#allocation2 + $0x260] sm:$0xff] }
 0x20a   :  { %v5746_v5 = vpop.f32.mrf.mxu0  ;;  %v5748_v14 = vpop.f32.mrf.mxu1  ;;  %1685 = vmatmul.mubr.f32.gmra.mxu0 %v5103_v51  ;;  %2134 = vmatmul.mubr.f32.gmra.mxu1 %v5103_v51 }
 0x20b   :  { %8098 = vst [vmem:[#allocation178_spill] sm:$0xff] %v5746_v5  ;;  %8099 = vst [vmem:[#allocation179_spill] sm:$0xff] %v5748_v14  ;;  %1690 = vmatprep.mubr.f32.mxu0 %v5104_v63  ;;  %2139 = vmatprep.mubr.f32.mxu1 %v5104_v63  ;;  %v5106_v5 = vld [vmem:[#allocation2 + $0x278] sm:$0xff] }
 0x20c   :  { %v5750_v23 = vpop.f32.mrf.mxu0  ;;  %v5752_v60 = vpop.f32.mrf.mxu1 }
 0x20d   :  { %8100 = vst [vmem:[#allocation180_spill] sm:$0xff] %v5750_v23  ;;  %8101 = vst [vmem:[#allocation181_spill] sm:$0xff] %v5752_v60  ;;  %v5107_v23 = vld [vmem:[#allocation2 + $0x270] sm:$0xff] }
 0x20e   :  { %v5754_v42 = vpop.f32.mrf.mxu0  ;;  %v5756_v35 = vpop.f32.mrf.mxu1  ;;  %1691 = vmatmul.mubr.f32.gmra.mxu0 %v5105_v17  ;;  %2140 = vmatmul.mubr.f32.gmra.mxu1 %v5105_v17 }
 0x20f   :  { %8102 = vst [vmem:[#allocation182_spill] sm:$0xff] %v5754_v42  ;;  %8103 = vst [vmem:[#allocation183_spill] sm:$0xff] %v5756_v35  ;;  %1696 = vmatprep.mubr.f32.mxu0 %v5106_v5  ;;  %2145 = vmatprep.mubr.f32.mxu1 %v5106_v5  ;;  %v5108_v42 = vld [vmem:[#allocation2 + $0x288] sm:$0xff] }
 0x210   :  { %v5758_v14 = vpop.f32.mrf.mxu0  ;;  %v5760_v51 = vpop.f32.mrf.mxu1 }
 0x211   :  { %8104 = vst [vmem:[#allocation184_spill] sm:$0xff] %v5758_v14  ;;  %8105 = vst [vmem:[#allocation185_spill] sm:$0xff] %v5760_v51  ;;  %v5109_v14 = vld [vmem:[#allocation2 + $0x280] sm:$0xff] }
 0x212   :  { %v5762_v2 = vpop.f32.mrf.mxu0  ;;  %v5764_v63 = vpop.f32.mrf.mxu1  ;;  %1697 = vmatmul.mubr.f32.gmra.mxu0 %v5107_v23  ;;  %2146 = vmatmul.mubr.f32.gmra.mxu1 %v5107_v23 }
 0x213   :  { %8106 = vst [vmem:[#allocation186_spill] sm:$0xff] %v5762_v2  ;;  %8107 = vst [vmem:[#allocation187_spill] sm:$0xff] %v5764_v63  ;;  %1702 = vmatprep.mubr.f32.mxu0 %v5108_v42  ;;  %2151 = vmatprep.mubr.f32.mxu1 %v5108_v42  ;;  %v5110_v2 = vld [vmem:[#allocation2 + $0x298] sm:$0xff] }
 0x214   :  { %v5766_v35 = vpop.f32.mrf.mxu0  ;;  %v5768_v17 = vpop.f32.mrf.mxu1 }
 0x215   :  { %8108 = vst [vmem:[#allocation188_spill] sm:$0xff] %v5766_v35  ;;  %8109 = vst [vmem:[#allocation189_spill] sm:$0xff] %v5768_v17  ;;  %v5111_v35 = vld [vmem:[#allocation2 + $0x290] sm:$0xff] }
 0x216   :  { %v5770_v60 = vpop.f32.mrf.mxu0  ;;  %v5772_v5 = vpop.f32.mrf.mxu1  ;;  %1703 = vmatmul.mubr.f32.gmra.mxu0 %v5109_v14  ;;  %2152 = vmatmul.mubr.f32.gmra.mxu1 %v5109_v14 }
 0x217   :  { %8110 = vst [vmem:[#allocation190_spill] sm:$0xff] %v5770_v60  ;;  %8111 = vst [vmem:[#allocation191_spill] sm:$0xff] %v5772_v5  ;;  %1708 = vmatprep.mubr.f32.mxu0 %v5110_v2  ;;  %2157 = vmatprep.mubr.f32.mxu1 %v5110_v2  ;;  %v5112_v60 = vld [vmem:[#allocation2 + $0x2a8] sm:$0xff] }
 0x218   :  { %v5774_v63 = vpop.f32.mrf.mxu0  ;;  %v5776_v23 = vpop.f32.mrf.mxu1 }
 0x219   :  { %8112 = vst [vmem:[#allocation192_spill] sm:$0xff] %v5774_v63  ;;  %8113 = vst [vmem:[#allocation193_spill] sm:$0xff] %v5776_v23  ;;  %v5113_v63 = vld [vmem:[#allocation2 + $0x2a0] sm:$0xff] }
 0x21a   :  { %v5778_v51 = vpop.f32.mrf.mxu0  ;;  %v5780_v42 = vpop.f32.mrf.mxu1  ;;  %1709 = vmatmul.mubr.f32.gmra.mxu0 %v5111_v35  ;;  %2158 = vmatmul.mubr.f32.gmra.mxu1 %v5111_v35 }
 0x21b   :  { %8114 = vst [vmem:[#allocation194_spill] sm:$0xff] %v5778_v51  ;;  %8115 = vst [vmem:[#allocation195_spill] sm:$0xff] %v5780_v42  ;;  %1714 = vmatprep.mubr.f32.mxu0 %v5112_v60  ;;  %2163 = vmatprep.mubr.f32.mxu1 %v5112_v60  ;;  %v5114_v51 = vld [vmem:[#allocation2 + $0x2b8] sm:$0xff] }
 0x21c   :  { %v5782_v5 = vpop.f32.mrf.mxu0  ;;  %v5784_v14 = vpop.f32.mrf.mxu1 }
 0x21d   :  { %8116 = vst [vmem:[#allocation196_spill] sm:$0xff] %v5782_v5  ;;  %8117 = vst [vmem:[#allocation197_spill] sm:$0xff] %v5784_v14  ;;  %v5115_v5 = vld [vmem:[#allocation2 + $0x2b0] sm:$0xff] }
 0x21e   :  { %v5786_v17 = vpop.f32.mrf.mxu0  ;;  %v5788_v2 = vpop.f32.mrf.mxu1  ;;  %1715 = vmatmul.mubr.f32.gmra.mxu0 %v5113_v63  ;;  %2164 = vmatmul.mubr.f32.gmra.mxu1 %v5113_v63 }
 0x21f   :  { %8118 = vst [vmem:[#allocation198_spill] sm:$0xff] %v5786_v17  ;;  %8119 = vst [vmem:[#allocation199_spill] sm:$0xff] %v5788_v2  ;;  %1720 = vmatprep.mubr.f32.mxu0 %v5114_v51  ;;  %2169 = vmatprep.mubr.f32.mxu1 %v5114_v51  ;;  %v5116_v17 = vld [vmem:[#allocation2 + $0x2c8] sm:$0xff] }
 0x220   :  { %v5790_v42 = vpop.f32.mrf.mxu0  ;;  %v5792_v35 = vpop.f32.mrf.mxu1 }
 0x221   :  { %8120 = vst [vmem:[#allocation200_spill] sm:$0xff] %v5790_v42  ;;  %8121 = vst [vmem:[#allocation201_spill] sm:$0xff] %v5792_v35  ;;  %v5117_v42 = vld [vmem:[#allocation2 + $0x2c0] sm:$0xff] }
 0x222   :  { %v5794_v23 = vpop.f32.mrf.mxu0  ;;  %v5796_v60 = vpop.f32.mrf.mxu1  ;;  %1721 = vmatmul.mubr.f32.gmra.mxu0 %v5115_v5  ;;  %2170 = vmatmul.mubr.f32.gmra.mxu1 %v5115_v5 }
 0x223   :  { %8122 = vst [vmem:[#allocation202_spill] sm:$0xff] %v5794_v23  ;;  %8123 = vst [vmem:[#allocation203_spill] sm:$0xff] %v5796_v60  ;;  %1726 = vmatprep.mubr.f32.mxu0 %v5116_v17  ;;  %2175 = vmatprep.mubr.f32.mxu1 %v5116_v17  ;;  %v5118_v23 = vld [vmem:[#allocation2 + $0x2d8] sm:$0xff] }
 0x224   :  { %v5798_v2 = vpop.f32.mrf.mxu0  ;;  %v5800_v63 = vpop.f32.mrf.mxu1 }
 0x225   :  { %8124 = vst [vmem:[#allocation204_spill] sm:$0xff] %v5798_v2  ;;  %8125 = vst [vmem:[#allocation205_spill] sm:$0xff] %v5800_v63  ;;  %v5119_v2 = vld [vmem:[#allocation2 + $0x2d0] sm:$0xff] }
 0x226   :  { %v5802_v14 = vpop.f32.mrf.mxu0  ;;  %v5804_v51 = vpop.f32.mrf.mxu1  ;;  %1727 = vmatmul.mubr.f32.gmra.mxu0 %v5117_v42  ;;  %2176 = vmatmul.mubr.f32.gmra.mxu1 %v5117_v42 }
 0x227   :  { %8126 = vst [vmem:[#allocation206_spill] sm:$0xff] %v5802_v14  ;;  %8127 = vst [vmem:[#allocation207_spill] sm:$0xff] %v5804_v51  ;;  %1732 = vmatprep.mubr.f32.mxu0 %v5118_v23  ;;  %2181 = vmatprep.mubr.f32.mxu1 %v5118_v23  ;;  %v5120_v14 = vld [vmem:[#allocation2 + $0x2e8] sm:$0xff] }
 0x228   :  { %v5806_v60 = vpop.f32.mrf.mxu0  ;;  %v5808_v5 = vpop.f32.mrf.mxu1 }
 0x229   :  { %8128 = vst [vmem:[#allocation208_spill] sm:$0xff] %v5806_v60  ;;  %8129 = vst [vmem:[#allocation209_spill] sm:$0xff] %v5808_v5  ;;  %v5121_v60 = vld [vmem:[#allocation2 + $0x2e0] sm:$0xff] }
 0x22a   :  { %v5810_v35 = vpop.f32.mrf.mxu0  ;;  %v5812_v17 = vpop.f32.mrf.mxu1  ;;  %1733 = vmatmul.mubr.f32.gmra.mxu0 %v5119_v2  ;;  %2182 = vmatmul.mubr.f32.gmra.mxu1 %v5119_v2 }
 0x22b   :  { %8130 = vst [vmem:[#allocation210_spill] sm:$0xff] %v5810_v35  ;;  %8131 = vst [vmem:[#allocation211_spill] sm:$0xff] %v5812_v17  ;;  %1738 = vmatprep.mubr.f32.mxu0 %v5120_v14  ;;  %2187 = vmatprep.mubr.f32.mxu1 %v5120_v14  ;;  %v5122_v35 = vld [vmem:[#allocation2 + $0x2f8] sm:$0xff] }
 0x22c   :  { %v5814_v51 = vpop.f32.mrf.mxu0  ;;  %v5816_v42 = vpop.f32.mrf.mxu1 }
 0x22d   :  { %8132 = vst [vmem:[#allocation212_spill] sm:$0xff] %v5814_v51  ;;  %8133 = vst [vmem:[#allocation213_spill] sm:$0xff] %v5816_v42  ;;  %v5123_v51 = vld [vmem:[#allocation2 + $0x2f0] sm:$0xff] }
 0x22e   :  { %v5818_v63 = vpop.f32.mrf.mxu0  ;;  %v5820_v23 = vpop.f32.mrf.mxu1  ;;  %1739 = vmatmul.mubr.f32.gmra.mxu0 %v5121_v60  ;;  %2188 = vmatmul.mubr.f32.gmra.mxu1 %v5121_v60 }
 0x22f   :  { %8134 = vst [vmem:[#allocation214_spill] sm:$0xff] %v5818_v63  ;;  %8135 = vst [vmem:[#allocation215_spill] sm:$0xff] %v5820_v23  ;;  %1744 = vmatprep.mubr.f32.mxu0 %v5122_v35  ;;  %2193 = vmatprep.mubr.f32.mxu1 %v5122_v35  ;;  %v5124_v63 = vld [vmem:[#allocation2 + $0x308] sm:$0xff]  ;;  %v5125_v35 = vld [vmem:[#allocation2 + $0x300] sm:$0xff] }
 0x230   :  { %v5822_v17 = vpop.f32.mrf.mxu0  ;;  %v5824_v2 = vpop.f32.mrf.mxu1 }
 0x231   :  { %8136 = vst [vmem:[#allocation216_spill] sm:$0xff] %v5822_v17  ;;  %8137 = vst [vmem:[#allocation217_spill] sm:$0xff] %v5824_v2 }
 0x232   :  { %v5826_v5 = vpop.f32.mrf.mxu0  ;;  %v5828_v14 = vpop.f32.mrf.mxu1  ;;  %1745 = vmatmul.mubr.f32.gmra.mxu0 %v5123_v51  ;;  %2194 = vmatmul.mubr.f32.gmra.mxu1 %v5123_v51 }
 0x233   :  { %8138 = vst [vmem:[#allocation218_spill] sm:$0xff] %v5826_v5  ;;  %8139 = vst [vmem:[#allocation219_spill] sm:$0xff] %v5828_v14  ;;  %1750 = vmatprep.mubr.f32.mxu0 %v5124_v63  ;;  %2199 = vmatprep.mubr.f32.mxu1 %v5124_v63  ;;  %v5126_v5 = vld [vmem:[#allocation2 + $0x318] sm:$0xff]  ;;  %v5127_v63 = vld [vmem:[#allocation2 + $0x310] sm:$0xff] }
 0x234   :  { %v5830_v23 = vpop.f32.mrf.mxu0  ;;  %v5832_v60 = vpop.f32.mrf.mxu1 }
 0x235   :  { %8140 = vst [vmem:[#allocation220_spill] sm:$0xff] %v5830_v23  ;;  %8141 = vst [vmem:[#allocation221_spill] sm:$0xff] %v5832_v60 }
 0x236   :  { %v5834_v42 = vpop.f32.mrf.mxu0  ;;  %1751 = vmatmul.mubr.f32.gmra.mxu0 %v5125_v35  ;;  %v5836_v17 = vpop.f32.mrf.mxu1  ;;  %2200 = vmatmul.mubr.f32.gmra.mxu1 %v5125_v35 }
 0x237   :  { %8142 = vst [vmem:[#allocation222_spill] sm:$0xff] %v5834_v42  ;;  %8143 = vst [vmem:[#allocation223_spill] sm:$0xff] %v5836_v17  ;;  %1756 = vmatprep.mubr.f32.mxu0 %v5126_v5  ;;  %2205 = vmatprep.mubr.f32.mxu1 %v5126_v5  ;;  %v5128_v42 = vld [vmem:[#allocation2 + $0x328] sm:$0xff]  ;;  %v5129_v5 = vld [vmem:[#allocation2 + $0x320] sm:$0xff] }
 0x238   :  { %v5838_v14 = vpop.f32.mrf.mxu0  ;;  %v5840_v51 = vpop.f32.mrf.mxu1 }
 0x239   :  { %8144 = vst [vmem:[#allocation224_spill] sm:$0xff] %v5838_v14  ;;  %8145 = vst [vmem:[#allocation225_spill] sm:$0xff] %v5840_v51 }
 0x23a   :  { %v5842_v2 = vpop.f32.mrf.mxu0  ;;  %1757 = vmatmul.mubr.f32.gmra.mxu0 %v5127_v63  ;;  %v5844_v23 = vpop.f32.mrf.mxu1  ;;  %2206 = vmatmul.mubr.f32.gmra.mxu1 %v5127_v63 }
 0x23b   :  { %8146 = vst [vmem:[#allocation226_spill] sm:$0xff] %v5842_v2  ;;  %8147 = vst [vmem:[#allocation227_spill] sm:$0xff] %v5844_v23  ;;  %1762 = vmatprep.mubr.f32.mxu0 %v5128_v42  ;;  %2211 = vmatprep.mubr.f32.mxu1 %v5128_v42  ;;  %v5130_v2 = vld [vmem:[#allocation2 + $0x338] sm:$0xff]  ;;  %v5131_v42 = vld [vmem:[#allocation2 + $0x330] sm:$0xff] }
 0x23c   :  { %v5846_v60 = vpop.f32.mrf.mxu0  ;;  %v5848_v35 = vpop.f32.mrf.mxu1 }
 0x23d   :  { %8148 = vst [vmem:[#allocation228_spill] sm:$0xff] %v5846_v60  ;;  %8149 = vst [vmem:[#allocation229_spill] sm:$0xff] %v5848_v35 }
 0x23e   :  { %v5850_v17 = vpop.f32.mrf.mxu0  ;;  %1763 = vmatmul.mubr.f32.gmra.mxu0 %v5129_v5  ;;  %v5852_v14 = vpop.f32.mrf.mxu1  ;;  %2212 = vmatmul.mubr.f32.gmra.mxu1 %v5129_v5 }
 0x23f   :  { %8150 = vst [vmem:[#allocation230_spill] sm:$0xff] %v5850_v17  ;;  %8151 = vst [vmem:[#allocation231_spill] sm:$0xff] %v5852_v14  ;;  %1768 = vmatprep.mubr.f32.mxu0 %v5130_v2  ;;  %2217 = vmatprep.mubr.f32.mxu1 %v5130_v2  ;;  %v5132_v17 = vld [vmem:[#allocation2 + $0x348] sm:$0xff]  ;;  %v5133_v2 = vld [vmem:[#allocation2 + $0x340] sm:$0xff] }
 0x240   :  { %v5854_v51 = vpop.f32.mrf.mxu0  ;;  %v5856_v63 = vpop.f32.mrf.mxu1 }
 0x241   :  { %8152 = vst [vmem:[#allocation232_spill] sm:$0xff] %v5854_v51  ;;  %8153 = vst [vmem:[#allocation233_spill] sm:$0xff] %v5856_v63 }
 0x242   :  { %v5858_v23 = vpop.f32.mrf.mxu0  ;;  %1769 = vmatmul.mubr.f32.gmra.mxu0 %v5131_v42  ;;  %v5860_v60 = vpop.f32.mrf.mxu1  ;;  %2218 = vmatmul.mubr.f32.gmra.mxu1 %v5131_v42 }
 0x243   :  { %8154 = vst [vmem:[#allocation234_spill] sm:$0xff] %v5858_v23  ;;  %8155 = vst [vmem:[#allocation235_spill] sm:$0xff] %v5860_v60  ;;  %1774 = vmatprep.mubr.f32.mxu0 %v5132_v17  ;;  %2223 = vmatprep.mubr.f32.mxu1 %v5132_v17  ;;  %v5134_v23 = vld [vmem:[#allocation2 + $0x358] sm:$0xff]  ;;  %v5135_v17 = vld [vmem:[#allocation2 + $0x350] sm:$0xff] }
 0x244   :  { %v5862_v35 = vpop.f32.mrf.mxu0  ;;  %v5864_v5 = vpop.f32.mrf.mxu1 }
 0x245   :  { %8156 = vst [vmem:[#allocation236_spill] sm:$0xff] %v5862_v35  ;;  %8157 = vst [vmem:[#allocation237_spill] sm:$0xff] %v5864_v5 }
 0x246   :  { %v5866_v14 = vpop.f32.mrf.mxu0  ;;  %1775 = vmatmul.mubr.f32.gmra.mxu0 %v5133_v2  ;;  %v5868_v51 = vpop.f32.mrf.mxu1  ;;  %2224 = vmatmul.mubr.f32.gmra.mxu1 %v5133_v2 }
 0x247   :  { %8158 = vst [vmem:[#allocation238_spill] sm:$0xff] %v5866_v14  ;;  %8159 = vst [vmem:[#allocation239_spill] sm:$0xff] %v5868_v51  ;;  %1780 = vmatprep.mubr.f32.mxu0 %v5134_v23  ;;  %2229 = vmatprep.mubr.f32.mxu1 %v5134_v23  ;;  %v5136_v14 = vld [vmem:[#allocation2 + $0x368] sm:$0xff]  ;;  %v5137_v23 = vld [vmem:[#allocation2 + $0x360] sm:$0xff] }
 0x248   :  { %v5870_v63 = vpop.f32.mrf.mxu0  ;;  %v5872_v42 = vpop.f32.mrf.mxu1 }
 0x249   :  { %8160 = vst [vmem:[#allocation240_spill] sm:$0xff] %v5870_v63  ;;  %8161 = vst [vmem:[#allocation241_spill] sm:$0xff] %v5872_v42 }
 0x24a   :  { %v5874_v60 = vpop.f32.mrf.mxu0  ;;  %1781 = vmatmul.mubr.f32.gmra.mxu0 %v5135_v17  ;;  %v5876_v35 = vpop.f32.mrf.mxu1  ;;  %2230 = vmatmul.mubr.f32.gmra.mxu1 %v5135_v17 }
 0x24b   :  { %8162 = vst [vmem:[#allocation242_spill] sm:$0xff] %v5874_v60  ;;  %8163 = vst [vmem:[#allocation243_spill] sm:$0xff] %v5876_v35  ;;  %1786 = vmatprep.mubr.f32.mxu0 %v5136_v14  ;;  %2235 = vmatprep.mubr.f32.mxu1 %v5136_v14  ;;  %v5138_v60 = vld [vmem:[#allocation2 + $0x378] sm:$0xff]  ;;  %v5139_v14 = vld [vmem:[#allocation2 + $0x370] sm:$0xff] }
 0x24c   :  { %v5878_v5 = vpop.f32.mrf.mxu0  ;;  %v5880_v2 = vpop.f32.mrf.mxu1 }
 0x24d   :  { %8164 = vst [vmem:[#allocation244_spill] sm:$0xff] %v5878_v5  ;;  %8165 = vst [vmem:[#allocation245_spill] sm:$0xff] %v5880_v2 }
 0x24e   :  { %v5882_v51 = vpop.f32.mrf.mxu0  ;;  %1787 = vmatmul.mubr.f32.gmra.mxu0 %v5137_v23  ;;  %v5884_v63 = vpop.f32.mrf.mxu1  ;;  %2236 = vmatmul.mubr.f32.gmra.mxu1 %v5137_v23 }
 0x24f   :  { %8166 = vst [vmem:[#allocation246_spill] sm:$0xff] %v5882_v51  ;;  %8167 = vst [vmem:[#allocation247_spill] sm:$0xff] %v5884_v63  ;;  %1792 = vmatprep.mubr.f32.mxu0 %v5138_v60  ;;  %2241 = vmatprep.mubr.f32.mxu1 %v5138_v60  ;;  %v5140_v51 = vld [vmem:[#allocation2 + $0x388] sm:$0xff]  ;;  %v5141_v60 = vld [vmem:[#allocation2 + $0x380] sm:$0xff] }
 0x250   :  { %v5886_v42 = vpop.f32.mrf.mxu0  ;;  %v5888_v17 = vpop.f32.mrf.mxu1 }
 0x251   :  { %8168 = vst [vmem:[#allocation248_spill] sm:$0xff] %v5886_v42  ;;  %8169 = vst [vmem:[#allocation249_spill] sm:$0xff] %v5888_v17 }
 0x252   :  { %v5890_v35 = vpop.f32.mrf.mxu0  ;;  %1793 = vmatmul.mubr.f32.gmra.mxu0 %v5139_v14  ;;  %v5892_v5 = vpop.f32.mrf.mxu1  ;;  %2242 = vmatmul.mubr.f32.gmra.mxu1 %v5139_v14 }
 0x253   :  { %8170 = vst [vmem:[#allocation250_spill] sm:$0xff] %v5890_v35  ;;  %8171 = vst [vmem:[#allocation251_spill] sm:$0xff] %v5892_v5  ;;  %1798 = vmatprep.mubr.f32.mxu0 %v5140_v51  ;;  %2247 = vmatprep.mubr.f32.mxu1 %v5140_v51  ;;  %v5142_v35 = vld [vmem:[#allocation2 + $0x398] sm:$0xff]  ;;  %v5143_v51 = vld [vmem:[#allocation2 + $0x390] sm:$0xff] }
 0x254   :  { %v5894_v2 = vpop.f32.mrf.mxu0  ;;  %v5896_v23 = vpop.f32.mrf.mxu1 }
 0x255   :  { %8172 = vst [vmem:[#allocation252_spill] sm:$0xff] %v5894_v2  ;;  %8173 = vst [vmem:[#allocation253_spill] sm:$0xff] %v5896_v23 }
 0x256   :  { %v5898_v63 = vpop.f32.mrf.mxu0  ;;  %1799 = vmatmul.mubr.f32.gmra.mxu0 %v5141_v60  ;;  %v5900_v42 = vpop.f32.mrf.mxu1  ;;  %2248 = vmatmul.mubr.f32.gmra.mxu1 %v5141_v60 }
 0x257   :  { %8174 = vst [vmem:[#allocation254_spill] sm:$0xff] %v5898_v63  ;;  %8175 = vst [vmem:[#allocation255_spill] sm:$0xff] %v5900_v42  ;;  %1804 = vmatprep.mubr.f32.mxu0 %v5142_v35  ;;  %2253 = vmatprep.mubr.f32.mxu1 %v5142_v35  ;;  %v5144_v63 = vld [vmem:[#allocation2 + $0x3a8] sm:$0xff]  ;;  %v5145_v35 = vld [vmem:[#allocation2 + $0x3a0] sm:$0xff] }
 0x258   :  { %v5902_v17 = vpop.f32.mrf.mxu0  ;;  %v5904_v14 = vpop.f32.mrf.mxu1 }
 0x259   :  { %8176 = vst [vmem:[#allocation256_spill] sm:$0xff] %v5902_v17  ;;  %8177 = vst [vmem:[#allocation257_spill] sm:$0xff] %v5904_v14  ;;  %v5146_v14 = vld [vmem:[#allocation2 + $0x3b8] sm:$0xff] }
 0x25a   :  { %v5906_v5 = vpop.f32.mrf.mxu0  ;;  %1805 = vmatmul.mubr.f32.gmra.mxu0 %v5143_v51  ;;  %v5908_v2 = vpop.f32.mrf.mxu1  ;;  %2254 = vmatmul.mubr.f32.gmra.mxu1 %v5143_v51 }
 0x25b   :  { %8178 = vst [vmem:[#allocation258_spill] sm:$0xff] %v5906_v5  ;;  %8179 = vst [vmem:[#allocation259_spill] sm:$0xff] %v5908_v2  ;;  %1810 = vmatprep.mubr.f32.mxu0 %v5144_v63  ;;  %2259 = vmatprep.mubr.f32.mxu1 %v5144_v63  ;;  %v460_v5 = vlaneseq }
 0x25c   :  { %v5910_v23 = vpop.f32.mrf.mxu0  ;;  %v5912_v60 = vpop.f32.mrf.mxu1 }
 0x25d   :  { %8180 = vst [vmem:[#allocation260_spill] sm:$0xff] %v5910_v23  ;;  %8181 = vst [vmem:[#allocation261_spill] sm:$0xff] %v5912_v60  ;;  %v5147_v23 = vld [vmem:[#allocation2 + $0x3b0] sm:$0xff] }
 0x25e   :  { %v5914_v42 = vpop.f32.mrf.mxu0  ;;  %1811 = vmatmul.mubr.f32.gmra.mxu0 %v5145_v35  ;;  %v5916_v17 = vpop.f32.mrf.mxu1  ;;  %2260 = vmatmul.mubr.f32.gmra.mxu1 %v5145_v35 }
 0x25f   :  { %8182 = vst [vmem:[#allocation262_spill] sm:$0xff] %v5914_v42  ;;  %8183 = vst [vmem:[#allocation263_spill] sm:$0xff] %v5916_v17  ;;  %1816 = vmatprep.mubr.f32.mxu0 %v5146_v14  ;;  %2265 = vmatprep.mubr.f32.mxu1 %v5146_v14  ;;  %v5926_v42 = vshrl.u32 %v460_v5, 7  ;;  %v5150_v5 = vld [vmem:[#allocation2 + $0x3d8] sm:$0xff] }
 0x260   :  { %v5918_v2 = vpop.f32.mrf.mxu0  ;;  %v5920_v51 = vpop.f32.mrf.mxu1 }
 0x261   :  { %8184 = vst [vmem:[#allocation264_spill] sm:$0xff] %v5918_v2  ;;  %8185 = vst [vmem:[#allocation265_spill] sm:$0xff] %v5920_v51  ;;  %v474_v51 = vsub.s32 3, %v5926_v42 }
 0x262   :  { %v5922_v63 = vpop.f32.mrf.mxu0  ;;  %1817 = vmatmul.mubr.f32.gmra.mxu0 %v5147_v23  ;;  %v5924_v60 = vpop.f32.mrf.mxu1  ;;  %2266 = vmatmul.mubr.f32.gmra.mxu1 %v5147_v23  ;;  %v458_v23 = vld [vmem:[#allocation7] sm:$0xff] }
 0x263   :  { %8186 = vst [vmem:[#allocation266_spill] sm:$0xff] %v5922_v63  ;;  %8187 = vst [vmem:[#allocation267_spill] sm:$0xff] %v5924_v60  ;;  %1822 = vmatprep.mubr.f32.mxu0 %v5148_v32  ;;  %2271 = vmatprep.mubr.f32.mxu1 %v5148_v32  ;;  %v5149_v63 = vld [vmem:[#allocation2 + $0x3c0] sm:$0xff]  ;;  %v470_v60 = vsub.s32 2, %v5926_v42  ;;  %v5948_v20 = vrot.slane %v458_v23, %v474_v51  ;;  %v5152_v32 = vld [vmem:[#allocation2 + $0x3e8] sm:$0xff] }
 0x264   :  { %v5928_v35 = vpop.f32.mrf.mxu0  ;;  %v5930_v17 = vpop.f32.mrf.mxu1 }
 0x265   :  { %8188 = vst [vmem:[#allocation268_spill] sm:$0xff] %v5928_v35  ;;  %8189 = vst [vmem:[#allocation269_spill] sm:$0xff] %v5930_v17  ;;  %v8194_v35 = vsub.s32 1, %v5926_v42 }
 0x266   :  { %v5934_v2 = vpop.f32.mrf.mxu0  ;;  %1823 = vmatmul.mubr.f32.gmra.mxu0 %v5149_v63  ;;  %v5936_v29 = vpop.f32.mrf.mxu1  ;;  %2272 = vmatmul.mubr.f32.gmra.mxu1 %v5149_v63  ;;  %v5151_v63 = vld [vmem:[#allocation2 + $0x3d0] sm:$0xff] }
 0x267   :  { %8190 = vst [vmem:[#allocation270_spill] sm:$0xff] %v5934_v2  ;;  %8191 = vst [vmem:[#allocation271_spill] sm:$0xff] %v5936_v29  ;;  %1828 = vmatprep.mubr.f32.mxu0 %v5150_v5  ;;  %2277 = vmatprep.mubr.f32.mxu1 %v5150_v5  ;;  %v5946_v2 = vrot.slane %v458_v23, %v8194_v35 }
 0x268   :  { %v5940_v17 = vpop.f32.mrf.mxu0  ;;  %v5942_v14 = vpop.f32.mrf.mxu1 }
 0x269   :  { %8192 = vst [vmem:[#allocation272_spill] sm:$0xff] %v5940_v17  ;;  %8193 = vst [vmem:[#allocation273_spill] sm:$0xff] %v5942_v14  ;;  %v8197_v17 = vsub.s32 0, %v5926_v42  ;;  %v5958_v14 = vrot.slane %v458_v23, %v470_v60 }
 0x26a   :  { %v5950_v29 = vpop.f32.mrf.mxu0  ;;  %1829 = vmatmul.mubr.f32.gmra.mxu0 %v5151_v63  ;;  %v5952_v5 = vpop.f32.mrf.mxu1  ;;  %2278 = vmatmul.mubr.f32.gmra.mxu1 %v5151_v63 }
 0x26b   :  { %8195 = vst [vmem:[#allocation274_spill] sm:$0xff] %v5950_v29  ;;  %8196 = vst [vmem:[#allocation275_spill] sm:$0xff] %v5952_v5  ;;  %1834 = vmatprep.mubr.f32.mxu0 %v5152_v32  ;;  %2283 = vmatprep.mubr.f32.mxu1 %v5152_v32  ;;  %v5956_v26 = vrot.slane %v458_v23, %v8197_v17  ;;  %v569_v29 = vadd.f32 %v5326_v40, %v5946_v2  ;;  %v5154_v17 = vld [vmem:[#allocation2 + $0x3f8] sm:$0xff] }
 0x26c   :  { %v5960_v35 = vpop.f32.mrf.mxu0  ;;  %v5962_v51 = vpop.f32.mrf.mxu1  ;;  %v1018_v5 = vadd.f32 %v5328_v41, %v5948_v20  ;;  %v1016_v23 = vadd.f32 %v5324_v38, %v5958_v14 }
 0x26d   :  { %8198 = vst [vmem:[#allocation276_spill] sm:$0xff] %v5960_v35  ;;  %8199 = vst [vmem:[#allocation277_spill] sm:$0xff] %v5962_v51  ;;  %v567_v60 = vadd.f32 %v5322_v37, %v5956_v26  ;;  %v2297_v41 = vmax.f32 %v569_v29, 0.0  ;;  %v575_v35 = vadd.f32 %v5334_v46, %v5946_v2  ;;  %v573_v29 = vadd.f32 %v5330_v43, %v5956_v26 }
 0x26e   :  { %v5968_v63 = vpop.f32.mrf.mxu0  ;;  %1835 = vmatmul.mubr.f32.gmra.mxu0 %v5153_v11  ;;  %v5970_v32 = vpop.f32.mrf.mxu1  ;;  %2284 = vmatmul.mubr.f32.gmra.mxu1 %v5153_v11  ;;  %v1024_v11 = vadd.f32 %v5336_v47, %v5948_v20  ;;  %v1022_v46 = vadd.f32 %v5332_v44, %v5958_v14  ;;  %v2965_v44 = vld [vmem:[#allocation8 + $0x4e8] sm:$0xff] }
 0x26f   :  { %8200 = vst [vmem:[#allocation278_spill] sm:$0xff] %v5968_v63  ;;  %8201 = vst [vmem:[#allocation279_spill] sm:$0xff] %v5970_v32  ;;  %1840 = vmatprep.mubr.f32.mxu0 %v5154_v17  ;;  %2289 = vmatprep.mubr.f32.mxu1 %v5154_v17  ;;  %v2299_v63 = vmax.f32 %v1018_v5, 0.0  ;;  %v5155_v17 = vld [vmem:[#allocation2 + $0x3f0] sm:$0xff]  ;;  %v2296_v38 = vmax.f32 %v567_v60, 0.0  ;;  %v2966_v60 = vld [vmem:[#allocation8 + $0x4f0] sm:$0xff] }
 0x270   :  { %v5976_v40 = vpop.f32.mrf.mxu0  ;;  %v5978_v51 = vpop.f32.mrf.mxu1 }
 0x271   :  { %8202 = vst [vmem:[#allocation280_spill] sm:$0xff] %v5976_v40  ;;  %8203 = vst [vmem:[#allocation281_spill] sm:$0xff] %v5978_v51  ;;  %v2298_v40 = vmax.f32 %v1016_v23, 0.0  ;;  %v2307_v51 = vmax.f32 %v1024_v11, 0.0  ;;  %v3030_v23 = vld [vmem:[#allocation8 + $0x6f0] sm:$0xff]  ;;  %v2306_v11 = vmax.f32 %v1022_v46, 0.0 }
 0x272   :  { %v5984_v32 = vpop.f32.mrf.mxu0  ;;  %1841 = vmatmul.mubr.f32.gmra.mxu0 %v5155_v17  ;;  %v5986_v37 = vpop.f32.mrf.mxu1  ;;  %2290 = vmatmul.mubr.f32.gmra.mxu1 %v5155_v17  ;;  %v3029_v17 = vld [vmem:[#allocation8 + $0x6e8] sm:$0xff] }
 0x273   :  { %8204 = vst [vmem:[#allocation282_spill] sm:$0xff] %v5984_v32  ;;  %8205 = vst [vmem:[#allocation283_spill] sm:$0xff] %v5986_v37  ;;  %3140 = vmatprep.mubr.f32.mxu0 %v2297_v41  ;;  %3589 = vmatprep.mubr.f32.mxu1 %v2299_v63  ;;  %v2305_v32 = vmax.f32 %v575_v35, 0.0  ;;  %v581_v37 = vadd.f32 %v5342_v52, %v5946_v2  ;;  %v1030_v63 = vadd.f32 %v5344_v53, %v5948_v20 }
 0x274   :  { %v5992_v5 = vpop.f32.mrf.mxu0  ;;  %v5994_v47 = vpop.f32.mrf.mxu1  ;;  %v2304_v35 = vmax.f32 %v573_v29, 0.0  ;;  %v579_v52 = vadd.f32 %v5338_v49, %v5956_v26  ;;  %v1028_v53 = vadd.f32 %v5340_v50, %v5958_v14  ;;  %v2964_v29 = vld [vmem:[#allocation8 + $0x4e0] sm:$0xff] }
 0x275   :  { %8206 = vst [vmem:[#allocation284_spill] sm:$0xff] %v5994_v47  ;;  %v3028_v49 = vld [vmem:[#allocation8 + $0x6e0] sm:$0xff] }
 0x276   :  { %v6000_v41 = vpop.f32.mrf.mxu0  ;;  %v6002_v43 = vpop.f32.mrf.mxu1  ;;  %3141 = vmatmul.mubr.f32.vlgmr.msra.gmra.mxu0 %v2296_v38  ;;  %3590 = vmatmul.mubr.f32.vlgmr.msra.gmra.mxu1 %v2298_v40  ;;  %v2313_v38 = vmax.f32 %v581_v37, 0.0  ;;  %v2315_v40 = vmax.f32 %v1030_v63, 0.0  ;;  %v2312_v37 = vmax.f32 %v579_v52, 0.0  ;;  %v2314_v63 = vmax.f32 %v1028_v53, 0.0  ;;  %v2962_v53 = vld [vmem:[#allocation8 + $0x4d0] sm:$0xff] }
 0x277   :  { %8207 = vst [vmem:[#allocation285_spill] sm:$0xff] %v6000_v41  ;;  %3146 = vmatprep.mubr.f32.mxu0 %v2305_v32  ;;  %3595 = vmatprep.mubr.f32.mxu1 %v2307_v51  ;;  %v587_v32 = vadd.f32 %v5350_v58, %v5946_v2  ;;  %v1036_v51 = vadd.f32 %v5352_v59, %v5948_v20 }
 0x278   :  { %3975 = vmatpush1.msra.mxu0 %v2966_v60  ;;  %v6008_v47 = vpop.f32.mrf.mxu0  ;;  %v6010_v41 = vpop.f32.mrf.mxu1  ;;  %4424 = vmatpush1.msra.mxu1 %v3030_v23  ;;  %v2963_v60 = vld [vmem:[#allocation8 + $0x4d8] sm:$0xff]  ;;  %v585_v58 = vadd.f32 %v5346_v55, %v5956_v26  ;;  %v1034_v59 = vadd.f32 %v5348_v56, %v5958_v14  ;;  %v1042_v52 = vadd.f32 %v5360_v1, %v5948_v20  ;;  %v3026_v55 = vld [vmem:[#allocation8 + $0x6d0] sm:$0xff] }
 0x279   :  { %3976 = vmatprep.subr.mxu0 %v2965_v44  ;;  %4425 = vmatprep.subr.mxu1 %v3029_v17  ;;  %v3027_v23 = vld [vmem:[#allocation8 + $0x6d8] sm:$0xff]  ;;  %v1040_v1 = vadd.f32 %v5356_v62, %v5958_v14 }
 0x27a   :  { %v6016_v46 = vpop.f32.mrf.mxu0  ;;  %v6018_v50 = vpop.f32.mrf.mxu1  ;;  %3147 = vmatmul.mubr.f32.gmra.mxu0 %v2304_v35  ;;  %3596 = vmatmul.mubr.f32.gmra.mxu1 %v2306_v11  ;;  %v2321_v35 = vmax.f32 %v587_v32, 0.0  ;;  %v2323_v11 = vmax.f32 %v1036_v51, 0.0  ;;  %v2320_v32 = vmax.f32 %v585_v58, 0.0  ;;  %v2322_v51 = vmax.f32 %v1034_v59, 0.0  ;;  %v2960_v59 = vld [vmem:[#allocation8 + $0x4c0] sm:$0xff] }
 0x27b   :  { %3152 = vmatprep.mubr.f32.mxu0 %v2313_v38  ;;  %3601 = vmatprep.mubr.f32.mxu1 %v2315_v40  ;;  %v593_v38 = vadd.f32 %v5358_v0, %v5946_v2  ;;  %v591_v0 = vadd.f32 %v5354_v61, %v5956_v26  ;;  %v1048_v58 = vadd.f32 %v5368_v7, %v5948_v20  ;;  %v3024_v61 = vld [vmem:[#allocation8 + $0x6c0] sm:$0xff] }
 0x27c   :  { %v6024_v44 = vpop.f32.mrf.mxu0  ;;  %v6026_v17 = vpop.f32.mrf.mxu1  ;;  %3977 = vmatpush1.msra.mxu0 %v2964_v29  ;;  %4426 = vmatpush1.msra.mxu1 %v3028_v49  ;;  %v2961_v29 = vld [vmem:[#allocation8 + $0x4c8] sm:$0xff]  ;;  %v1046_v7 = vadd.f32 %v5364_v4, %v5958_v14 }
 0x27d   :  { %3978 = vmatprep.subr.mxu0 %v2963_v60  ;;  %4427 = vmatprep.subr.mxu1 %v3027_v23  ;;  %v3025_v49 = vld [vmem:[#allocation8 + $0x6c8] sm:$0xff] }
 0x27e   :  { %v6032_v40 = vpop.f32.mrf.mxu0  ;;  %v6034_v56 = vpop.f32.mrf.mxu1  ;;  %3153 = vmatmul.mubr.f32.gmra.mxu0 %v2312_v37  ;;  %3602 = vmatmul.mubr.f32.gmra.mxu1 %v2314_v63  ;;  %v2329_v37 = vmax.f32 %v593_v38, 0.0  ;;  %v2331_v63 = vmax.f32 %v1042_v52, 0.0  ;;  %v2328_v38 = vmax.f32 %v591_v0, 0.0  ;;  %v2330_v52 = vmax.f32 %v1040_v1, 0.0  ;;  %v2958_v1 = vld [vmem:[#allocation8 + $0x4b0] sm:$0xff] }
 0x27f   :  { %3158 = vmatprep.mubr.f32.mxu0 %v2321_v35  ;;  %3607 = vmatprep.mubr.f32.mxu1 %v2323_v11  ;;  %v599_v35 = vadd.f32 %v5366_v6, %v5946_v2  ;;  %v597_v6 = vadd.f32 %v5362_v3, %v5956_v26  ;;  %v1054_v0 = vadd.f32 %v5376_v13, %v5948_v20  ;;  %v3022_v3 = vld [vmem:[#allocation8 + $0x6b0] sm:$0xff] }
 0x280   :  { %v6040_v60 = vpop.f32.mrf.mxu0  ;;  %v6042_v23 = vpop.f32.mrf.mxu1  ;;  %3979 = vmatpush1.msra.mxu0 %v2962_v53  ;;  %4428 = vmatpush1.msra.mxu1 %v3026_v55  ;;  %v2959_v53 = vld [vmem:[#allocation8 + $0x4b8] sm:$0xff]  ;;  %v1052_v13 = vadd.f32 %v5372_v10, %v5958_v14 }
 0x281   :  { %3980 = vmatprep.subr.mxu0 %v2961_v29  ;;  %4429 = vmatprep.subr.mxu1 %v3025_v49  ;;  %v3023_v55 = vld [vmem:[#allocation8 + $0x6b8] sm:$0xff] }
 0x282   :  { %v6048_v11 = vpop.f32.mrf.mxu0  ;;  %v6050_v62 = vpop.f32.mrf.mxu1  ;;  %3159 = vmatmul.mubr.f32.gmra.mxu0 %v2320_v32  ;;  %3608 = vmatmul.mubr.f32.gmra.mxu1 %v2322_v51  ;;  %v2337_v32 = vmax.f32 %v599_v35, 0.0  ;;  %v2339_v51 = vmax.f32 %v1048_v58, 0.0  ;;  %v2336_v35 = vmax.f32 %v597_v6, 0.0  ;;  %v2338_v58 = vmax.f32 %v1046_v7, 0.0  ;;  %v2956_v7 = vld [vmem:[#allocation8 + $0x4a0] sm:$0xff] }
 0x283   :  { %3164 = vmatprep.mubr.f32.mxu0 %v2329_v37  ;;  %3613 = vmatprep.mubr.f32.mxu1 %v2331_v63  ;;  %v605_v37 = vadd.f32 %v5374_v12, %v5946_v2  ;;  %v603_v12 = vadd.f32 %v5370_v9, %v5956_v26  ;;  %v1060_v6 = vadd.f32 %v5384_v19, %v5948_v20  ;;  %v3020_v9 = vld [vmem:[#allocation8 + $0x6a0] sm:$0xff] }
 0x284   :  { %v6056_v29 = vpop.f32.mrf.mxu0  ;;  %v6058_v49 = vpop.f32.mrf.mxu1  ;;  %3981 = vmatpush1.msra.mxu0 %v2960_v59  ;;  %4430 = vmatpush1.msra.mxu1 %v3024_v61  ;;  %v2957_v59 = vld [vmem:[#allocation8 + $0x4a8] sm:$0xff]  ;;  %v1058_v19 = vadd.f32 %v5380_v16, %v5958_v14 }
 0x285   :  { %3982 = vmatprep.subr.mxu0 %v2959_v53  ;;  %4431 = vmatprep.subr.mxu1 %v3023_v55  ;;  %v3021_v61 = vld [vmem:[#allocation8 + $0x6a8] sm:$0xff] }
 0x286   :  { %v6064_v63 = vpop.f32.mrf.mxu0  ;;  %v6066_v4 = vpop.f32.mrf.mxu1  ;;  %3165 = vmatmul.mubr.f32.gmra.mxu0 %v2328_v38  ;;  %3614 = vmatmul.mubr.f32.gmra.mxu1 %v2330_v52  ;;  %v2345_v38 = vmax.f32 %v605_v37, 0.0  ;;  %v2347_v52 = vmax.f32 %v1054_v0, 0.0  ;;  %v2344_v37 = vmax.f32 %v603_v12, 0.0  ;;  %v2346_v0 = vmax.f32 %v1052_v13, 0.0  ;;  %v2954_v13 = vld [vmem:[#allocation8 + $0x490] sm:$0xff] }
 0x287   :  { %3170 = vmatprep.mubr.f32.mxu0 %v2337_v32  ;;  %3619 = vmatprep.mubr.f32.mxu1 %v2339_v51  ;;  %v611_v32 = vadd.f32 %v5382_v18, %v5946_v2  ;;  %v609_v18 = vadd.f32 %v5378_v15, %v5956_v26  ;;  %v1066_v12 = vadd.f32 %v5392_v25, %v5948_v20  ;;  %v3018_v15 = vld [vmem:[#allocation8 + $0x690] sm:$0xff] }
 0x288   :  { %v6072_v53 = vpop.f32.mrf.mxu0  ;;  %v6074_v55 = vpop.f32.mrf.mxu1  ;;  %3983 = vmatpush1.msra.mxu0 %v2958_v1  ;;  %4432 = vmatpush1.msra.mxu1 %v3022_v3  ;;  %v2955_v1 = vld [vmem:[#allocation8 + $0x498] sm:$0xff]  ;;  %v1064_v25 = vadd.f32 %v5388_v22, %v5958_v14 }
 0x289   :  { %3984 = vmatprep.subr.mxu0 %v2957_v59  ;;  %4433 = vmatprep.subr.mxu1 %v3021_v61  ;;  %v3019_v3 = vld [vmem:[#allocation8 + $0x698] sm:$0xff] }
 0x28a   :  { %v6080_v51 = vpop.f32.mrf.mxu0  ;;  %v6082_v10 = vpop.f32.mrf.mxu1  ;;  %3171 = vmatmul.mubr.f32.gmra.mxu0 %v2336_v35  ;;  %3620 = vmatmul.mubr.f32.gmra.mxu1 %v2338_v58  ;;  %v2353_v35 = vmax.f32 %v611_v32, 0.0  ;;  %v2355_v58 = vmax.f32 %v1060_v6, 0.0  ;;  %v2352_v32 = vmax.f32 %v609_v18, 0.0  ;;  %v2354_v6 = vmax.f32 %v1058_v19, 0.0  ;;  %v2952_v19 = vld [vmem:[#allocation8 + $0x480] sm:$0xff] }
 0x28b   :  { %3176 = vmatprep.mubr.f32.mxu0 %v2345_v38  ;;  %3625 = vmatprep.mubr.f32.mxu1 %v2347_v52  ;;  %v617_v38 = vadd.f32 %v5390_v24, %v5946_v2  ;;  %v615_v24 = vadd.f32 %v5386_v21, %v5956_v26  ;;  %v1072_v18 = vadd.f32 %v5400_v31, %v5948_v20  ;;  %v3016_v21 = vld [vmem:[#allocation8 + $0x680] sm:$0xff] }
 0x28c   :  { %v6088_v59 = vpop.f32.mrf.mxu0  ;;  %v6090_v61 = vpop.f32.mrf.mxu1  ;;  %3985 = vmatpush1.msra.mxu0 %v2956_v7  ;;  %4434 = vmatpush1.msra.mxu1 %v3020_v9  ;;  %v2953_v7 = vld [vmem:[#allocation8 + $0x488] sm:$0xff]  ;;  %v1070_v31 = vadd.f32 %v5396_v28, %v5958_v14 }
 0x28d   :  { %3986 = vmatprep.subr.mxu0 %v2955_v1  ;;  %4435 = vmatprep.subr.mxu1 %v3019_v3  ;;  %v3017_v9 = vld [vmem:[#allocation8 + $0x688] sm:$0xff] }
 0x28e   :  { %v6096_v52 = vpop.f32.mrf.mxu0  ;;  %v6098_v16 = vpop.f32.mrf.mxu1  ;;  %3177 = vmatmul.mubr.f32.gmra.mxu0 %v2344_v37  ;;  %3626 = vmatmul.mubr.f32.gmra.mxu1 %v2346_v0  ;;  %v2361_v37 = vmax.f32 %v617_v38, 0.0  ;;  %v2363_v0 = vmax.f32 %v1066_v12, 0.0  ;;  %v2360_v38 = vmax.f32 %v615_v24, 0.0  ;;  %v2362_v12 = vmax.f32 %v1064_v25, 0.0  ;;  %v2950_v25 = vld [vmem:[#allocation8 + $0x470] sm:$0xff] }
 0x28f   :  { %3182 = vmatprep.mubr.f32.mxu0 %v2353_v35  ;;  %3631 = vmatprep.mubr.f32.mxu1 %v2355_v58  ;;  %v623_v35 = vadd.f32 %v5398_v30, %v5946_v2  ;;  %v621_v30 = vadd.f32 %v5394_v27, %v5956_v26  ;;  %v1078_v24 = vadd.f32 %v5408_v39, %v5948_v20  ;;  %v3014_v27 = vld [vmem:[#allocation8 + $0x670] sm:$0xff] }
 0x290   :  { %v6104_v1 = vpop.f32.mrf.mxu0  ;;  %v6106_v3 = vpop.f32.mrf.mxu1  ;;  %3987 = vmatpush1.msra.mxu0 %v2954_v13  ;;  %4436 = vmatpush1.msra.mxu1 %v3018_v15  ;;  %v2951_v13 = vld [vmem:[#allocation8 + $0x478] sm:$0xff]  ;;  %v1076_v39 = vadd.f32 %v5404_v34, %v5958_v14 }
 0x291   :  { %3988 = vmatprep.subr.mxu0 %v2953_v7  ;;  %4437 = vmatprep.subr.mxu1 %v3017_v9  ;;  %v3015_v15 = vld [vmem:[#allocation8 + $0x678] sm:$0xff] }
 0x292   :  { %v6112_v58 = vpop.f32.mrf.mxu0  ;;  %v6114_v22 = vpop.f32.mrf.mxu1  ;;  %3183 = vmatmul.mubr.f32.gmra.mxu0 %v2352_v32  ;;  %3632 = vmatmul.mubr.f32.gmra.mxu1 %v2354_v6  ;;  %v2369_v32 = vmax.f32 %v623_v35, 0.0  ;;  %v2371_v6 = vmax.f32 %v1072_v18, 0.0  ;;  %v2368_v35 = vmax.f32 %v621_v30, 0.0  ;;  %v2370_v18 = vmax.f32 %v1070_v31, 0.0  ;;  %v2948_v31 = vld [vmem:[#allocation8 + $0x460] sm:$0xff] }
 0x293   :  { %8208 = vst [vmem:[#allocation286_spill] sm:$0xff] %v6112_v58  ;;  %8209 = vst [vmem:[#allocation287_spill] sm:$0xff] %v6114_v22  ;;  %3188 = vmatprep.mubr.f32.mxu0 %v2361_v37  ;;  %3637 = vmatprep.mubr.f32.mxu1 %v2363_v0  ;;  %v629_v37 = vadd.f32 %v5406_v36, %v5946_v2  ;;  %v627_v36 = vadd.f32 %v5402_v33, %v5956_v26  ;;  %v3012_v33 = vld [vmem:[#allocation8 + $0x660] sm:$0xff] }
 0x294   :  { %v6120_v7 = vpop.f32.mrf.mxu0  ;;  %v6122_v9 = vpop.f32.mrf.mxu1  ;;  %3989 = vmatpush1.msra.mxu0 %v2952_v19  ;;  %4438 = vmatpush1.msra.mxu1 %v3016_v21  ;;  %v2949_v19 = vld [vmem:[#allocation8 + $0x468] sm:$0xff]  ;;  %v1084_v30 = vadd.f32 %v5416_v57, %v5948_v20  ;;  %v1082_v57 = vadd.f32 %v5412_v48, %v5958_v14 }
 0x295   :  { %8210 = vst [vmem:[#allocation288_spill] sm:$0xff] %v6122_v9  ;;  %3990 = vmatprep.subr.mxu0 %v2951_v13  ;;  %4439 = vmatprep.subr.mxu1 %v3015_v15  ;;  %v3013_v21 = vld [vmem:[#allocation8 + $0x668] sm:$0xff] }
 0x296   :  { %v6128_v0 = vpop.f32.mrf.mxu0  ;;  %v6130_v28 = vpop.f32.mrf.mxu1  ;;  %3189 = vmatmul.mubr.f32.gmra.mxu0 %v2360_v38  ;;  %3638 = vmatmul.mubr.f32.gmra.mxu1 %v2362_v12  ;;  %v2377_v38 = vmax.f32 %v629_v37, 0.0  ;;  %v2379_v12 = vmax.f32 %v1078_v24, 0.0  ;;  %v2376_v37 = vmax.f32 %v627_v36, 0.0  ;;  %v2378_v24 = vmax.f32 %v1076_v39, 0.0  ;;  %v8219_v36 = vld [vmem:[#allocation17_spill] sm:$0xff] }
 0x297   :  { %8211 = vst [vmem:[#allocation289_spill] sm:$0xff] %v6128_v0  ;;  %8212 = vst [vmem:[#allocation290_spill] sm:$0xff] %v6130_v28  ;;  %3194 = vmatprep.mubr.f32.mxu0 %v2369_v32  ;;  %3643 = vmatprep.mubr.f32.mxu1 %v2371_v6  ;;  %v635_v32 = vadd.f32 %v5414_v54, %v5946_v2  ;;  %v633_v54 = vadd.f32 %v5410_v45, %v5956_v26  ;;  %v3010_v45 = vld [vmem:[#allocation8 + $0x650] sm:$0xff] }
 0x298   :  { %v6136_v13 = vpop.f32.mrf.mxu0  ;;  %v6138_v15 = vpop.f32.mrf.mxu1  ;;  %3991 = vmatpush1.msra.mxu0 %v2950_v25  ;;  %4440 = vmatpush1.msra.mxu1 %v3014_v27  ;;  %v2947_v25 = vld [vmem:[#allocation8 + $0x458] sm:$0xff]  ;;  %v1090_v39 = vadd.f32 %v8219_v36, %v5948_v20 }
 0x299   :  { %8213 = vst [vmem:[#allocation291_spill] sm:$0xff] %v6136_v13  ;;  %8214 = vst [vmem:[#allocation292_spill] sm:$0xff] %v6138_v15  ;;  %3992 = vmatprep.subr.mxu0 %v2949_v19  ;;  %4441 = vmatprep.subr.mxu1 %v3013_v21  ;;  %v3011_v27 = vld [vmem:[#allocation8 + $0x658] sm:$0xff] }
 0x29a   :  { %v6144_v6 = vpop.f32.mrf.mxu0  ;;  %v6146_v34 = vpop.f32.mrf.mxu1  ;;  %3195 = vmatmul.mubr.f32.gmra.mxu0 %v2368_v35  ;;  %3644 = vmatmul.mubr.f32.gmra.mxu1 %v2370_v18  ;;  %v2385_v35 = vmax.f32 %v635_v32, 0.0  ;;  %v2387_v18 = vmax.f32 %v1084_v30, 0.0  ;;  %v2384_v32 = vmax.f32 %v633_v54, 0.0  ;;  %v2386_v30 = vmax.f32 %v1082_v57, 0.0  ;;  %v8227_v54 = vld [vmem:[#allocation21_spill] sm:$0xff] }
 0x29b   :  { %8215 = vst [vmem:[#allocation293_spill] sm:$0xff] %v6144_v6  ;;  %8216 = vst [vmem:[#allocation294_spill] sm:$0xff] %v6146_v34  ;;  %3200 = vmatprep.mubr.f32.mxu0 %v2377_v38  ;;  %3649 = vmatprep.mubr.f32.mxu1 %v2379_v12  ;;  %v641_v38 = vadd.f32 %v5422_v8, %v5946_v2  ;;  %v2946_v12 = vld [vmem:[#allocation8 + $0x450] sm:$0xff]  ;;  %v8222_v8 = vld [vmem:[#allocation15_spill] sm:$0xff]  ;;  %v1096_v57 = vadd.f32 %v8227_v54, %v5948_v20 }
 0x29c   :  { %v6152_v19 = vpop.f32.mrf.mxu0  ;;  %v6154_v21 = vpop.f32.mrf.mxu1  ;;  %3993 = vmatpush1.msra.mxu0 %v2948_v31  ;;  %4442 = vmatpush1.msra.mxu1 %v3012_v33  ;;  %v2945_v31 = vld [vmem:[#allocation8 + $0x448] sm:$0xff]  ;;  %v639_v6 = vadd.f32 %v8222_v8, %v5956_v26  ;;  %v3008_v8 = vld [vmem:[#allocation8 + $0x640] sm:$0xff] }
 0x29d   :  { %8217 = vst [vmem:[#allocation295_spill] sm:$0xff] %v6152_v19  ;;  %8218 = vst [vmem:[#allocation296_spill] sm:$0xff] %v6154_v21  ;;  %3994 = vmatprep.subr.mxu0 %v2947_v25  ;;  %4443 = vmatprep.subr.mxu1 %v3011_v27  ;;  %v3009_v33 = vld [vmem:[#allocation8 + $0x648] sm:$0xff] }
 0x29e   :  { %v6160_v34 = vpop.f32.mrf.mxu0  ;;  %v6162_v48 = vpop.f32.mrf.mxu1  ;;  %3201 = vmatmul.mubr.f32.gmra.mxu0 %v2376_v37  ;;  %3650 = vmatmul.mubr.f32.gmra.mxu1 %v2378_v24  ;;  %v8223_v25 = vld [vmem:[#allocation16_spill] sm:$0xff]  ;;  %v2393_v37 = vmax.f32 %v641_v38, 0.0  ;;  %v2395_v24 = vmax.f32 %v1090_v39, 0.0  ;;  %v2392_v38 = vmax.f32 %v639_v6, 0.0  ;;  %v8235_v6 = vld [vmem:[#allocation25_spill] sm:$0xff] }
 0x29f   :  { %8220 = vst [vmem:[#allocation17_spill] sm:$0xff] %v6160_v34  ;;  %8221 = vst [vmem:[#allocation297_spill] sm:$0xff] %v6162_v48  ;;  %3206 = vmatprep.mubr.f32.mxu0 %v2385_v35  ;;  %3655 = vmatprep.mubr.f32.mxu1 %v2387_v18  ;;  %v1088_v36 = vadd.f32 %v8223_v25, %v5958_v14  ;;  %v8226_v48 = vld [vmem:[#allocation20_spill] sm:$0xff]  ;;  %v2944_v18 = vld [vmem:[#allocation8 + $0x440] sm:$0xff] }
 0x2a0   :  { %v6168_v27 = vpop.f32.mrf.mxu0  ;;  %v6170_v21 = vpop.f32.mrf.mxu1  ;;  %3995 = vmatpush1.msra.mxu0 %v2946_v12  ;;  %4444 = vmatpush1.msra.mxu1 %v3010_v45  ;;  %v647_v35 = vadd.f32 %v8226_v48, %v5946_v2  ;;  %v2943_v12 = vld [vmem:[#allocation8 + $0x438] sm:$0xff] }
 0x2a1   :  { %8224 = vst [vmem:[#allocation15_spill] sm:$0xff] %v6168_v27  ;;  %8225 = vst [vmem:[#allocation16_spill] sm:$0xff] %v6170_v21  ;;  %3996 = vmatprep.subr.mxu0 %v2945_v31  ;;  %4445 = vmatprep.subr.mxu1 %v3009_v33  ;;  %v3007_v45 = vld [vmem:[#allocation8 + $0x638] sm:$0xff]  ;;  %v2394_v39 = vmax.f32 %v1088_v36, 0.0  ;;  %v8231_v31 = vld [vmem:[#allocation19_spill] sm:$0xff]  ;;  %v1102_v36 = vadd.f32 %v8235_v6, %v5948_v20 }
 0x2a2   :  { %v6176_v34 = vpop.f32.mrf.mxu0  ;;  %v6178_v25 = vpop.f32.mrf.mxu1  ;;  %3207 = vmatmul.mubr.f32.gmra.mxu0 %v2384_v32  ;;  %3656 = vmatmul.mubr.f32.gmra.mxu1 %v2386_v30  ;;  %v8230_v48 = vld [vmem:[#allocation18_spill] sm:$0xff]  ;;  %v1094_v54 = vadd.f32 %v8231_v31, %v5958_v14  ;;  %v2401_v32 = vmax.f32 %v647_v35, 0.0  ;;  %v2403_v30 = vmax.f32 %v1096_v57, 0.0 }
 0x2a3   :  { %8228 = vst [vmem:[#allocation20_spill] sm:$0xff] %v6176_v34  ;;  %8229 = vst [vmem:[#allocation21_spill] sm:$0xff] %v6178_v25  ;;  %3212 = vmatprep.mubr.f32.mxu0 %v2393_v37  ;;  %3661 = vmatprep.mubr.f32.mxu1 %v2395_v24  ;;  %v645_v21 = vadd.f32 %v8230_v48, %v5956_v26  ;;  %v8234_v25 = vld [vmem:[#allocation24_spill] sm:$0xff]  ;;  %v2942_v24 = vld [vmem:[#allocation8 + $0x430] sm:$0xff] }
 0x2a4   :  { %v6184_v33 = vpop.f32.mrf.mxu0  ;;  %v6186_v27 = vpop.f32.mrf.mxu1  ;;  %3997 = vmatpush1.msra.mxu0 %v2944_v18  ;;  %4446 = vmatpush1.msra.mxu1 %v3008_v8  ;;  %v653_v37 = vadd.f32 %v8234_v25, %v5946_v2  ;;  %v3006_v48 = vld [vmem:[#allocation8 + $0x630] sm:$0xff]  ;;  %v2941_v18 = vld [vmem:[#allocation8 + $0x428] sm:$0xff]  ;;  %v2402_v57 = vmax.f32 %v1094_v54, 0.0  ;;  %v8238_v25 = vld [vmem:[#allocation22_spill] sm:$0xff] }
 0x2a5   :  { %8232 = vst [vmem:[#allocation18_spill] sm:$0xff] %v6184_v33  ;;  %8233 = vst [vmem:[#allocation19_spill] sm:$0xff] %v6186_v27  ;;  %3998 = vmatprep.subr.mxu0 %v2943_v12  ;;  %4447 = vmatprep.subr.mxu1 %v3007_v45  ;;  %v3005_v8 = vld [vmem:[#allocation8 + $0x628] sm:$0xff]  ;;  %v2400_v35 = vmax.f32 %v645_v21, 0.0  ;;  %v651_v27 = vadd.f32 %v8238_v25, %v5956_v26  ;;  %v8239_v12 = vld [vmem:[#allocation23_spill] sm:$0xff] }
 0x2a6   :  { %v6192_v34 = vpop.f32.mrf.mxu0  ;;  %v6194_v31 = vpop.f32.mrf.mxu1  ;;  %3213 = vmatmul.mubr.f32.gmra.mxu0 %v2392_v38  ;;  %3662 = vmatmul.mubr.f32.gmra.mxu1 %v2394_v39  ;;  %v1100_v6 = vadd.f32 %v8239_v12, %v5958_v14  ;;  %v2409_v38 = vmax.f32 %v653_v37, 0.0  ;;  %v2411_v39 = vmax.f32 %v1102_v36, 0.0  ;;  %v8243_v21 = vld [vmem:[#allocation29_spill] sm:$0xff]  ;;  %v3004_v25 = vld [vmem:[#allocation8 + $0x620] sm:$0xff] }
 0x2a7   :  { %8236 = vst [vmem:[#allocation24_spill] sm:$0xff] %v6192_v34  ;;  %8237 = vst [vmem:[#allocation25_spill] sm:$0xff] %v6194_v31  ;;  %3218 = vmatprep.mubr.f32.mxu0 %v2401_v32  ;;  %3667 = vmatprep.mubr.f32.mxu1 %v2403_v30  ;;  %v8242_v31 = vld [vmem:[#allocation28_spill] sm:$0xff]  ;;  %v1108_v54 = vadd.f32 %v8243_v21, %v5948_v20  ;;  %v2940_v30 = vld [vmem:[#allocation8 + $0x420] sm:$0xff]  ;;  %v2408_v37 = vmax.f32 %v651_v27, 0.0 }
 0x2a8   :  { %v6200_v45 = vpop.f32.mrf.mxu0  ;;  %v6202_v33 = vpop.f32.mrf.mxu1  ;;  %3999 = vmatpush1.msra.mxu0 %v2942_v24  ;;  %4448 = vmatpush1.msra.mxu1 %v3006_v48  ;;  %v659_v32 = vadd.f32 %v8242_v31, %v5946_v2  ;;  %v2939_v24 = vld [vmem:[#allocation8 + $0x418] sm:$0xff]  ;;  %v2410_v36 = vmax.f32 %v1100_v6, 0.0  ;;  %v8251_v27 = vld [vmem:[#allocation33_spill] sm:$0xff] }
 0x2a9   :  { %8240 = vst [vmem:[#allocation22_spill] sm:$0xff] %v6200_v45  ;;  %8241 = vst [vmem:[#allocation23_spill] sm:$0xff] %v6202_v33  ;;  %4000 = vmatprep.subr.mxu0 %v2941_v18  ;;  %4449 = vmatprep.subr.mxu1 %v3005_v8  ;;  %v3003_v48 = vld [vmem:[#allocation8 + $0x618] sm:$0xff]  ;;  %v8247_v18 = vld [vmem:[#allocation27_spill] sm:$0xff]  ;;  %v1114_v6 = vadd.f32 %v8251_v27, %v5948_v20 }
 0x2aa   :  { %v6208_v34 = vpop.f32.mrf.mxu0  ;;  %v6210_v12 = vpop.f32.mrf.mxu1  ;;  %3219 = vmatmul.mubr.f32.gmra.mxu0 %v2400_v35  ;;  %3668 = vmatmul.mubr.f32.gmra.mxu1 %v2402_v57  ;;  %v8246_v31 = vld [vmem:[#allocation26_spill] sm:$0xff]  ;;  %v1106_v21 = vadd.f32 %v8247_v18, %v5958_v14  ;;  %v2417_v35 = vmax.f32 %v659_v32, 0.0  ;;  %v2419_v57 = vmax.f32 %v1108_v54, 0.0 }
 0x2ab   :  { %8244 = vst [vmem:[#allocation28_spill] sm:$0xff] %v6208_v34  ;;  %8245 = vst [vmem:[#allocation29_spill] sm:$0xff] %v6210_v12  ;;  %3224 = vmatprep.mubr.f32.mxu0 %v2409_v38  ;;  %3673 = vmatprep.mubr.f32.mxu1 %v2411_v39  ;;  %v657_v33 = vadd.f32 %v8246_v31, %v5956_v26  ;;  %v8250_v12 = vld [vmem:[#allocation32_spill] sm:$0xff]  ;;  %v2938_v39 = vld [vmem:[#allocation8 + $0x410] sm:$0xff] }
 0x2ac   :  { %v6216_v8 = vpop.f32.mrf.mxu0  ;;  %v6218_v45 = vpop.f32.mrf.mxu1  ;;  %4001 = vmatpush1.msra.mxu0 %v2940_v30  ;;  %4450 = vmatpush1.msra.mxu1 %v3004_v25  ;;  %v665_v38 = vadd.f32 %v8250_v12, %v5946_v2  ;;  %v3002_v31 = vld [vmem:[#allocation8 + $0x610] sm:$0xff]  ;;  %v2937_v30 = vld [vmem:[#allocation8 + $0x408] sm:$0xff]  ;;  %v2418_v54 = vmax.f32 %v1106_v21, 0.0  ;;  %v8254_v12 = vld [vmem:[#allocation30_spill] sm:$0xff] }
 0x2ad   :  { %8248 = vst [vmem:[#allocation26_spill] sm:$0xff] %v6216_v8  ;;  %8249 = vst [vmem:[#allocation27_spill] sm:$0xff] %v6218_v45  ;;  %4002 = vmatprep.subr.mxu0 %v2939_v24  ;;  %4451 = vmatprep.subr.mxu1 %v3003_v48  ;;  %v3001_v25 = vld [vmem:[#allocation8 + $0x608] sm:$0xff]  ;;  %v2416_v32 = vmax.f32 %v657_v33, 0.0  ;;  %v663_v45 = vadd.f32 %v8254_v12, %v5956_v26  ;;  %v8255_v24 = vld [vmem:[#allocation31_spill] sm:$0xff] }
 0x2ae   :  { %v6224_v34 = vpop.f32.mrf.mxu0  ;;  %v6226_v18 = vpop.f32.mrf.mxu1  ;;  %3225 = vmatmul.mubr.f32.gmra.mxu0 %v2408_v37  ;;  %3674 = vmatmul.mubr.f32.gmra.mxu1 %v2410_v36  ;;  %v1112_v27 = vadd.f32 %v8255_v24, %v5958_v14  ;;  %v2425_v37 = vmax.f32 %v665_v38, 0.0  ;;  %v2427_v36 = vmax.f32 %v1114_v6, 0.0  ;;  %v8259_v33 = vld [vmem:[#allocation37_spill] sm:$0xff]  ;;  %v3000_v12 = vld [vmem:[#allocation8 + $0x600] sm:$0xff] }
 0x2af   :  { %8252 = vst [vmem:[#allocation32_spill] sm:$0xff] %v6224_v34  ;;  %8253 = vst [vmem:[#allocation33_spill] sm:$0xff] %v6226_v18  ;;  %3230 = vmatprep.mubr.f32.mxu0 %v2417_v35  ;;  %3679 = vmatprep.mubr.f32.mxu1 %v2419_v57  ;;  %v8258_v18 = vld [vmem:[#allocation36_spill] sm:$0xff]  ;;  %v1120_v21 = vadd.f32 %v8259_v33, %v5948_v20  ;;  %v2936_v57 = vld [vmem:[#allocation8 + $0x400] sm:$0xff]  ;;  %v2424_v38 = vmax.f32 %v663_v45, 0.0 }
 0x2b0   :  { %v6232_v48 = vpop.f32.mrf.mxu0  ;;  %v6234_v8 = vpop.f32.mrf.mxu1  ;;  %4003 = vmatpush1.msra.mxu0 %v2938_v39  ;;  %4452 = vmatpush1.msra.mxu1 %v3002_v31  ;;  %v671_v35 = vadd.f32 %v8258_v18, %v5946_v2  ;;  %v2999_v39 = vld [vmem:[#allocation8 + $0x5f8] sm:$0xff]  ;;  %v2426_v6 = vmax.f32 %v1112_v27, 0.0  ;;  %v8267_v45 = vld [vmem:[#allocation41_spill] sm:$0xff] }
 0x2b1   :  { %8256 = vst [vmem:[#allocation30_spill] sm:$0xff] %v6232_v48  ;;  %8257 = vst [vmem:[#allocation31_spill] sm:$0xff] %v6234_v8  ;;  %4004 = vmatprep.subr.mxu0 %v2937_v30  ;;  %4453 = vmatprep.subr.mxu1 %v3001_v25  ;;  %v3063_v31 = vld [vmem:[#allocation8 + $0x7f8] sm:$0xff]  ;;  %v8263_v30 = vld [vmem:[#allocation35_spill] sm:$0xff]  ;;  %v1126_v27 = vadd.f32 %v8267_v45, %v5948_v20 }
 0x2b2   :  { %v6240_v34 = vpop.f32.mrf.mxu0  ;;  %v6242_v24 = vpop.f32.mrf.mxu1  ;;  %3231 = vmatmul.mubr.f32.gmra.mxu0 %v2416_v32  ;;  %3680 = vmatmul.mubr.f32.gmra.mxu1 %v2418_v54  ;;  %v8262_v18 = vld [vmem:[#allocation34_spill] sm:$0xff]  ;;  %v1118_v33 = vadd.f32 %v8263_v30, %v5958_v14  ;;  %v2433_v32 = vmax.f32 %v671_v35, 0.0  ;;  %v2435_v54 = vmax.f32 %v1120_v21, 0.0 }
 0x2b3   :  { %8260 = vst [vmem:[#allocation36_spill] sm:$0xff] %v6240_v34  ;;  %8261 = vst [vmem:[#allocation37_spill] sm:$0xff] %v6242_v24  ;;  %3236 = vmatprep.mubr.f32.mxu0 %v2425_v37  ;;  %3685 = vmatprep.mubr.f32.mxu1 %v2427_v36  ;;  %v669_v8 = vadd.f32 %v8262_v18, %v5956_v26  ;;  %v8266_v24 = vld [vmem:[#allocation40_spill] sm:$0xff]  ;;  %v2998_v36 = vld [vmem:[#allocation8 + $0x5f0] sm:$0xff] }
 0x2b4   :  { %v6248_v25 = vpop.f32.mrf.mxu0  ;;  %v6250_v48 = vpop.f32.mrf.mxu1  ;;  %4005 = vmatpush1.msra.mxu0 %v2936_v57  ;;  %4454 = vmatpush1.msra.mxu1 %v3000_v12  ;;  %v677_v37 = vadd.f32 %v8266_v24, %v5946_v2  ;;  %v3062_v18 = vld [vmem:[#allocation8 + $0x7f0] sm:$0xff]  ;;  %v2997_v57 = vld [vmem:[#allocation8 + $0x5e8] sm:$0xff]  ;;  %v2434_v21 = vmax.f32 %v1118_v33, 0.0  ;;  %v8270_v24 = vld [vmem:[#allocation38_spill] sm:$0xff] }
 0x2b5   :  { %8264 = vst [vmem:[#allocation34_spill] sm:$0xff] %v6248_v25  ;;  %8265 = vst [vmem:[#allocation35_spill] sm:$0xff] %v6250_v48  ;;  %4006 = vmatprep.subr.mxu0 %v2999_v39  ;;  %4455 = vmatprep.subr.mxu1 %v3063_v31  ;;  %v3061_v12 = vld [vmem:[#allocation8 + $0x7e8] sm:$0xff]  ;;  %v2432_v35 = vmax.f32 %v669_v8, 0.0  ;;  %v675_v48 = vadd.f32 %v8270_v24, %v5956_v26  ;;  %v8271_v39 = vld [vmem:[#allocation39_spill] sm:$0xff] }
 0x2b6   :  { %v6256_v34 = vpop.f32.mrf.mxu0  ;;  %v6258_v30 = vpop.f32.mrf.mxu1  ;;  %3237 = vmatmul.mubr.f32.gmra.mxu0 %v2424_v38  ;;  %3686 = vmatmul.mubr.f32.gmra.mxu1 %v2426_v6  ;;  %v1124_v45 = vadd.f32 %v8271_v39, %v5958_v14  ;;  %v2441_v38 = vmax.f32 %v677_v37, 0.0  ;;  %v2443_v6 = vmax.f32 %v1126_v27, 0.0  ;;  %v8275_v8 = vld [vmem:[#allocation45_spill] sm:$0xff]  ;;  %v3060_v24 = vld [vmem:[#allocation8 + $0x7e0] sm:$0xff] }
 0x2b7   :  { %8268 = vst [vmem:[#allocation40_spill] sm:$0xff] %v6256_v34  ;;  %8269 = vst [vmem:[#allocation41_spill] sm:$0xff] %v6258_v30  ;;  %3242 = vmatprep.mubr.f32.mxu0 %v2433_v32  ;;  %3691 = vmatprep.mubr.f32.mxu1 %v2435_v54  ;;  %v8274_v30 = vld [vmem:[#allocation44_spill] sm:$0xff]  ;;  %v1132_v33 = vadd.f32 %v8275_v8, %v5948_v20  ;;  %v2996_v54 = vld [vmem:[#allocation8 + $0x5e0] sm:$0xff]  ;;  %v2440_v37 = vmax.f32 %v675_v48, 0.0 }
 0x2b8   :  { %v6264_v31 = vpop.f32.mrf.mxu0  ;;  %v6266_v25 = vpop.f32.mrf.mxu1  ;;  %4007 = vmatpush2.msra.mxu0 %v2998_v36  ;;  %4456 = vmatpush2.msra.mxu1 %v3062_v18  ;;  %v683_v32 = vadd.f32 %v8274_v30, %v5946_v2  ;;  %v2995_v36 = vld [vmem:[#allocation8 + $0x5d8] sm:$0xff]  ;;  %v2442_v27 = vmax.f32 %v1124_v45, 0.0  ;;  %v8283_v48 = vld [vmem:[#allocation49_spill] sm:$0xff] }
 0x2b9   :  { %8272 = vst [vmem:[#allocation38_spill] sm:$0xff] %v6264_v31  ;;  %8273 = vst [vmem:[#allocation39_spill] sm:$0xff] %v6266_v25  ;;  %4008 = vmatprep.subr.mxu0 %v2997_v57  ;;  %4457 = vmatprep.subr.mxu1 %v3061_v12  ;;  %v3059_v18 = vld [vmem:[#allocation8 + $0x7d8] sm:$0xff]  ;;  %v8279_v57 = vld [vmem:[#allocation43_spill] sm:$0xff]  ;;  %v1138_v45 = vadd.f32 %v8283_v48, %v5948_v20 }
 0x2ba   :  { %v6272_v34 = vpop.f32.mrf.mxu0  ;;  %v6274_v39 = vpop.f32.mrf.mxu1  ;;  %3243 = vmatmul.mubr.f32.gmra.mxu0 %v2432_v35  ;;  %3692 = vmatmul.mubr.f32.gmra.mxu1 %v2434_v21  ;;  %v8278_v30 = vld [vmem:[#allocation42_spill] sm:$0xff]  ;;  %v1130_v8 = vadd.f32 %v8279_v57, %v5958_v14  ;;  %v2449_v35 = vmax.f32 %v683_v32, 0.0  ;;  %v2451_v21 = vmax.f32 %v1132_v33, 0.0 }
 0x2bb   :  { %8276 = vst [vmem:[#allocation44_spill] sm:$0xff] %v6272_v34  ;;  %8277 = vst [vmem:[#allocation45_spill] sm:$0xff] %v6274_v39  ;;  %3248 = vmatprep.mubr.f32.mxu0 %v2441_v38  ;;  %3697 = vmatprep.mubr.f32.mxu1 %v2443_v6  ;;  %v681_v25 = vadd.f32 %v8278_v30, %v5956_v26  ;;  %v8282_v39 = vld [vmem:[#allocation48_spill] sm:$0xff]  ;;  %v2994_v6 = vld [vmem:[#allocation8 + $0x5d0] sm:$0xff] }
 0x2bc   :  { %v6280_v12 = vpop.f32.mrf.mxu0  ;;  %v6282_v31 = vpop.f32.mrf.mxu1  ;;  %4009 = vmatpush2.msra.mxu0 %v2996_v54  ;;  %4458 = vmatpush2.msra.mxu1 %v3060_v24  ;;  %v689_v38 = vadd.f32 %v8282_v39, %v5946_v2  ;;  %v3058_v30 = vld [vmem:[#allocation8 + $0x7d0] sm:$0xff]  ;;  %v2993_v54 = vld [vmem:[#allocation8 + $0x5c8] sm:$0xff]  ;;  %v2450_v33 = vmax.f32 %v1130_v8, 0.0  ;;  %v8286_v39 = vld [vmem:[#allocation46_spill] sm:$0xff] }
 0x2bd   :  { %8280 = vst [vmem:[#allocation42_spill] sm:$0xff] %v6280_v12  ;;  %8281 = vst [vmem:[#allocation43_spill] sm:$0xff] %v6282_v31  ;;  %4010 = vmatprep.subr.mxu0 %v2995_v36  ;;  %4459 = vmatprep.subr.mxu1 %v3059_v18  ;;  %v3057_v24 = vld [vmem:[#allocation8 + $0x7c8] sm:$0xff]  ;;  %v2448_v32 = vmax.f32 %v681_v25, 0.0  ;;  %v687_v31 = vadd.f32 %v8286_v39, %v5956_v26  ;;  %v8287_v36 = vld [vmem:[#allocation47_spill] sm:$0xff] }
 0x2be   :  { %v6288_v34 = vpop.f32.mrf.mxu0  ;;  %v6290_v57 = vpop.f32.mrf.mxu1  ;;  %3249 = vmatmul.mubr.f32.gmra.mxu0 %v2440_v37  ;;  %3698 = vmatmul.mubr.f32.gmra.mxu1 %v2442_v27  ;;  %v1136_v48 = vadd.f32 %v8287_v36, %v5958_v14  ;;  %v2457_v37 = vmax.f32 %v689_v38, 0.0  ;;  %v2459_v27 = vmax.f32 %v1138_v45, 0.0  ;;  %v8291_v25 = vld [vmem:[#allocation53_spill] sm:$0xff]  ;;  %v3056_v39 = vld [vmem:[#allocation8 + $0x7c0] sm:$0xff] }
 0x2bf   :  { %8284 = vst [vmem:[#allocation48_spill] sm:$0xff] %v6288_v34  ;;  %8285 = vst [vmem:[#allocation49_spill] sm:$0xff] %v6290_v57  ;;  %3254 = vmatprep.mubr.f32.mxu0 %v2449_v35  ;;  %3703 = vmatprep.mubr.f32.mxu1 %v2451_v21  ;;  %v8290_v57 = vld [vmem:[#allocation52_spill] sm:$0xff]  ;;  %v1144_v8 = vadd.f32 %v8291_v25, %v5948_v20  ;;  %v2992_v21 = vld [vmem:[#allocation8 + $0x5c0] sm:$0xff]  ;;  %v2456_v38 = vmax.f32 %v687_v31, 0.0 }
 0x2c0   :  { %v6296_v18 = vpop.f32.mrf.mxu0  ;;  %v6298_v12 = vpop.f32.mrf.mxu1  ;;  %4011 = vmatpush2.msra.mxu0 %v2994_v6  ;;  %4460 = vmatpush2.msra.mxu1 %v3058_v30  ;;  %v695_v35 = vadd.f32 %v8290_v57, %v5946_v2  ;;  %v2991_v6 = vld [vmem:[#allocation8 + $0x5b8] sm:$0xff]  ;;  %v2458_v45 = vmax.f32 %v1136_v48, 0.0  ;;  %v8299_v31 = vld [vmem:[#allocation57_spill] sm:$0xff] }
 0x2c1   :  { %8288 = vst [vmem:[#allocation46_spill] sm:$0xff] %v6296_v18  ;;  %8289 = vst [vmem:[#allocation47_spill] sm:$0xff] %v6298_v12  ;;  %4012 = vmatprep.subr.mxu0 %v2993_v54  ;;  %4461 = vmatprep.subr.mxu1 %v3057_v24  ;;  %v3055_v30 = vld [vmem:[#allocation8 + $0x7b8] sm:$0xff]  ;;  %v8295_v54 = vld [vmem:[#allocation51_spill] sm:$0xff]  ;;  %v1150_v48 = vadd.f32 %v8299_v31, %v5948_v20 }
 0x2c2   :  { %v6304_v34 = vpop.f32.mrf.mxu0  ;;  %v6306_v36 = vpop.f32.mrf.mxu1  ;;  %3255 = vmatmul.mubr.f32.gmra.mxu0 %v2448_v32  ;;  %3704 = vmatmul.mubr.f32.gmra.mxu1 %v2450_v33  ;;  %v8294_v57 = vld [vmem:[#allocation50_spill] sm:$0xff]  ;;  %v1142_v25 = vadd.f32 %v8295_v54, %v5958_v14  ;;  %v2465_v32 = vmax.f32 %v695_v35, 0.0  ;;  %v2467_v33 = vmax.f32 %v1144_v8, 0.0 }
 0x2c3   :  { %8292 = vst [vmem:[#allocation52_spill] sm:$0xff] %v6304_v34  ;;  %8293 = vst [vmem:[#allocation53_spill] sm:$0xff] %v6306_v36  ;;  %3260 = vmatprep.mubr.f32.mxu0 %v2457_v37  ;;  %3709 = vmatprep.mubr.f32.mxu1 %v2459_v27  ;;  %v693_v12 = vadd.f32 %v8294_v57, %v5956_v26  ;;  %v8298_v36 = vld [vmem:[#allocation56_spill] sm:$0xff]  ;;  %v2990_v27 = vld [vmem:[#allocation8 + $0x5b0] sm:$0xff] }
 0x2c4   :  { %v6312_v24 = vpop.f32.mrf.mxu0  ;;  %v6314_v18 = vpop.f32.mrf.mxu1  ;;  %4013 = vmatpush2.msra.mxu0 %v2992_v21  ;;  %4462 = vmatpush2.msra.mxu1 %v3056_v39  ;;  %v701_v37 = vadd.f32 %v8298_v36, %v5946_v2  ;;  %v3054_v57 = vld [vmem:[#allocation8 + $0x7b0] sm:$0xff]  ;;  %v2989_v21 = vld [vmem:[#allocation8 + $0x5a8] sm:$0xff]  ;;  %v2466_v8 = vmax.f32 %v1142_v25, 0.0  ;;  %v8302_v36 = vld [vmem:[#allocation54_spill] sm:$0xff] }
 0x2c5   :  { %8296 = vst [vmem:[#allocation50_spill] sm:$0xff] %v6312_v24  ;;  %8297 = vst [vmem:[#allocation51_spill] sm:$0xff] %v6314_v18  ;;  %4014 = vmatprep.subr.mxu0 %v2991_v6  ;;  %4463 = vmatprep.subr.mxu1 %v3055_v30  ;;  %v3053_v39 = vld [vmem:[#allocation8 + $0x7a8] sm:$0xff]  ;;  %v2464_v35 = vmax.f32 %v693_v12, 0.0  ;;  %v699_v18 = vadd.f32 %v8302_v36, %v5956_v26  ;;  %v8303_v6 = vld [vmem:[#allocation55_spill] sm:$0xff] }
 0x2c6   :  { %v6320_v34 = vpop.f32.mrf.mxu0  ;;  %v6322_v54 = vpop.f32.mrf.mxu1  ;;  %3261 = vmatmul.mubr.f32.gmra.mxu0 %v2456_v38  ;;  %3710 = vmatmul.mubr.f32.gmra.mxu1 %v2458_v45  ;;  %v1148_v31 = vadd.f32 %v8303_v6, %v5958_v14  ;;  %v2473_v38 = vmax.f32 %v701_v37, 0.0  ;;  %v2475_v45 = vmax.f32 %v1150_v48, 0.0  ;;  %v8307_v12 = vld [vmem:[#allocation61_spill] sm:$0xff]  ;;  %v3052_v36 = vld [vmem:[#allocation8 + $0x7a0] sm:$0xff] }
 0x2c7   :  { %8300 = vst [vmem:[#allocation56_spill] sm:$0xff] %v6320_v34  ;;  %8301 = vst [vmem:[#allocation57_spill] sm:$0xff] %v6322_v54  ;;  %3266 = vmatprep.mubr.f32.mxu0 %v2465_v32  ;;  %3715 = vmatprep.mubr.f32.mxu1 %v2467_v33  ;;  %v8306_v54 = vld [vmem:[#allocation60_spill] sm:$0xff]  ;;  %v1156_v25 = vadd.f32 %v8307_v12, %v5948_v20  ;;  %v2988_v33 = vld [vmem:[#allocation8 + $0x5a0] sm:$0xff]  ;;  %v2472_v37 = vmax.f32 %v699_v18, 0.0 }
 0x2c8   :  { %v6328_v30 = vpop.f32.mrf.mxu0  ;;  %v6330_v24 = vpop.f32.mrf.mxu1  ;;  %4015 = vmatpush2.msra.mxu0 %v2990_v27  ;;  %4464 = vmatpush2.msra.mxu1 %v3054_v57  ;;  %v707_v32 = vadd.f32 %v8306_v54, %v5946_v2  ;;  %v2987_v27 = vld [vmem:[#allocation8 + $0x598] sm:$0xff]  ;;  %v2474_v48 = vmax.f32 %v1148_v31, 0.0  ;;  %v8315_v18 = vld [vmem:[#allocation65_spill] sm:$0xff] }
 0x2c9   :  { %8304 = vst [vmem:[#allocation54_spill] sm:$0xff] %v6328_v30  ;;  %8305 = vst [vmem:[#allocation55_spill] sm:$0xff] %v6330_v24  ;;  %4016 = vmatprep.subr.mxu0 %v2989_v21  ;;  %4465 = vmatprep.subr.mxu1 %v3053_v39  ;;  %v3051_v57 = vld [vmem:[#allocation8 + $0x798] sm:$0xff]  ;;  %v8311_v21 = vld [vmem:[#allocation59_spill] sm:$0xff]  ;;  %v1162_v31 = vadd.f32 %v8315_v18, %v5948_v20 }
 0x2ca   :  { %v6336_v34 = vpop.f32.mrf.mxu0  ;;  %v6338_v6 = vpop.f32.mrf.mxu1  ;;  %3267 = vmatmul.mubr.f32.gmra.mxu0 %v2464_v35  ;;  %3716 = vmatmul.mubr.f32.gmra.mxu1 %v2466_v8  ;;  %v8310_v54 = vld [vmem:[#allocation58_spill] sm:$0xff]  ;;  %v1154_v12 = vadd.f32 %v8311_v21, %v5958_v14  ;;  %v2481_v35 = vmax.f32 %v707_v32, 0.0  ;;  %v2483_v8 = vmax.f32 %v1156_v25, 0.0 }
 0x2cb   :  { %8308 = vst [vmem:[#allocation60_spill] sm:$0xff] %v6336_v34  ;;  %8309 = vst [vmem:[#allocation61_spill] sm:$0xff] %v6338_v6  ;;  %3272 = vmatprep.mubr.f32.mxu0 %v2473_v38  ;;  %3721 = vmatprep.mubr.f32.mxu1 %v2475_v45  ;;  %v705_v24 = vadd.f32 %v8310_v54, %v5956_v26  ;;  %v8314_v6 = vld [vmem:[#allocation64_spill] sm:$0xff]  ;;  %v2986_v45 = vld [vmem:[#allocation8 + $0x590] sm:$0xff] }
 0x2cc   :  { %v6344_v39 = vpop.f32.mrf.mxu0  ;;  %v6346_v30 = vpop.f32.mrf.mxu1  ;;  %4017 = vmatpush2.msra.mxu0 %v2988_v33  ;;  %4466 = vmatpush2.msra.mxu1 %v3052_v36  ;;  %v713_v38 = vadd.f32 %v8314_v6, %v5946_v2  ;;  %v3050_v54 = vld [vmem:[#allocation8 + $0x790] sm:$0xff]  ;;  %v2985_v33 = vld [vmem:[#allocation8 + $0x588] sm:$0xff]  ;;  %v2482_v25 = vmax.f32 %v1154_v12, 0.0  ;;  %v8318_v6 = vld [vmem:[#allocation62_spill] sm:$0xff] }
 0x2cd   :  { %8312 = vst [vmem:[#allocation58_spill] sm:$0xff] %v6344_v39  ;;  %8313 = vst [vmem:[#allocation59_spill] sm:$0xff] %v6346_v30  ;;  %4018 = vmatprep.subr.mxu0 %v2987_v27  ;;  %4467 = vmatprep.subr.mxu1 %v3051_v57  ;;  %v3049_v36 = vld [vmem:[#allocation8 + $0x788] sm:$0xff]  ;;  %v2480_v32 = vmax.f32 %v705_v24, 0.0  ;;  %v711_v30 = vadd.f32 %v8318_v6, %v5956_v26  ;;  %v8319_v27 = vld [vmem:[#allocation63_spill] sm:$0xff] }
 0x2ce   :  { %v6352_v34 = vpop.f32.mrf.mxu0  ;;  %v6354_v21 = vpop.f32.mrf.mxu1  ;;  %3273 = vmatmul.mubr.f32.gmra.mxu0 %v2472_v37  ;;  %3722 = vmatmul.mubr.f32.gmra.mxu1 %v2474_v48  ;;  %v1160_v18 = vadd.f32 %v8319_v27, %v5958_v14  ;;  %v2489_v37 = vmax.f32 %v713_v38, 0.0  ;;  %v2491_v48 = vmax.f32 %v1162_v31, 0.0  ;;  %v8323_v24 = vld [vmem:[#allocation69_spill] sm:$0xff]  ;;  %v3048_v6 = vld [vmem:[#allocation8 + $0x780] sm:$0xff] }
 0x2cf   :  { %8316 = vst [vmem:[#allocation64_spill] sm:$0xff] %v6352_v34  ;;  %8317 = vst [vmem:[#allocation65_spill] sm:$0xff] %v6354_v21  ;;  %3278 = vmatprep.mubr.f32.mxu0 %v2481_v35  ;;  %3727 = vmatprep.mubr.f32.mxu1 %v2483_v8  ;;  %v8322_v21 = vld [vmem:[#allocation68_spill] sm:$0xff]  ;;  %v1168_v12 = vadd.f32 %v8323_v24, %v5948_v20  ;;  %v2984_v8 = vld [vmem:[#allocation8 + $0x580] sm:$0xff]  ;;  %v2488_v38 = vmax.f32 %v711_v30, 0.0 }
 0x2d0   :  { %v6360_v57 = vpop.f32.mrf.mxu0  ;;  %v6362_v39 = vpop.f32.mrf.mxu1  ;;  %4019 = vmatpush2.msra.mxu0 %v2986_v45  ;;  %4468 = vmatpush2.msra.mxu1 %v3050_v54  ;;  %v719_v35 = vadd.f32 %v8322_v21, %v5946_v2  ;;  %v2983_v45 = vld [vmem:[#allocation8 + $0x578] sm:$0xff]  ;;  %v2490_v31 = vmax.f32 %v1160_v18, 0.0  ;;  %v8331_v30 = vld [vmem:[#allocation73_spill] sm:$0xff] }
 0x2d1   :  { %8320 = vst [vmem:[#allocation62_spill] sm:$0xff] %v6360_v57  ;;  %8321 = vst [vmem:[#allocation63_spill] sm:$0xff] %v6362_v39  ;;  %4020 = vmatprep.subr.mxu0 %v2985_v33  ;;  %4469 = vmatprep.subr.mxu1 %v3049_v36  ;;  %v3047_v54 = vld [vmem:[#allocation8 + $0x778] sm:$0xff]  ;;  %v8327_v33 = vld [vmem:[#allocation67_spill] sm:$0xff]  ;;  %v1174_v18 = vadd.f32 %v8331_v30, %v5948_v20 }
 0x2d2   :  { %v6368_v34 = vpop.f32.mrf.mxu0  ;;  %v6370_v27 = vpop.f32.mrf.mxu1  ;;  %3279 = vmatmul.mubr.f32.gmra.mxu0 %v2480_v32  ;;  %3728 = vmatmul.mubr.f32.gmra.mxu1 %v2482_v25  ;;  %v8326_v21 = vld [vmem:[#allocation66_spill] sm:$0xff]  ;;  %v1166_v24 = vadd.f32 %v8327_v33, %v5958_v14  ;;  %v2497_v32 = vmax.f32 %v719_v35, 0.0  ;;  %v2499_v25 = vmax.f32 %v1168_v12, 0.0 }
 0x2d3   :  { %8324 = vst [vmem:[#allocation68_spill] sm:$0xff] %v6368_v34  ;;  %8325 = vst [vmem:[#allocation69_spill] sm:$0xff] %v6370_v27  ;;  %3284 = vmatprep.mubr.f32.mxu0 %v2489_v37  ;;  %3733 = vmatprep.mubr.f32.mxu1 %v2491_v48  ;;  %v717_v39 = vadd.f32 %v8326_v21, %v5956_v26  ;;  %v8330_v27 = vld [vmem:[#allocation72_spill] sm:$0xff]  ;;  %v2982_v48 = vld [vmem:[#allocation8 + $0x570] sm:$0xff] }
 0x2d4   :  { %v6376_v36 = vpop.f32.mrf.mxu0  ;;  %v6378_v57 = vpop.f32.mrf.mxu1  ;;  %4021 = vmatpush2.msra.mxu0 %v2984_v8  ;;  %4470 = vmatpush2.msra.mxu1 %v3048_v6  ;;  %v725_v37 = vadd.f32 %v8330_v27, %v5946_v2  ;;  %v3046_v21 = vld [vmem:[#allocation8 + $0x770] sm:$0xff]  ;;  %v2981_v8 = vld [vmem:[#allocation8 + $0x568] sm:$0xff]  ;;  %v2498_v12 = vmax.f32 %v1166_v24, 0.0  ;;  %v8334_v27 = vld [vmem:[#allocation70_spill] sm:$0xff] }
 0x2d5   :  { %8328 = vst [vmem:[#allocation66_spill] sm:$0xff] %v6376_v36  ;;  %8329 = vst [vmem:[#allocation67_spill] sm:$0xff] %v6378_v57  ;;  %4022 = vmatprep.subr.mxu0 %v2983_v45  ;;  %4471 = vmatprep.subr.mxu1 %v3047_v54  ;;  %v3045_v6 = vld [vmem:[#allocation8 + $0x768] sm:$0xff]  ;;  %v2496_v35 = vmax.f32 %v717_v39, 0.0  ;;  %v723_v57 = vadd.f32 %v8334_v27, %v5956_v26  ;;  %v8335_v45 = vld [vmem:[#allocation71_spill] sm:$0xff] }
 0x2d6   :  { %v6384_v34 = vpop.f32.mrf.mxu0  ;;  %v6386_v33 = vpop.f32.mrf.mxu1  ;;  %3285 = vmatmul.mubr.f32.gmra.mxu0 %v2488_v38  ;;  %3734 = vmatmul.mubr.f32.gmra.mxu1 %v2490_v31  ;;  %v1172_v30 = vadd.f32 %v8335_v45, %v5958_v14  ;;  %v2505_v38 = vmax.f32 %v725_v37, 0.0  ;;  %v2507_v31 = vmax.f32 %v1174_v18, 0.0  ;;  %v8339_v39 = vld [vmem:[#allocation77_spill] sm:$0xff]  ;;  %v3044_v27 = vld [vmem:[#allocation8 + $0x760] sm:$0xff] }
 0x2d7   :  { %8332 = vst [vmem:[#allocation72_spill] sm:$0xff] %v6384_v34  ;;  %8333 = vst [vmem:[#allocation73_spill] sm:$0xff] %v6386_v33  ;;  %3290 = vmatprep.mubr.f32.mxu0 %v2497_v32  ;;  %3739 = vmatprep.mubr.f32.mxu1 %v2499_v25  ;;  %v8338_v33 = vld [vmem:[#allocation76_spill] sm:$0xff]  ;;  %v1180_v24 = vadd.f32 %v8339_v39, %v5948_v20  ;;  %v2980_v25 = vld [vmem:[#allocation8 + $0x560] sm:$0xff]  ;;  %v2504_v37 = vmax.f32 %v723_v57, 0.0 }
 0x2d8   :  { %v6392_v54 = vpop.f32.mrf.mxu0  ;;  %v6394_v36 = vpop.f32.mrf.mxu1  ;;  %4023 = vmatpush2.msra.mxu0 %v2982_v48  ;;  %4472 = vmatpush2.msra.mxu1 %v3046_v21  ;;  %v731_v32 = vadd.f32 %v8338_v33, %v5946_v2  ;;  %v2979_v48 = vld [vmem:[#allocation8 + $0x558] sm:$0xff]  ;;  %v2506_v18 = vmax.f32 %v1172_v30, 0.0  ;;  %v8347_v57 = vld [vmem:[#allocation81_spill] sm:$0xff] }
 0x2d9   :  { %8336 = vst [vmem:[#allocation70_spill] sm:$0xff] %v6392_v54  ;;  %8337 = vst [vmem:[#allocation71_spill] sm:$0xff] %v6394_v36  ;;  %4024 = vmatprep.subr.mxu0 %v2981_v8  ;;  %4473 = vmatprep.subr.mxu1 %v3045_v6  ;;  %v3043_v21 = vld [vmem:[#allocation8 + $0x758] sm:$0xff]  ;;  %v8343_v8 = vld [vmem:[#allocation75_spill] sm:$0xff]  ;;  %v1186_v30 = vadd.f32 %v8347_v57, %v5948_v20 }
 0x2da   :  { %v6400_v34 = vpop.f32.mrf.mxu0  ;;  %v6402_v45 = vpop.f32.mrf.mxu1  ;;  %3291 = vmatmul.mubr.f32.gmra.mxu0 %v2496_v35  ;;  %3740 = vmatmul.mubr.f32.gmra.mxu1 %v2498_v12  ;;  %v8342_v33 = vld [vmem:[#allocation74_spill] sm:$0xff]  ;;  %v1178_v39 = vadd.f32 %v8343_v8, %v5958_v14  ;;  %v2513_v35 = vmax.f32 %v731_v32, 0.0  ;;  %v2515_v12 = vmax.f32 %v1180_v24, 0.0 }
 0x2db   :  { %8340 = vst [vmem:[#allocation76_spill] sm:$0xff] %v6400_v34  ;;  %8341 = vst [vmem:[#allocation77_spill] sm:$0xff] %v6402_v45  ;;  %3296 = vmatprep.mubr.f32.mxu0 %v2505_v38  ;;  %3745 = vmatprep.mubr.f32.mxu1 %v2507_v31  ;;  %v729_v36 = vadd.f32 %v8342_v33, %v5956_v26  ;;  %v8346_v45 = vld [vmem:[#allocation80_spill] sm:$0xff]  ;;  %v2978_v31 = vld [vmem:[#allocation8 + $0x550] sm:$0xff] }
 0x2dc   :  { %v6408_v6 = vpop.f32.mrf.mxu0  ;;  %v6410_v54 = vpop.f32.mrf.mxu1  ;;  %4025 = vmatpush2.msra.mxu0 %v2980_v25  ;;  %4474 = vmatpush2.msra.mxu1 %v3044_v27  ;;  %v737_v38 = vadd.f32 %v8346_v45, %v5946_v2  ;;  %v3042_v33 = vld [vmem:[#allocation8 + $0x750] sm:$0xff]  ;;  %v2977_v25 = vld [vmem:[#allocation8 + $0x548] sm:$0xff]  ;;  %v2514_v24 = vmax.f32 %v1178_v39, 0.0  ;;  %v8350_v45 = vld [vmem:[#allocation78_spill] sm:$0xff] }
 0x2dd   :  { %8344 = vst [vmem:[#allocation74_spill] sm:$0xff] %v6408_v6  ;;  %8345 = vst [vmem:[#allocation75_spill] sm:$0xff] %v6410_v54  ;;  %4026 = vmatprep.subr.mxu0 %v2979_v48  ;;  %4475 = vmatprep.subr.mxu1 %v3043_v21  ;;  %v3041_v27 = vld [vmem:[#allocation8 + $0x748] sm:$0xff]  ;;  %v2512_v32 = vmax.f32 %v729_v36, 0.0  ;;  %v735_v54 = vadd.f32 %v8350_v45, %v5956_v26  ;;  %v8351_v48 = vld [vmem:[#allocation79_spill] sm:$0xff] }
 0x2de   :  { %v6416_v34 = vpop.f32.mrf.mxu0  ;;  %v6418_v8 = vpop.f32.mrf.mxu1  ;;  %3297 = vmatmul.mubr.f32.gmra.mxu0 %v2504_v37  ;;  %3746 = vmatmul.mubr.f32.gmra.mxu1 %v2506_v18  ;;  %v1184_v57 = vadd.f32 %v8351_v48, %v5958_v14  ;;  %v2521_v37 = vmax.f32 %v737_v38, 0.0  ;;  %v2523_v18 = vmax.f32 %v1186_v30, 0.0  ;;  %v8355_v36 = vld [vmem:[#allocation85_spill] sm:$0xff]  ;;  %v3040_v45 = vld [vmem:[#allocation8 + $0x740] sm:$0xff] }
 0x2df   :  { %8348 = vst [vmem:[#allocation80_spill] sm:$0xff] %v6416_v34  ;;  %8349 = vst [vmem:[#allocation81_spill] sm:$0xff] %v6418_v8  ;;  %3302 = vmatprep.mubr.f32.mxu0 %v2513_v35  ;;  %3751 = vmatprep.mubr.f32.mxu1 %v2515_v12  ;;  %v8354_v8 = vld [vmem:[#allocation84_spill] sm:$0xff]  ;;  %v1192_v39 = vadd.f32 %v8355_v36, %v5948_v20  ;;  %v2976_v12 = vld [vmem:[#allocation8 + $0x540] sm:$0xff]  ;;  %v2520_v38 = vmax.f32 %v735_v54, 0.0 }
 0x2e0   :  { %v6424_v21 = vpop.f32.mrf.mxu0  ;;  %v6426_v6 = vpop.f32.mrf.mxu1  ;;  %4027 = vmatpush2.msra.mxu0 %v2978_v31  ;;  %4476 = vmatpush2.msra.mxu1 %v3042_v33  ;;  %v743_v35 = vadd.f32 %v8354_v8, %v5946_v2  ;;  %v2975_v31 = vld [vmem:[#allocation8 + $0x538] sm:$0xff]  ;;  %v2522_v30 = vmax.f32 %v1184_v57, 0.0  ;;  %v8363_v54 = vld [vmem:[#allocation89_spill] sm:$0xff] }
 0x2e1   :  { %8352 = vst [vmem:[#allocation78_spill] sm:$0xff] %v6424_v21  ;;  %8353 = vst [vmem:[#allocation79_spill] sm:$0xff] %v6426_v6  ;;  %4028 = vmatprep.subr.mxu0 %v2977_v25  ;;  %4477 = vmatprep.subr.mxu1 %v3041_v27  ;;  %v3039_v33 = vld [vmem:[#allocation8 + $0x738] sm:$0xff]  ;;  %v8359_v25 = vld [vmem:[#allocation83_spill] sm:$0xff]  ;;  %v1198_v57 = vadd.f32 %v8363_v54, %v5948_v20 }
 0x2e2   :  { %v6432_v34 = vpop.f32.mrf.mxu0  ;;  %v6434_v48 = vpop.f32.mrf.mxu1  ;;  %3303 = vmatmul.mubr.f32.gmra.mxu0 %v2512_v32  ;;  %3752 = vmatmul.mubr.f32.gmra.mxu1 %v2514_v24  ;;  %v8358_v8 = vld [vmem:[#allocation82_spill] sm:$0xff]  ;;  %v1190_v36 = vadd.f32 %v8359_v25, %v5958_v14  ;;  %v2529_v32 = vmax.f32 %v743_v35, 0.0  ;;  %v2531_v24 = vmax.f32 %v1192_v39, 0.0 }
 0x2e3   :  { %8356 = vst [vmem:[#allocation84_spill] sm:$0xff] %v6432_v34  ;;  %8357 = vst [vmem:[#allocation85_spill] sm:$0xff] %v6434_v48  ;;  %3308 = vmatprep.mubr.f32.mxu0 %v2521_v37  ;;  %3757 = vmatprep.mubr.f32.mxu1 %v2523_v18  ;;  %v741_v6 = vadd.f32 %v8358_v8, %v5956_v26  ;;  %v8362_v48 = vld [vmem:[#allocation88_spill] sm:$0xff]  ;;  %v2974_v18 = vld [vmem:[#allocation8 + $0x530] sm:$0xff] }
 0x2e4   :  { %v6440_v27 = vpop.f32.mrf.mxu0  ;;  %v6442_v21 = vpop.f32.mrf.mxu1  ;;  %4029 = vmatpush2.msra.mxu0 %v2976_v12  ;;  %4478 = vmatpush2.msra.mxu1 %v3040_v45  ;;  %v749_v37 = vadd.f32 %v8362_v48, %v5946_v2  ;;  %v3038_v8 = vld [vmem:[#allocation8 + $0x730] sm:$0xff]  ;;  %v2973_v12 = vld [vmem:[#allocation8 + $0x528] sm:$0xff]  ;;  %v2530_v39 = vmax.f32 %v1190_v36, 0.0  ;;  %v8366_v48 = vld [vmem:[#allocation86_spill] sm:$0xff] }
 0x2e5   :  { %8360 = vst [vmem:[#allocation82_spill] sm:$0xff] %v6440_v27  ;;  %8361 = vst [vmem:[#allocation83_spill] sm:$0xff] %v6442_v21  ;;  %4030 = vmatprep.subr.mxu0 %v2975_v31  ;;  %4479 = vmatprep.subr.mxu1 %v3039_v33  ;;  %v3037_v45 = vld [vmem:[#allocation8 + $0x728] sm:$0xff]  ;;  %v2528_v35 = vmax.f32 %v741_v6, 0.0  ;;  %v747_v21 = vadd.f32 %v8366_v48, %v5956_v26  ;;  %v8367_v31 = vld [vmem:[#allocation87_spill] sm:$0xff] }
 0x2e6   :  { %v6448_v34 = vpop.f32.mrf.mxu0  ;;  %v6450_v25 = vpop.f32.mrf.mxu1  ;;  %3309 = vmatmul.mubr.f32.gmra.mxu0 %v2520_v38  ;;  %3758 = vmatmul.mubr.f32.gmra.mxu1 %v2522_v30  ;;  %v1196_v54 = vadd.f32 %v8367_v31, %v5958_v14  ;;  %v2537_v38 = vmax.f32 %v749_v37, 0.0  ;;  %v2539_v30 = vmax.f32 %v1198_v57, 0.0  ;;  %v8371_v6 = vld [vmem:[#allocation93_spill] sm:$0xff]  ;;  %v3036_v48 = vld [vmem:[#allocation8 + $0x720] sm:$0xff]  ;;  %v3035_v37 = vld [vmem:[#allocation8 + $0x718] sm:$0xff] }
 0x2e7   :  { %8364 = vst [vmem:[#allocation88_spill] sm:$0xff] %v6448_v34  ;;  %8365 = vst [vmem:[#allocation89_spill] sm:$0xff] %v6450_v25  ;;  %3314 = vmatprep.mubr.f32.mxu0 %v2529_v32  ;;  %3763 = vmatprep.mubr.f32.mxu1 %v2531_v24  ;;  %v8370_v25 = vld [vmem:[#allocation92_spill] sm:$0xff]  ;;  %v1204_v36 = vadd.f32 %v8371_v6, %v5948_v20  ;;  %v2972_v24 = vld [vmem:[#allocation8 + $0x520] sm:$0xff]  ;;  %v2536_v57 = vmax.f32 %v747_v21, 0.0 }
 0x2e8   :  { %v6456_v33 = vpop.f32.mrf.mxu0  ;;  %v6458_v27 = vpop.f32.mrf.mxu1  ;;  %4031 = vmatpush2.msra.mxu0 %v2974_v18  ;;  %4480 = vmatpush2.msra.mxu1 %v3038_v8  ;;  %v755_v32 = vadd.f32 %v8370_v25, %v5946_v2  ;;  %v2971_v18 = vld [vmem:[#allocation8 + $0x518] sm:$0xff]  ;;  %v2538_v8 = vmax.f32 %v1196_v54, 0.0  ;;  %v8379_v21 = vld [vmem:[#allocation97_spill] sm:$0xff] }
 0x2e9   :  { %8368 = vst [vmem:[#allocation86_spill] sm:$0xff] %v6456_v33  ;;  %8369 = vst [vmem:[#allocation87_spill] sm:$0xff] %v6458_v27  ;;  %4032 = vmatprep.subr.mxu0 %v2973_v12  ;;  %4481 = vmatprep.subr.mxu1 %v3037_v45  ;;  %v8374_v25 = vld [vmem:[#allocation90_spill] sm:$0xff]  ;;  %v8375_v12 = vld [vmem:[#allocation91_spill] sm:$0xff]  ;;  %v1210_v54 = vadd.f32 %v8379_v21, %v5948_v20 }
 0x2ea   :  { %v6464_v34 = vpop.f32.mrf.mxu0  ;;  %v6466_v31 = vpop.f32.mrf.mxu1  ;;  %3315 = vmatmul.mubr.f32.gmra.mxu0 %v2528_v35  ;;  %3764 = vmatmul.mubr.f32.gmra.mxu1 %v2530_v39  ;;  %v753_v27 = vadd.f32 %v8374_v25, %v5956_v26  ;;  %v1202_v6 = vadd.f32 %v8375_v12, %v5958_v14  ;;  %v2545_v35 = vmax.f32 %v755_v32, 0.0  ;;  %v2547_v39 = vmax.f32 %v1204_v36, 0.0  ;;  %v3034_v25 = vld [vmem:[#allocation8 + $0x710] sm:$0xff] }
 0x2eb   :  { %8372 = vst [vmem:[#allocation92_spill] sm:$0xff] %v6464_v34  ;;  %8373 = vst [vmem:[#allocation93_spill] sm:$0xff] %v6466_v31  ;;  %3320 = vmatprep.mubr.f32.mxu0 %v2537_v38  ;;  %3769 = vmatprep.mubr.f32.mxu1 %v2539_v30  ;;  %v8378_v38 = vld [vmem:[#allocation96_spill] sm:$0xff]  ;;  %v2970_v31 = vld [vmem:[#allocation8 + $0x510] sm:$0xff] }
 0x2ec   :  { %v6472_v45 = vpop.f32.mrf.mxu0  ;;  %v6474_v33 = vpop.f32.mrf.mxu1  ;;  %4033 = vmatpush2.msra.mxu0 %v2972_v24  ;;  %4482 = vmatpush2.msra.mxu1 %v3036_v48  ;;  %v761_v30 = vadd.f32 %v8378_v38, %v5946_v2  ;;  %v2544_v32 = vmax.f32 %v753_v27, 0.0  ;;  %v2546_v36 = vmax.f32 %v1202_v6, 0.0  ;;  %v8382_v24 = vld [vmem:[#allocation94_spill] sm:$0xff]  ;;  %v8383_v38 = vld [vmem:[#allocation95_spill] sm:$0xff]  ;;  %v8387_v27 = vld [vmem:[#allocation101_spill] sm:$0xff] }
 0x2ed   :  { %8376 = vst [vmem:[#allocation90_spill] sm:$0xff] %v6472_v45  ;;  %8377 = vst [vmem:[#allocation91_spill] sm:$0xff] %v6474_v33  ;;  %4034 = vmatprep.subr.mxu0 %v2971_v18  ;;  %4483 = vmatprep.subr.mxu1 %v3035_v37  ;;  %v759_v48 = vadd.f32 %v8382_v24, %v5956_v26  ;;  %v1208_v21 = vadd.f32 %v8383_v38, %v5958_v14  ;;  %v2968_v38 = vld [vmem:[#allocation8 + $0x500] sm:$0xff] }
 0x2ee   :  { %v6480_v34 = vpop.f32.mrf.mxu0  ;;  %v6482_v12 = vpop.f32.mrf.mxu1  ;;  %3321 = vmatmul.mubr.f32.gmra.mxu0 %v2536_v57  ;;  %3770 = vmatmul.mubr.f32.gmra.mxu1 %v2538_v8  ;;  %v8386_v57 = vld [vmem:[#allocation100_spill] sm:$0xff]  ;;  %v1216_v6 = vadd.f32 %v8387_v27, %v5948_v20 }
 0x2ef   :  { %8380 = vst [vmem:[#allocation96_spill] sm:$0xff] %v6480_v34  ;;  %8381 = vst [vmem:[#allocation97_spill] sm:$0xff] %v6482_v12  ;;  %3326 = vmatprep.mubr.f32.mxu0 %v2545_v35  ;;  %3775 = vmatprep.mubr.f32.mxu1 %v2547_v39  ;;  %v2553_v34 = vmax.f32 %v761_v30, 0.0  ;;  %v2555_v12 = vmax.f32 %v1210_v54, 0.0  ;;  %v767_v8 = vadd.f32 %v8386_v57, %v5946_v2  ;;  %v2969_v35 = vld [vmem:[#allocation8 + $0x508] sm:$0xff]  ;;  %v2552_v30 = vmax.f32 %v759_v48, 0.0 }
 0x2f0   :  { %v6488_v18 = vpop.f32.mrf.mxu0  ;;  %v6490_v37 = vpop.f32.mrf.mxu1  ;;  %4035 = vmatpush2.msra.mxu0 %v2970_v31  ;;  %4484 = vmatpush2.msra.mxu1 %v3034_v25  ;;  %v3033_v31 = vld [vmem:[#allocation8 + $0x708] sm:$0xff]  ;;  %v3032_v25 = vld [vmem:[#allocation8 + $0x700] sm:$0xff]  ;;  %v2554_v54 = vmax.f32 %v1208_v21, 0.0  ;;  %v8395_v48 = vld [vmem:[#allocation105_spill] sm:$0xff] }
 0x2f1   :  { %8384 = vst [vmem:[#allocation94_spill] sm:$0xff] %v6488_v18  ;;  %8385 = vst [vmem:[#allocation95_spill] sm:$0xff] %v6490_v37  ;;  %v8390_v37 = vld [vmem:[#allocation98_spill] sm:$0xff]  ;;  %v8391_v18 = vld [vmem:[#allocation99_spill] sm:$0xff]  ;;  %4036 = vmatprep.subr.mxu0 %v2969_v35  ;;  %4485 = vmatprep.subr.mxu1 %v3033_v31  ;;  %v1222_v21 = vadd.f32 %v8395_v48, %v5948_v20 }
 0x2f2   :  { %v6496_v39 = vpop.f32.mrf.mxu0  ;;  %v6498_v24 = vpop.f32.mrf.mxu1  ;;  %3327 = vmatmul.mubr.f32.gmra.mxu0 %v2544_v32  ;;  %3776 = vmatmul.mubr.f32.gmra.mxu1 %v2546_v36  ;;  %v765_v57 = vadd.f32 %v8390_v37, %v5956_v26  ;;  %v1214_v27 = vadd.f32 %v8391_v18, %v5958_v14  ;;  %v2561_v32 = vmax.f32 %v767_v8, 0.0  ;;  %v2563_v36 = vmax.f32 %v1216_v6, 0.0  ;;  %v8398_v8 = vld [vmem:[#allocation102_spill] sm:$0xff]  ;;  %v8399_v31 = vld [vmem:[#allocation103_spill] sm:$0xff] }
 0x2f3   :  { %8388 = vst [vmem:[#allocation100_spill] sm:$0xff] %v6496_v39  ;;  %8389 = vst [vmem:[#allocation101_spill] sm:$0xff] %v6498_v24  ;;  %3332 = vmatprep.mubr.f32.mxu0 %v2553_v34  ;;  %3781 = vmatprep.mubr.f32.mxu1 %v2555_v12  ;;  %v8394_v34 = vld [vmem:[#allocation104_spill] sm:$0xff]  ;;  %v771_v6 = vadd.f32 %v8398_v8, %v5956_v26  ;;  %v2571_v48 = vmax.f32 %v1222_v21, 0.0  ;;  %v8407_v21 = vld [vmem:[#allocation107_spill] sm:$0xff] }
 0x2f4   :  { %v6504_v33 = vpop.f32.mrf.mxu0  ;;  %v6506_v39 = vpop.f32.mrf.mxu1  ;;  %v773_v12 = vadd.f32 %v8394_v34, %v5946_v2  ;;  %4037 = vmatpush2.msra.mxu0 %v2968_v38  ;;  %4486 = vmatpush2.msra.mxu1 %v3032_v25  ;;  %v2560_v18 = vmax.f32 %v765_v57, 0.0  ;;  %v2562_v35 = vmax.f32 %v1214_v27, 0.0  ;;  %v1220_v34 = vadd.f32 %v8399_v31, %v5958_v14  ;;  %v8406_v31 = vld [vmem:[#allocation106_spill] sm:$0xff] }
 0x2f5   :  { %8392 = vst [vmem:[#allocation98_spill] sm:$0xff] %v6504_v33  ;;  %8393 = vst [vmem:[#allocation99_spill] sm:$0xff] %v6506_v39 }
 0x2f6   :  { %v6512_v37 = vpop.f32.mrf.mxu0  ;;  %v6514_v24 = vpop.f32.mrf.mxu1  ;;  %3333 = vmatmul.mubr.f32.gmra.mxu0 %v2552_v30  ;;  %3782 = vmatmul.mubr.f32.gmra.mxu1 %v2554_v54  ;;  %v2569_v25 = vmax.f32 %v773_v12, 0.0  ;;  %v8403_v54 = vld [vmem:[#allocation109_spill] sm:$0xff]  ;;  %v2570_v8 = vmax.f32 %v1220_v34, 0.0  ;;  %v777_v12 = vadd.f32 %v8406_v31, %v5956_v26 }
 0x2f7   :  { %8396 = vst [vmem:[#allocation104_spill] sm:$0xff] %v6512_v37  ;;  %8397 = vst [vmem:[#allocation105_spill] sm:$0xff] %v6514_v24  ;;  %3338 = vmatprep.mubr.f32.mxu0 %v2561_v32  ;;  %3787 = vmatprep.mubr.f32.mxu1 %v2563_v36  ;;  %v8402_v24 = vld [vmem:[#allocation108_spill] sm:$0xff]  ;;  %v1228_v32 = vadd.f32 %v8403_v54, %v5948_v20  ;;  %v2568_v36 = vmax.f32 %v771_v6, 0.0  ;;  %v1226_v37 = vadd.f32 %v8407_v21, %v5958_v14  ;;  %v8414_v21 = vld [vmem:[#allocation110_spill] sm:$0xff] }
 0x2f8   :  { %v6520_v39 = vpop.f32.mrf.mxu0  ;;  %v6522_v38 = vpop.f32.mrf.mxu1  ;;  %v779_v30 = vadd.f32 %v8402_v24, %v5946_v2 }
 0x2f9   :  { %8400 = vst [vmem:[#allocation102_spill] sm:$0xff] %v6520_v39  ;;  %8401 = vst [vmem:[#allocation103_spill] sm:$0xff] %v6522_v38  ;;  %v2578_v31 = vmax.f32 %v1226_v37, 0.0 }
 0x2fa   :  { %v6528_v57 = vpop.f32.mrf.mxu0  ;;  %v6530_v27 = vpop.f32.mrf.mxu1  ;;  %3339 = vmatmul.mubr.f32.gmra.mxu0 %v2560_v18  ;;  %3788 = vmatmul.mubr.f32.gmra.mxu1 %v2562_v35  ;;  %v2577_v54 = vmax.f32 %v779_v30, 0.0  ;;  %v8411_v35 = vld [vmem:[#allocation113_spill] sm:$0xff]  ;;  %v783_v30 = vadd.f32 %v8414_v21, %v5956_v26 }
 0x2fb   :  { %8404 = vst [vmem:[#allocation108_spill] sm:$0xff] %v6528_v57  ;;  %8405 = vst [vmem:[#allocation109_spill] sm:$0xff] %v6530_v27  ;;  %3344 = vmatprep.mubr.f32.mxu0 %v2569_v25  ;;  %3793 = vmatprep.mubr.f32.mxu1 %v2571_v48  ;;  %v2579_v57 = vmax.f32 %v1228_v32, 0.0  ;;  %v8410_v27 = vld [vmem:[#allocation112_spill] sm:$0xff]  ;;  %v1234_v25 = vadd.f32 %v8411_v35, %v5948_v20  ;;  %v2576_v48 = vmax.f32 %v777_v12, 0.0  ;;  %v8415_v32 = vld [vmem:[#allocation111_spill] sm:$0xff] }
 0x2fc   :  { %v6536_v24 = vpop.f32.mrf.mxu0  ;;  %v6538_v38 = vpop.f32.mrf.mxu1  ;;  %v785_v18 = vadd.f32 %v8410_v27, %v5946_v2 }
 0x2fd   :  { %8408 = vst [vmem:[#allocation106_spill] sm:$0xff] %v6536_v24  ;;  %8409 = vst [vmem:[#allocation107_spill] sm:$0xff] %v6538_v38  ;;  %v1232_v38 = vadd.f32 %v8415_v32, %v5958_v14  ;;  %v8422_v32 = vld [vmem:[#allocation114_spill] sm:$0xff] }
 0x2fe   :  { %v6544_v6 = vpop.f32.mrf.mxu0  ;;  %v6546_v34 = vpop.f32.mrf.mxu1  ;;  %3345 = vmatmul.mubr.f32.gmra.mxu0 %v2568_v36  ;;  %3794 = vmatmul.mubr.f32.gmra.mxu1 %v2570_v8  ;;  %v2585_v35 = vmax.f32 %v785_v18, 0.0  ;;  %v8419_v8 = vld [vmem:[#allocation117_spill] sm:$0xff]  ;;  %v789_v18 = vadd.f32 %v8422_v32, %v5956_v26 }
 0x2ff   :  { %8412 = vst [vmem:[#allocation112_spill] sm:$0xff] %v6544_v6  ;;  %8413 = vst [vmem:[#allocation113_spill] sm:$0xff] %v6546_v34  ;;  %3350 = vmatprep.mubr.f32.mxu0 %v2577_v54  ;;  %3799 = vmatprep.mubr.f32.mxu1 %v2579_v57  ;;  %v2587_v6 = vmax.f32 %v1234_v25, 0.0  ;;  %v8418_v34 = vld [vmem:[#allocation116_spill] sm:$0xff]  ;;  %v1240_v57 = vadd.f32 %v8419_v8, %v5948_v20  ;;  %v2584_v54 = vmax.f32 %v783_v30, 0.0  ;;  %v2586_v21 = vmax.f32 %v1232_v38, 0.0 }
 0x300   :  { %v6552_v27 = vpop.f32.mrf.mxu0  ;;  %v6554_v24 = vpop.f32.mrf.mxu1  ;;  %v791_v36 = vadd.f32 %v8418_v34, %v5946_v2  ;;  %v8423_v25 = vld [vmem:[#allocation115_spill] sm:$0xff] }
 0x301   :  { %8416 = vst [vmem:[#allocation110_spill] sm:$0xff] %v6552_v27  ;;  %8417 = vst [vmem:[#allocation111_spill] sm:$0xff] %v6554_v24  ;;  %v1238_v24 = vadd.f32 %v8423_v25, %v5958_v14  ;;  %v8430_v25 = vld [vmem:[#allocation118_spill] sm:$0xff] }
 0x302   :  { %v6560_v12 = vpop.f32.mrf.mxu0  ;;  %v6562_v37 = vpop.f32.mrf.mxu1  ;;  %3351 = vmatmul.mubr.f32.gmra.mxu0 %v2576_v48  ;;  %3800 = vmatmul.mubr.f32.gmra.mxu1 %v2578_v31  ;;  %v2593_v8 = vmax.f32 %v791_v36, 0.0  ;;  %v8427_v31 = vld [vmem:[#allocation121_spill] sm:$0xff]  ;;  %v795_v36 = vadd.f32 %v8430_v25, %v5956_v26 }
 0x303   :  { %8420 = vst [vmem:[#allocation116_spill] sm:$0xff] %v6560_v12  ;;  %8421 = vst [vmem:[#allocation117_spill] sm:$0xff] %v6562_v37  ;;  %3356 = vmatprep.mubr.f32.mxu0 %v2585_v35  ;;  %3805 = vmatprep.mubr.f32.mxu1 %v2587_v6  ;;  %v2595_v12 = vmax.f32 %v1240_v57, 0.0  ;;  %v8426_v37 = vld [vmem:[#allocation120_spill] sm:$0xff]  ;;  %v1246_v6 = vadd.f32 %v8427_v31, %v5948_v20  ;;  %v2592_v35 = vmax.f32 %v789_v18, 0.0  ;;  %v2594_v32 = vmax.f32 %v1238_v24, 0.0 }
 0x304   :  { %v6568_v34 = vpop.f32.mrf.mxu0  ;;  %v6570_v27 = vpop.f32.mrf.mxu1  ;;  %v797_v48 = vadd.f32 %v8426_v37, %v5946_v2  ;;  %v8431_v57 = vld [vmem:[#allocation119_spill] sm:$0xff] }
 0x305   :  { %8424 = vst [vmem:[#allocation114_spill] sm:$0xff] %v6568_v34  ;;  %8425 = vst [vmem:[#allocation115_spill] sm:$0xff] %v6570_v27  ;;  %v1244_v27 = vadd.f32 %v8431_v57, %v5958_v14  ;;  %v8438_v57 = vld [vmem:[#allocation122_spill] sm:$0xff] }
 0x306   :  { %v6576_v30 = vpop.f32.mrf.mxu0  ;;  %v6578_v38 = vpop.f32.mrf.mxu1  ;;  %3357 = vmatmul.mubr.f32.gmra.mxu0 %v2584_v54  ;;  %3806 = vmatmul.mubr.f32.gmra.mxu1 %v2586_v21  ;;  %v2601_v31 = vmax.f32 %v797_v48, 0.0  ;;  %v8435_v21 = vld [vmem:[#allocation125_spill] sm:$0xff]  ;;  %v801_v48 = vadd.f32 %v8438_v57, %v5956_v26 }
 0x307   :  { %8428 = vst [vmem:[#allocation120_spill] sm:$0xff] %v6576_v30  ;;  %8429 = vst [vmem:[#allocation121_spill] sm:$0xff] %v6578_v38  ;;  %3362 = vmatprep.mubr.f32.mxu0 %v2593_v8  ;;  %3811 = vmatprep.mubr.f32.mxu1 %v2595_v12  ;;  %v2603_v30 = vmax.f32 %v1246_v6, 0.0  ;;  %v8434_v38 = vld [vmem:[#allocation124_spill] sm:$0xff]  ;;  %v1252_v12 = vadd.f32 %v8435_v21, %v5948_v20  ;;  %v2600_v8 = vmax.f32 %v795_v36, 0.0  ;;  %v2602_v25 = vmax.f32 %v1244_v27, 0.0 }
 0x308   :  { %v6584_v37 = vpop.f32.mrf.mxu0  ;;  %v6586_v34 = vpop.f32.mrf.mxu1  ;;  %v803_v54 = vadd.f32 %v8434_v38, %v5946_v2  ;;  %v8439_v6 = vld [vmem:[#allocation123_spill] sm:$0xff] }
 0x309   :  { %8432 = vst [vmem:[#allocation118_spill] sm:$0xff] %v6584_v37  ;;  %8433 = vst [vmem:[#allocation119_spill] sm:$0xff] %v6586_v34  ;;  %v1250_v34 = vadd.f32 %v8439_v6, %v5958_v14  ;;  %v8446_v6 = vld [vmem:[#allocation126_spill] sm:$0xff] }
 0x30a   :  { %v6592_v18 = vpop.f32.mrf.mxu0  ;;  %v6594_v24 = vpop.f32.mrf.mxu1  ;;  %3363 = vmatmul.mubr.f32.gmra.mxu0 %v2592_v35  ;;  %3812 = vmatmul.mubr.f32.gmra.mxu1 %v2594_v32  ;;  %v2609_v21 = vmax.f32 %v803_v54, 0.0  ;;  %v8443_v32 = vld [vmem:[#allocation129_spill] sm:$0xff]  ;;  %v807_v54 = vadd.f32 %v8446_v6, %v5956_v26 }
 0x30b   :  { %8436 = vst [vmem:[#allocation124_spill] sm:$0xff] %v6592_v18  ;;  %8437 = vst [vmem:[#allocation125_spill] sm:$0xff] %v6594_v24  ;;  %3368 = vmatprep.mubr.f32.mxu0 %v2601_v31  ;;  %3817 = vmatprep.mubr.f32.mxu1 %v2603_v30  ;;  %v2611_v18 = vmax.f32 %v1252_v12, 0.0  ;;  %v8442_v24 = vld [vmem:[#allocation128_spill] sm:$0xff]  ;;  %v1258_v30 = vadd.f32 %v8443_v32, %v5948_v20  ;;  %v2608_v31 = vmax.f32 %v801_v48, 0.0  ;;  %v2610_v57 = vmax.f32 %v1250_v34, 0.0 }
 0x30c   :  { %v6600_v38 = vpop.f32.mrf.mxu0  ;;  %v6602_v37 = vpop.f32.mrf.mxu1  ;;  %v809_v35 = vadd.f32 %v8442_v24, %v5946_v2  ;;  %v8447_v12 = vld [vmem:[#allocation127_spill] sm:$0xff] }
 0x30d   :  { %8440 = vst [vmem:[#allocation122_spill] sm:$0xff] %v6600_v38  ;;  %8441 = vst [vmem:[#allocation123_spill] sm:$0xff] %v6602_v37  ;;  %v1256_v37 = vadd.f32 %v8447_v12, %v5958_v14  ;;  %v8454_v12 = vld [vmem:[#allocation130_spill] sm:$0xff] }
 0x30e   :  { %v6608_v36 = vpop.f32.mrf.mxu0  ;;  %v6610_v27 = vpop.f32.mrf.mxu1  ;;  %3369 = vmatmul.mubr.f32.gmra.mxu0 %v2600_v8  ;;  %3818 = vmatmul.mubr.f32.gmra.mxu1 %v2602_v25  ;;  %v2617_v32 = vmax.f32 %v809_v35, 0.0  ;;  %v8451_v25 = vld [vmem:[#allocation133_spill] sm:$0xff]  ;;  %v813_v35 = vadd.f32 %v8454_v12, %v5956_v26 }
 0x30f   :  { %8444 = vst [vmem:[#allocation128_spill] sm:$0xff] %v6608_v36  ;;  %8445 = vst [vmem:[#allocation129_spill] sm:$0xff] %v6610_v27  ;;  %3374 = vmatprep.mubr.f32.mxu0 %v2609_v21  ;;  %3823 = vmatprep.mubr.f32.mxu1 %v2611_v18  ;;  %v2619_v36 = vmax.f32 %v1258_v30, 0.0  ;;  %v8450_v27 = vld [vmem:[#allocation132_spill] sm:$0xff]  ;;  %v1264_v18 = vadd.f32 %v8451_v25, %v5948_v20  ;;  %v2616_v21 = vmax.f32 %v807_v54, 0.0  ;;  %v2618_v6 = vmax.f32 %v1256_v37, 0.0 }
 0x310   :  { %v6616_v24 = vpop.f32.mrf.mxu0  ;;  %v6618_v38 = vpop.f32.mrf.mxu1  ;;  %v815_v8 = vadd.f32 %v8450_v27, %v5946_v2  ;;  %v8455_v30 = vld [vmem:[#allocation131_spill] sm:$0xff] }
 0x311   :  { %8448 = vst [vmem:[#allocation126_spill] sm:$0xff] %v6616_v24  ;;  %8449 = vst [vmem:[#allocation127_spill] sm:$0xff] %v6618_v38  ;;  %v1262_v38 = vadd.f32 %v8455_v30, %v5958_v14  ;;  %v8462_v30 = vld [vmem:[#allocation134_spill] sm:$0xff] }
 0x312   :  { %v6624_v48 = vpop.f32.mrf.mxu0  ;;  %v6626_v34 = vpop.f32.mrf.mxu1  ;;  %3375 = vmatmul.mubr.f32.gmra.mxu0 %v2608_v31  ;;  %3824 = vmatmul.mubr.f32.gmra.mxu1 %v2610_v57  ;;  %v2625_v25 = vmax.f32 %v815_v8, 0.0  ;;  %v8459_v57 = vld [vmem:[#allocation137_spill] sm:$0xff]  ;;  %v819_v8 = vadd.f32 %v8462_v30, %v5956_v26 }
 0x313   :  { %8452 = vst [vmem:[#allocation132_spill] sm:$0xff] %v6624_v48  ;;  %8453 = vst [vmem:[#allocation133_spill] sm:$0xff] %v6626_v34  ;;  %3380 = vmatprep.mubr.f32.mxu0 %v2617_v32  ;;  %3829 = vmatprep.mubr.f32.mxu1 %v2619_v36  ;;  %v2627_v48 = vmax.f32 %v1264_v18, 0.0  ;;  %v8458_v34 = vld [vmem:[#allocation136_spill] sm:$0xff]  ;;  %v1270_v36 = vadd.f32 %v8459_v57, %v5948_v20  ;;  %v2624_v32 = vmax.f32 %v813_v35, 0.0  ;;  %v2626_v12 = vmax.f32 %v1262_v38, 0.0 }
 0x314   :  { %v6632_v27 = vpop.f32.mrf.mxu0  ;;  %v6634_v24 = vpop.f32.mrf.mxu1  ;;  %v821_v31 = vadd.f32 %v8458_v34, %v5946_v2  ;;  %v8463_v18 = vld [vmem:[#allocation135_spill] sm:$0xff] }
 0x315   :  { %8456 = vst [vmem:[#allocation130_spill] sm:$0xff] %v6632_v27  ;;  %8457 = vst [vmem:[#allocation131_spill] sm:$0xff] %v6634_v24  ;;  %v1268_v24 = vadd.f32 %v8463_v18, %v5958_v14  ;;  %v8470_v18 = vld [vmem:[#allocation138_spill] sm:$0xff] }
 0x316   :  { %v6640_v54 = vpop.f32.mrf.mxu0  ;;  %v6642_v37 = vpop.f32.mrf.mxu1  ;;  %3381 = vmatmul.mubr.f32.gmra.mxu0 %v2616_v21  ;;  %3830 = vmatmul.mubr.f32.gmra.mxu1 %v2618_v6  ;;  %v2633_v57 = vmax.f32 %v821_v31, 0.0  ;;  %v8467_v6 = vld [vmem:[#allocation141_spill] sm:$0xff]  ;;  %v825_v31 = vadd.f32 %v8470_v18, %v5956_v26 }
 0x317   :  { %8460 = vst [vmem:[#allocation136_spill] sm:$0xff] %v6640_v54  ;;  %8461 = vst [vmem:[#allocation137_spill] sm:$0xff] %v6642_v37  ;;  %3386 = vmatprep.mubr.f32.mxu0 %v2625_v25  ;;  %3835 = vmatprep.mubr.f32.mxu1 %v2627_v48  ;;  %v2635_v54 = vmax.f32 %v1270_v36, 0.0  ;;  %v8466_v37 = vld [vmem:[#allocation140_spill] sm:$0xff]  ;;  %v1276_v48 = vadd.f32 %v8467_v6, %v5948_v20  ;;  %v2632_v25 = vmax.f32 %v819_v8, 0.0  ;;  %v2634_v30 = vmax.f32 %v1268_v24, 0.0 }
 0x318   :  { %v6648_v34 = vpop.f32.mrf.mxu0  ;;  %v6650_v27 = vpop.f32.mrf.mxu1  ;;  %v827_v21 = vadd.f32 %v8466_v37, %v5946_v2  ;;  %v8471_v36 = vld [vmem:[#allocation139_spill] sm:$0xff] }
 0x319   :  { %8464 = vst [vmem:[#allocation134_spill] sm:$0xff] %v6648_v34  ;;  %8465 = vst [vmem:[#allocation135_spill] sm:$0xff] %v6650_v27  ;;  %v1274_v27 = vadd.f32 %v8471_v36, %v5958_v14  ;;  %v8478_v36 = vld [vmem:[#allocation142_spill] sm:$0xff] }
 0x31a   :  { %v6656_v35 = vpop.f32.mrf.mxu0  ;;  %v6658_v38 = vpop.f32.mrf.mxu1  ;;  %3387 = vmatmul.mubr.f32.gmra.mxu0 %v2624_v32  ;;  %3836 = vmatmul.mubr.f32.gmra.mxu1 %v2626_v12  ;;  %v2641_v6 = vmax.f32 %v827_v21, 0.0  ;;  %v8475_v12 = vld [vmem:[#allocation145_spill] sm:$0xff]  ;;  %v831_v21 = vadd.f32 %v8478_v36, %v5956_v26 }
 0x31b   :  { %8468 = vst [vmem:[#allocation140_spill] sm:$0xff] %v6656_v35  ;;  %8469 = vst [vmem:[#allocation141_spill] sm:$0xff] %v6658_v38  ;;  %3392 = vmatprep.mubr.f32.mxu0 %v2633_v57  ;;  %3841 = vmatprep.mubr.f32.mxu1 %v2635_v54  ;;  %v2643_v35 = vmax.f32 %v1276_v48, 0.0  ;;  %v8474_v38 = vld [vmem:[#allocation144_spill] sm:$0xff]  ;;  %v1282_v54 = vadd.f32 %v8475_v12, %v5948_v20  ;;  %v2640_v57 = vmax.f32 %v825_v31, 0.0  ;;  %v2642_v18 = vmax.f32 %v1274_v27, 0.0 }
 0x31c   :  { %v6664_v37 = vpop.f32.mrf.mxu0  ;;  %v6666_v34 = vpop.f32.mrf.mxu1  ;;  %v833_v32 = vadd.f32 %v8474_v38, %v5946_v2  ;;  %v8479_v48 = vld [vmem:[#allocation143_spill] sm:$0xff] }
 0x31d   :  { %8472 = vst [vmem:[#allocation138_spill] sm:$0xff] %v6664_v37  ;;  %8473 = vst [vmem:[#allocation139_spill] sm:$0xff] %v6666_v34  ;;  %v1280_v34 = vadd.f32 %v8479_v48, %v5958_v14  ;;  %v8486_v48 = vld [vmem:[#allocation146_spill] sm:$0xff] }
 0x31e   :  { %v6672_v8 = vpop.f32.mrf.mxu0  ;;  %v6674_v24 = vpop.f32.mrf.mxu1  ;;  %3393 = vmatmul.mubr.f32.gmra.mxu0 %v2632_v25  ;;  %3842 = vmatmul.mubr.f32.gmra.mxu1 %v2634_v30  ;;  %v2649_v12 = vmax.f32 %v833_v32, 0.0  ;;  %v8483_v30 = vld [vmem:[#allocation149_spill] sm:$0xff]  ;;  %v837_v32 = vadd.f32 %v8486_v48, %v5956_v26 }
 0x31f   :  { %8476 = vst [vmem:[#allocation144_spill] sm:$0xff] %v6672_v8  ;;  %8477 = vst [vmem:[#allocation145_spill] sm:$0xff] %v6674_v24  ;;  %3398 = vmatprep.mubr.f32.mxu0 %v2641_v6  ;;  %3847 = vmatprep.mubr.f32.mxu1 %v2643_v35  ;;  %v2651_v8 = vmax.f32 %v1282_v54, 0.0  ;;  %v8482_v24 = vld [vmem:[#allocation148_spill] sm:$0xff]  ;;  %v1288_v35 = vadd.f32 %v8483_v30, %v5948_v20  ;;  %v2648_v6 = vmax.f32 %v831_v21, 0.0  ;;  %v2650_v36 = vmax.f32 %v1280_v34, 0.0 }
 0x320   :  { %v6680_v38 = vpop.f32.mrf.mxu0  ;;  %v6682_v37 = vpop.f32.mrf.mxu1  ;;  %v839_v25 = vadd.f32 %v8482_v24, %v5946_v2  ;;  %v8487_v54 = vld [vmem:[#allocation147_spill] sm:$0xff] }
 0x321   :  { %8480 = vst [vmem:[#allocation142_spill] sm:$0xff] %v6680_v38  ;;  %8481 = vst [vmem:[#allocation143_spill] sm:$0xff] %v6682_v37  ;;  %v1286_v37 = vadd.f32 %v8487_v54, %v5958_v14  ;;  %v8494_v54 = vld [vmem:[#allocation150_spill] sm:$0xff] }
 0x322   :  { %v6688_v31 = vpop.f32.mrf.mxu0  ;;  %v6690_v27 = vpop.f32.mrf.mxu1  ;;  %3399 = vmatmul.mubr.f32.gmra.mxu0 %v2640_v57  ;;  %3848 = vmatmul.mubr.f32.gmra.mxu1 %v2642_v18  ;;  %v2657_v30 = vmax.f32 %v839_v25, 0.0  ;;  %v8491_v18 = vld [vmem:[#allocation153_spill] sm:$0xff]  ;;  %v843_v25 = vadd.f32 %v8494_v54, %v5956_v26 }
 0x323   :  { %8484 = vst [vmem:[#allocation148_spill] sm:$0xff] %v6688_v31  ;;  %8485 = vst [vmem:[#allocation149_spill] sm:$0xff] %v6690_v27  ;;  %3404 = vmatprep.mubr.f32.mxu0 %v2649_v12  ;;  %3853 = vmatprep.mubr.f32.mxu1 %v2651_v8  ;;  %v2659_v31 = vmax.f32 %v1288_v35, 0.0  ;;  %v8490_v27 = vld [vmem:[#allocation152_spill] sm:$0xff]  ;;  %v1294_v8 = vadd.f32 %v8491_v18, %v5948_v20  ;;  %v2656_v12 = vmax.f32 %v837_v32, 0.0  ;;  %v2658_v48 = vmax.f32 %v1286_v37, 0.0 }
 0x324   :  { %v6696_v24 = vpop.f32.mrf.mxu0  ;;  %v6698_v38 = vpop.f32.mrf.mxu1  ;;  %v845_v57 = vadd.f32 %v8490_v27, %v5946_v2  ;;  %v8495_v35 = vld [vmem:[#allocation151_spill] sm:$0xff] }
 0x325   :  { %8488 = vst [vmem:[#allocation146_spill] sm:$0xff] %v6696_v24  ;;  %8489 = vst [vmem:[#allocation147_spill] sm:$0xff] %v6698_v38  ;;  %v1292_v38 = vadd.f32 %v8495_v35, %v5958_v14  ;;  %v8502_v35 = vld [vmem:[#allocation154_spill] sm:$0xff] }
 0x326   :  { %v6704_v21 = vpop.f32.mrf.mxu0  ;;  %v6706_v34 = vpop.f32.mrf.mxu1  ;;  %3405 = vmatmul.mubr.f32.gmra.mxu0 %v2648_v6  ;;  %3854 = vmatmul.mubr.f32.gmra.mxu1 %v2650_v36  ;;  %v2665_v18 = vmax.f32 %v845_v57, 0.0  ;;  %v8499_v36 = vld [vmem:[#allocation157_spill] sm:$0xff]  ;;  %v849_v57 = vadd.f32 %v8502_v35, %v5956_v26 }
 0x327   :  { %8492 = vst [vmem:[#allocation152_spill] sm:$0xff] %v6704_v21  ;;  %8493 = vst [vmem:[#allocation153_spill] sm:$0xff] %v6706_v34  ;;  %3410 = vmatprep.mubr.f32.mxu0 %v2657_v30  ;;  %3859 = vmatprep.mubr.f32.mxu1 %v2659_v31  ;;  %v2667_v21 = vmax.f32 %v1294_v8, 0.0  ;;  %v8498_v34 = vld [vmem:[#allocation156_spill] sm:$0xff]  ;;  %v1300_v31 = vadd.f32 %v8499_v36, %v5948_v20  ;;  %v2664_v30 = vmax.f32 %v843_v25, 0.0  ;;  %v2666_v54 = vmax.f32 %v1292_v38, 0.0 }
 0x328   :  { %v6712_v27 = vpop.f32.mrf.mxu0  ;;  %v6714_v24 = vpop.f32.mrf.mxu1  ;;  %v851_v6 = vadd.f32 %v8498_v34, %v5946_v2  ;;  %v8503_v8 = vld [vmem:[#allocation155_spill] sm:$0xff] }
 0x329   :  { %8496 = vst [vmem:[#allocation150_spill] sm:$0xff] %v6712_v27  ;;  %8497 = vst [vmem:[#allocation151_spill] sm:$0xff] %v6714_v24  ;;  %v1298_v24 = vadd.f32 %v8503_v8, %v5958_v14  ;;  %v8510_v8 = vld [vmem:[#allocation158_spill] sm:$0xff] }
 0x32a   :  { %v6720_v32 = vpop.f32.mrf.mxu0  ;;  %v6722_v37 = vpop.f32.mrf.mxu1  ;;  %3411 = vmatmul.mubr.f32.gmra.mxu0 %v2656_v12  ;;  %3860 = vmatmul.mubr.f32.gmra.mxu1 %v2658_v48  ;;  %v2673_v36 = vmax.f32 %v851_v6, 0.0  ;;  %v8507_v48 = vld [vmem:[#allocation161_spill] sm:$0xff]  ;;  %v855_v6 = vadd.f32 %v8510_v8, %v5956_v26 }
 0x32b   :  { %8500 = vst [vmem:[#allocation156_spill] sm:$0xff] %v6720_v32  ;;  %8501 = vst [vmem:[#allocation157_spill] sm:$0xff] %v6722_v37  ;;  %3416 = vmatprep.mubr.f32.mxu0 %v2665_v18  ;;  %3865 = vmatprep.mubr.f32.mxu1 %v2667_v21  ;;  %v2675_v32 = vmax.f32 %v1300_v31, 0.0  ;;  %v8506_v37 = vld [vmem:[#allocation160_spill] sm:$0xff]  ;;  %v1306_v21 = vadd.f32 %v8507_v48, %v5948_v20  ;;  %v2672_v18 = vmax.f32 %v849_v57, 0.0  ;;  %v2674_v35 = vmax.f32 %v1298_v24, 0.0 }
 0x32c   :  { %v6728_v34 = vpop.f32.mrf.mxu0  ;;  %v6730_v27 = vpop.f32.mrf.mxu1  ;;  %v857_v12 = vadd.f32 %v8506_v37, %v5946_v2  ;;  %v8511_v31 = vld [vmem:[#allocation159_spill] sm:$0xff]  ;;  %v3064_v48 = vld [vmem:[%s7933_s4] sm:$0x3]  ;;  %v8515_v24 = vld [vmem:[#allocation165_spill] sm:$0xff]  ;;  %s5273_s4 = smov [#allocation10]  }
 0x32d   :  { %8504 = vst [vmem:[#allocation154_spill] sm:$0xff] %v6728_v34  ;;  %8505 = vst [vmem:[#allocation155_spill] sm:$0xff] %v6730_v27  ;;  %v1304_v27 = vadd.f32 %v8511_v31, %v5958_v14  ;;  %v8518_v31 = vld [vmem:[#allocation162_spill] sm:$0xff]  ;;  %s5005_s15 = sshll.u32 %s5273_s4, 4  ;;  %s5006_s15 = int_to_ptr.vmem [resolvable:$true] %s5005_s15 }
 0x32e   :  { %v6736_v25 = vpop.f32.mrf.mxu0  ;;  %v6738_v38 = vpop.f32.mrf.mxu1  ;;  %3417 = vmatmul.mubr.f32.gmra.mxu0 %v2664_v30  ;;  %3866 = vmatmul.mubr.f32.gmra.mxu1 %v2666_v54  ;;  %v2681_v30 = vmax.f32 %v857_v12, 0.0  ;;  %v2683_v54 = vmax.f32 %v1306_v21, 0.0  ;;  %v8520_v12 = vsub.s32 0, %v5926_v42  ;;  %s5237_s16 = scalar_lea.vmem %s5006_s15, 16384  ;;  %p5242_p7 = scmp.lt.s32.totalorder %s5006_s15, %s5006_s15 }
 0x32f   :  { %8508 = vst [vmem:[#allocation160_spill] sm:$0xff] %v6736_v25  ;;  %8509 = vst [vmem:[#allocation161_spill] sm:$0xff] %v6738_v38  ;;  %3422 = vmatprep.mubr.f32.mxu0 %v2673_v36  ;;  %3871 = vmatprep.mubr.f32.mxu1 %v2675_v32  ;;  %v8514_v32 = vld [vmem:[#allocation164_spill] sm:$0xff]  ;;  %v1312_v36 = vadd.f32 %v8515_v24, %v5948_v20  ;;  %v861_v25 = vadd.f32 %v8518_v31, %v5956_v26  ;;  %v2682_v24 = vmax.f32 %v1304_v27, 0.0  ;;  %p5238_p6 = scmp.ne.s32.totalorder %s5006_s15, %s5237_s16  ;;  %p5243_p8 = scmp.lt.s32.totalorder %s5237_s16, %s5237_s16 }
 0x330   :  { %v6744_v37 = vpop.f32.mrf.mxu0  ;;  %v6746_v34 = vpop.f32.mrf.mxu1  ;;  %v863_v57 = vadd.f32 %v8514_v32, %v5946_v2  ;;  %v6765_v21 = vrot.slane %v3064_v48, %v8520_v12  ;;  %v2680_v32 = vmax.f32 %v855_v6, 0.0 }
 0x331   :  { %8512 = vst [vmem:[#allocation158_spill] sm:$0xff] %v6744_v37  ;;  %8513 = vst [vmem:[#allocation159_spill] sm:$0xff] %v6746_v34  ;;  %v8519_v34 = vld [vmem:[#allocation163_spill] sm:$0xff]  ;;  %v2688_v27 = vmax.f32 %v861_v25, 0.0  ;;  %v8529_v25 = vld [vmem:[#allocation173_spill] sm:$0xff]  ;;  %p5244_p9 = por %p5243_p8, %p5242_p7 }
 0x332   :  { %v6755_v8 = vpop.f32.mrf.mxu0  ;;  %v6757_v38 = vpop.f32.mrf.mxu1  ;;  %3423 = vmatmul.mubr.f32.gmra.mxu0 %v2672_v18  ;;  %3872 = vmatmul.mubr.f32.gmra.mxu1 %v2674_v35  ;;  %v1310_v37 = vadd.f32 %v8519_v34, %v5958_v14  ;;  %v8522_v18 = vld [vmem:[#allocation169_spill] sm:$0xff]  ;;  %v2689_v33 = vmax.f32 %v863_v57, 0.0  ;;  %v2691_v34 = vmax.f32 %v1312_v36, 0.0  ;;  %v8527_v57 = vld [vmem:[#allocation167_spill] sm:$0xff] }
 0x333   :  { %8516 = vst [vmem:[#allocation164_spill] sm:$0xff] %v6755_v8  ;;  %8517 = vst [vmem:[#allocation165_spill] sm:$0xff] %v6757_v38  ;;  %3428 = vmatprep.mubr.f32.mxu0 %v2681_v30  ;;  %3877 = vmatprep.mubr.f32.mxu1 %v2683_v54  ;;  %v8521_v8 = vld [vmem:[#allocation168_spill] sm:$0xff]  ;;  %v1318_v35 = vadd.f32 %v8522_v18, %v5948_v20  ;;  %v8525_v30 = vsub.s32 1, %v5926_v42  ;;  %v8526_v18 = vld [vmem:[#allocation166_spill] sm:$0xff]  ;;  %v1316_v36 = vadd.f32 %v8527_v57, %v5958_v14  ;;  %p5245_p10 = pnand %p5244_p9, %p5238_p6 }
 0x334   :  { %v869_v39 = vadd.f32 %v8521_v8, %v5946_v2  ;;  %v6771_v38 = vpop.f32.mrf.mxu0  ;;  %v6773_v31 = vpop.f32.mrf.mxu1  ;;  %v2690_v45 = vmax.f32 %v1310_v37, 0.0  ;;  %v1324_v37 = vadd.f32 %v8529_v25, %v5948_v20 }
 0x335   :  { %8523 = vst [vmem:[#allocation162_spill] sm:$0xff] %v6771_v38  ;;  %8524 = vst [vmem:[#allocation163_spill] sm:$0xff] %v6773_v31  ;;  %v6777_v54 = vrot.slane %v3064_v48, %v8525_v30  ;;  %v867_v38 = vadd.f32 %v8526_v18, %v5956_v26  ;;  %v2699_v19 = vmax.f32 %v1318_v35, 0.0 }
 0x336   :  { %v3142_v12 = vpop.f32.mrf.mxu0  ;;  %3429 = vmatmul.mubr.f32.gmra.mxu0 %v2680_v32  ;;  %v3591_v6 = vpop.f32.mrf.mxu1  ;;  %3878 = vmatmul.mubr.f32.gmra.mxu1 %v2682_v24  ;;  %v2697_v31 = vmax.f32 %v869_v39, 0.0  ;;  %v8528_v32 = vld [vmem:[#allocation172_spill] sm:$0xff]  ;;  %v8532_v39 = vld [vmem:[#allocation171_spill] sm:$0xff]  ;;  %v2707_v13 = vmax.f32 %v1324_v37, 0.0 }
 0x337   :  { %v3143_v8 = vadd.f32 %v3142_v12, %v6765_v21  ;;  %3434 = vmatprep.mubr.f32.mxu0 %v2689_v33  ;;  %3883 = vmatprep.mubr.f32.mxu1 %v2691_v34  ;;  %v875_v28 = vadd.f32 %v8528_v32, %v5946_v2  ;;  %v8531_v34 = vld [vmem:[#allocation170_spill] sm:$0xff]  ;;  %v1322_v35 = vadd.f32 %v8532_v39, %v5958_v14  ;;  %v8539_v37 = vld [vmem:[#allocation175_spill] sm:$0xff] }
 0x338   :  { %v3144_v48 = vpop.f32.mrf.mxu0  ;;  %v3593_v30 = vpop.f32.mrf.mxu1  ;;  %v873_v12 = vadd.f32 %v8531_v34, %v5956_v26  ;;  %v8535_v34 = vld [vmem:[#allocation177_spill] sm:$0xff]  ;;  %v8538_v39 = vld [vmem:[#allocation174_spill] sm:$0xff] }
 0x339   :  { %v6788_v24 = vadd.f32 %v3591_v6, %v3143_v8  ;;  %v3145_v33 = vadd.f32 %v3144_v48, %v6777_v54  ;;  %v2696_v6 = vmax.f32 %v867_v38, 0.0  ;;  %v2698_v8 = vmax.f32 %v1316_v36, 0.0  ;;  %v8534_v48 = vld [vmem:[#allocation176_spill] sm:$0xff] }
 0x33a   :  { %v3148_v18 = vpop.f32.mrf.mxu0  ;;  %3435 = vmatmul.mubr.f32.gmra.mxu0 %v2688_v27  ;;  %v3597_v57 = vpop.f32.mrf.mxu1  ;;  %3884 = vmatmul.mubr.f32.gmra.mxu1 %v2690_v45  ;;  %v881_v25 = vadd.f32 %v8534_v48, %v5946_v2  ;;  %v2705_v45 = vmax.f32 %v875_v28, 0.0  ;;  %v2706_v38 = vmax.f32 %v1322_v35, 0.0  ;;  %v879_v28 = vadd.f32 %v8538_v39, %v5956_v26 }
 0x33b   :  { %8530 = vst [vmem:[#allocation168_spill] sm:$0xff] %v6788_v24  ;;  %v6795_v0 = vadd.f32 %v3593_v30, %v3145_v33  ;;  %v3149_v32 = vadd.f32 %v3148_v18, %v6765_v21  ;;  %3440 = vmatprep.mubr.f32.mxu0 %v2697_v31  ;;  %3889 = vmatprep.mubr.f32.mxu1 %v2699_v19  ;;  %v2704_v19 = vmax.f32 %v873_v12, 0.0 }
 0x33c   :  { %v1330_v24 = vadd.f32 %v8535_v34, %v5948_v20  ;;  %v3150_v27 = vpop.f32.mrf.mxu0  ;;  %v3599_v15 = vpop.f32.mrf.mxu1 }
 0x33d   :  { %8533 = vst [vmem:[#allocation169_spill] sm:$0xff] %v6795_v0  ;;  %v6802_v22 = vadd.f32 %v3597_v57, %v3149_v32  ;;  %v3151_v30 = vadd.f32 %v3150_v27, %v6777_v54  ;;  %v1328_v57 = vadd.f32 %v8539_v37, %v5958_v14  ;;  %v2713_v32 = vmax.f32 %v881_v25, 0.0 }
 0x33e   :  { %v3154_v33 = vpop.f32.mrf.mxu0  ;;  %3441 = vmatmul.mubr.f32.gmra.mxu0 %v2696_v6  ;;  %v3603_v31 = vpop.f32.mrf.mxu1  ;;  %3890 = vmatmul.mubr.f32.gmra.mxu1 %v2698_v8  ;;  %v2715_v48 = vmax.f32 %v1330_v24, 0.0  ;;  %v8540_v8 = vld [vmem:[#allocation180_spill] sm:$0xff]  ;;  %v8544_v24 = vld [vmem:[#allocation179_spill] sm:$0xff] }
 0x33f   :  { %8536 = vst [vmem:[#allocation166_spill] sm:$0xff] %v6802_v22  ;;  %v6805_v36 = vadd.f32 %v3599_v15, %v3151_v30  ;;  %v3155_v18 = vadd.f32 %v3154_v33, %v6765_v21  ;;  %3446 = vmatprep.mubr.f32.mxu0 %v2705_v45  ;;  %3895 = vmatprep.mubr.f32.mxu1 %v2707_v13  ;;  %v8541_v15 = vld [vmem:[#allocation181_spill] sm:$0xff]  ;;  %v8543_v45 = vld [vmem:[#allocation178_spill] sm:$0xff] }
 0x340   :  { %v3156_v34 = vpop.f32.mrf.mxu0  ;;  %v3605_v6 = vpop.f32.mrf.mxu1  ;;  %v887_v12 = vadd.f32 %v8540_v8, %v5946_v2  ;;  %v1336_v35 = vadd.f32 %v8541_v15, %v5948_v20  ;;  %v885_v30 = vadd.f32 %v8543_v45, %v5956_v26  ;;  %v1334_v25 = vadd.f32 %v8544_v24, %v5958_v14  ;;  %v8547_v45 = vld [vmem:[#allocation185_spill] sm:$0xff]  ;;  %v8550_v24 = vld [vmem:[#allocation182_spill] sm:$0xff] }
 0x341   :  { %8537 = vst [vmem:[#allocation167_spill] sm:$0xff] %v6805_v36  ;;  %v6816_v27 = vadd.f32 %v3603_v31, %v3155_v18  ;;  %v3157_v13 = vadd.f32 %v3156_v34, %v6777_v54  ;;  %v2712_v31 = vmax.f32 %v879_v28, 0.0  ;;  %v2714_v18 = vmax.f32 %v1328_v57, 0.0  ;;  %v8546_v34 = vld [vmem:[#allocation184_spill] sm:$0xff] }
 0x342   :  { %v3160_v33 = vpop.f32.mrf.mxu0  ;;  %3447 = vmatmul.mubr.f32.gmra.mxu0 %v2704_v19  ;;  %v3609_v39 = vpop.f32.mrf.mxu1  ;;  %3896 = vmatmul.mubr.f32.gmra.mxu1 %v2706_v38  ;;  %v893_v15 = vadd.f32 %v8546_v34, %v5946_v2  ;;  %v2721_v38 = vmax.f32 %v887_v12, 0.0  ;;  %v2723_v22 = vmax.f32 %v1336_v35, 0.0  ;;  %v2720_v28 = vmax.f32 %v885_v30, 0.0  ;;  %v8551_v35 = vld [vmem:[#allocation183_spill] sm:$0xff] }
 0x343   :  { %8542 = vst [vmem:[#allocation172_spill] sm:$0xff] %v6816_v27  ;;  %v6823_v37 = vadd.f32 %v3605_v6, %v3157_v13  ;;  %v3161_v8 = vadd.f32 %v3160_v33, %v6765_v21  ;;  %3452 = vmatprep.mubr.f32.mxu0 %v2713_v32  ;;  %3901 = vmatprep.mubr.f32.mxu1 %v2715_v48  ;;  %v2722_v57 = vmax.f32 %v1334_v25, 0.0 }
 0x344   :  { %v1342_v27 = vadd.f32 %v8547_v45, %v5948_v20  ;;  %v3162_v19 = vpop.f32.mrf.mxu0  ;;  %v3611_v36 = vpop.f32.mrf.mxu1  ;;  %v891_v12 = vadd.f32 %v8550_v24, %v5956_v26 }
 0x345   :  { %8545 = vst [vmem:[#allocation173_spill] sm:$0xff] %v6823_v37  ;;  %v6830_v0 = vadd.f32 %v3609_v39, %v3161_v8  ;;  %v3163_v6 = vadd.f32 %v3162_v19, %v6777_v54  ;;  %v1340_v39 = vadd.f32 %v8551_v35, %v5958_v14  ;;  %v2729_v8 = vmax.f32 %v893_v15, 0.0 }
 0x346   :  { %v3166_v13 = vpop.f32.mrf.mxu0  ;;  %3453 = vmatmul.mubr.f32.gmra.mxu0 %v2712_v31  ;;  %v3615_v32 = vpop.f32.mrf.mxu1  ;;  %3902 = vmatmul.mubr.f32.gmra.mxu1 %v2714_v18  ;;  %v2731_v34 = vmax.f32 %v1342_v27, 0.0  ;;  %v8552_v18 = vld [vmem:[#allocation188_spill] sm:$0xff]  ;;  %v8556_v27 = vld [vmem:[#allocation187_spill] sm:$0xff] }
 0x347   :  { %8548 = vst [vmem:[#allocation170_spill] sm:$0xff] %v6830_v0  ;;  %v6833_v48 = vadd.f32 %v3611_v36, %v3163_v6  ;;  %v3167_v33 = vadd.f32 %v3166_v13, %v6765_v21  ;;  %3458 = vmatprep.mubr.f32.mxu0 %v2721_v38  ;;  %3907 = vmatprep.mubr.f32.mxu1 %v2723_v22  ;;  %v8553_v36 = vld [vmem:[#allocation189_spill] sm:$0xff]  ;;  %v8555_v38 = vld [vmem:[#allocation186_spill] sm:$0xff] }
 0x348   :  { %v3168_v45 = vpop.f32.mrf.mxu0  ;;  %v3617_v31 = vpop.f32.mrf.mxu1  ;;  %v899_v30 = vadd.f32 %v8552_v18, %v5946_v2  ;;  %v1348_v25 = vadd.f32 %v8553_v36, %v5948_v20  ;;  %v897_v6 = vadd.f32 %v8555_v38, %v5956_v26  ;;  %v1346_v15 = vadd.f32 %v8556_v27, %v5958_v14  ;;  %v8559_v38 = vld [vmem:[#allocation193_spill] sm:$0xff]  ;;  %v8562_v27 = vld [vmem:[#allocation190_spill] sm:$0xff] }
 0x349   :  { %8549 = vst [vmem:[#allocation171_spill] sm:$0xff] %v6833_v48  ;;  %v6844_v19 = vadd.f32 %v3615_v32, %v3167_v33  ;;  %v3169_v22 = vadd.f32 %v3168_v45, %v6777_v54  ;;  %v2728_v32 = vmax.f32 %v891_v12, 0.0  ;;  %v2730_v33 = vmax.f32 %v1340_v39, 0.0  ;;  %v8558_v45 = vld [vmem:[#allocation192_spill] sm:$0xff] }
 0x34a   :  { %v3172_v13 = vpop.f32.mrf.mxu0  ;;  %3459 = vmatmul.mubr.f32.gmra.mxu0 %v2720_v28  ;;  %v3621_v24 = vpop.f32.mrf.mxu1  ;;  %3908 = vmatmul.mubr.f32.gmra.mxu1 %v2722_v57  ;;  %v905_v36 = vadd.f32 %v8558_v45, %v5946_v2  ;;  %v2737_v57 = vmax.f32 %v899_v30, 0.0  ;;  %v2739_v0 = vmax.f32 %v1348_v25, 0.0  ;;  %v2736_v12 = vmax.f32 %v897_v6, 0.0  ;;  %v8563_v25 = vld [vmem:[#allocation191_spill] sm:$0xff] }
 0x34b   :  { %8554 = vst [vmem:[#allocation176_spill] sm:$0xff] %v6844_v19  ;;  %v6851_v35 = vadd.f32 %v3617_v31, %v3169_v22  ;;  %v3173_v18 = vadd.f32 %v3172_v13, %v6765_v21  ;;  %3464 = vmatprep.mubr.f32.mxu0 %v2729_v8  ;;  %3913 = vmatprep.mubr.f32.mxu1 %v2731_v34  ;;  %v2738_v39 = vmax.f32 %v1346_v15, 0.0 }
 0x34c   :  { %v1354_v19 = vadd.f32 %v8559_v38, %v5948_v20  ;;  %v3174_v28 = vpop.f32.mrf.mxu0  ;;  %v3623_v48 = vpop.f32.mrf.mxu1  ;;  %v903_v30 = vadd.f32 %v8562_v27, %v5956_v26 }
 0x34d   :  { %8557 = vst [vmem:[#allocation177_spill] sm:$0xff] %v6851_v35  ;;  %v6858_v37 = vadd.f32 %v3621_v24, %v3173_v18  ;;  %v3175_v31 = vadd.f32 %v3174_v28, %v6777_v54  ;;  %v1352_v24 = vadd.f32 %v8563_v25, %v5958_v14  ;;  %v2745_v18 = vmax.f32 %v905_v36, 0.0 }
 0x34e   :  { %v3178_v22 = vpop.f32.mrf.mxu0  ;;  %3465 = vmatmul.mubr.f32.gmra.mxu0 %v2728_v32  ;;  %v3627_v8 = vpop.f32.mrf.mxu1  ;;  %3914 = vmatmul.mubr.f32.gmra.mxu1 %v2730_v33  ;;  %v2747_v45 = vmax.f32 %v1354_v19, 0.0  ;;  %v8564_v33 = vld [vmem:[#allocation196_spill] sm:$0xff]  ;;  %v8568_v19 = vld [vmem:[#allocation195_spill] sm:$0xff] }
 0x34f   :  { %8560 = vst [vmem:[#allocation174_spill] sm:$0xff] %v6858_v37  ;;  %v6861_v34 = vadd.f32 %v3623_v48, %v3175_v31  ;;  %v3179_v13 = vadd.f32 %v3178_v22, %v6765_v21  ;;  %3470 = vmatprep.mubr.f32.mxu0 %v2737_v57  ;;  %3919 = vmatprep.mubr.f32.mxu1 %v2739_v0  ;;  %v8565_v48 = vld [vmem:[#allocation197_spill] sm:$0xff]  ;;  %v8567_v57 = vld [vmem:[#allocation194_spill] sm:$0xff] }
 0x350   :  { %v3180_v38 = vpop.f32.mrf.mxu0  ;;  %v3629_v32 = vpop.f32.mrf.mxu1  ;;  %v911_v6 = vadd.f32 %v8564_v33, %v5946_v2  ;;  %v1360_v15 = vadd.f32 %v8565_v48, %v5948_v20  ;;  %v909_v31 = vadd.f32 %v8567_v57, %v5956_v26  ;;  %v1358_v36 = vadd.f32 %v8568_v19, %v5958_v14  ;;  %v8571_v57 = vld [vmem:[#allocation201_spill] sm:$0xff]  ;;  %v8574_v19 = vld [vmem:[#allocation198_spill] sm:$0xff] }
 0x351   :  { %8561 = vst [vmem:[#allocation175_spill] sm:$0xff] %v6861_v34  ;;  %v6872_v28 = vadd.f32 %v3627_v8, %v3179_v13  ;;  %v3181_v0 = vadd.f32 %v3180_v38, %v6777_v54  ;;  %v2744_v8 = vmax.f32 %v903_v30, 0.0  ;;  %v2746_v13 = vmax.f32 %v1352_v24, 0.0  ;;  %v8570_v38 = vld [vmem:[#allocation200_spill] sm:$0xff] }
 0x352   :  { %v3184_v22 = vpop.f32.mrf.mxu0  ;;  %3471 = vmatmul.mubr.f32.gmra.mxu0 %v2736_v12  ;;  %v3633_v27 = vpop.f32.mrf.mxu1  ;;  %3920 = vmatmul.mubr.f32.gmra.mxu1 %v2738_v39  ;;  %v917_v48 = vadd.f32 %v8570_v38, %v5946_v2  ;;  %v2753_v39 = vmax.f32 %v911_v6, 0.0  ;;  %v2755_v37 = vmax.f32 %v1360_v15, 0.0  ;;  %v2752_v30 = vmax.f32 %v909_v31, 0.0  ;;  %v8575_v15 = vld [vmem:[#allocation199_spill] sm:$0xff] }
 0x353   :  { %8566 = vst [vmem:[#allocation180_spill] sm:$0xff] %v6872_v28  ;;  %v6879_v25 = vadd.f32 %v3629_v32, %v3181_v0  ;;  %v3185_v33 = vadd.f32 %v3184_v22, %v6765_v21  ;;  %3476 = vmatprep.mubr.f32.mxu0 %v2745_v18  ;;  %3925 = vmatprep.mubr.f32.mxu1 %v2747_v45  ;;  %v2754_v24 = vmax.f32 %v1358_v36, 0.0 }
 0x354   :  { %v1366_v28 = vadd.f32 %v8571_v57, %v5948_v20  ;;  %v3186_v12 = vpop.f32.mrf.mxu0  ;;  %v3635_v34 = vpop.f32.mrf.mxu1  ;;  %v915_v6 = vadd.f32 %v8574_v19, %v5956_v26 }
 0x355   :  { %8569 = vst [vmem:[#allocation181_spill] sm:$0xff] %v6879_v25  ;;  %v6886_v35 = vadd.f32 %v3633_v27, %v3185_v33  ;;  %v3187_v32 = vadd.f32 %v3186_v12, %v6777_v54  ;;  %v1364_v27 = vadd.f32 %v8575_v15, %v5958_v14  ;;  %v2761_v33 = vmax.f32 %v917_v48, 0.0 }
 0x356   :  { %v3190_v0 = vpop.f32.mrf.mxu0  ;;  %3477 = vmatmul.mubr.f32.gmra.mxu0 %v2744_v8  ;;  %v3639_v18 = vpop.f32.mrf.mxu1  ;;  %3926 = vmatmul.mubr.f32.gmra.mxu1 %v2746_v13  ;;  %v2763_v38 = vmax.f32 %v1366_v28, 0.0  ;;  %v8576_v13 = vld [vmem:[#allocation204_spill] sm:$0xff]  ;;  %v8580_v28 = vld [vmem:[#allocation203_spill] sm:$0xff] }
 0x357   :  { %8572 = vst [vmem:[#allocation178_spill] sm:$0xff] %v6886_v35  ;;  %v6889_v45 = vadd.f32 %v3635_v34, %v3187_v32  ;;  %v3191_v22 = vadd.f32 %v3190_v0, %v6765_v21  ;;  %3482 = vmatprep.mubr.f32.mxu0 %v2753_v39  ;;  %3931 = vmatprep.mubr.f32.mxu1 %v2755_v37  ;;  %v8577_v34 = vld [vmem:[#allocation205_spill] sm:$0xff]  ;;  %v8579_v39 = vld [vmem:[#allocation202_spill] sm:$0xff] }
 0x358   :  { %v3192_v57 = vpop.f32.mrf.mxu0  ;;  %v3641_v8 = vpop.f32.mrf.mxu1  ;;  %v923_v31 = vadd.f32 %v8576_v13, %v5946_v2  ;;  %v1372_v36 = vadd.f32 %v8577_v34, %v5948_v20  ;;  %v921_v32 = vadd.f32 %v8579_v39, %v5956_v26  ;;  %v1370_v48 = vadd.f32 %v8580_v28, %v5958_v14  ;;  %v8583_v39 = vld [vmem:[#allocation209_spill] sm:$0xff]  ;;  %v8586_v28 = vld [vmem:[#allocation206_spill] sm:$0xff] }
 0x359   :  { %8573 = vst [vmem:[#allocation179_spill] sm:$0xff] %v6889_v45  ;;  %v6900_v12 = vadd.f32 %v3639_v18, %v3191_v22  ;;  %v3193_v37 = vadd.f32 %v3192_v57, %v6777_v54  ;;  %v2760_v18 = vmax.f32 %v915_v6, 0.0  ;;  %v2762_v22 = vmax.f32 %v1364_v27, 0.0  ;;  %v8582_v57 = vld [vmem:[#allocation208_spill] sm:$0xff] }
 0x35a   :  { %v3196_v0 = vpop.f32.mrf.mxu0  ;;  %3483 = vmatmul.mubr.f32.gmra.mxu0 %v2752_v30  ;;  %v3645_v19 = vpop.f32.mrf.mxu1  ;;  %3932 = vmatmul.mubr.f32.gmra.mxu1 %v2754_v24  ;;  %v929_v34 = vadd.f32 %v8582_v57, %v5946_v2  ;;  %v2769_v24 = vmax.f32 %v923_v31, 0.0  ;;  %v2771_v35 = vmax.f32 %v1372_v36, 0.0  ;;  %v2768_v6 = vmax.f32 %v921_v32, 0.0  ;;  %v8587_v36 = vld [vmem:[#allocation207_spill] sm:$0xff] }
 0x35b   :  { %8578 = vst [vmem:[#allocation184_spill] sm:$0xff] %v6900_v12  ;;  %v6907_v15 = vadd.f32 %v3641_v8, %v3193_v37  ;;  %v3197_v13 = vadd.f32 %v3196_v0, %v6765_v21  ;;  %3488 = vmatprep.mubr.f32.mxu0 %v2761_v33  ;;  %3937 = vmatprep.mubr.f32.mxu1 %v2763_v38  ;;  %v2770_v27 = vmax.f32 %v1370_v48, 0.0 }
 0x35c   :  { %v1378_v12 = vadd.f32 %v8583_v39, %v5948_v20  ;;  %v3198_v30 = vpop.f32.mrf.mxu0  ;;  %v3647_v45 = vpop.f32.mrf.mxu1  ;;  %v927_v31 = vadd.f32 %v8586_v28, %v5956_v26 }
 0x35d   :  { %8581 = vst [vmem:[#allocation185_spill] sm:$0xff] %v6907_v15  ;;  %v6914_v25 = vadd.f32 %v3645_v19, %v3197_v13  ;;  %v3199_v8 = vadd.f32 %v3198_v30, %v6777_v54  ;;  %v1376_v19 = vadd.f32 %v8587_v36, %v5958_v14  ;;  %v2777_v13 = vmax.f32 %v929_v34, 0.0  ;;  %v8592_v36 = vld [vmem:[#allocation211_spill] sm:$0xff] }
 0x35e   :  { %v3202_v37 = vpop.f32.mrf.mxu0  ;;  %3489 = vmatmul.mubr.f32.gmra.mxu0 %v2760_v18  ;;  %v3651_v33 = vpop.f32.mrf.mxu1  ;;  %3938 = vmatmul.mubr.f32.gmra.mxu1 %v2762_v22  ;;  %v2779_v57 = vmax.f32 %v1378_v12, 0.0  ;;  %v8588_v22 = vld [vmem:[#allocation212_spill] sm:$0xff]  ;;  %v490_v34 = vsub.s32 7, %v5926_v42 }
 0x35f   :  { %8584 = vst [vmem:[#allocation182_spill] sm:$0xff] %v6914_v25  ;;  %v6917_v38 = vadd.f32 %v3647_v45, %v3199_v8  ;;  %v3203_v0 = vadd.f32 %v3202_v37, %v6765_v21  ;;  %3494 = vmatprep.mubr.f32.mxu0 %v2769_v24  ;;  %3943 = vmatprep.mubr.f32.mxu1 %v2771_v35  ;;  %v8589_v45 = vld [vmem:[#allocation213_spill] sm:$0xff]  ;;  %v8591_v24 = vld [vmem:[#allocation210_spill] sm:$0xff]  ;;  %v482_v37 = vsub.s32 5, %v5926_v42 }
 0x360   :  { %v3204_v39 = vpop.f32.mrf.mxu0  ;;  %v3653_v18 = vpop.f32.mrf.mxu1  ;;  %v935_v32 = vadd.f32 %v8588_v22, %v5946_v2  ;;  %v1384_v48 = vadd.f32 %v8589_v45, %v5948_v20  ;;  %v933_v8 = vadd.f32 %v8591_v24, %v5956_v26  ;;  %v1382_v22 = vadd.f32 %v8592_v36, %v5958_v14  ;;  %v8593_v45 = vld [vmem:[#allocation216_spill] sm:$0xff] }
 0x361   :  { %8585 = vst [vmem:[#allocation183_spill] sm:$0xff] %v6917_v38  ;;  %v6928_v30 = vadd.f32 %v3651_v33, %v3203_v0  ;;  %v3205_v35 = vadd.f32 %v3204_v39, %v6777_v54  ;;  %v2776_v0 = vmax.f32 %v927_v31, 0.0  ;;  %v2778_v39 = vmax.f32 %v1376_v19, 0.0  ;;  %v5156_v31 = vld [vmem:[#allocation7] sm:$0xff] }
 0x362   :  { %v3208_v12 = vpop.f32.mrf.mxu0  ;;  %3495 = vmatmul.mubr.f32.gmra.mxu0 %v2768_v6  ;;  %v3657_v28 = vpop.f32.mrf.mxu1  ;;  %3944 = vmatmul.mubr.f32.gmra.mxu1 %v2770_v27  ;;  %v941_v24 = vadd.f32 %v8593_v45, %v5946_v2  ;;  %v2785_v27 = vmax.f32 %v935_v32, 0.0  ;;  %v2787_v58 = vmax.f32 %v1384_v48, 0.0  ;;  %v6949_v19 = vrot.slane %v5156_v31, %v482_v37  ;;  %v8598_v37 = vld [vmem:[#allocation215_spill] sm:$0xff] }
 0x363   :  { %8590 = vst [vmem:[#allocation188_spill] sm:$0xff] %v6928_v30  ;;  %v6937_v38 = vadd.f32 %v3653_v18, %v3205_v35  ;;  %v3209_v33 = vadd.f32 %v3208_v12, %v6765_v21  ;;  %3500 = vmatprep.mubr.f32.mxu0 %v2777_v13  ;;  %3949 = vmatprep.mubr.f32.mxu1 %v2779_v57  ;;  %v8594_v30 = vld [vmem:[#allocation217_spill] sm:$0xff]  ;;  %v478_v35 = vsub.s32 4, %v5926_v42  ;;  %v486_v13 = vsub.s32 6, %v5926_v42 }
 0x364   :  { %v1390_v25 = vadd.f32 %v8594_v30, %v5948_v20  ;;  %v3210_v6 = vpop.f32.mrf.mxu0  ;;  %v3659_v15 = vpop.f32.mrf.mxu1  ;;  %v6951_v57 = vrot.slane %v5156_v31, %v490_v34  ;;  %v2784_v36 = vmax.f32 %v933_v8, 0.0  ;;  %v2786_v32 = vmax.f32 %v1382_v22, 0.0 }
 0x365   :  { %v6944_v9 = vadd.f32 %v3657_v28, %v3209_v33  ;;  %v3211_v18 = vadd.f32 %v3210_v6, %v6777_v54  ;;  %v8597_v33 = vld [vmem:[#allocation214_spill] sm:$0xff]  ;;  %v1388_v45 = vadd.f32 %v8598_v37, %v5958_v14  ;;  %v2793_v34 = vmax.f32 %v941_v24, 0.0 }
 0x366   :  { %v3214_v12 = vpop.f32.mrf.mxu0  ;;  %3501 = vmatmul.mubr.f32.gmra.mxu0 %v2776_v0  ;;  %v3663_v30 = vpop.f32.mrf.mxu1  ;;  %3950 = vmatmul.mubr.f32.gmra.mxu1 %v2778_v39  ;;  %v939_v42 = vadd.f32 %v8597_v33, %v5956_v26  ;;  %v2795_v6 = vmax.f32 %v1390_v25, 0.0  ;;  %v8599_v39 = vld [vmem:[#allocation220_spill] sm:$0xff]  ;;  %v6969_v33 = vrot.slane %v5156_v31, %v478_v35  ;;  %v6971_v37 = vrot.slane %v5156_v31, %v486_v13  ;;  %v8604_v13 = vld [vmem:[#allocation225_spill] sm:$0xff] }
 0x367   :  { %8595 = vst [vmem:[#allocation189_spill] sm:$0xff] %v6944_v9  ;;  %v6953_v48 = vadd.f32 %v3659_v15, %v3211_v18  ;;  %v3215_v28 = vadd.f32 %v3214_v12, %v6765_v21  ;;  %3506 = vmatprep.mubr.f32.mxu0 %v2785_v27  ;;  %3955 = vmatprep.mubr.f32.mxu1 %v2787_v58  ;;  %v8600_v15 = vld [vmem:[#allocation221_spill] sm:$0xff]  ;;  %v8601_v27 = vld [vmem:[#allocation218_spill] sm:$0xff] }
 0x368   :  { %v3216_v9 = vpop.f32.mrf.mxu0  ;;  %v3665_v0 = vpop.f32.mrf.mxu1  ;;  %v947_v8 = vadd.f32 %v8599_v39, %v5946_v2  ;;  %v1396_v22 = vadd.f32 %v8600_v15, %v5948_v20  ;;  %v945_v12 = vadd.f32 %v8601_v27, %v5956_v26  ;;  %v8602_v2 = vld [vmem:[#allocation219_spill] sm:$0xff]  ;;  %v8603_v26 = vld [vmem:[#allocation224_spill] sm:$0xff]  ;;  %v1916_v31 = vadd.f32 %v8604_v13, %v6951_v57 }
 0x369   :  { %8596 = vst [vmem:[#allocation186_spill] sm:$0xff] %v6953_v48  ;;  %v6964_v18 = vadd.f32 %v3663_v30, %v3215_v28  ;;  %v3217_v58 = vadd.f32 %v3216_v9, %v6777_v54  ;;  %v1394_v39 = vadd.f32 %v8602_v2, %v5958_v14  ;;  %v2792_v9 = vmax.f32 %v939_v42, 0.0 }
 0x36a   :  { %v3220_v25 = vpop.f32.mrf.mxu0  ;;  %3507 = vmatmul.mubr.f32.gmra.mxu0 %v2784_v36  ;;  %v3669_v24 = vpop.f32.mrf.mxu1  ;;  %3956 = vmatmul.mubr.f32.gmra.mxu1 %v2786_v32  ;;  %v2794_v30 = vmax.f32 %v1388_v45, 0.0  ;;  %v1467_v35 = vadd.f32 %v8603_v26, %v6949_v19  ;;  %v2801_v32 = vmax.f32 %v947_v8, 0.0  ;;  %v2803_v15 = vmax.f32 %v1396_v22, 0.0  ;;  %v8608_v22 = vld [vmem:[#allocation223_spill] sm:$0xff] }
 0x36b   :  { %v6975_v48 = vadd.f32 %v3665_v0, %v3217_v58  ;;  %v3221_v20 = vadd.f32 %v3220_v25, %v6765_v21  ;;  %3512 = vmatprep.mubr.f32.mxu0 %v2793_v34  ;;  %3961 = vmatprep.mubr.f32.mxu1 %v2795_v6  ;;  %v2800_v42 = vmax.f32 %v945_v12, 0.0  ;;  %v2802_v45 = vmax.f32 %v1394_v39, 0.0  ;;  %v8607_v25 = vld [vmem:[#allocation222_spill] sm:$0xff]  ;;  %v8610_v39 = vld [vmem:[#allocation229_spill] sm:$0xff] }
 0x36c   :  { %v3222_v36 = vpop.f32.mrf.mxu0  ;;  %v3671_v28 = vpop.f32.mrf.mxu1  ;;  %v1465_v8 = vadd.f32 %v8607_v25, %v6969_v33  ;;  %v2301_v2 = vmax.f32 %v1467_v35, 0.0  ;;  %v1922_v13 = vadd.f32 %v8610_v39, %v6951_v57  ;;  %v8613_v35 = vld [vmem:[#allocation227_spill] sm:$0xff]  ;;  %v8616_v39 = vld [vmem:[#allocation233_spill] sm:$0xff] }
 0x36d   :  { %v6982_v27 = vadd.f32 %v3669_v24, %v3221_v20  ;;  %v3223_v14 = vadd.f32 %v3222_v36, %v6777_v54  ;;  %v1914_v24 = vadd.f32 %v8608_v22, %v6971_v37  ;;  %v2303_v20 = vmax.f32 %v1916_v31, 0.0 }
 0x36e   :  { %v3226_v0 = vpop.f32.mrf.mxu0  ;;  %3513 = vmatmul.mubr.f32.gmra.mxu0 %v2792_v9  ;;  %v3675_v34 = vpop.f32.mrf.mxu1  ;;  %3962 = vmatmul.mubr.f32.gmra.mxu1 %v2794_v30  ;;  %v8609_v30 = vld [vmem:[#allocation228_spill] sm:$0xff]  ;;  %v1920_v31 = vadd.f32 %v8613_v35, %v6971_v37  ;;  %v8619_v35 = vld [vmem:[#allocation230_spill] sm:$0xff] }
 0x36f   :  { %8605 = vst [vmem:[#allocation187_spill] sm:$0xff] %v6982_v27  ;;  %v6985_v6 = vadd.f32 %v3671_v28, %v3223_v14  ;;  %v3227_v58 = vadd.f32 %v3226_v0, %v6765_v21  ;;  %3518 = vmatprep.mubr.f32.mxu0 %v2801_v32  ;;  %3967 = vmatprep.mubr.f32.mxu1 %v2803_v15  ;;  %v8612_v32 = vld [vmem:[#allocation226_spill] sm:$0xff] }
 0x370   :  { %v3228_v26 = vpop.f32.mrf.mxu0  ;;  %v3677_v9 = vpop.f32.mrf.mxu1  ;;  %v1473_v12 = vadd.f32 %v8609_v30, %v6949_v19  ;;  %v1471_v15 = vadd.f32 %v8612_v32, %v6969_v33  ;;  %v1928_v32 = vadd.f32 %v8616_v39, %v6951_v57 }
 0x371   :  { %8606 = vst [vmem:[#allocation192_spill] sm:$0xff] %v6985_v6  ;;  %v6996_v36 = vadd.f32 %v3675_v34, %v3227_v58  ;;  %v3229_v28 = vadd.f32 %v3228_v26, %v6777_v54  ;;  %v2300_v34 = vmax.f32 %v1465_v8, 0.0  ;;  %v2302_v58 = vmax.f32 %v1914_v24, 0.0  ;;  %v8615_v26 = vld [vmem:[#allocation232_spill] sm:$0xff] }
 0x372   :  { %v3232_v14 = vpop.f32.mrf.mxu0  ;;  %3519 = vmatmul.mubr.f32.gmra.mxu0 %v2800_v42  ;;  %v3681_v0 = vpop.f32.mrf.mxu1  ;;  %3968 = vmatmul.mubr.f32.gmra.mxu1 %v2802_v45  ;;  %v1479_v30 = vadd.f32 %v8615_v26, %v6949_v19  ;;  %v2309_v45 = vmax.f32 %v1473_v12, 0.0  ;;  %v2311_v6 = vmax.f32 %v1922_v13, 0.0  ;;  %v2308_v8 = vmax.f32 %v1471_v15, 0.0  ;;  %v8620_v13 = vld [vmem:[#allocation231_spill] sm:$0xff] }
 0x373   :  { %8611 = vst [vmem:[#allocation193_spill] sm:$0xff] %v6996_v36  ;;  %v7003_v25 = vadd.f32 %v3677_v9, %v3229_v28  ;;  %v3233_v22 = vadd.f32 %v3232_v14, %v6765_v21  ;;  %4038 = vmatprep.mubr.f32.mxu0 %v2301_v2  ;;  %4487 = vmatprep.mubr.f32.mxu1 %v2303_v20  ;;  %v2310_v24 = vmax.f32 %v1920_v31, 0.0  ;;  %v2319_v26 = vmax.f32 %v1928_v32, 0.0 }
 0x374   :  { %v3234_v42 = vpop.f32.mrf.mxu0  ;;  %v3683_v36 = vpop.f32.mrf.mxu1  ;;  %v1477_v12 = vadd.f32 %v8619_v35, %v6969_v33 }
 0x375   :  { %8614 = vst [vmem:[#allocation190_spill] sm:$0xff] %v7003_v25  ;;  %v7010_v27 = vadd.f32 %v3681_v0, %v3233_v22  ;;  %v3235_v9 = vadd.f32 %v3234_v42, %v6777_v54  ;;  %v1926_v0 = vadd.f32 %v8620_v13, %v6971_v37  ;;  %v2317_v22 = vmax.f32 %v1479_v30, 0.0  ;;  %v8625_v30 = vld [vmem:[#allocation235_spill] sm:$0xff] }
 0x376   :  { %v3238_v28 = vpop.f32.mrf.mxu0  ;;  %v3687_v14 = vpop.f32.mrf.mxu1  ;;  %4039 = vmatmul.mubr.f32.vlgmr.msra.gmra.mxu0 %v2300_v34  ;;  %4488 = vmatmul.mubr.f32.vlgmr.msra.gmra.mxu1 %v2302_v58  ;;  %v8621_v34 = vld [vmem:[#allocation236_spill] sm:$0xff]  ;;  %v1932_v32 = vadd.f32 %v8625_v30, %v6971_v37  ;;  %v8631_v30 = vld [vmem:[#allocation238_spill] sm:$0xff] }
 0x377   :  { %8617 = vst [vmem:[#allocation191_spill] sm:$0xff] %v7010_v27  ;;  %v7013_v2 = vadd.f32 %v3683_v36, %v3235_v9  ;;  %v3239_v20 = vadd.f32 %v3238_v28, %v6765_v21  ;;  %4044 = vmatprep.mubr.f32.mxu0 %v2309_v45  ;;  %4493 = vmatprep.mubr.f32.mxu1 %v2311_v6  ;;  %v8622_v36 = vld [vmem:[#allocation237_spill] sm:$0xff]  ;;  %v8624_v45 = vld [vmem:[#allocation234_spill] sm:$0xff] }
 0x378   :  { %v3240_v39 = vpop.f32.mrf.mxu0  ;;  %v3689_v42 = vpop.f32.mrf.mxu1  ;;  %v1485_v15 = vadd.f32 %v8621_v34, %v6949_v19  ;;  %v1934_v31 = vadd.f32 %v8622_v36, %v6951_v57  ;;  %v1483_v9 = vadd.f32 %v8624_v45, %v6969_v33  ;;  %v8628_v45 = vld [vmem:[#allocation241_spill] sm:$0xff] }
 0x379   :  { %8618 = vst [vmem:[#allocation196_spill] sm:$0xff] %v7013_v2  ;;  %v7024_v58 = vadd.f32 %v3687_v14, %v3239_v20  ;;  %v3241_v6 = vadd.f32 %v3240_v39, %v6777_v54  ;;  %v2316_v14 = vmax.f32 %v1477_v12, 0.0  ;;  %v2318_v20 = vmax.f32 %v1926_v0, 0.0  ;;  %v8627_v39 = vld [vmem:[#allocation240_spill] sm:$0xff] }
 0x37a   :  { %v3244_v28 = vpop.f32.mrf.mxu0  ;;  %v3693_v35 = vpop.f32.mrf.mxu1  ;;  %4045 = vmatmul.mubr.f32.gmra.mxu0 %v2308_v8  ;;  %4494 = vmatmul.mubr.f32.gmra.mxu1 %v2310_v24  ;;  %v1491_v36 = vadd.f32 %v8627_v39, %v6949_v19  ;;  %v2325_v24 = vmax.f32 %v1485_v15, 0.0  ;;  %v2327_v27 = vmax.f32 %v1934_v31, 0.0  ;;  %v2324_v12 = vmax.f32 %v1483_v9, 0.0  ;;  %v8632_v31 = vld [vmem:[#allocation239_spill] sm:$0xff] }
 0x37b   :  { %8623 = vst [vmem:[#allocation197_spill] sm:$0xff] %v7024_v58  ;;  %v7031_v13 = vadd.f32 %v3689_v42, %v3241_v6  ;;  %v3245_v34 = vadd.f32 %v3244_v28, %v6765_v21  ;;  %4050 = vmatprep.mubr.f32.mxu0 %v2317_v22  ;;  %4499 = vmatprep.mubr.f32.mxu1 %v2319_v26  ;;  %v2326_v0 = vmax.f32 %v1932_v32, 0.0  ;;  %v8634_v32 = vld [vmem:[#allocation245_spill] sm:$0xff] }
 0x37c   :  { %v1940_v58 = vadd.f32 %v8628_v45, %v6951_v57  ;;  %v3246_v2 = vpop.f32.mrf.mxu0  ;;  %v3695_v8 = vpop.f32.mrf.mxu1  ;;  %v1489_v15 = vadd.f32 %v8631_v30, %v6969_v33 }
 0x37d   :  { %8626 = vst [vmem:[#allocation194_spill] sm:$0xff] %v7031_v13  ;;  %v7038_v25 = vadd.f32 %v3693_v35, %v3245_v34  ;;  %v3247_v42 = vadd.f32 %v3246_v2, %v6777_v54  ;;  %v1938_v35 = vadd.f32 %v8632_v31, %v6971_v37  ;;  %v2333_v34 = vmax.f32 %v1491_v36, 0.0 }
 0x37e   :  { %v3250_v6 = vpop.f32.mrf.mxu0  ;;  %v3699_v28 = vpop.f32.mrf.mxu1  ;;  %4051 = vmatmul.mubr.f32.gmra.mxu0 %v2316_v14  ;;  %4500 = vmatmul.mubr.f32.gmra.mxu1 %v2318_v20  ;;  %v2335_v2 = vmax.f32 %v1940_v58, 0.0  ;;  %v8633_v14 = vld [vmem:[#allocation244_spill] sm:$0xff]  ;;  %v1946_v20 = vadd.f32 %v8634_v32, %v6951_v57  ;;  %v8637_v58 = vld [vmem:[#allocation243_spill] sm:$0xff] }
 0x37f   :  { %8629 = vst [vmem:[#allocation195_spill] sm:$0xff] %v7038_v25  ;;  %v7041_v22 = vadd.f32 %v3695_v8, %v3247_v42  ;;  %v3251_v26 = vadd.f32 %v3250_v6, %v6765_v21  ;;  %4056 = vmatprep.mubr.f32.mxu0 %v2325_v24  ;;  %4505 = vmatprep.mubr.f32.mxu1 %v2327_v27  ;;  %v8636_v24 = vld [vmem:[#allocation242_spill] sm:$0xff] }
 0x380   :  { %v3252_v39 = vpop.f32.mrf.mxu0  ;;  %v3701_v45 = vpop.f32.mrf.mxu1  ;;  %v1497_v9 = vadd.f32 %v8633_v14, %v6949_v19  ;;  %v1495_v42 = vadd.f32 %v8636_v24, %v6969_v33  ;;  %v1944_v36 = vadd.f32 %v8637_v58, %v6971_v37  ;;  %v8640_v24 = vld [vmem:[#allocation249_spill] sm:$0xff]  ;;  %v2343_v25 = vmax.f32 %v1946_v20, 0.0  ;;  %v8643_v58 = vld [vmem:[#allocation246_spill] sm:$0xff]  ;;  %v8644_v20 = vld [vmem:[#allocation247_spill] sm:$0xff] }
 0x381   :  { %8630 = vst [vmem:[#allocation200_spill] sm:$0xff] %v7041_v22  ;;  %v7052_v8 = vadd.f32 %v3699_v28, %v3251_v26  ;;  %v3253_v27 = vadd.f32 %v3252_v39, %v6777_v54  ;;  %v2332_v28 = vmax.f32 %v1489_v15, 0.0  ;;  %v2334_v26 = vmax.f32 %v1938_v35, 0.0  ;;  %v8639_v39 = vld [vmem:[#allocation248_spill] sm:$0xff] }
 0x382   :  { %v3256_v6 = vpop.f32.mrf.mxu0  ;;  %v3705_v30 = vpop.f32.mrf.mxu1  ;;  %4057 = vmatmul.mubr.f32.gmra.mxu0 %v2324_v12  ;;  %4506 = vmatmul.mubr.f32.gmra.mxu1 %v2326_v0  ;;  %v1503_v32 = vadd.f32 %v8639_v39, %v6949_v19  ;;  %v2341_v0 = vmax.f32 %v1497_v9, 0.0  ;;  %v2340_v15 = vmax.f32 %v1495_v42, 0.0  ;;  %v2342_v35 = vmax.f32 %v1944_v36, 0.0  ;;  %v8646_v36 = vld [vmem:[#allocation253_spill] sm:$0xff] }
 0x383   :  { %8635 = vst [vmem:[#allocation201_spill] sm:$0xff] %v7052_v8  ;;  %v7059_v31 = vadd.f32 %v3701_v45, %v3253_v27  ;;  %v3257_v14 = vadd.f32 %v3256_v6, %v6765_v21  ;;  %4062 = vmatprep.mubr.f32.mxu0 %v2333_v34  ;;  %4511 = vmatprep.mubr.f32.mxu1 %v2335_v2 }
 0x384   :  { %v1952_v8 = vadd.f32 %v8640_v24, %v6951_v57  ;;  %v3258_v22 = vpop.f32.mrf.mxu0  ;;  %v3707_v12 = vpop.f32.mrf.mxu1  ;;  %v1501_v9 = vadd.f32 %v8643_v58, %v6969_v33 }
 0x385   :  { %8638 = vst [vmem:[#allocation198_spill] sm:$0xff] %v7059_v31  ;;  %v7066_v13 = vadd.f32 %v3705_v30, %v3257_v14  ;;  %v3259_v45 = vadd.f32 %v3258_v22, %v6777_v54  ;;  %v1950_v30 = vadd.f32 %v8644_v20, %v6971_v37  ;;  %v2349_v14 = vmax.f32 %v1503_v32, 0.0 }
 0x386   :  { %v3262_v27 = vpop.f32.mrf.mxu0  ;;  %v3711_v6 = vpop.f32.mrf.mxu1  ;;  %4063 = vmatmul.mubr.f32.gmra.mxu0 %v2332_v28  ;;  %4512 = vmatmul.mubr.f32.gmra.mxu1 %v2334_v26  ;;  %v2351_v22 = vmax.f32 %v1952_v8, 0.0  ;;  %v8645_v28 = vld [vmem:[#allocation252_spill] sm:$0xff]  ;;  %v1958_v26 = vadd.f32 %v8646_v36, %v6951_v57  ;;  %v8649_v8 = vld [vmem:[#allocation251_spill] sm:$0xff] }
 0x387   :  { %8641 = vst [vmem:[#allocation199_spill] sm:$0xff] %v7066_v13  ;;  %v7069_v34 = vadd.f32 %v3707_v12, %v3259_v45  ;;  %v3263_v2 = vadd.f32 %v3262_v27, %v6765_v21  ;;  %4068 = vmatprep.mubr.f32.mxu0 %v2341_v0  ;;  %4517 = vmatprep.mubr.f32.mxu1 %v2343_v25  ;;  %v8648_v0 = vld [vmem:[#allocation250_spill] sm:$0xff] }
 0x388   :  { %v3264_v39 = vpop.f32.mrf.mxu0  ;;  %v3713_v24 = vpop.f32.mrf.mxu1  ;;  %v1509_v42 = vadd.f32 %v8645_v28, %v6949_v19  ;;  %v1507_v45 = vadd.f32 %v8648_v0, %v6969_v33  ;;  %v1956_v32 = vadd.f32 %v8649_v8, %v6971_v37  ;;  %v8652_v0 = vld [vmem:[#allocation257_spill] sm:$0xff]  ;;  %v2359_v13 = vmax.f32 %v1958_v26, 0.0  ;;  %v8655_v8 = vld [vmem:[#allocation254_spill] sm:$0xff]  ;;  %v8656_v26 = vld [vmem:[#allocation255_spill] sm:$0xff] }
 0x389   :  { %8642 = vst [vmem:[#allocation204_spill] sm:$0xff] %v7069_v34  ;;  %v7080_v12 = vadd.f32 %v3711_v6, %v3263_v2  ;;  %v3265_v25 = vadd.f32 %v3264_v39, %v6777_v54  ;;  %v2348_v6 = vmax.f32 %v1501_v9, 0.0  ;;  %v2350_v2 = vmax.f32 %v1950_v30, 0.0  ;;  %v8651_v39 = vld [vmem:[#allocation256_spill] sm:$0xff] }
 0x38a   :  { %v3268_v27 = vpop.f32.mrf.mxu0  ;;  %v3717_v58 = vpop.f32.mrf.mxu1  ;;  %4069 = vmatmul.mubr.f32.gmra.mxu0 %v2340_v15  ;;  %4518 = vmatmul.mubr.f32.gmra.mxu1 %v2342_v35  ;;  %v1515_v36 = vadd.f32 %v8651_v39, %v6949_v19  ;;  %v2357_v35 = vmax.f32 %v1509_v42, 0.0  ;;  %v2356_v9 = vmax.f32 %v1507_v45, 0.0  ;;  %v2358_v30 = vmax.f32 %v1956_v32, 0.0  ;;  %v8658_v32 = vld [vmem:[#allocation261_spill] sm:$0xff] }
 0x38b   :  { %8647 = vst [vmem:[#allocation205_spill] sm:$0xff] %v7080_v12  ;;  %v7087_v20 = vadd.f32 %v3713_v24, %v3265_v25  ;;  %v3269_v28 = vadd.f32 %v3268_v27, %v6765_v21  ;;  %4074 = vmatprep.mubr.f32.mxu0 %v2349_v14  ;;  %4523 = vmatprep.mubr.f32.mxu1 %v2351_v22 }
 0x38c   :  { %v1964_v12 = vadd.f32 %v8652_v0, %v6951_v57  ;;  %v3270_v34 = vpop.f32.mrf.mxu0  ;;  %v3719_v15 = vpop.f32.mrf.mxu1  ;;  %v1513_v42 = vadd.f32 %v8655_v8, %v6969_v33 }
 0x38d   :  { %8650 = vst [vmem:[#allocation202_spill] sm:$0xff] %v7087_v20  ;;  %v7094_v31 = vadd.f32 %v3717_v58, %v3269_v28  ;;  %v3271_v24 = vadd.f32 %v3270_v34, %v6777_v54  ;;  %v1962_v58 = vadd.f32 %v8656_v26, %v6971_v37  ;;  %v2365_v28 = vmax.f32 %v1515_v36, 0.0 }
 0x38e   :  { %v3274_v25 = vpop.f32.mrf.mxu0  ;;  %v3723_v27 = vpop.f32.mrf.mxu1  ;;  %4075 = vmatmul.mubr.f32.gmra.mxu0 %v2348_v6  ;;  %4524 = vmatmul.mubr.f32.gmra.mxu1 %v2350_v2  ;;  %v2367_v34 = vmax.f32 %v1964_v12, 0.0  ;;  %v8657_v6 = vld [vmem:[#allocation260_spill] sm:$0xff]  ;;  %v1970_v2 = vadd.f32 %v8658_v32, %v6951_v57  ;;  %v8661_v12 = vld [vmem:[#allocation259_spill] sm:$0xff] }
 0x38f   :  { %8653 = vst [vmem:[#allocation203_spill] sm:$0xff] %v7094_v31  ;;  %v7097_v14 = vadd.f32 %v3719_v15, %v3271_v24  ;;  %v3275_v22 = vadd.f32 %v3274_v25, %v6765_v21  ;;  %4080 = vmatprep.mubr.f32.mxu0 %v2357_v35  ;;  %4529 = vmatprep.mubr.f32.mxu1 %v2359_v13  ;;  %v8660_v35 = vld [vmem:[#allocation258_spill] sm:$0xff] }
 0x390   :  { %v3276_v39 = vpop.f32.mrf.mxu0  ;;  %v3725_v0 = vpop.f32.mrf.mxu1  ;;  %v1521_v45 = vadd.f32 %v8657_v6, %v6949_v19  ;;  %v1519_v24 = vadd.f32 %v8660_v35, %v6969_v33  ;;  %v1968_v36 = vadd.f32 %v8661_v12, %v6971_v37  ;;  %v8664_v35 = vld [vmem:[#allocation265_spill] sm:$0xff]  ;;  %v2375_v31 = vmax.f32 %v1970_v2, 0.0  ;;  %v8667_v12 = vld [vmem:[#allocation262_spill] sm:$0xff]  ;;  %v8668_v2 = vld [vmem:[#allocation263_spill] sm:$0xff] }
 0x391   :  { %8654 = vst [vmem:[#allocation208_spill] sm:$0xff] %v7097_v14  ;;  %v7108_v15 = vadd.f32 %v3723_v27, %v3275_v22  ;;  %v3277_v13 = vadd.f32 %v3276_v39, %v6777_v54  ;;  %v2364_v27 = vmax.f32 %v1513_v42, 0.0  ;;  %v2366_v22 = vmax.f32 %v1962_v58, 0.0  ;;  %v8663_v39 = vld [vmem:[#allocation264_spill] sm:$0xff] }
 0x392   :  { %v3280_v25 = vpop.f32.mrf.mxu0  ;;  %v3729_v8 = vpop.f32.mrf.mxu1  ;;  %4081 = vmatmul.mubr.f32.gmra.mxu0 %v2356_v9  ;;  %4530 = vmatmul.mubr.f32.gmra.mxu1 %v2358_v30  ;;  %v1527_v32 = vadd.f32 %v8663_v39, %v6949_v19  ;;  %v2373_v30 = vmax.f32 %v1521_v45, 0.0  ;;  %v2372_v42 = vmax.f32 %v1519_v24, 0.0  ;;  %v2374_v58 = vmax.f32 %v1968_v36, 0.0  ;;  %v8670_v36 = vld [vmem:[#allocation269_spill] sm:$0xff] }
 0x393   :  { %8659 = vst [vmem:[#allocation209_spill] sm:$0xff] %v7108_v15  ;;  %v7115_v26 = vadd.f32 %v3725_v0, %v3277_v13  ;;  %v3281_v6 = vadd.f32 %v3280_v25, %v6765_v21  ;;  %4086 = vmatprep.mubr.f32.mxu0 %v2365_v28  ;;  %4535 = vmatprep.mubr.f32.mxu1 %v2367_v34 }
 0x394   :  { %v1976_v15 = vadd.f32 %v8664_v35, %v6951_v57  ;;  %v3282_v14 = vpop.f32.mrf.mxu0  ;;  %v3731_v9 = vpop.f32.mrf.mxu1  ;;  %v1525_v45 = vadd.f32 %v8667_v12, %v6969_v33 }
 0x395   :  { %8662 = vst [vmem:[#allocation206_spill] sm:$0xff] %v7115_v26  ;;  %v7122_v20 = vadd.f32 %v3729_v8, %v3281_v6  ;;  %v3283_v0 = vadd.f32 %v3282_v14, %v6777_v54  ;;  %v1974_v8 = vadd.f32 %v8668_v2, %v6971_v37  ;;  %v2381_v6 = vmax.f32 %v1527_v32, 0.0 }
 0x396   :  { %v3286_v13 = vpop.f32.mrf.mxu0  ;;  %v3735_v25 = vpop.f32.mrf.mxu1  ;;  %4087 = vmatmul.mubr.f32.gmra.mxu0 %v2364_v27  ;;  %4536 = vmatmul.mubr.f32.gmra.mxu1 %v2366_v22  ;;  %v2383_v14 = vmax.f32 %v1976_v15, 0.0  ;;  %v8669_v27 = vld [vmem:[#allocation268_spill] sm:$0xff]  ;;  %v1982_v22 = vadd.f32 %v8670_v36, %v6951_v57  ;;  %v8673_v15 = vld [vmem:[#allocation267_spill] sm:$0xff] }
 0x397   :  { %8665 = vst [vmem:[#allocation207_spill] sm:$0xff] %v7122_v20  ;;  %v7125_v28 = vadd.f32 %v3731_v9, %v3283_v0  ;;  %v3287_v34 = vadd.f32 %v3286_v13, %v6765_v21  ;;  %4092 = vmatprep.mubr.f32.mxu0 %v2373_v30  ;;  %4541 = vmatprep.mubr.f32.mxu1 %v2375_v31  ;;  %v8672_v30 = vld [vmem:[#allocation266_spill] sm:$0xff] }
 0x398   :  { %v3288_v39 = vpop.f32.mrf.mxu0  ;;  %v3737_v35 = vpop.f32.mrf.mxu1  ;;  %v1533_v24 = vadd.f32 %v8669_v27, %v6949_v19  ;;  %v1531_v0 = vadd.f32 %v8672_v30, %v6969_v33  ;;  %v1980_v32 = vadd.f32 %v8673_v15, %v6971_v37  ;;  %v8676_v30 = vld [vmem:[#allocation273_spill] sm:$0xff]  ;;  %v2391_v20 = vmax.f32 %v1982_v22, 0.0  ;;  %v8679_v15 = vld [vmem:[#allocation270_spill] sm:$0xff]  ;;  %v8680_v22 = vld [vmem:[#allocation271_spill] sm:$0xff] }
 0x399   :  { %8666 = vst [vmem:[#allocation212_spill] sm:$0xff] %v7125_v28  ;;  %v7136_v9 = vadd.f32 %v3735_v25, %v3287_v34  ;;  %v3289_v31 = vadd.f32 %v3288_v39, %v6777_v54  ;;  %v2380_v25 = vmax.f32 %v1525_v45, 0.0  ;;  %v2382_v34 = vmax.f32 %v1974_v8, 0.0  ;;  %v8675_v39 = vld [vmem:[#allocation272_spill] sm:$0xff] }
 0x39a   :  { %v3292_v13 = vpop.f32.mrf.mxu0  ;;  %v3741_v12 = vpop.f32.mrf.mxu1  ;;  %4093 = vmatmul.mubr.f32.gmra.mxu0 %v2372_v42  ;;  %4542 = vmatmul.mubr.f32.gmra.mxu1 %v2374_v58  ;;  %v1539_v36 = vadd.f32 %v8675_v39, %v6949_v19  ;;  %v2389_v58 = vmax.f32 %v1533_v24, 0.0  ;;  %v2388_v45 = vmax.f32 %v1531_v0, 0.0  ;;  %v2390_v8 = vmax.f32 %v1980_v32, 0.0  ;;  %v8682_v32 = vld [vmem:[#allocation277_spill] sm:$0xff] }
 0x39b   :  { %8671 = vst [vmem:[#allocation213_spill] sm:$0xff] %v7136_v9  ;;  %v7143_v2 = vadd.f32 %v3737_v35, %v3289_v31  ;;  %v3293_v27 = vadd.f32 %v3292_v13, %v6765_v21  ;;  %4098 = vmatprep.mubr.f32.mxu0 %v2381_v6  ;;  %4547 = vmatprep.mubr.f32.mxu1 %v2383_v14 }
 0x39c   :  { %v1988_v9 = vadd.f32 %v8676_v30, %v6951_v57  ;;  %v3294_v28 = vpop.f32.mrf.mxu0  ;;  %v3743_v42 = vpop.f32.mrf.mxu1  ;;  %v1537_v24 = vadd.f32 %v8679_v15, %v6969_v33 }
 0x39d   :  { %8674 = vst [vmem:[#allocation210_spill] sm:$0xff] %v7143_v2  ;;  %v7150_v26 = vadd.f32 %v3741_v12, %v3293_v27  ;;  %v3295_v35 = vadd.f32 %v3294_v28, %v6777_v54  ;;  %v1986_v12 = vadd.f32 %v8680_v22, %v6971_v37  ;;  %v2397_v27 = vmax.f32 %v1539_v36, 0.0 }
 0x39e   :  { %v3298_v31 = vpop.f32.mrf.mxu0  ;;  %v3747_v13 = vpop.f32.mrf.mxu1  ;;  %4099 = vmatmul.mubr.f32.gmra.mxu0 %v2380_v25  ;;  %4548 = vmatmul.mubr.f32.gmra.mxu1 %v2382_v34  ;;  %v2399_v28 = vmax.f32 %v1988_v9, 0.0  ;;  %v8681_v25 = vld [vmem:[#allocation276_spill] sm:$0xff]  ;;  %v1994_v34 = vadd.f32 %v8682_v32, %v6951_v57  ;;  %v8685_v9 = vld [vmem:[#allocation275_spill] sm:$0xff] }
 0x39f   :  { %8677 = vst [vmem:[#allocation211_spill] sm:$0xff] %v7150_v26  ;;  %v7153_v6 = vadd.f32 %v3743_v42, %v3295_v35  ;;  %v3299_v14 = vadd.f32 %v3298_v31, %v6765_v21  ;;  %4104 = vmatprep.mubr.f32.mxu0 %v2389_v58  ;;  %4553 = vmatprep.mubr.f32.mxu1 %v2391_v20  ;;  %v8684_v58 = vld [vmem:[#allocation274_spill] sm:$0xff] }
 0x3a0   :  { %v3300_v39 = vpop.f32.mrf.mxu0  ;;  %v3749_v30 = vpop.f32.mrf.mxu1  ;;  %v1545_v0 = vadd.f32 %v8681_v25, %v6949_v19  ;;  %v1543_v35 = vadd.f32 %v8684_v58, %v6969_v33  ;;  %v1992_v36 = vadd.f32 %v8685_v9, %v6971_v37  ;;  %v8687_v58 = vld [vmem:[#allocation281_spill] sm:$0xff]  ;;  %v2407_v26 = vmax.f32 %v1994_v34, 0.0  ;;  %v8688_v9 = vld [vmem:[#allocation278_spill] sm:$0xff]  ;;  %v8689_v34 = vld [vmem:[#allocation279_spill] sm:$0xff] }
 0x3a1   :  { %8678 = vst [vmem:[#allocation216_spill] sm:$0xff] %v7153_v6  ;;  %v7164_v42 = vadd.f32 %v3747_v13, %v3299_v14  ;;  %v3301_v20 = vadd.f32 %v3300_v39, %v6777_v54  ;;  %v2396_v13 = vmax.f32 %v1537_v24, 0.0  ;;  %v2398_v14 = vmax.f32 %v1986_v12, 0.0  ;;  %v8686_v39 = vld [vmem:[#allocation280_spill] sm:$0xff] }
 0x3a2   :  { %v3304_v31 = vpop.f32.mrf.mxu0  ;;  %v3753_v15 = vpop.f32.mrf.mxu1  ;;  %4105 = vmatmul.mubr.f32.gmra.mxu0 %v2388_v45  ;;  %4554 = vmatmul.mubr.f32.gmra.mxu1 %v2390_v8  ;;  %v1551_v32 = vadd.f32 %v8686_v39, %v6949_v19  ;;  %v2405_v8 = vmax.f32 %v1545_v0, 0.0  ;;  %v2404_v24 = vmax.f32 %v1543_v35, 0.0  ;;  %v2406_v12 = vmax.f32 %v1992_v36, 0.0  ;;  %v8690_v36 = vld [vmem:[#allocation284_spill] sm:$0xff] }
 0x3a3   :  { %8683 = vst [vmem:[#allocation217_spill] sm:$0xff] %v7164_v42  ;;  %v7171_v22 = vadd.f32 %v3749_v30, %v3301_v20  ;;  %v3305_v25 = vadd.f32 %v3304_v31, %v6765_v21  ;;  %4110 = vmatprep.mubr.f32.mxu0 %v2397_v27  ;;  %4559 = vmatprep.mubr.f32.mxu1 %v2399_v28 }
 0x3a4   :  { %v2000_v42 = vadd.f32 %v8687_v58, %v6951_v57  ;;  %v3306_v6 = vpop.f32.mrf.mxu0  ;;  %v3755_v45 = vpop.f32.mrf.mxu1  ;;  %v1549_v0 = vadd.f32 %v8688_v9, %v6969_v33  ;;  %v1557_v35 = vadd.f32 %v5992_v5, %v6949_v19 }
 0x3a5   :  { %v7178_v2 = vadd.f32 %v3753_v15, %v3305_v25  ;;  %v3307_v30 = vadd.f32 %v3306_v6, %v6777_v54  ;;  %v1998_v15 = vadd.f32 %v8689_v34, %v6971_v37  ;;  %v2413_v25 = vmax.f32 %v1551_v32, 0.0 }
 0x3a6   :  { %v3310_v20 = vpop.f32.mrf.mxu0  ;;  %v3759_v31 = vpop.f32.mrf.mxu1  ;;  %4111 = vmatmul.mubr.f32.gmra.mxu0 %v2396_v13  ;;  %4560 = vmatmul.mubr.f32.gmra.mxu1 %v2398_v14  ;;  %v2415_v6 = vmax.f32 %v2000_v42, 0.0  ;;  %v2006_v13 = vadd.f32 %v8690_v36, %v6951_v57  ;;  %v8693_v42 = vld [vmem:[#allocation283_spill] sm:$0xff]  ;;  %v1563_v34 = vadd.f32 %v6008_v47, %v6949_v19 }
 0x3a7   :  { %v7181_v27 = vadd.f32 %v3755_v45, %v3307_v30  ;;  %v3311_v28 = vadd.f32 %v3310_v20, %v6765_v21  ;;  %4116 = vmatprep.mubr.f32.mxu0 %v2405_v8  ;;  %4565 = vmatprep.mubr.f32.mxu1 %v2407_v26  ;;  %v8692_v45 = vld [vmem:[#allocation282_spill] sm:$0xff]  ;;  %v2004_v32 = vadd.f32 %v8693_v42, %v6971_v37 }
 0x3a8   :  { %v3312_v39 = vpop.f32.mrf.mxu0  ;;  %v3761_v58 = vpop.f32.mrf.mxu1  ;;  %v1555_v8 = vadd.f32 %v8692_v45, %v6969_v33  ;;  %v2423_v45 = vmax.f32 %v2006_v13, 0.0  ;;  %v2429_v13 = vmax.f32 %v1563_v34, 0.0 }
 0x3a9   :  { %v7192_v14 = vadd.f32 %v3759_v31, %v3311_v28  ;;  %v3313_v26 = vadd.f32 %v3312_v39, %v6777_v54  ;;  %v2412_v31 = vmax.f32 %v1549_v0, 0.0  ;;  %v2414_v28 = vmax.f32 %v1998_v15, 0.0 }
 0x3aa   :  { %v3316_v30 = vpop.f32.mrf.mxu0  ;;  %v3765_v20 = vpop.f32.mrf.mxu1  ;;  %4117 = vmatmul.mubr.f32.gmra.mxu0 %v2404_v24  ;;  %4566 = vmatmul.mubr.f32.gmra.mxu1 %v2406_v12  ;;  %v2012_v39 = vadd.f32 %v6010_v41, %v6951_v57  ;;  %v2421_v12 = vmax.f32 %v1557_v35, 0.0  ;;  %v2420_v0 = vmax.f32 %v1555_v8, 0.0  ;;  %v2422_v15 = vmax.f32 %v2004_v32, 0.0  ;;  %v8694_v41 = vld [vmem:[#allocation285_spill] sm:$0xff] }
 0x3ab   :  { %8691 = vst [vmem:[#allocation214_spill] sm:$0xff] %v7192_v14  ;;  %v7199_v9 = vadd.f32 %v3761_v58, %v3313_v26  ;;  %v3317_v5 = vadd.f32 %v3316_v30, %v6765_v21  ;;  %4122 = vmatprep.mubr.f32.mxu0 %v2413_v25  ;;  %4571 = vmatprep.mubr.f32.mxu1 %v2415_v6 }
 0x3ac   :  { %v3318_v36 = vpop.f32.mrf.mxu0  ;;  %v3767_v24 = vpop.f32.mrf.mxu1  ;;  %v1561_v6 = vadd.f32 %v8694_v41, %v6969_v33  ;;  %v2010_v35 = vadd.f32 %v6002_v43, %v6971_v37  ;;  %v1569_v8 = vadd.f32 %v6024_v44, %v6949_v19  ;;  %v2018_v32 = vadd.f32 %v6026_v17, %v6951_v57 }
 0x3ad   :  { %v7206_v14 = vadd.f32 %v3765_v20, %v3317_v5  ;;  %v3319_v58 = vadd.f32 %v3318_v36, %v6777_v54  ;;  %v2431_v20 = vmax.f32 %v2012_v39, 0.0  ;;  %v1567_v36 = vadd.f32 %v6016_v46, %v6969_v33 }
 0x3ae   :  { %v3322_v26 = vpop.f32.mrf.mxu0  ;;  %v3771_v30 = vpop.f32.mrf.mxu1  ;;  %4123 = vmatmul.mubr.f32.gmra.mxu0 %v2412_v31  ;;  %4572 = vmatmul.mubr.f32.gmra.mxu1 %v2414_v28  ;;  %v2016_v43 = vadd.f32 %v6018_v50, %v6971_v37  ;;  %v2428_v17 = vmax.f32 %v1561_v6, 0.0  ;;  %v2430_v39 = vmax.f32 %v2010_v35, 0.0  ;;  %v2024_v46 = vadd.f32 %v6042_v23, %v6951_v57 }
 0x3af   :  { %v7209_v25 = vadd.f32 %v3767_v24, %v3319_v58  ;;  %v3323_v47 = vadd.f32 %v3322_v26, %v6765_v21  ;;  %4128 = vmatprep.mubr.f32.mxu0 %v2421_v12  ;;  %4577 = vmatprep.mubr.f32.mxu1 %v2423_v45  ;;  %v1575_v45 = vadd.f32 %v6040_v60, %v6949_v19  ;;  %v2436_v6 = vmax.f32 %v1567_v36, 0.0 }
 0x3b0   :  { %v3324_v42 = vpop.f32.mrf.mxu0  ;;  %v3773_v5 = vpop.f32.mrf.mxu1  ;;  %v2438_v35 = vmax.f32 %v2016_v43, 0.0  ;;  %v1573_v23 = vadd.f32 %v6032_v40, %v6969_v33  ;;  %v2030_v36 = vadd.f32 %v6058_v49, %v6951_v57  ;;  %v1579_v40 = vadd.f32 %v6048_v11, %v6969_v33 }
 0x3b1   :  { %v7220_v31 = vadd.f32 %v3771_v30, %v3323_v47  ;;  %v3325_v28 = vadd.f32 %v3324_v42, %v6777_v54  ;;  %v2437_v30 = vmax.f32 %v1569_v8, 0.0  ;;  %v2445_v42 = vmax.f32 %v1575_v45, 0.0 }
 0x3b2   :  { %v3328_v24 = vpop.f32.mrf.mxu0  ;;  %v3777_v12 = vpop.f32.mrf.mxu1  ;;  %4129 = vmatmul.mubr.f32.gmra.mxu0 %v2420_v0  ;;  %4578 = vmatmul.mubr.f32.gmra.mxu1 %v2422_v15  ;;  %v2439_v0 = vmax.f32 %v2018_v32, 0.0  ;;  %v2444_v49 = vmax.f32 %v1573_v23, 0.0  ;;  %v1587_v45 = vadd.f32 %v6072_v53, %v6949_v19  ;;  %v2036_v11 = vadd.f32 %v6074_v55, %v6951_v57 }
 0x3b3   :  { %v7227_v34 = vadd.f32 %v3773_v5, %v3325_v28  ;;  %v3329_v44 = vadd.f32 %v3328_v24, %v6765_v21  ;;  %4134 = vmatprep.mubr.f32.mxu0 %v2429_v13  ;;  %4583 = vmatprep.mubr.f32.mxu1 %v2431_v20  ;;  %v2022_v20 = vadd.f32 %v6034_v56, %v6971_v37  ;;  %v2447_v5 = vmax.f32 %v2024_v46, 0.0 }
 0x3b4   :  { %v3330_v58 = vpop.f32.mrf.mxu0  ;;  %v3779_v26 = vpop.f32.mrf.mxu1  ;;  %v1581_v28 = vadd.f32 %v6056_v29, %v6949_v19  ;;  %v2028_v56 = vadd.f32 %v6050_v62, %v6971_v37  ;;  %v1585_v55 = vadd.f32 %v6064_v63, %v6969_v33  ;;  %v2461_v23 = vmax.f32 %v1587_v45, 0.0 }
 0x3b5   :  { %v7234_v15 = vadd.f32 %v3777_v12, %v3329_v44  ;;  %v3331_v50 = vadd.f32 %v3330_v58, %v6777_v54  ;;  %v1591_v63 = vadd.f32 %v6080_v51, %v6969_v33  ;;  %v2048_v51 = vadd.f32 %v6106_v3, %v6951_v57 }
 0x3b6   :  { %v3334_v47 = vpop.f32.mrf.mxu0  ;;  %v3783_v41 = vpop.f32.mrf.mxu1  ;;  %4135 = vmatmul.mubr.f32.gmra.mxu0 %v2428_v17  ;;  %4584 = vmatmul.mubr.f32.gmra.mxu1 %v2430_v39  ;;  %v2446_v39 = vmax.f32 %v2022_v20, 0.0  ;;  %v2463_v20 = vmax.f32 %v2036_v11, 0.0  ;;  %v1597_v3 = vadd.f32 %v6096_v52, %v6969_v33 }
 0x3b7   :  { %v7237_v13 = vadd.f32 %v3779_v26, %v3331_v50  ;;  %v3335_v60 = vadd.f32 %v3334_v47, %v6765_v21  ;;  %4140 = vmatprep.mubr.f32.mxu0 %v2437_v30  ;;  %4589 = vmatprep.mubr.f32.mxu1 %v2439_v0  ;;  %v2453_v26 = vmax.f32 %v1581_v28, 0.0  ;;  %v2455_v30 = vmax.f32 %v2030_v36, 0.0 }
 0x3b8   :  { %v3336_v8 = vpop.f32.mrf.mxu0  ;;  %v3785_v32 = vpop.f32.mrf.mxu1 }
 0x3b9   :  { %v7248_v24 = vadd.f32 %v3783_v41, %v3335_v60  ;;  %v3337_v12 = vadd.f32 %v3336_v8, %v6777_v54  ;;  %v2452_v41 = vmax.f32 %v1579_v40, 0.0  ;;  %v2034_v60 = vadd.f32 %v6066_v4, %v6971_v37 }
 0x3ba   :  { %v3340_v43 = vpop.f32.mrf.mxu0  ;;  %v3789_v44 = vpop.f32.mrf.mxu1  ;;  %4141 = vmatmul.mubr.f32.gmra.mxu0 %v2436_v6  ;;  %4590 = vmatmul.mubr.f32.gmra.mxu1 %v2438_v35  ;;  %v2454_v6 = vmax.f32 %v2028_v56, 0.0  ;;  %v1593_v8 = vadd.f32 %v6088_v59, %v6949_v19  ;;  %v2040_v4 = vadd.f32 %v6082_v10, %v6971_v37  ;;  %v1599_v56 = vadd.f32 %v6104_v1, %v6949_v19 }
 0x3bb   :  { %v7255_v17 = vadd.f32 %v3785_v32, %v3337_v12  ;;  %v3341_v29 = vadd.f32 %v3340_v43, %v6765_v21  ;;  %4146 = vmatprep.mubr.f32.mxu0 %v2445_v42  ;;  %4595 = vmatprep.mubr.f32.mxu1 %v2447_v5  ;;  %v2042_v32 = vadd.f32 %v6090_v61, %v6951_v57  ;;  %v2460_v61 = vmax.f32 %v1585_v55, 0.0 }
 0x3bc   :  { %v3342_v46 = vpop.f32.mrf.mxu0  ;;  %v3791_v58 = vpop.f32.mrf.mxu1  ;;  %v1605_v55 = vadd.f32 %v6120_v7, %v6949_v19 }
 0x3bd   :  { %v7262_v0 = vadd.f32 %v3789_v44, %v3341_v29  ;;  %v3343_v62 = vadd.f32 %v3342_v46, %v6777_v54  ;;  %v2462_v44 = vmax.f32 %v2034_v60, 0.0  ;;  %v2471_v45 = vmax.f32 %v2042_v32, 0.0  ;;  %v8695_v60 = vld [vmem:[#allocation288_spill] sm:$0xff] }
 0x3be   :  { %v3346_v50 = vpop.f32.mrf.mxu0  ;;  %v3795_v47 = vpop.f32.mrf.mxu1  ;;  %4147 = vmatmul.mubr.f32.gmra.mxu0 %v2444_v49  ;;  %4596 = vmatmul.mubr.f32.gmra.mxu1 %v2446_v39  ;;  %v2469_v39 = vmax.f32 %v1593_v8, 0.0 }
 0x3bf   :  { %v7265_v35 = vadd.f32 %v3791_v58, %v3343_v62  ;;  %v3347_v53 = vadd.f32 %v3346_v50, %v6765_v21  ;;  %4152 = vmatprep.mubr.f32.mxu0 %v2453_v26  ;;  %4601 = vmatprep.mubr.f32.mxu1 %v2455_v30  ;;  %v2468_v26 = vmax.f32 %v1591_v63, 0.0  ;;  %v2470_v30 = vmax.f32 %v2040_v4, 0.0  ;;  %v8698_v4 = vld [vmem:[#allocation291_spill] sm:$0xff] }
 0x3c0   :  { %v3348_v42 = vpop.f32.mrf.mxu0  ;;  %v3797_v5 = vpop.f32.mrf.mxu1  ;;  %v2046_v50 = vadd.f32 %v6098_v16, %v6971_v37  ;;  %v8697_v16 = vld [vmem:[#allocation287_spill] sm:$0xff] }
 0x3c1   :  { %v7276_v28 = vadd.f32 %v3795_v47, %v3347_v53  ;;  %v3349_v36 = vadd.f32 %v3348_v42, %v6777_v54  ;;  %v2477_v47 = vmax.f32 %v1599_v56, 0.0 }
 0x3c2   :  { %v3352_v12 = vpop.f32.mrf.mxu0  ;;  %v3801_v40 = vpop.f32.mrf.mxu1  ;;  %4153 = vmatmul.mubr.f32.gmra.mxu0 %v2452_v41  ;;  %4602 = vmatmul.mubr.f32.gmra.mxu1 %v2454_v6  ;;  %v2479_v41 = vmax.f32 %v2048_v51, 0.0 }
 0x3c3   :  { %v7283_v43 = vadd.f32 %v3797_v5, %v3349_v36  ;;  %v3353_v59 = vadd.f32 %v3352_v12, %v6765_v21  ;;  %4158 = vmatprep.mubr.f32.mxu0 %v2461_v23  ;;  %4607 = vmatprep.mubr.f32.mxu1 %v2463_v20  ;;  %v2054_v23 = vadd.f32 %v8695_v60, %v6951_v57  ;;  %v8696_v5 = vld [vmem:[#allocation286_spill] sm:$0xff]  ;;  %v2476_v12 = vmax.f32 %v1597_v3, 0.0  ;;  %v8700_v3 = vld [vmem:[#allocation289_spill] sm:$0xff] }
 0x3c4   :  { %v3354_v29 = vpop.f32.mrf.mxu0  ;;  %v3803_v49 = vpop.f32.mrf.mxu1  ;;  %v1603_v52 = vadd.f32 %v8696_v5, %v6969_v33  ;;  %v2052_v36 = vadd.f32 %v8697_v16, %v6971_v37  ;;  %v8703_v5 = vld [vmem:[#allocation296_spill] sm:$0xff]  ;;  %v8704_v16 = vld [vmem:[#allocation293_spill] sm:$0xff] }
 0x3c5   :  { %v7290_v11 = vadd.f32 %v3801_v40, %v3353_v59  ;;  %v3355_v10 = vadd.f32 %v3354_v29, %v6777_v54  ;;  %v2478_v40 = vmax.f32 %v2046_v50, 0.0  ;;  %v1611_v59 = vadd.f32 %v8698_v4, %v6949_v19 }
 0x3c6   :  { %v3358_v46 = vpop.f32.mrf.mxu0  ;;  %v3807_v58 = vpop.f32.mrf.mxu1  ;;  %4159 = vmatmul.mubr.f32.gmra.mxu0 %v2460_v61  ;;  %4608 = vmatmul.mubr.f32.gmra.mxu1 %v2462_v44  ;;  %v8699_v61 = vld [vmem:[#allocation292_spill] sm:$0xff]  ;;  %v2485_v29 = vmax.f32 %v1605_v55, 0.0  ;;  %v1609_v50 = vadd.f32 %v8700_v3, %v6969_v33 }
 0x3c7   :  { %v7293_v62 = vadd.f32 %v3803_v49, %v3355_v10  ;;  %v3359_v1 = vadd.f32 %v3358_v46, %v6765_v21  ;;  %4164 = vmatprep.mubr.f32.mxu0 %v2469_v39  ;;  %4613 = vmatprep.mubr.f32.mxu1 %v2471_v45  ;;  %v2060_v44 = vadd.f32 %v8699_v61, %v6951_v57  ;;  %v2487_v49 = vmax.f32 %v2054_v23, 0.0  ;;  %v8702_v23 = vld [vmem:[#allocation295_spill] sm:$0xff] }
 0x3c8   :  { %v3360_v6 = vpop.f32.mrf.mxu0  ;;  %v3809_v53 = vpop.f32.mrf.mxu1 }
 0x3c9   :  { %v7304_v20 = vadd.f32 %v3807_v58, %v3359_v1  ;;  %v3361_v42 = vadd.f32 %v3360_v6, %v6777_v54  ;;  %v2484_v58 = vmax.f32 %v1603_v52, 0.0  ;;  %v2493_v6 = vmax.f32 %v1611_v59, 0.0 }
 0x3ca   :  { %v3364_v8 = vpop.f32.mrf.mxu0  ;;  %v3813_v32 = vpop.f32.mrf.mxu1  ;;  %4165 = vmatmul.mubr.f32.gmra.mxu0 %v2468_v26  ;;  %4614 = vmatmul.mubr.f32.gmra.mxu1 %v2470_v30  ;;  %v2486_v26 = vmax.f32 %v2052_v36, 0.0  ;;  %v2066_v52 = vadd.f32 %v8703_v5, %v6951_v57  ;;  %v1615_v36 = vadd.f32 %v8704_v16, %v6969_v33 }
 0x3cb   :  { %v7311_v63 = vadd.f32 %v3809_v53, %v3361_v42  ;;  %v3365_v7 = vadd.f32 %v3364_v8, %v6765_v21  ;;  %4170 = vmatprep.mubr.f32.mxu0 %v2477_v47  ;;  %4619 = vmatprep.mubr.f32.mxu1 %v2479_v41  ;;  %v8701_v47 = vld [vmem:[#allocation290_spill] sm:$0xff]  ;;  %v2495_v53 = vmax.f32 %v2060_v44, 0.0  ;;  %v1617_v42 = vadd.f32 %v8702_v23, %v6949_v19 }
 0x3cc   :  { %v3366_v56 = vpop.f32.mrf.mxu0  ;;  %v3815_v51 = vpop.f32.mrf.mxu1  ;;  %v2058_v41 = vadd.f32 %v8701_v47, %v6971_v37  ;;  %v2492_v44 = vmax.f32 %v1609_v50, 0.0  ;;  %v2500_v50 = vmax.f32 %v1615_v36, 0.0 }
 0x3cd   :  { %v7318_v39 = vadd.f32 %v3813_v32, %v3365_v7  ;;  %v3367_v45 = vadd.f32 %v3366_v56, %v6777_v54 }
 0x3ce   :  { %v3370_v10 = vpop.f32.mrf.mxu0  ;;  %v3819_v46 = vpop.f32.mrf.mxu1  ;;  %4171 = vmatmul.mubr.f32.gmra.mxu0 %v2476_v12  ;;  %4620 = vmatmul.mubr.f32.gmra.mxu1 %v2478_v40  ;;  %v8705_v40 = vld [vmem:[#allocation294_spill] sm:$0xff]  ;;  %v2494_v56 = vmax.f32 %v2058_v41, 0.0 }
 0x3cf   :  { %v7321_v30 = vadd.f32 %v3815_v51, %v3367_v45  ;;  %v3371_v1 = vadd.f32 %v3370_v10, %v6765_v21  ;;  %4176 = vmatprep.mubr.f32.mxu0 %v2485_v29  ;;  %4625 = vmatprep.mubr.f32.mxu1 %v2487_v49  ;;  %v2064_v4 = vadd.f32 %v8705_v40, %v6971_v37  ;;  %v8706_v51 = vld [vmem:[#allocation15_spill] sm:$0xff]  ;;  %v8707_v49 = vld [vmem:[#allocation16_spill] sm:$0xff] }
 0x3d0   :  { %v3372_v55 = vpop.f32.mrf.mxu0  ;;  %v3821_v60 = vpop.f32.mrf.mxu1  ;;  %v1623_v29 = vadd.f32 %v8706_v51, %v6949_v19  ;;  %v2072_v45 = vadd.f32 %v8707_v49, %v6951_v57  ;;  %v8711_v40 = vld [vmem:[#allocation19_spill] sm:$0xff] }
 0x3d1   :  { %v7332_v8 = vadd.f32 %v3819_v46, %v3371_v1  ;;  %v3373_v32 = vadd.f32 %v3372_v55, %v6777_v54  ;;  %v2502_v41 = vmax.f32 %v2064_v4, 0.0  ;;  %v2078_v4 = vadd.f32 %v8711_v40, %v6951_v57 }
 0x3d2   :  { %v3376_v7 = vpop.f32.mrf.mxu0  ;;  %v3825_v12 = vpop.f32.mrf.mxu1  ;;  %4177 = vmatmul.mubr.f32.gmra.mxu0 %v2484_v58  ;;  %4626 = vmatmul.mubr.f32.gmra.mxu1 %v2486_v26  ;;  %v2501_v58 = vmax.f32 %v1617_v42, 0.0  ;;  %v2503_v26 = vmax.f32 %v2066_v52, 0.0  ;;  %v8709_v42 = vld [vmem:[#allocation297_spill] sm:$0xff]  ;;  %v2509_v52 = vmax.f32 %v1623_v29, 0.0 }
 0x3d3   :  { %v7339_v59 = vadd.f32 %v3821_v60, %v3373_v32  ;;  %v3377_v61 = vadd.f32 %v3376_v7, %v6765_v21  ;;  %4182 = vmatprep.mubr.f32.mxu0 %v2493_v6  ;;  %4631 = vmatprep.mubr.f32.mxu1 %v2495_v53  ;;  %v8708_v60 = vld [vmem:[#allocation17_spill] sm:$0xff]  ;;  %v2070_v5 = vadd.f32 %v8709_v42, %v6971_v37  ;;  %v2511_v32 = vmax.f32 %v2072_v45, 0.0 }
 0x3d4   :  { %v3378_v10 = vpop.f32.mrf.mxu0  ;;  %v3827_v46 = vpop.f32.mrf.mxu1  ;;  %v1621_v23 = vadd.f32 %v8708_v60, %v6969_v33  ;;  %v8713_v29 = vld [vmem:[#allocation21_spill] sm:$0xff] }
 0x3d5   :  { %v7346_v1 = vadd.f32 %v3825_v12, %v3377_v61  ;;  %v3379_v3 = vadd.f32 %v3378_v10, %v6777_v54  ;;  %v8710_v12 = vld [vmem:[#allocation18_spill] sm:$0xff]  ;;  %v2076_v45 = vadd.f32 %v8713_v29, %v6971_v37 }
 0x3d6   :  { %v3382_v47 = vpop.f32.mrf.mxu0  ;;  %v3831_v55 = vpop.f32.mrf.mxu1  ;;  %4183 = vmatmul.mubr.f32.gmra.mxu0 %v2492_v44  ;;  %4632 = vmatmul.mubr.f32.gmra.mxu1 %v2494_v56  ;;  %v1629_v36 = vadd.f32 %v8710_v12, %v6949_v19  ;;  %v8712_v56 = vld [vmem:[#allocation20_spill] sm:$0xff] }
 0x3d7   :  { %v7349_v6 = vadd.f32 %v3827_v46, %v3379_v3  ;;  %v3383_v53 = vadd.f32 %v3382_v47, %v6765_v21  ;;  %4188 = vmatprep.mubr.f32.mxu0 %v2501_v58  ;;  %4637 = vmatprep.mubr.f32.mxu1 %v2503_v26  ;;  %v1627_v51 = vadd.f32 %v8712_v56, %v6969_v33  ;;  %v2508_v26 = vmax.f32 %v1621_v23, 0.0  ;;  %v8714_v47 = vld [vmem:[#allocation22_spill] sm:$0xff]  ;;  %v8717_v56 = vld [vmem:[#allocation24_spill] sm:$0xff] }
 0x3d8   :  { %v3384_v16 = vpop.f32.mrf.mxu0  ;;  %v3833_v7 = vpop.f32.mrf.mxu1  ;;  %v2510_v3 = vmax.f32 %v2070_v5, 0.0  ;;  %v2518_v5 = vmax.f32 %v2076_v45, 0.0  ;;  %v8720_v45 = vld [vmem:[#allocation27_spill] sm:$0xff] }
 0x3d9   :  { %v7360_v61 = vadd.f32 %v3831_v55, %v3383_v53  ;;  %v3385_v44 = vadd.f32 %v3384_v16, %v6777_v54  ;;  %v1635_v55 = vadd.f32 %v8714_v47, %v6949_v19  ;;  %v8715_v53 = vld [vmem:[#allocation23_spill] sm:$0xff]  ;;  %v2519_v16 = vmax.f32 %v2078_v4, 0.0  ;;  %v8718_v4 = vld [vmem:[#allocation25_spill] sm:$0xff] }
 0x3da   :  { %v3388_v49 = vpop.f32.mrf.mxu0  ;;  %v3837_v10 = vpop.f32.mrf.mxu1  ;;  %4189 = vmatmul.mubr.f32.gmra.mxu0 %v2500_v50  ;;  %4638 = vmatmul.mubr.f32.gmra.mxu1 %v2502_v41  ;;  %v2084_v60 = vadd.f32 %v8715_v53, %v6951_v57  ;;  %v2517_v41 = vmax.f32 %v1629_v36, 0.0  ;;  %v2516_v23 = vmax.f32 %v1627_v51, 0.0  ;;  %v1633_v36 = vadd.f32 %v8717_v56, %v6969_v33 }
 0x3db   :  { %v7367_v46 = vadd.f32 %v3833_v7, %v3385_v44  ;;  %v3389_v58 = vadd.f32 %v3388_v49, %v6765_v21  ;;  %4194 = vmatprep.mubr.f32.mxu0 %v2509_v52  ;;  %4643 = vmatprep.mubr.f32.mxu1 %v2511_v32  ;;  %v2082_v49 = vadd.f32 %v8718_v4, %v6971_v37  ;;  %v8725_v4 = vld [vmem:[#allocation30_spill] sm:$0xff] }
 0x3dc   :  { %v3390_v42 = vpop.f32.mrf.mxu0  ;;  %v3839_v50 = vpop.f32.mrf.mxu1  ;;  %v2527_v29 = vmax.f32 %v2084_v60, 0.0 }
 0x3dd   :  { %v7374_v12 = vadd.f32 %v3837_v10, %v3389_v58  ;;  %v3391_v7 = vadd.f32 %v3390_v42, %v6777_v54  ;;  %v2525_v10 = vmax.f32 %v1635_v55, 0.0  ;;  %v8723_v55 = vld [vmem:[#allocation29_spill] sm:$0xff] }
 0x3de   :  { %v3394_v40 = vpop.f32.mrf.mxu0  ;;  %v3843_v44 = vpop.f32.mrf.mxu1  ;;  %4195 = vmatmul.mubr.f32.gmra.mxu0 %v2508_v26  ;;  %4644 = vmatmul.mubr.f32.gmra.mxu1 %v2510_v3  ;;  %v8719_v26 = vld [vmem:[#allocation26_spill] sm:$0xff]  ;;  %v2090_v3 = vadd.f32 %v8720_v45, %v6951_v57  ;;  %v2088_v60 = vadd.f32 %v8723_v55, %v6971_v37  ;;  %v8729_v55 = vld [vmem:[#allocation32_spill] sm:$0xff] }
 0x3df   :  { %v7377_v52 = vadd.f32 %v3839_v50, %v3391_v7  ;;  %v3395_v32 = vadd.f32 %v3394_v40, %v6765_v21  ;;  %4200 = vmatprep.mubr.f32.mxu0 %v2517_v41  ;;  %4649 = vmatprep.mubr.f32.mxu1 %v2519_v16  ;;  %v1641_v51 = vadd.f32 %v8719_v26, %v6949_v19  ;;  %v8722_v50 = vld [vmem:[#allocation28_spill] sm:$0xff]  ;;  %v8726_v26 = vld [vmem:[#allocation31_spill] sm:$0xff] }
 0x3e0   :  { %v3396_v58 = vpop.f32.mrf.mxu0  ;;  %v3845_v47 = vpop.f32.mrf.mxu1  ;;  %v1639_v41 = vadd.f32 %v8722_v50, %v6969_v33  ;;  %v2096_v45 = vadd.f32 %v8726_v26, %v6951_v57 }
 0x3e1   :  { %8716 = vst [vmem:[#allocation215_spill] sm:$0xff] %v7377_v52  ;;  %v7388_v53 = vadd.f32 %v3843_v44, %v3395_v32  ;;  %v3397_v42 = vadd.f32 %v3396_v58, %v6777_v54  ;;  %v2524_v44 = vmax.f32 %v1633_v36, 0.0  ;;  %v2526_v32 = vmax.f32 %v2082_v49, 0.0 }
 0x3e2   :  { %v3400_v16 = vpop.f32.mrf.mxu0  ;;  %v3849_v7 = vpop.f32.mrf.mxu1  ;;  %4201 = vmatmul.mubr.f32.gmra.mxu0 %v2516_v23  ;;  %4650 = vmatmul.mubr.f32.gmra.mxu1 %v2518_v5  ;;  %v1647_v58 = vadd.f32 %v8725_v4, %v6949_v19  ;;  %v2533_v5 = vmax.f32 %v1641_v51, 0.0  ;;  %v2532_v36 = vmax.f32 %v1639_v41, 0.0  ;;  %v2534_v49 = vmax.f32 %v2088_v60, 0.0  ;;  %v8732_v60 = vld [vmem:[#allocation35_spill] sm:$0xff] }
 0x3e3   :  { %8721 = vst [vmem:[#allocation220_spill] sm:$0xff] %v7388_v53  ;;  %v7395_v40 = vadd.f32 %v3845_v47, %v3397_v42  ;;  %v3401_v56 = vadd.f32 %v3400_v16, %v6765_v21  ;;  %4206 = vmatprep.mubr.f32.mxu0 %v2525_v10  ;;  %4655 = vmatprep.mubr.f32.mxu1 %v2527_v29  ;;  %v2535_v53 = vmax.f32 %v2090_v3, 0.0  ;;  %v8730_v3 = vld [vmem:[#allocation33_spill] sm:$0xff]  ;;  %v2543_v4 = vmax.f32 %v2096_v45, 0.0 }
 0x3e4   :  { %v3402_v50 = vpop.f32.mrf.mxu0  ;;  %v3851_v23 = vpop.f32.mrf.mxu1  ;;  %v1645_v51 = vadd.f32 %v8729_v55, %v6969_v33 }
 0x3e5   :  { %8724 = vst [vmem:[#allocation221_spill] sm:$0xff] %v7395_v40  ;;  %v7402_v52 = vadd.f32 %v3849_v7, %v3401_v56  ;;  %v3403_v47 = vadd.f32 %v3402_v50, %v6777_v54  ;;  %v2094_v7 = vadd.f32 %v8730_v3, %v6971_v37  ;;  %v2541_v56 = vmax.f32 %v1647_v58, 0.0  ;;  %v8735_v58 = vld [vmem:[#allocation37_spill] sm:$0xff] }
 0x3e6   :  { %v3406_v42 = vpop.f32.mrf.mxu0  ;;  %v3855_v16 = vpop.f32.mrf.mxu1  ;;  %4207 = vmatmul.mubr.f32.gmra.mxu0 %v2524_v44  ;;  %4656 = vmatmul.mubr.f32.gmra.mxu1 %v2526_v32  ;;  %v8731_v44 = vld [vmem:[#allocation34_spill] sm:$0xff]  ;;  %v2102_v32 = vadd.f32 %v8732_v60, %v6951_v57  ;;  %v2100_v45 = vadd.f32 %v8735_v58, %v6971_v37  ;;  %v8741_v58 = vld [vmem:[#allocation40_spill] sm:$0xff] }
 0x3e7   :  { %8727 = vst [vmem:[#allocation218_spill] sm:$0xff] %v7402_v52  ;;  %v7405_v10 = vadd.f32 %v3851_v23, %v3403_v47  ;;  %v3407_v29 = vadd.f32 %v3406_v42, %v6765_v21  ;;  %4212 = vmatprep.mubr.f32.mxu0 %v2533_v5  ;;  %4661 = vmatprep.mubr.f32.mxu1 %v2535_v53  ;;  %v8734_v5 = vld [vmem:[#allocation36_spill] sm:$0xff] }
 0x3e8   :  { %v3408_v26 = vpop.f32.mrf.mxu0  ;;  %v3857_v50 = vpop.f32.mrf.mxu1  ;;  %v1653_v41 = vadd.f32 %v8731_v44, %v6949_v19  ;;  %v1651_v47 = vadd.f32 %v8734_v5, %v6969_v33  ;;  %v8738_v5 = vld [vmem:[#allocation39_spill] sm:$0xff]  ;;  %v2551_v52 = vmax.f32 %v2102_v32, 0.0  ;;  %v8742_v32 = vld [vmem:[#allocation41_spill] sm:$0xff] }
 0x3e9   :  { %8728 = vst [vmem:[#allocation219_spill] sm:$0xff] %v7405_v10  ;;  %v7416_v23 = vadd.f32 %v3855_v16, %v3407_v29  ;;  %v3409_v53 = vadd.f32 %v3408_v26, %v6777_v54  ;;  %v2540_v16 = vmax.f32 %v1645_v51, 0.0  ;;  %v2542_v29 = vmax.f32 %v2094_v7, 0.0  ;;  %v8737_v26 = vld [vmem:[#allocation38_spill] sm:$0xff] }
 0x3ea   :  { %v3412_v42 = vpop.f32.mrf.mxu0  ;;  %v3861_v55 = vpop.f32.mrf.mxu1  ;;  %4213 = vmatmul.mubr.f32.gmra.mxu0 %v2532_v36  ;;  %4662 = vmatmul.mubr.f32.gmra.mxu1 %v2534_v49  ;;  %v1659_v60 = vadd.f32 %v8737_v26, %v6949_v19  ;;  %v2549_v49 = vmax.f32 %v1653_v41, 0.0  ;;  %v2548_v51 = vmax.f32 %v1651_v47, 0.0  ;;  %v2550_v7 = vmax.f32 %v2100_v45, 0.0  ;;  %v8744_v45 = vld [vmem:[#allocation43_spill] sm:$0xff] }
 0x3eb   :  { %8733 = vst [vmem:[#allocation224_spill] sm:$0xff] %v7416_v23  ;;  %v7423_v3 = vadd.f32 %v3857_v50, %v3409_v53  ;;  %v3413_v44 = vadd.f32 %v3412_v42, %v6765_v21  ;;  %4218 = vmatprep.mubr.f32.mxu0 %v2541_v56  ;;  %4667 = vmatprep.mubr.f32.mxu1 %v2543_v4 }
 0x3ec   :  { %v2108_v23 = vadd.f32 %v8738_v5, %v6951_v57  ;;  %v3414_v10 = vpop.f32.mrf.mxu0  ;;  %v3863_v36 = vpop.f32.mrf.mxu1  ;;  %v1657_v41 = vadd.f32 %v8741_v58, %v6969_v33 }
 0x3ed   :  { %8736 = vst [vmem:[#allocation225_spill] sm:$0xff] %v7423_v3  ;;  %v7430_v40 = vadd.f32 %v3861_v55, %v3413_v44  ;;  %v3415_v50 = vadd.f32 %v3414_v10, %v6777_v54  ;;  %v2106_v55 = vadd.f32 %v8742_v32, %v6971_v37  ;;  %v2557_v44 = vmax.f32 %v1659_v60, 0.0 }
 0x3ee   :  { %v3418_v53 = vpop.f32.mrf.mxu0  ;;  %v3867_v42 = vpop.f32.mrf.mxu1  ;;  %4219 = vmatmul.mubr.f32.gmra.mxu0 %v2540_v16  ;;  %4668 = vmatmul.mubr.f32.gmra.mxu1 %v2542_v29  ;;  %v2559_v10 = vmax.f32 %v2108_v23, 0.0  ;;  %v8743_v16 = vld [vmem:[#allocation42_spill] sm:$0xff]  ;;  %v2114_v29 = vadd.f32 %v8744_v45, %v6951_v57  ;;  %v8747_v23 = vld [vmem:[#allocation45_spill] sm:$0xff] }
 0x3ef   :  { %8739 = vst [vmem:[#allocation222_spill] sm:$0xff] %v7430_v40  ;;  %v7433_v56 = vadd.f32 %v3863_v36, %v3415_v50  ;;  %v3419_v4 = vadd.f32 %v3418_v53, %v6765_v21  ;;  %4224 = vmatprep.mubr.f32.mxu0 %v2549_v49  ;;  %4673 = vmatprep.mubr.f32.mxu1 %v2551_v52  ;;  %v8746_v49 = vld [vmem:[#allocation44_spill] sm:$0xff] }
 0x3f0   :  { %v3420_v26 = vpop.f32.mrf.mxu0  ;;  %v3869_v5 = vpop.f32.mrf.mxu1  ;;  %v1665_v47 = vadd.f32 %v8743_v16, %v6949_v19  ;;  %v1663_v50 = vadd.f32 %v8746_v49, %v6969_v33  ;;  %v2112_v60 = vadd.f32 %v8747_v23, %v6971_v37  ;;  %v8750_v49 = vld [vmem:[#allocation47_spill] sm:$0xff]  ;;  %v2567_v40 = vmax.f32 %v2114_v29, 0.0  ;;  %v8753_v23 = vld [vmem:[#allocation48_spill] sm:$0xff]  ;;  %v8754_v29 = vld [vmem:[#allocation49_spill] sm:$0xff] }
 0x3f1   :  { %8740 = vst [vmem:[#allocation223_spill] sm:$0xff] %v7433_v56  ;;  %v7444_v36 = vadd.f32 %v3867_v42, %v3419_v4  ;;  %v3421_v52 = vadd.f32 %v3420_v26, %v6777_v54  ;;  %v2556_v42 = vmax.f32 %v1657_v41, 0.0  ;;  %v2558_v4 = vmax.f32 %v2106_v55, 0.0  ;;  %v8749_v26 = vld [vmem:[#allocation46_spill] sm:$0xff] }
 0x3f2   :  { %v3424_v53 = vpop.f32.mrf.mxu0  ;;  %v3873_v58 = vpop.f32.mrf.mxu1  ;;  %4225 = vmatmul.mubr.f32.gmra.mxu0 %v2548_v51  ;;  %4674 = vmatmul.mubr.f32.gmra.mxu1 %v2550_v7  ;;  %v1671_v45 = vadd.f32 %v8749_v26, %v6949_v19  ;;  %v2565_v7 = vmax.f32 %v1665_v47, 0.0  ;;  %v2564_v41 = vmax.f32 %v1663_v50, 0.0  ;;  %v2566_v55 = vmax.f32 %v2112_v60, 0.0  ;;  %v8756_v60 = vld [vmem:[#allocation51_spill] sm:$0xff] }
 0x3f3   :  { %8745 = vst [vmem:[#allocation228_spill] sm:$0xff] %v7444_v36  ;;  %v7451_v32 = vadd.f32 %v3869_v5, %v3421_v52  ;;  %v3425_v16 = vadd.f32 %v3424_v53, %v6765_v21  ;;  %4230 = vmatprep.mubr.f32.mxu0 %v2557_v44  ;;  %4679 = vmatprep.mubr.f32.mxu1 %v2559_v10 }
 0x3f4   :  { %v2120_v36 = vadd.f32 %v8750_v49, %v6951_v57  ;;  %v3426_v56 = vpop.f32.mrf.mxu0  ;;  %v3875_v51 = vpop.f32.mrf.mxu1  ;;  %v1669_v47 = vadd.f32 %v8753_v23, %v6969_v33 }
 0x3f5   :  { %8748 = vst [vmem:[#allocation229_spill] sm:$0xff] %v7451_v32  ;;  %v7458_v3 = vadd.f32 %v3873_v58, %v3425_v16  ;;  %v3427_v5 = vadd.f32 %v3426_v56, %v6777_v54  ;;  %v2118_v58 = vadd.f32 %v8754_v29, %v6971_v37  ;;  %v2573_v16 = vmax.f32 %v1671_v45, 0.0 }
 0x3f6   :  { %v3430_v52 = vpop.f32.mrf.mxu0  ;;  %v3879_v53 = vpop.f32.mrf.mxu1  ;;  %4231 = vmatmul.mubr.f32.gmra.mxu0 %v2556_v42  ;;  %4680 = vmatmul.mubr.f32.gmra.mxu1 %v2558_v4  ;;  %v2575_v56 = vmax.f32 %v2120_v36, 0.0  ;;  %v8755_v42 = vld [vmem:[#allocation50_spill] sm:$0xff]  ;;  %v2126_v4 = vadd.f32 %v8756_v60, %v6951_v57  ;;  %v8759_v36 = vld [vmem:[#allocation53_spill] sm:$0xff] }
 0x3f7   :  { %8751 = vst [vmem:[#allocation226_spill] sm:$0xff] %v7458_v3  ;;  %v7461_v44 = vadd.f32 %v3875_v51, %v3427_v5  ;;  %v3431_v10 = vadd.f32 %v3430_v52, %v6765_v21  ;;  %4236 = vmatprep.mubr.f32.mxu0 %v2565_v7  ;;  %4685 = vmatprep.mubr.f32.mxu1 %v2567_v40  ;;  %v8758_v7 = vld [vmem:[#allocation52_spill] sm:$0xff] }
 0x3f8   :  { %v3432_v26 = vpop.f32.mrf.mxu0  ;;  %v3881_v49 = vpop.f32.mrf.mxu1  ;;  %v1677_v50 = vadd.f32 %v8755_v42, %v6949_v19  ;;  %v1675_v5 = vadd.f32 %v8758_v7, %v6969_v33  ;;  %v2124_v45 = vadd.f32 %v8759_v36, %v6971_v37  ;;  %v8762_v7 = vld [vmem:[#allocation55_spill] sm:$0xff]  ;;  %v2583_v3 = vmax.f32 %v2126_v4, 0.0  ;;  %v8765_v36 = vld [vmem:[#allocation56_spill] sm:$0xff]  ;;  %v8766_v4 = vld [vmem:[#allocation57_spill] sm:$0xff] }
 0x3f9   :  { %8752 = vst [vmem:[#allocation227_spill] sm:$0xff] %v7461_v44  ;;  %v7472_v51 = vadd.f32 %v3879_v53, %v3431_v10  ;;  %v3433_v40 = vadd.f32 %v3432_v26, %v6777_v54  ;;  %v2572_v53 = vmax.f32 %v1669_v47, 0.0  ;;  %v2574_v10 = vmax.f32 %v2118_v58, 0.0  ;;  %v8761_v26 = vld [vmem:[#allocation54_spill] sm:$0xff] }
 0x3fa   :  { %v3436_v52 = vpop.f32.mrf.mxu0  ;;  %v3885_v23 = vpop.f32.mrf.mxu1  ;;  %4237 = vmatmul.mubr.f32.gmra.mxu0 %v2564_v41  ;;  %4686 = vmatmul.mubr.f32.gmra.mxu1 %v2566_v55  ;;  %v1683_v60 = vadd.f32 %v8761_v26, %v6949_v19  ;;  %v2581_v55 = vmax.f32 %v1677_v50, 0.0  ;;  %v2580_v47 = vmax.f32 %v1675_v5, 0.0  ;;  %v2582_v58 = vmax.f32 %v2124_v45, 0.0  ;;  %v8768_v45 = vld [vmem:[#allocation59_spill] sm:$0xff] }
 0x3fb   :  { %8757 = vst [vmem:[#allocation232_spill] sm:$0xff] %v7472_v51  ;;  %v7479_v29 = vadd.f32 %v3881_v49, %v3433_v40  ;;  %v3437_v42 = vadd.f32 %v3436_v52, %v6765_v21  ;;  %4242 = vmatprep.mubr.f32.mxu0 %v2573_v16  ;;  %4691 = vmatprep.mubr.f32.mxu1 %v2575_v56 }
 0x3fc   :  { %v2132_v51 = vadd.f32 %v8762_v7, %v6951_v57  ;;  %v3438_v44 = vpop.f32.mrf.mxu0  ;;  %v3887_v41 = vpop.f32.mrf.mxu1  ;;  %v1681_v50 = vadd.f32 %v8765_v36, %v6969_v33 }
 0x3fd   :  { %8760 = vst [vmem:[#allocation233_spill] sm:$0xff] %v7479_v29  ;;  %v7486_v32 = vadd.f32 %v3885_v23, %v3437_v42  ;;  %v3439_v49 = vadd.f32 %v3438_v44, %v6777_v54  ;;  %v2130_v23 = vadd.f32 %v8766_v4, %v6971_v37  ;;  %v2589_v42 = vmax.f32 %v1683_v60, 0.0 }
 0x3fe   :  { %v3442_v40 = vpop.f32.mrf.mxu0  ;;  %v3891_v52 = vpop.f32.mrf.mxu1  ;;  %4243 = vmatmul.mubr.f32.gmra.mxu0 %v2572_v53  ;;  %4692 = vmatmul.mubr.f32.gmra.mxu1 %v2574_v10  ;;  %v2591_v44 = vmax.f32 %v2132_v51, 0.0  ;;  %v8767_v53 = vld [vmem:[#allocation58_spill] sm:$0xff]  ;;  %v2138_v10 = vadd.f32 %v8768_v45, %v6951_v57  ;;  %v8771_v51 = vld [vmem:[#allocation61_spill] sm:$0xff] }
 0x3ff   :  { %8763 = vst [vmem:[#allocation230_spill] sm:$0xff] %v7486_v32  ;;  %v7489_v16 = vadd.f32 %v3887_v41, %v3439_v49  ;;  %v3443_v56 = vadd.f32 %v3442_v40, %v6765_v21  ;;  %4248 = vmatprep.mubr.f32.mxu0 %v2581_v55  ;;  %4697 = vmatprep.mubr.f32.mxu1 %v2583_v3  ;;  %v8770_v55 = vld [vmem:[#allocation60_spill] sm:$0xff] }
 0x400   :  { %v3444_v26 = vpop.f32.mrf.mxu0  ;;  %v3893_v7 = vpop.f32.mrf.mxu1  ;;  %v1689_v5 = vadd.f32 %v8767_v53, %v6949_v19  ;;  %v1687_v49 = vadd.f32 %v8770_v55, %v6969_v33  ;;  %v2136_v60 = vadd.f32 %v8771_v51, %v6971_v37  ;;  %v8774_v55 = vld [vmem:[#allocation63_spill] sm:$0xff]  ;;  %v2599_v32 = vmax.f32 %v2138_v10, 0.0  ;;  %v8777_v51 = vld [vmem:[#allocation64_spill] sm:$0xff]  ;;  %v8778_v10 = vld [vmem:[#allocation65_spill] sm:$0xff] }
 0x401   :  { %8764 = vst [vmem:[#allocation231_spill] sm:$0xff] %v7489_v16  ;;  %v7500_v41 = vadd.f32 %v3891_v52, %v3443_v56  ;;  %v3445_v3 = vadd.f32 %v3444_v26, %v6777_v54  ;;  %v2588_v52 = vmax.f32 %v1681_v50, 0.0  ;;  %v2590_v56 = vmax.f32 %v2130_v23, 0.0  ;;  %v8773_v26 = vld [vmem:[#allocation62_spill] sm:$0xff] }
 0x402   :  { %v3448_v40 = vpop.f32.mrf.mxu0  ;;  %v3897_v36 = vpop.f32.mrf.mxu1  ;;  %4249 = vmatmul.mubr.f32.gmra.mxu0 %v2580_v47  ;;  %4698 = vmatmul.mubr.f32.gmra.mxu1 %v2582_v58  ;;  %v1695_v45 = vadd.f32 %v8773_v26, %v6949_v19  ;;  %v2597_v58 = vmax.f32 %v1689_v5, 0.0  ;;  %v2596_v50 = vmax.f32 %v1687_v49, 0.0  ;;  %v2598_v23 = vmax.f32 %v2136_v60, 0.0  ;;  %v8780_v60 = vld [vmem:[#allocation67_spill] sm:$0xff] }
 0x403   :  { %8769 = vst [vmem:[#allocation236_spill] sm:$0xff] %v7500_v41  ;;  %v7507_v4 = vadd.f32 %v3893_v7, %v3445_v3  ;;  %v3449_v53 = vadd.f32 %v3448_v40, %v6765_v21  ;;  %4254 = vmatprep.mubr.f32.mxu0 %v2589_v42  ;;  %4703 = vmatprep.mubr.f32.mxu1 %v2591_v44 }
 0x404   :  { %v2144_v41 = vadd.f32 %v8774_v55, %v6951_v57  ;;  %v3450_v16 = vpop.f32.mrf.mxu0  ;;  %v3899_v47 = vpop.f32.mrf.mxu1  ;;  %v1693_v5 = vadd.f32 %v8777_v51, %v6969_v33 }
 0x405   :  { %8772 = vst [vmem:[#allocation237_spill] sm:$0xff] %v7507_v4  ;;  %v7514_v29 = vadd.f32 %v3897_v36, %v3449_v53  ;;  %v3451_v7 = vadd.f32 %v3450_v16, %v6777_v54  ;;  %v2142_v36 = vadd.f32 %v8778_v10, %v6971_v37  ;;  %v2605_v53 = vmax.f32 %v1695_v45, 0.0 }
 0x406   :  { %v3454_v3 = vpop.f32.mrf.mxu0  ;;  %v3903_v40 = vpop.f32.mrf.mxu1  ;;  %4255 = vmatmul.mubr.f32.gmra.mxu0 %v2588_v52  ;;  %4704 = vmatmul.mubr.f32.gmra.mxu1 %v2590_v56  ;;  %v2607_v16 = vmax.f32 %v2144_v41, 0.0  ;;  %v8779_v52 = vld [vmem:[#allocation66_spill] sm:$0xff]  ;;  %v2150_v56 = vadd.f32 %v8780_v60, %v6951_v57  ;;  %v8783_v41 = vld [vmem:[#allocation69_spill] sm:$0xff] }
 0x407   :  { %8775 = vst [vmem:[#allocation234_spill] sm:$0xff] %v7514_v29  ;;  %v7517_v42 = vadd.f32 %v3899_v47, %v3451_v7  ;;  %v3455_v44 = vadd.f32 %v3454_v3, %v6765_v21  ;;  %4260 = vmatprep.mubr.f32.mxu0 %v2597_v58  ;;  %4709 = vmatprep.mubr.f32.mxu1 %v2599_v32  ;;  %v8782_v58 = vld [vmem:[#allocation68_spill] sm:$0xff] }
 0x408   :  { %v3456_v26 = vpop.f32.mrf.mxu0  ;;  %v3905_v55 = vpop.f32.mrf.mxu1  ;;  %v1701_v49 = vadd.f32 %v8779_v52, %v6949_v19  ;;  %v1699_v7 = vadd.f32 %v8782_v58, %v6969_v33  ;;  %v2148_v45 = vadd.f32 %v8783_v41, %v6971_v37  ;;  %v8786_v58 = vld [vmem:[#allocation71_spill] sm:$0xff]  ;;  %v2615_v29 = vmax.f32 %v2150_v56, 0.0  ;;  %v8789_v41 = vld [vmem:[#allocation72_spill] sm:$0xff]  ;;  %v8790_v56 = vld [vmem:[#allocation73_spill] sm:$0xff] }
 0x409   :  { %8776 = vst [vmem:[#allocation235_spill] sm:$0xff] %v7517_v42  ;;  %v7528_v47 = vadd.f32 %v3903_v40, %v3455_v44  ;;  %v3457_v32 = vadd.f32 %v3456_v26, %v6777_v54  ;;  %v2604_v40 = vmax.f32 %v1693_v5, 0.0  ;;  %v2606_v44 = vmax.f32 %v2142_v36, 0.0  ;;  %v8785_v26 = vld [vmem:[#allocation70_spill] sm:$0xff] }
 0x40a   :  { %v3460_v3 = vpop.f32.mrf.mxu0  ;;  %v3909_v51 = vpop.f32.mrf.mxu1  ;;  %4261 = vmatmul.mubr.f32.gmra.mxu0 %v2596_v50  ;;  %4710 = vmatmul.mubr.f32.gmra.mxu1 %v2598_v23  ;;  %v1707_v60 = vadd.f32 %v8785_v26, %v6949_v19  ;;  %v2613_v23 = vmax.f32 %v1701_v49, 0.0  ;;  %v2612_v5 = vmax.f32 %v1699_v7, 0.0  ;;  %v2614_v36 = vmax.f32 %v2148_v45, 0.0  ;;  %v8792_v45 = vld [vmem:[#allocation75_spill] sm:$0xff] }
 0x40b   :  { %8781 = vst [vmem:[#allocation240_spill] sm:$0xff] %v7528_v47  ;;  %v7535_v10 = vadd.f32 %v3905_v55, %v3457_v32  ;;  %v3461_v52 = vadd.f32 %v3460_v3, %v6765_v21  ;;  %4266 = vmatprep.mubr.f32.mxu0 %v2605_v53  ;;  %4715 = vmatprep.mubr.f32.mxu1 %v2607_v16 }
 0x40c   :  { %v2156_v47 = vadd.f32 %v8786_v58, %v6951_v57  ;;  %v3462_v42 = vpop.f32.mrf.mxu0  ;;  %v3911_v50 = vpop.f32.mrf.mxu1  ;;  %v1705_v49 = vadd.f32 %v8789_v41, %v6969_v33 }
 0x40d   :  { %8784 = vst [vmem:[#allocation241_spill] sm:$0xff] %v7535_v10  ;;  %v7542_v4 = vadd.f32 %v3909_v51, %v3461_v52  ;;  %v3463_v55 = vadd.f32 %v3462_v42, %v6777_v54  ;;  %v2154_v51 = vadd.f32 %v8790_v56, %v6971_v37  ;;  %v2621_v52 = vmax.f32 %v1707_v60, 0.0 }
 0x40e   :  { %v3466_v32 = vpop.f32.mrf.mxu0  ;;  %v3915_v3 = vpop.f32.mrf.mxu1  ;;  %4267 = vmatmul.mubr.f32.gmra.mxu0 %v2604_v40  ;;  %4716 = vmatmul.mubr.f32.gmra.mxu1 %v2606_v44  ;;  %v2623_v42 = vmax.f32 %v2156_v47, 0.0  ;;  %v8791_v40 = vld [vmem:[#allocation74_spill] sm:$0xff]  ;;  %v2162_v44 = vadd.f32 %v8792_v45, %v6951_v57  ;;  %v8795_v47 = vld [vmem:[#allocation77_spill] sm:$0xff] }
 0x40f   :  { %8787 = vst [vmem:[#allocation238_spill] sm:$0xff] %v7542_v4  ;;  %v7545_v53 = vadd.f32 %v3911_v50, %v3463_v55  ;;  %v3467_v16 = vadd.f32 %v3466_v32, %v6765_v21  ;;  %4272 = vmatprep.mubr.f32.mxu0 %v2613_v23  ;;  %4721 = vmatprep.mubr.f32.mxu1 %v2615_v29  ;;  %v8794_v23 = vld [vmem:[#allocation76_spill] sm:$0xff] }
 0x410   :  { %v3468_v26 = vpop.f32.mrf.mxu0  ;;  %v3917_v58 = vpop.f32.mrf.mxu1  ;;  %v1713_v7 = vadd.f32 %v8791_v40, %v6949_v19  ;;  %v1711_v55 = vadd.f32 %v8794_v23, %v6969_v33  ;;  %v2160_v60 = vadd.f32 %v8795_v47, %v6971_v37  ;;  %v8798_v23 = vld [vmem:[#allocation79_spill] sm:$0xff]  ;;  %v2631_v4 = vmax.f32 %v2162_v44, 0.0  ;;  %v8801_v47 = vld [vmem:[#allocation80_spill] sm:$0xff]  ;;  %v8802_v44 = vld [vmem:[#allocation81_spill] sm:$0xff] }
 0x411   :  { %8788 = vst [vmem:[#allocation239_spill] sm:$0xff] %v7545_v53  ;;  %v7556_v50 = vadd.f32 %v3915_v3, %v3467_v16  ;;  %v3469_v29 = vadd.f32 %v3468_v26, %v6777_v54  ;;  %v2620_v3 = vmax.f32 %v1705_v49, 0.0  ;;  %v2622_v16 = vmax.f32 %v2154_v51, 0.0  ;;  %v8797_v26 = vld [vmem:[#allocation78_spill] sm:$0xff] }
 0x412   :  { %v3472_v32 = vpop.f32.mrf.mxu0  ;;  %v3921_v41 = vpop.f32.mrf.mxu1  ;;  %4273 = vmatmul.mubr.f32.gmra.mxu0 %v2612_v5  ;;  %4722 = vmatmul.mubr.f32.gmra.mxu1 %v2614_v36  ;;  %v1719_v45 = vadd.f32 %v8797_v26, %v6949_v19  ;;  %v2629_v36 = vmax.f32 %v1713_v7, 0.0  ;;  %v2628_v49 = vmax.f32 %v1711_v55, 0.0  ;;  %v2630_v51 = vmax.f32 %v2160_v60, 0.0  ;;  %v8804_v60 = vld [vmem:[#allocation83_spill] sm:$0xff] }
 0x413   :  { %8793 = vst [vmem:[#allocation244_spill] sm:$0xff] %v7556_v50  ;;  %v7563_v56 = vadd.f32 %v3917_v58, %v3469_v29  ;;  %v3473_v40 = vadd.f32 %v3472_v32, %v6765_v21  ;;  %4278 = vmatprep.mubr.f32.mxu0 %v2621_v52  ;;  %4727 = vmatprep.mubr.f32.mxu1 %v2623_v42 }
 0x414   :  { %v2168_v50 = vadd.f32 %v8798_v23, %v6951_v57  ;;  %v3474_v53 = vpop.f32.mrf.mxu0  ;;  %v3923_v5 = vpop.f32.mrf.mxu1  ;;  %v1717_v7 = vadd.f32 %v8801_v47, %v6969_v33 }
 0x415   :  { %8796 = vst [vmem:[#allocation245_spill] sm:$0xff] %v7563_v56  ;;  %v7570_v10 = vadd.f32 %v3921_v41, %v3473_v40  ;;  %v3475_v58 = vadd.f32 %v3474_v53, %v6777_v54  ;;  %v2166_v41 = vadd.f32 %v8802_v44, %v6971_v37  ;;  %v2637_v40 = vmax.f32 %v1719_v45, 0.0 }
 0x416   :  { %v3478_v29 = vpop.f32.mrf.mxu0  ;;  %v3927_v32 = vpop.f32.mrf.mxu1  ;;  %4279 = vmatmul.mubr.f32.gmra.mxu0 %v2620_v3  ;;  %4728 = vmatmul.mubr.f32.gmra.mxu1 %v2622_v16  ;;  %v2639_v53 = vmax.f32 %v2168_v50, 0.0  ;;  %v8803_v3 = vld [vmem:[#allocation82_spill] sm:$0xff]  ;;  %v2174_v16 = vadd.f32 %v8804_v60, %v6951_v57  ;;  %v8807_v50 = vld [vmem:[#allocation85_spill] sm:$0xff] }
 0x417   :  { %8799 = vst [vmem:[#allocation242_spill] sm:$0xff] %v7570_v10  ;;  %v7573_v52 = vadd.f32 %v3923_v5, %v3475_v58  ;;  %v3479_v42 = vadd.f32 %v3478_v29, %v6765_v21  ;;  %4284 = vmatprep.mubr.f32.mxu0 %v2629_v36  ;;  %4733 = vmatprep.mubr.f32.mxu1 %v2631_v4  ;;  %v8806_v36 = vld [vmem:[#allocation84_spill] sm:$0xff] }
 0x418   :  { %v3480_v26 = vpop.f32.mrf.mxu0  ;;  %v3929_v23 = vpop.f32.mrf.mxu1  ;;  %v1725_v55 = vadd.f32 %v8803_v3, %v6949_v19  ;;  %v1723_v58 = vadd.f32 %v8806_v36, %v6969_v33  ;;  %v2172_v45 = vadd.f32 %v8807_v50, %v6971_v37  ;;  %v8810_v36 = vld [vmem:[#allocation87_spill] sm:$0xff]  ;;  %v2647_v10 = vmax.f32 %v2174_v16, 0.0  ;;  %v8813_v50 = vld [vmem:[#allocation88_spill] sm:$0xff]  ;;  %v8814_v16 = vld [vmem:[#allocation89_spill] sm:$0xff] }
 0x419   :  { %8800 = vst [vmem:[#allocation243_spill] sm:$0xff] %v7573_v52  ;;  %v7584_v5 = vadd.f32 %v3927_v32, %v3479_v42  ;;  %v3481_v4 = vadd.f32 %v3480_v26, %v6777_v54  ;;  %v2636_v32 = vmax.f32 %v1717_v7, 0.0  ;;  %v2638_v42 = vmax.f32 %v2166_v41, 0.0  ;;  %v8809_v26 = vld [vmem:[#allocation86_spill] sm:$0xff] }
 0x41a   :  { %v3484_v29 = vpop.f32.mrf.mxu0  ;;  %v3933_v47 = vpop.f32.mrf.mxu1  ;;  %4285 = vmatmul.mubr.f32.gmra.mxu0 %v2628_v49  ;;  %4734 = vmatmul.mubr.f32.gmra.mxu1 %v2630_v51  ;;  %v1731_v60 = vadd.f32 %v8809_v26, %v6949_v19  ;;  %v2645_v51 = vmax.f32 %v1725_v55, 0.0  ;;  %v2644_v7 = vmax.f32 %v1723_v58, 0.0  ;;  %v2646_v41 = vmax.f32 %v2172_v45, 0.0  ;;  %v8816_v45 = vld [vmem:[#allocation91_spill] sm:$0xff] }
 0x41b   :  { %8805 = vst [vmem:[#allocation248_spill] sm:$0xff] %v7584_v5  ;;  %v7591_v44 = vadd.f32 %v3929_v23, %v3481_v4  ;;  %v3485_v3 = vadd.f32 %v3484_v29, %v6765_v21  ;;  %4290 = vmatprep.mubr.f32.mxu0 %v2637_v40  ;;  %4739 = vmatprep.mubr.f32.mxu1 %v2639_v53 }
 0x41c   :  { %v2180_v5 = vadd.f32 %v8810_v36, %v6951_v57  ;;  %v3486_v52 = vpop.f32.mrf.mxu0  ;;  %v3935_v49 = vpop.f32.mrf.mxu1  ;;  %v1729_v55 = vadd.f32 %v8813_v50, %v6969_v33 }
 0x41d   :  { %8808 = vst [vmem:[#allocation249_spill] sm:$0xff] %v7591_v44  ;;  %v7598_v56 = vadd.f32 %v3933_v47, %v3485_v3  ;;  %v3487_v23 = vadd.f32 %v3486_v52, %v6777_v54  ;;  %v2178_v47 = vadd.f32 %v8814_v16, %v6971_v37  ;;  %v2653_v3 = vmax.f32 %v1731_v60, 0.0 }
 0x41e   :  { %v3490_v4 = vpop.f32.mrf.mxu0  ;;  %v3939_v29 = vpop.f32.mrf.mxu1  ;;  %4291 = vmatmul.mubr.f32.gmra.mxu0 %v2636_v32  ;;  %4740 = vmatmul.mubr.f32.gmra.mxu1 %v2638_v42  ;;  %v2655_v52 = vmax.f32 %v2180_v5, 0.0  ;;  %v8815_v32 = vld [vmem:[#allocation90_spill] sm:$0xff]  ;;  %v2186_v42 = vadd.f32 %v8816_v45, %v6951_v57  ;;  %v8819_v5 = vld [vmem:[#allocation93_spill] sm:$0xff] }
 0x41f   :  { %8811 = vst [vmem:[#allocation246_spill] sm:$0xff] %v7598_v56  ;;  %v7601_v40 = vadd.f32 %v3935_v49, %v3487_v23  ;;  %v3491_v53 = vadd.f32 %v3490_v4, %v6765_v21  ;;  %4296 = vmatprep.mubr.f32.mxu0 %v2645_v51  ;;  %4745 = vmatprep.mubr.f32.mxu1 %v2647_v10  ;;  %v8818_v51 = vld [vmem:[#allocation92_spill] sm:$0xff] }
 0x420   :  { %v3492_v26 = vpop.f32.mrf.mxu0  ;;  %v3941_v36 = vpop.f32.mrf.mxu1  ;;  %v1737_v58 = vadd.f32 %v8815_v32, %v6949_v19  ;;  %v1735_v23 = vadd.f32 %v8818_v51, %v6969_v33  ;;  %v2184_v60 = vadd.f32 %v8819_v5, %v6971_v37  ;;  %v8822_v51 = vld [vmem:[#allocation95_spill] sm:$0xff]  ;;  %v2663_v56 = vmax.f32 %v2186_v42, 0.0  ;;  %v8825_v5 = vld [vmem:[#allocation96_spill] sm:$0xff]  ;;  %v8826_v42 = vld [vmem:[#allocation97_spill] sm:$0xff] }
 0x421   :  { %8812 = vst [vmem:[#allocation247_spill] sm:$0xff] %v7601_v40  ;;  %v7612_v49 = vadd.f32 %v3939_v29, %v3491_v53  ;;  %v3493_v10 = vadd.f32 %v3492_v26, %v6777_v54  ;;  %v2652_v29 = vmax.f32 %v1729_v55, 0.0  ;;  %v2654_v53 = vmax.f32 %v2178_v47, 0.0  ;;  %v8821_v26 = vld [vmem:[#allocation94_spill] sm:$0xff] }
 0x422   :  { %v3496_v4 = vpop.f32.mrf.mxu0  ;;  %v3945_v50 = vpop.f32.mrf.mxu1  ;;  %4297 = vmatmul.mubr.f32.gmra.mxu0 %v2644_v7  ;;  %4746 = vmatmul.mubr.f32.gmra.mxu1 %v2646_v41  ;;  %v1743_v45 = vadd.f32 %v8821_v26, %v6949_v19  ;;  %v2661_v41 = vmax.f32 %v1737_v58, 0.0  ;;  %v2660_v55 = vmax.f32 %v1735_v23, 0.0  ;;  %v2662_v47 = vmax.f32 %v2184_v60, 0.0  ;;  %v8828_v60 = vld [vmem:[#allocation99_spill] sm:$0xff] }
 0x423   :  { %8817 = vst [vmem:[#allocation252_spill] sm:$0xff] %v7612_v49  ;;  %v7619_v16 = vadd.f32 %v3941_v36, %v3493_v10  ;;  %v3497_v32 = vadd.f32 %v3496_v4, %v6765_v21  ;;  %4302 = vmatprep.mubr.f32.mxu0 %v2653_v3  ;;  %4751 = vmatprep.mubr.f32.mxu1 %v2655_v52 }
 0x424   :  { %v2192_v49 = vadd.f32 %v8822_v51, %v6951_v57  ;;  %v3498_v40 = vpop.f32.mrf.mxu0  ;;  %v3947_v7 = vpop.f32.mrf.mxu1  ;;  %v1741_v58 = vadd.f32 %v8825_v5, %v6969_v33 }
 0x425   :  { %8820 = vst [vmem:[#allocation253_spill] sm:$0xff] %v7619_v16  ;;  %v7626_v44 = vadd.f32 %v3945_v50, %v3497_v32  ;;  %v3499_v36 = vadd.f32 %v3498_v40, %v6777_v54  ;;  %v2190_v50 = vadd.f32 %v8826_v42, %v6971_v37  ;;  %v2669_v32 = vmax.f32 %v1743_v45, 0.0 }
 0x426   :  { %v3502_v10 = vpop.f32.mrf.mxu0  ;;  %v3951_v4 = vpop.f32.mrf.mxu1  ;;  %4303 = vmatmul.mubr.f32.gmra.mxu0 %v2652_v29  ;;  %4752 = vmatmul.mubr.f32.gmra.mxu1 %v2654_v53  ;;  %v2671_v40 = vmax.f32 %v2192_v49, 0.0  ;;  %v8827_v29 = vld [vmem:[#allocation98_spill] sm:$0xff]  ;;  %v2198_v53 = vadd.f32 %v8828_v60, %v6951_v57  ;;  %v8831_v49 = vld [vmem:[#allocation101_spill] sm:$0xff] }
 0x427   :  { %8823 = vst [vmem:[#allocation250_spill] sm:$0xff] %v7626_v44  ;;  %v7629_v3 = vadd.f32 %v3947_v7, %v3499_v36  ;;  %v3503_v52 = vadd.f32 %v3502_v10, %v6765_v21  ;;  %4308 = vmatprep.mubr.f32.mxu0 %v2661_v41  ;;  %4757 = vmatprep.mubr.f32.mxu1 %v2663_v56  ;;  %v8830_v41 = vld [vmem:[#allocation100_spill] sm:$0xff] }
 0x428   :  { %v3504_v26 = vpop.f32.mrf.mxu0  ;;  %v3953_v51 = vpop.f32.mrf.mxu1  ;;  %v1749_v23 = vadd.f32 %v8827_v29, %v6949_v19  ;;  %v1747_v36 = vadd.f32 %v8830_v41, %v6969_v33  ;;  %v2196_v45 = vadd.f32 %v8831_v49, %v6971_v37  ;;  %v8834_v41 = vld [vmem:[#allocation103_spill] sm:$0xff]  ;;  %v2679_v44 = vmax.f32 %v2198_v53, 0.0  ;;  %v8837_v49 = vld [vmem:[#allocation104_spill] sm:$0xff]  ;;  %v8838_v53 = vld [vmem:[#allocation105_spill] sm:$0xff] }
 0x429   :  { %8824 = vst [vmem:[#allocation251_spill] sm:$0xff] %v7629_v3  ;;  %v7640_v7 = vadd.f32 %v3951_v4, %v3503_v52  ;;  %v3505_v56 = vadd.f32 %v3504_v26, %v6777_v54  ;;  %v2668_v4 = vmax.f32 %v1741_v58, 0.0  ;;  %v2670_v52 = vmax.f32 %v2190_v50, 0.0  ;;  %v8833_v26 = vld [vmem:[#allocation102_spill] sm:$0xff] }
 0x42a   :  { %v3508_v10 = vpop.f32.mrf.mxu0  ;;  %v3957_v5 = vpop.f32.mrf.mxu1  ;;  %4309 = vmatmul.mubr.f32.gmra.mxu0 %v2660_v55  ;;  %4758 = vmatmul.mubr.f32.gmra.mxu1 %v2662_v47  ;;  %v1755_v60 = vadd.f32 %v8833_v26, %v6949_v19  ;;  %v2677_v47 = vmax.f32 %v1749_v23, 0.0  ;;  %v2676_v58 = vmax.f32 %v1747_v36, 0.0  ;;  %v2678_v50 = vmax.f32 %v2196_v45, 0.0  ;;  %v8840_v45 = vld [vmem:[#allocation107_spill] sm:$0xff] }
 0x42b   :  { %8829 = vst [vmem:[#allocation256_spill] sm:$0xff] %v7640_v7  ;;  %v7647_v42 = vadd.f32 %v3953_v51, %v3505_v56  ;;  %v3509_v29 = vadd.f32 %v3508_v10, %v6765_v21  ;;  %4314 = vmatprep.mubr.f32.mxu0 %v2669_v32  ;;  %4763 = vmatprep.mubr.f32.mxu1 %v2671_v40 }
 0x42c   :  { %v2204_v7 = vadd.f32 %v8834_v41, %v6951_v57  ;;  %v3510_v3 = vpop.f32.mrf.mxu0  ;;  %v3959_v55 = vpop.f32.mrf.mxu1  ;;  %v1753_v23 = vadd.f32 %v8837_v49, %v6969_v33 }
 0x42d   :  { %8832 = vst [vmem:[#allocation257_spill] sm:$0xff] %v7647_v42  ;;  %v7654_v16 = vadd.f32 %v3957_v5, %v3509_v29  ;;  %v3511_v51 = vadd.f32 %v3510_v3, %v6777_v54  ;;  %v2202_v5 = vadd.f32 %v8838_v53, %v6971_v37  ;;  %v2685_v29 = vmax.f32 %v1755_v60, 0.0 }
 0x42e   :  { %v3514_v56 = vpop.f32.mrf.mxu0  ;;  %v3963_v10 = vpop.f32.mrf.mxu1  ;;  %4315 = vmatmul.mubr.f32.gmra.mxu0 %v2668_v4  ;;  %4764 = vmatmul.mubr.f32.gmra.mxu1 %v2670_v52  ;;  %v2687_v3 = vmax.f32 %v2204_v7, 0.0  ;;  %v8839_v4 = vld [vmem:[#allocation106_spill] sm:$0xff]  ;;  %v2210_v52 = vadd.f32 %v8840_v45, %v6951_v57  ;;  %v8843_v7 = vld [vmem:[#allocation109_spill] sm:$0xff] }
 0x42f   :  { %8835 = vst [vmem:[#allocation254_spill] sm:$0xff] %v7654_v16  ;;  %v7657_v32 = vadd.f32 %v3959_v55, %v3511_v51  ;;  %v3515_v40 = vadd.f32 %v3514_v56, %v6765_v21  ;;  %4320 = vmatprep.mubr.f32.mxu0 %v2677_v47  ;;  %4769 = vmatprep.mubr.f32.mxu1 %v2679_v44  ;;  %v8842_v47 = vld [vmem:[#allocation108_spill] sm:$0xff] }
 0x430   :  { %v3516_v26 = vpop.f32.mrf.mxu0  ;;  %v3965_v41 = vpop.f32.mrf.mxu1  ;;  %v1761_v36 = vadd.f32 %v8839_v4, %v6949_v19  ;;  %v1759_v51 = vadd.f32 %v8842_v47, %v6969_v33  ;;  %v2208_v60 = vadd.f32 %v8843_v7, %v6971_v37  ;;  %v8845_v47 = vld [vmem:[#allocation111_spill] sm:$0xff]  ;;  %v2695_v16 = vmax.f32 %v2210_v52, 0.0  ;;  %v8849_v7 = vld [vmem:[#allocation112_spill] sm:$0xff]  ;;  %v8850_v52 = vld [vmem:[#allocation113_spill] sm:$0xff] }
 0x431   :  { %8836 = vst [vmem:[#allocation255_spill] sm:$0xff] %v7657_v32  ;;  %v7668_v55 = vadd.f32 %v3963_v10, %v3515_v40  ;;  %v3517_v44 = vadd.f32 %v3516_v26, %v6777_v54  ;;  %v2684_v10 = vmax.f32 %v1753_v23, 0.0  ;;  %v2686_v40 = vmax.f32 %v2202_v5, 0.0  ;;  %v8844_v26 = vld [vmem:[#allocation110_spill] sm:$0xff] }
 0x432   :  { %v3520_v56 = vpop.f32.mrf.mxu0  ;;  %v3969_v49 = vpop.f32.mrf.mxu1  ;;  %4321 = vmatmul.mubr.f32.gmra.mxu0 %v2676_v58  ;;  %4770 = vmatmul.mubr.f32.gmra.mxu1 %v2678_v50  ;;  %v1767_v45 = vadd.f32 %v8844_v26, %v6949_v19  ;;  %v2693_v50 = vmax.f32 %v1761_v36, 0.0  ;;  %v2692_v23 = vmax.f32 %v1759_v51, 0.0  ;;  %v2694_v5 = vmax.f32 %v2208_v60, 0.0  ;;  %v8852_v60 = vld [vmem:[#allocation115_spill] sm:$0xff] }
 0x433   :  { %8841 = vst [vmem:[#allocation260_spill] sm:$0xff] %v7668_v55  ;;  %v7675_v53 = vadd.f32 %v3965_v41, %v3517_v44  ;;  %v3521_v4 = vadd.f32 %v3520_v56, %v6765_v21  ;;  %4326 = vmatprep.mubr.f32.mxu0 %v2685_v29  ;;  %4775 = vmatprep.mubr.f32.mxu1 %v2687_v3  ;;  %v8848_v3 = vld [vmem:[#allocation168_spill] sm:$0xff] }
 0x434   :  { %v2216_v55 = vadd.f32 %v8845_v47, %v6951_v57  ;;  %v3522_v32 = vpop.f32.mrf.mxu0  ;;  %v3971_v58 = vpop.f32.mrf.mxu1  ;;  %v1765_v36 = vadd.f32 %v8849_v7, %v6969_v33  ;;  %v2222_v26 = vadd.f32 %v8852_v60, %v6951_v57 }
 0x435   :  { %v7682_v42 = vadd.f32 %v3969_v49, %v3521_v4  ;;  %v3523_v41 = vadd.f32 %v3522_v32, %v6777_v54  ;;  %v2214_v49 = vadd.f32 %v8850_v52, %v6971_v37  ;;  %v2701_v4 = vmax.f32 %v1767_v45, 0.0  ;;  %v8856_v52 = vld [vmem:[#allocation166_spill] sm:$0xff] }
 0x436   :  { %v4040_v44 = vpop.f32.mrf.mxu0  ;;  %4327 = vmatmul.mubr.f32.gmra.mxu0 %v2684_v10  ;;  %v4489_v21 = vpop.f32.mrf.mxu1  ;;  %4776 = vmatmul.mubr.f32.gmra.mxu1 %v2686_v40  ;;  %v2703_v54 = vmax.f32 %v2216_v55, 0.0  ;;  %v8851_v40 = vld [vmem:[#allocation114_spill] sm:$0xff]  ;;  %v8855_v55 = vld [vmem:[#allocation117_spill] sm:$0xff]  ;;  %v2700_v60 = vmax.f32 %v1765_v36, 0.0 }
 0x437   :  { %8846 = vst [vmem:[#allocation261_spill] sm:$0xff] %v7682_v42  ;;  %v7685_v29 = vadd.f32 %v3971_v58, %v3523_v41  ;;  %v4041_v56 = vadd.f32 %v4040_v44, %v8848_v3  ;;  %4332 = vmatprep.mubr.f32.mxu0 %v2693_v50  ;;  %4781 = vmatprep.mubr.f32.mxu1 %v2695_v16  ;;  %v8853_v58 = vld [vmem:[#allocation169_spill] sm:$0xff]  ;;  %v8854_v16 = vld [vmem:[#allocation116_spill] sm:$0xff]  ;;  %v2711_v42 = vmax.f32 %v2222_v26, 0.0 }
 0x438   :  { %v4042_v32 = vpop.f32.mrf.mxu0  ;;  %v4491_v10 = vpop.f32.mrf.mxu1  ;;  %v1773_v51 = vadd.f32 %v8851_v40, %v6949_v19  ;;  %v1771_v41 = vadd.f32 %v8854_v16, %v6969_v33  ;;  %v2220_v45 = vadd.f32 %v8855_v55, %v6971_v37  ;;  %v8862_v26 = vld [vmem:[#allocation121_spill] sm:$0xff] }
 0x439   :  { %8847 = vst [vmem:[#allocation258_spill] sm:$0xff] %v7685_v29  ;;  %v4490_v47 = vadd.f32 %v4489_v21, %v4041_v56  ;;  %v4043_v50 = vadd.f32 %v4042_v32, %v8853_v58  ;;  %v2702_v21 = vmax.f32 %v2214_v49, 0.0  ;;  %v8857_v56 = vld [vmem:[#allocation118_spill] sm:$0xff]  ;;  %v8858_v58 = vld [vmem:[#allocation119_spill] sm:$0xff] }
 0x43a   :  { %v4046_v44 = vpop.f32.mrf.mxu0  ;;  %4333 = vmatmul.mubr.f32.gmra.mxu0 %v2692_v23  ;;  %v4495_v3 = vpop.f32.mrf.mxu1  ;;  %4782 = vmatmul.mubr.f32.gmra.mxu1 %v2694_v5  ;;  %v1779_v32 = vadd.f32 %v8857_v56, %v6949_v19  ;;  %v2228_v16 = vadd.f32 %v8858_v58, %v6951_v57  ;;  %v2709_v5 = vmax.f32 %v1773_v51, 0.0  ;;  %v2708_v36 = vmax.f32 %v1771_v41, 0.0  ;;  %v8861_v56 = vld [vmem:[#allocation120_spill] sm:$0xff] }
 0x43b   :  { %4872 = vst [vmem:[#allocation10] sm:$0xff] %v4490_v47  ;;  %v4492_v7 = vadd.f32 %v4491_v10, %v4043_v50  ;;  %v4047_v40 = vadd.f32 %v4046_v44, %v8856_v52  ;;  %4338 = vmatprep.mubr.f32.mxu0 %v2701_v4  ;;  %4787 = vmatprep.mubr.f32.mxu1 %v2703_v54  ;;  %v8859_v47 = vld [vmem:[#allocation167_spill] sm:$0xff]  ;;  %v2710_v49 = vmax.f32 %v2220_v45, 0.0  ;;  %v8860_v44 = vld [vmem:[#allocation172_spill] sm:$0xff] }
 0x43c   :  { %v4048_v23 = vpop.f32.mrf.mxu0  ;;  %v4497_v29 = vpop.f32.mrf.mxu1  ;;  %v1777_v51 = vadd.f32 %v8861_v56, %v6969_v33  ;;  %v8864_v45 = vld [vmem:[#allocation123_spill] sm:$0xff]  ;;  %v8868_v56 = vld [vmem:[#allocation170_spill] sm:$0xff] }
 0x43d   :  { %4873 = vst [vmem:[#allocation10 + $0x8] sm:$0xff] %v4492_v7  ;;  %v4496_v55 = vadd.f32 %v4495_v3, %v4047_v40  ;;  %v4049_v10 = vadd.f32 %v4048_v23, %v8859_v47  ;;  %v2226_v3 = vadd.f32 %v8862_v26, %v6971_v37  ;;  %v2717_v7 = vmax.f32 %v1779_v32, 0.0  ;;  %v8867_v32 = vld [vmem:[#allocation125_spill] sm:$0xff] }
 0x43e   :  { %v4052_v50 = vpop.f32.mrf.mxu0  ;;  %4339 = vmatmul.mubr.f32.gmra.mxu0 %v2700_v60  ;;  %v4501_v4 = vpop.f32.mrf.mxu1  ;;  %4788 = vmatmul.mubr.f32.gmra.mxu1 %v2702_v21  ;;  %v2719_v40 = vmax.f32 %v2228_v16, 0.0  ;;  %v8863_v21 = vld [vmem:[#allocation122_spill] sm:$0xff]  ;;  %v2232_v16 = vadd.f32 %v8867_v32, %v6971_v37 }
 0x43f   :  { %4874 = vst [vmem:[#allocation10 + $0x10] sm:$0xff] %v4496_v55  ;;  %v4498_v54 = vadd.f32 %v4497_v29, %v4049_v10  ;;  %v4053_v52 = vadd.f32 %v4052_v50, %v8860_v44  ;;  %4344 = vmatprep.mubr.f32.mxu0 %v2709_v5  ;;  %4793 = vmatprep.mubr.f32.mxu1 %v2711_v42  ;;  %v8865_v5 = vld [vmem:[#allocation173_spill] sm:$0xff]  ;;  %v8866_v55 = vld [vmem:[#allocation124_spill] sm:$0xff] }
 0x440   :  { %v4054_v58 = vpop.f32.mrf.mxu0  ;;  %v4503_v60 = vpop.f32.mrf.mxu1  ;;  %v1785_v41 = vadd.f32 %v8863_v21, %v6949_v19  ;;  %v2234_v29 = vadd.f32 %v8864_v45, %v6951_v57  ;;  %v1783_v47 = vadd.f32 %v8866_v55, %v6969_v33  ;;  %v8870_v21 = vld [vmem:[#allocation127_spill] sm:$0xff] }
 0x441   :  { %4875 = vst [vmem:[#allocation10 + $0x18] sm:$0xff] %v4498_v54  ;;  %v4502_v23 = vadd.f32 %v4501_v4, %v4053_v52  ;;  %v4055_v42 = vadd.f32 %v4054_v58, %v8865_v5  ;;  %v2716_v54 = vmax.f32 %v1777_v51, 0.0  ;;  %v2718_v4 = vmax.f32 %v2226_v3, 0.0  ;;  %v8869_v52 = vld [vmem:[#allocation126_spill] sm:$0xff] }
 0x442   :  { %v4058_v10 = vpop.f32.mrf.mxu0  ;;  %4345 = vmatmul.mubr.f32.gmra.mxu0 %v2708_v36  ;;  %v4507_v50 = vpop.f32.mrf.mxu1  ;;  %4794 = vmatmul.mubr.f32.gmra.mxu1 %v2710_v49  ;;  %v1791_v58 = vadd.f32 %v8869_v52, %v6949_v19  ;;  %v2240_v45 = vadd.f32 %v8870_v21, %v6951_v57  ;;  %v2725_v49 = vmax.f32 %v1785_v41, 0.0  ;;  %v2727_v55 = vmax.f32 %v2234_v29, 0.0  ;;  %v8873_v52 = vld [vmem:[#allocation128_spill] sm:$0xff]  ;;  %v8874_v29 = vld [vmem:[#allocation129_spill] sm:$0xff] }
 0x443   :  { %4876 = vst [vmem:[#allocation10 + $0x20] sm:$0xff] %v4502_v23  ;;  %v4504_v44 = vadd.f32 %v4503_v60, %v4055_v42  ;;  %v4059_v26 = vadd.f32 %v4058_v10, %v8868_v56  ;;  %4350 = vmatprep.mubr.f32.mxu0 %v2717_v7  ;;  %4799 = vmatprep.mubr.f32.mxu1 %v2719_v40  ;;  %v8871_v23 = vld [vmem:[#allocation171_spill] sm:$0xff]  ;;  %v2724_v51 = vmax.f32 %v1783_v47, 0.0  ;;  %v2726_v3 = vmax.f32 %v2232_v16, 0.0  ;;  %v8872_v10 = vld [vmem:[#allocation176_spill] sm:$0xff] }
 0x444   :  { %v4060_v36 = vpop.f32.mrf.mxu0  ;;  %v4509_v5 = vpop.f32.mrf.mxu1  ;;  %v1789_v41 = vadd.f32 %v8873_v52, %v6969_v33  ;;  %v8876_v16 = vld [vmem:[#allocation131_spill] sm:$0xff]  ;;  %v8880_v52 = vld [vmem:[#allocation174_spill] sm:$0xff] }
 0x445   :  { %4877 = vst [vmem:[#allocation10 + $0x28] sm:$0xff] %v4504_v44  ;;  %v4508_v32 = vadd.f32 %v4507_v50, %v4059_v26  ;;  %v4061_v60 = vadd.f32 %v4060_v36, %v8871_v23  ;;  %v2238_v50 = vadd.f32 %v8874_v29, %v6971_v37  ;;  %v2733_v44 = vmax.f32 %v1791_v58, 0.0  ;;  %v8879_v58 = vld [vmem:[#allocation133_spill] sm:$0xff] }
 0x446   :  { %v4064_v42 = vpop.f32.mrf.mxu0  ;;  %4351 = vmatmul.mubr.f32.gmra.mxu0 %v2716_v54  ;;  %v4513_v7 = vpop.f32.mrf.mxu1  ;;  %4800 = vmatmul.mubr.f32.gmra.mxu1 %v2718_v4  ;;  %v2735_v26 = vmax.f32 %v2240_v45, 0.0  ;;  %v8875_v4 = vld [vmem:[#allocation130_spill] sm:$0xff]  ;;  %v2246_v36 = vadd.f32 %v8876_v16, %v6951_v57  ;;  %v2244_v45 = vadd.f32 %v8879_v58, %v6971_v37 }
 0x447   :  { %4878 = vst [vmem:[#allocation10 + $0x30] sm:$0xff] %v4508_v32  ;;  %v4510_v40 = vadd.f32 %v4509_v5, %v4061_v60  ;;  %v4065_v56 = vadd.f32 %v4064_v42, %v8872_v10  ;;  %4356 = vmatprep.mubr.f32.mxu0 %v2725_v49  ;;  %4805 = vmatprep.mubr.f32.mxu1 %v2727_v55  ;;  %v8877_v49 = vld [vmem:[#allocation177_spill] sm:$0xff]  ;;  %v8878_v32 = vld [vmem:[#allocation132_spill] sm:$0xff] }
 0x448   :  { %v4066_v21 = vpop.f32.mrf.mxu0  ;;  %v4515_v54 = vpop.f32.mrf.mxu1  ;;  %v1797_v47 = vadd.f32 %v8875_v4, %v6949_v19  ;;  %v1795_v23 = vadd.f32 %v8878_v32, %v6969_v33  ;;  %v8882_v4 = vld [vmem:[#allocation135_spill] sm:$0xff]  ;;  %v2743_v32 = vmax.f32 %v2246_v36, 0.0  ;;  %v8886_v36 = vld [vmem:[#allocation137_spill] sm:$0xff] }
 0x449   :  { %4879 = vst [vmem:[#allocation10 + $0x38] sm:$0xff] %v4510_v40  ;;  %v4514_v5 = vadd.f32 %v4513_v7, %v4065_v56  ;;  %v4067_v55 = vadd.f32 %v4066_v21, %v8877_v49  ;;  %v2732_v40 = vmax.f32 %v1789_v41, 0.0  ;;  %v2734_v7 = vmax.f32 %v2238_v50, 0.0  ;;  %v8881_v56 = vld [vmem:[#allocation134_spill] sm:$0xff] }
 0x44a   :  { %v4070_v60 = vpop.f32.mrf.mxu0  ;;  %4357 = vmatmul.mubr.f32.gmra.mxu0 %v2724_v51  ;;  %v4519_v42 = vpop.f32.mrf.mxu1  ;;  %4806 = vmatmul.mubr.f32.gmra.mxu1 %v2726_v3  ;;  %v1803_v21 = vadd.f32 %v8881_v56, %v6949_v19  ;;  %v2252_v16 = vadd.f32 %v8882_v4, %v6951_v57  ;;  %v2741_v3 = vmax.f32 %v1797_v47, 0.0  ;;  %v2740_v41 = vmax.f32 %v1795_v23, 0.0  ;;  %v8885_v56 = vld [vmem:[#allocation136_spill] sm:$0xff] }
 0x44b   :  { %4880 = vst [vmem:[#allocation10 + $0x40] sm:$0xff] %v4514_v5  ;;  %v4516_v10 = vadd.f32 %v4515_v54, %v4067_v55  ;;  %v4071_v29 = vadd.f32 %v4070_v60, %v8880_v52  ;;  %4362 = vmatprep.mubr.f32.mxu0 %v2733_v44  ;;  %4811 = vmatprep.mubr.f32.mxu1 %v2735_v26  ;;  %v8883_v5 = vld [vmem:[#allocation175_spill] sm:$0xff]  ;;  %v2742_v50 = vmax.f32 %v2244_v45, 0.0  ;;  %v8884_v60 = vld [vmem:[#allocation180_spill] sm:$0xff] }
 0x44c   :  { %v4072_v51 = vpop.f32.mrf.mxu0  ;;  %v4521_v49 = vpop.f32.mrf.mxu1  ;;  %v1801_v47 = vadd.f32 %v8885_v56, %v6969_v33  ;;  %v8888_v45 = vld [vmem:[#allocation139_spill] sm:$0xff]  ;;  %v8892_v56 = vld [vmem:[#allocation178_spill] sm:$0xff] }
 0x44d   :  { %4881 = vst [vmem:[#allocation10 + $0x48] sm:$0xff] %v4516_v10  ;;  %v4520_v58 = vadd.f32 %v4519_v42, %v4071_v29  ;;  %v4073_v54 = vadd.f32 %v4072_v51, %v8883_v5  ;;  %v2250_v42 = vadd.f32 %v8886_v36, %v6971_v37  ;;  %v2749_v10 = vmax.f32 %v1803_v21, 0.0  ;;  %v8891_v21 = vld [vmem:[#allocation141_spill] sm:$0xff] }
 0x44e   :  { %v4076_v55 = vpop.f32.mrf.mxu0  ;;  %4363 = vmatmul.mubr.f32.gmra.mxu0 %v2732_v40  ;;  %v4525_v44 = vpop.f32.mrf.mxu1  ;;  %4812 = vmatmul.mubr.f32.gmra.mxu1 %v2734_v7  ;;  %v2751_v29 = vmax.f32 %v2252_v16, 0.0  ;;  %v8887_v7 = vld [vmem:[#allocation138_spill] sm:$0xff]  ;;  %v2258_v51 = vadd.f32 %v8888_v45, %v6951_v57  ;;  %v2256_v16 = vadd.f32 %v8891_v21, %v6971_v37 }
 0x44f   :  { %4882 = vst [vmem:[#allocation10 + $0x50] sm:$0xff] %v4520_v58  ;;  %v4522_v26 = vadd.f32 %v4521_v49, %v4073_v54  ;;  %v4077_v52 = vadd.f32 %v4076_v55, %v8884_v60  ;;  %4368 = vmatprep.mubr.f32.mxu0 %v2741_v3  ;;  %4817 = vmatprep.mubr.f32.mxu1 %v2743_v32  ;;  %v8889_v3 = vld [vmem:[#allocation181_spill] sm:$0xff]  ;;  %v8890_v58 = vld [vmem:[#allocation140_spill] sm:$0xff] }
 0x450   :  { %v4078_v4 = vpop.f32.mrf.mxu0  ;;  %v4527_v40 = vpop.f32.mrf.mxu1  ;;  %v1809_v23 = vadd.f32 %v8887_v7, %v6949_v19  ;;  %v1807_v5 = vadd.f32 %v8890_v58, %v6969_v33  ;;  %v8894_v7 = vld [vmem:[#allocation143_spill] sm:$0xff]  ;;  %v2759_v58 = vmax.f32 %v2258_v51, 0.0  ;;  %v8898_v51 = vld [vmem:[#allocation145_spill] sm:$0xff] }
 0x451   :  { %4883 = vst [vmem:[#allocation10 + $0x58] sm:$0xff] %v4522_v26  ;;  %v4526_v49 = vadd.f32 %v4525_v44, %v4077_v52  ;;  %v4079_v32 = vadd.f32 %v4078_v4, %v8889_v3  ;;  %v2748_v26 = vmax.f32 %v1801_v47, 0.0  ;;  %v2750_v44 = vmax.f32 %v2250_v42, 0.0  ;;  %v8893_v52 = vld [vmem:[#allocation142_spill] sm:$0xff] }
 0x452   :  { %v4082_v54 = vpop.f32.mrf.mxu0  ;;  %4369 = vmatmul.mubr.f32.gmra.mxu0 %v2740_v41  ;;  %v4531_v55 = vpop.f32.mrf.mxu1  ;;  %4818 = vmatmul.mubr.f32.gmra.mxu1 %v2742_v50  ;;  %v1815_v4 = vadd.f32 %v8893_v52, %v6949_v19  ;;  %v2264_v45 = vadd.f32 %v8894_v7, %v6951_v57  ;;  %v2757_v50 = vmax.f32 %v1809_v23, 0.0  ;;  %v2756_v47 = vmax.f32 %v1807_v5, 0.0  ;;  %v8897_v52 = vld [vmem:[#allocation144_spill] sm:$0xff] }
 0x453   :  { %4884 = vst [vmem:[#allocation10 + $0x60] sm:$0xff] %v4526_v49  ;;  %v4528_v60 = vadd.f32 %v4527_v40, %v4079_v32  ;;  %v4083_v36 = vadd.f32 %v4082_v54, %v8892_v56  ;;  %4374 = vmatprep.mubr.f32.mxu0 %v2749_v10  ;;  %4823 = vmatprep.mubr.f32.mxu1 %v2751_v29  ;;  %v8895_v49 = vld [vmem:[#allocation179_spill] sm:$0xff]  ;;  %v2758_v42 = vmax.f32 %v2256_v16, 0.0  ;;  %v8896_v54 = vld [vmem:[#allocation184_spill] sm:$0xff] }
 0x454   :  { %v4084_v41 = vpop.f32.mrf.mxu0  ;;  %v4533_v3 = vpop.f32.mrf.mxu1  ;;  %v1813_v23 = vadd.f32 %v8897_v52, %v6969_v33  ;;  %v8900_v16 = vld [vmem:[#allocation147_spill] sm:$0xff]  ;;  %v8904_v52 = vld [vmem:[#allocation182_spill] sm:$0xff] }
 0x455   :  { %4885 = vst [vmem:[#allocation10 + $0x68] sm:$0xff] %v4528_v60  ;;  %v4532_v21 = vadd.f32 %v4531_v55, %v4083_v36  ;;  %v4085_v40 = vadd.f32 %v4084_v41, %v8895_v49  ;;  %v2262_v55 = vadd.f32 %v8898_v51, %v6971_v37  ;;  %v2765_v60 = vmax.f32 %v1815_v4, 0.0  ;;  %v8903_v4 = vld [vmem:[#allocation149_spill] sm:$0xff] }
 0x456   :  { %v4088_v32 = vpop.f32.mrf.mxu0  ;;  %4375 = vmatmul.mubr.f32.gmra.mxu0 %v2748_v26  ;;  %v4537_v10 = vpop.f32.mrf.mxu1  ;;  %4824 = vmatmul.mubr.f32.gmra.mxu1 %v2750_v44  ;;  %v2767_v36 = vmax.f32 %v2264_v45, 0.0  ;;  %v8899_v44 = vld [vmem:[#allocation146_spill] sm:$0xff]  ;;  %v2270_v41 = vadd.f32 %v8900_v16, %v6951_v57  ;;  %v2268_v45 = vadd.f32 %v8903_v4, %v6971_v37 }
 0x457   :  { %4886 = vst [vmem:[#allocation10 + $0x70] sm:$0xff] %v4532_v21  ;;  %v4534_v29 = vadd.f32 %v4533_v3, %v4085_v40  ;;  %v4089_v56 = vadd.f32 %v4088_v32, %v8896_v54  ;;  %4380 = vmatprep.mubr.f32.mxu0 %v2757_v50  ;;  %4829 = vmatprep.mubr.f32.mxu1 %v2759_v58  ;;  %v8901_v50 = vld [vmem:[#allocation185_spill] sm:$0xff]  ;;  %v8902_v21 = vld [vmem:[#allocation148_spill] sm:$0xff] }
 0x458   :  { %v4090_v7 = vpop.f32.mrf.mxu0  ;;  %v4539_v26 = vpop.f32.mrf.mxu1  ;;  %v1821_v5 = vadd.f32 %v8899_v44, %v6949_v19  ;;  %v1819_v49 = vadd.f32 %v8902_v21, %v6969_v33  ;;  %v8906_v44 = vld [vmem:[#allocation151_spill] sm:$0xff]  ;;  %v2775_v21 = vmax.f32 %v2270_v41, 0.0  ;;  %v8910_v41 = vld [vmem:[#allocation153_spill] sm:$0xff] }
 0x459   :  { %4887 = vst [vmem:[#allocation10 + $0x78] sm:$0xff] %v4534_v29  ;;  %v4538_v3 = vadd.f32 %v4537_v10, %v4089_v56  ;;  %v4091_v58 = vadd.f32 %v4090_v7, %v8901_v50  ;;  %v2764_v29 = vmax.f32 %v1813_v23, 0.0  ;;  %v2766_v10 = vmax.f32 %v2262_v55, 0.0  ;;  %v8905_v56 = vld [vmem:[#allocation150_spill] sm:$0xff] }
 0x45a   :  { %v4094_v40 = vpop.f32.mrf.mxu0  ;;  %4381 = vmatmul.mubr.f32.gmra.mxu0 %v2756_v47  ;;  %v4543_v32 = vpop.f32.mrf.mxu1  ;;  %4830 = vmatmul.mubr.f32.gmra.mxu1 %v2758_v42  ;;  %v1827_v7 = vadd.f32 %v8905_v56, %v6949_v19  ;;  %v2276_v16 = vadd.f32 %v8906_v44, %v6951_v57  ;;  %v2773_v42 = vmax.f32 %v1821_v5, 0.0  ;;  %v2772_v23 = vmax.f32 %v1819_v49, 0.0  ;;  %v8909_v56 = vld [vmem:[#allocation152_spill] sm:$0xff] }
 0x45b   :  { %4888 = vst [vmem:[#allocation10 + $0x80] sm:$0xff] %v4538_v3  ;;  %v4540_v54 = vadd.f32 %v4539_v26, %v4091_v58  ;;  %v4095_v51 = vadd.f32 %v4094_v40, %v8904_v52  ;;  %4386 = vmatprep.mubr.f32.mxu0 %v2765_v60  ;;  %4835 = vmatprep.mubr.f32.mxu1 %v2767_v36  ;;  %v8907_v3 = vld [vmem:[#allocation183_spill] sm:$0xff]  ;;  %v2774_v55 = vmax.f32 %v2268_v45, 0.0  ;;  %v8908_v40 = vld [vmem:[#allocation188_spill] sm:$0xff] }
 0x45c   :  { %v4096_v47 = vpop.f32.mrf.mxu0  ;;  %v4545_v50 = vpop.f32.mrf.mxu1  ;;  %v1825_v5 = vadd.f32 %v8909_v56, %v6969_v33  ;;  %v8912_v45 = vld [vmem:[#allocation155_spill] sm:$0xff] }
 0x45d   :  { %4889 = vst [vmem:[#allocation10 + $0x88] sm:$0xff] %v4540_v54  ;;  %v4544_v4 = vadd.f32 %v4543_v32, %v4095_v51  ;;  %v4097_v26 = vadd.f32 %v4096_v47, %v8907_v3  ;;  %v2274_v32 = vadd.f32 %v8910_v41, %v6971_v37  ;;  %v2781_v54 = vmax.f32 %v1827_v7, 0.0  ;;  %v8914_v7 = vld [vmem:[#allocation157_spill] sm:$0xff]  ;;  %v8917_v41 = vld [vmem:[#allocation159_spill] sm:$0xff] }
 0x45e   :  { %v4100_v58 = vpop.f32.mrf.mxu0  ;;  %4387 = vmatmul.mubr.f32.gmra.mxu0 %v2764_v29  ;;  %v4549_v60 = vpop.f32.mrf.mxu1  ;;  %4836 = vmatmul.mubr.f32.gmra.mxu1 %v2766_v10  ;;  %v2783_v51 = vmax.f32 %v2276_v16, 0.0  ;;  %v8911_v10 = vld [vmem:[#allocation154_spill] sm:$0xff]  ;;  %v2282_v47 = vadd.f32 %v8912_v45, %v6951_v57  ;;  %v2280_v16 = vadd.f32 %v8914_v7, %v6971_v37  ;;  %v8919_v7 = vld [vmem:[#allocation160_spill] sm:$0xff] }
 0x45f   :  { %4890 = vst [vmem:[#allocation10 + $0x90] sm:$0xff] %v4544_v4  ;;  %v4546_v36 = vadd.f32 %v4545_v50, %v4097_v26  ;;  %v4101_v52 = vadd.f32 %v4100_v58, %v8908_v40  ;;  %4392 = vmatprep.mubr.f32.mxu0 %v2773_v42  ;;  %4841 = vmatprep.mubr.f32.mxu1 %v2775_v21  ;;  %v8913_v21 = vld [vmem:[#allocation156_spill] sm:$0xff]  ;;  %v8915_v40 = vld [vmem:[#allocation189_spill] sm:$0xff] }
 0x460   :  { %v4102_v44 = vpop.f32.mrf.mxu0  ;;  %v4551_v29 = vpop.f32.mrf.mxu1  ;;  %v1833_v49 = vadd.f32 %v8911_v10, %v6949_v19  ;;  %v1831_v4 = vadd.f32 %v8913_v21, %v6969_v33  ;;  %v2791_v45 = vmax.f32 %v2282_v47, 0.0  ;;  %v8920_v47 = vld [vmem:[#allocation161_spill] sm:$0xff] }
 0x461   :  { %4891 = vst [vmem:[#allocation10 + $0x98] sm:$0xff] %v4546_v36  ;;  %v4550_v50 = vadd.f32 %v4549_v60, %v4101_v52  ;;  %v4103_v42 = vadd.f32 %v4102_v44, %v6937_v38  ;;  %v2780_v36 = vmax.f32 %v1825_v5, 0.0  ;;  %v2782_v60 = vmax.f32 %v2274_v32, 0.0  ;;  %v8916_v38 = vld [vmem:[#allocation158_spill] sm:$0xff] }
 0x462   :  { %v4106_v3 = vpop.f32.mrf.mxu0  ;;  %4393 = vmatmul.mubr.f32.gmra.mxu0 %v2772_v23  ;;  %v4555_v26 = vpop.f32.mrf.mxu1  ;;  %4842 = vmatmul.mubr.f32.gmra.mxu1 %v2774_v55  ;;  %v1839_v52 = vadd.f32 %v8916_v38, %v6949_v19  ;;  %v2288_v44 = vadd.f32 %v8917_v41, %v6951_v57  ;;  %v2789_v55 = vmax.f32 %v1833_v49, 0.0  ;;  %v2788_v5 = vmax.f32 %v1831_v4, 0.0 }
 0x463   :  { %4892 = vst [vmem:[#allocation10 + $0xa0] sm:$0xff] %v4550_v50  ;;  %v4552_v58 = vadd.f32 %v4551_v29, %v4103_v42  ;;  %v4107_v56 = vadd.f32 %v4106_v3, %v8915_v40  ;;  %4398 = vmatprep.mubr.f32.mxu0 %v2781_v54  ;;  %4847 = vmatprep.mubr.f32.mxu1 %v2783_v51  ;;  %v8918_v50 = vld [vmem:[#allocation186_spill] sm:$0xff]  ;;  %v2790_v32 = vmax.f32 %v2280_v16, 0.0  ;;  %v8922_v16 = vld [vmem:[#allocation163_spill] sm:$0xff] }
 0x464   :  { %v4108_v23 = vpop.f32.mrf.mxu0  ;;  %v4557_v10 = vpop.f32.mrf.mxu1  ;;  %v1837_v49 = vadd.f32 %v8919_v7, %v6969_v33  ;;  %v2799_v40 = vmax.f32 %v2288_v44, 0.0  ;;  %v2294_v38 = vadd.f32 %v8922_v16, %v6951_v57  ;;  %v8925_v57 = vld [vmem:[#allocation165_spill] sm:$0xff] }
 0x465   :  { %4893 = vst [vmem:[#allocation10 + $0xa8] sm:$0xff] %v4552_v58  ;;  %v4556_v21 = vadd.f32 %v4555_v26, %v4107_v56  ;;  %v4109_v29 = vadd.f32 %v4108_v23, %v8918_v50  ;;  %v2286_v26 = vadd.f32 %v8920_v47, %v6971_v37  ;;  %v2797_v58 = vmax.f32 %v1839_v52, 0.0  ;;  %v8923_v52 = vld [vmem:[#allocation187_spill] sm:$0xff] }
 0x466   :  { %v4112_v42 = vpop.f32.mrf.mxu0  ;;  %4399 = vmatmul.mubr.f32.gmra.mxu0 %v2780_v36  ;;  %v4561_v54 = vpop.f32.mrf.mxu1  ;;  %4848 = vmatmul.mubr.f32.gmra.mxu1 %v2782_v60  ;;  %v8921_v60 = vld [vmem:[#allocation162_spill] sm:$0xff] }
 0x467   :  { %4894 = vst [vmem:[#allocation10 + $0xb0] sm:$0xff] %v4556_v21  ;;  %v4558_v51 = vadd.f32 %v4557_v10, %v4109_v29  ;;  %v4113_v3 = vadd.f32 %v4112_v42, %v6964_v18  ;;  %4404 = vmatprep.mubr.f32.mxu0 %v2789_v55  ;;  %4853 = vmatprep.mubr.f32.mxu1 %v2791_v45  ;;  %v2796_v45 = vmax.f32 %v1837_v49, 0.0  ;;  %v2798_v21 = vmax.f32 %v2286_v26, 0.0  ;;  %v8927_v26 = vld [vmem:[#allocation193_spill] sm:$0xff] }
 0x468   :  { %v4114_v56 = vpop.f32.mrf.mxu0  ;;  %v4563_v36 = vpop.f32.mrf.mxu1  ;;  %v1845_v4 = vadd.f32 %v8921_v60, %v6949_v19  ;;  %v8924_v19 = vld [vmem:[#allocation164_spill] sm:$0xff]  ;;  %v2292_v29 = vadd.f32 %v8925_v57, %v6971_v37  ;;  %v8928_v60 = vld [vmem:[#allocation190_spill] sm:$0xff]  ;;  %v8931_v57 = vld [vmem:[#allocation197_spill] sm:$0xff] }
 0x469   :  { %4895 = vst [vmem:[#allocation10 + $0xb8] sm:$0xff] %v4558_v51  ;;  %v4562_v18 = vadd.f32 %v4561_v54, %v4113_v3  ;;  %v4115_v41 = vadd.f32 %v4114_v56, %v6975_v48  ;;  %v1843_v50 = vadd.f32 %v8924_v19, %v6969_v33  ;;  %v8926_v51 = vld [vmem:[#allocation192_spill] sm:$0xff] }
 0x46a   :  { %v4118_v23 = vpop.f32.mrf.mxu0  ;;  %4405 = vmatmul.mubr.f32.gmra.mxu0 %v2788_v5  ;;  %v4567_v10 = vpop.f32.mrf.mxu1  ;;  %4854 = vmatmul.mubr.f32.gmra.mxu1 %v2790_v32  ;;  %v2805_v54 = vmax.f32 %v1845_v4, 0.0  ;;  %v2807_v5 = vmax.f32 %v2294_v38, 0.0  ;;  %v2806_v37 = vmax.f32 %v2292_v29, 0.0 }
 0x46b   :  { %4896 = vst [vmem:[#allocation10 + $0xc0] sm:$0xff] %v4562_v18  ;;  %v4564_v55 = vadd.f32 %v4563_v36, %v4115_v41  ;;  %v4119_v44 = vadd.f32 %v4118_v23, %v8923_v52  ;;  %4410 = vmatprep.mubr.f32.mxu0 %v2797_v58  ;;  %4859 = vmatprep.mubr.f32.mxu1 %v2799_v40  ;;  %v2804_v33 = vmax.f32 %v1843_v50, 0.0  ;;  %v8929_v41 = vld [vmem:[#allocation191_spill] sm:$0xff] }
 0x46c   :  { %v4120_v42 = vpop.f32.mrf.mxu0  ;;  %v4569_v48 = vpop.f32.mrf.mxu1 }
 0x46d   :  { %4897 = vst [vmem:[#allocation10 + $0xc8] sm:$0xff] %v4564_v55  ;;  %v4568_v32 = vadd.f32 %v4567_v10, %v4119_v44  ;;  %v4121_v3 = vadd.f32 %v4120_v42, %v8926_v51  ;;  %v8930_v44 = vld [vmem:[#allocation196_spill] sm:$0xff] }
 0x46e   :  { %v4124_v7 = vpop.f32.mrf.mxu0  ;;  %4411 = vmatmul.mubr.f32.gmra.mxu0 %v2796_v45  ;;  %v4573_v47 = vpop.f32.mrf.mxu1  ;;  %4860 = vmatmul.mubr.f32.gmra.mxu1 %v2798_v21 }
 0x46f   :  { %4898 = vst [vmem:[#allocation10 + $0xd0] sm:$0xff] %v4568_v32  ;;  %v4570_v49 = vadd.f32 %v4569_v48, %v4121_v3  ;;  %v4125_v58 = vadd.f32 %v4124_v7, %v8927_v26  ;;  %4416 = vmatprep.mubr.f32.mxu0 %v2805_v54  ;;  %4865 = vmatprep.mubr.f32.mxu1 %v2807_v5  ;;  %v8932_v5 = vld [vmem:[#allocation194_spill] sm:$0xff] }
 0x470   :  { %v4126_v40 = vpop.f32.mrf.mxu0  ;;  %v4575_v56 = vpop.f32.mrf.mxu1 }
 0x471   :  { %4899 = vst [vmem:[#allocation10 + $0xd8] sm:$0xff] %v4570_v49  ;;  %v4574_v36 = vadd.f32 %v4573_v47, %v4125_v58  ;;  %v4127_v4 = vadd.f32 %v4126_v40, %v8928_v60  ;;  %v8933_v47 = vld [vmem:[#allocation195_spill] sm:$0xff] }
 0x472   :  { %v4130_v16 = vpop.f32.mrf.mxu0  ;;  %4417 = vmatmul.mubr.f32.gmra.mxu0 %v2804_v33  ;;  %v4579_v38 = vpop.f32.mrf.mxu1  ;;  %4866 = vmatmul.mubr.f32.gmra.mxu1 %v2806_v37  ;;  %v8934_v37 = vld [vmem:[#allocation200_spill] sm:$0xff] }
 0x473   :  { %4900 = vst [vmem:[#allocation10 + $0xe0] sm:$0xff] %v4574_v36  ;;  %v4576_v18 = vadd.f32 %v4575_v56, %v4127_v4  ;;  %v4131_v23 = vadd.f32 %v4130_v16, %v8929_v41  ;;  %v8935_v4 = vld [vmem:[#allocation201_spill] sm:$0xff] }
 0x474   :  { %v4132_v10 = vpop.f32.mrf.mxu0  ;;  %v4581_v55 = vpop.f32.mrf.mxu1 }
 0x475   :  { %4901 = vst [vmem:[#allocation10 + $0xe8] sm:$0xff] %v4576_v18  ;;  %v4580_v52 = vadd.f32 %v4579_v38, %v4131_v23  ;;  %v4133_v45 = vadd.f32 %v4132_v10, %v8930_v44  ;;  %v8936_v23 = vld [vmem:[#allocation198_spill] sm:$0xff] }
 0x476   :  { %v4136_v21 = vpop.f32.mrf.mxu0  ;;  %v4585_v19 = vpop.f32.mrf.mxu1 }
 0x477   :  { %4902 = vst [vmem:[#allocation10 + $0xf0] sm:$0xff] %v4580_v52  ;;  %v4582_v50 = vadd.f32 %v4581_v55, %v4133_v45  ;;  %v4137_v29 = vadd.f32 %v4136_v21, %v8931_v57  ;;  %v8937_v45 = vld [vmem:[#allocation199_spill] sm:$0xff] }
 0x478   :  { %v4138_v42 = vpop.f32.mrf.mxu0  ;;  %v4587_v48 = vpop.f32.mrf.mxu1 }
 0x479   :  { %4903 = vst [vmem:[#allocation10 + $0xf8] sm:$0xff] %v4582_v50  ;;  %v4586_v54 = vadd.f32 %v4585_v19, %v4137_v29  ;;  %v4139_v32 = vadd.f32 %v4138_v42, %v8932_v5  ;;  %v8938_v29 = vld [vmem:[#allocation204_spill] sm:$0xff] }
 0x47a   :  { %v4142_v51 = vpop.f32.mrf.mxu0  ;;  %v4591_v3 = vpop.f32.mrf.mxu1 }
 0x47b   :  { %4904 = vst [vmem:[#allocation10 + $0x100] sm:$0xff] %v4586_v54  ;;  %v4588_v7 = vadd.f32 %v4587_v48, %v4139_v32  ;;  %v4143_v49 = vadd.f32 %v4142_v51, %v8933_v47  ;;  %v8939_v32 = vld [vmem:[#allocation205_spill] sm:$0xff] }
 0x47c   :  { %v4144_v26 = vpop.f32.mrf.mxu0  ;;  %v4593_v58 = vpop.f32.mrf.mxu1 }
 0x47d   :  { %4905 = vst [vmem:[#allocation10 + $0x108] sm:$0xff] %v4588_v7  ;;  %v4592_v33 = vadd.f32 %v4591_v3, %v4143_v49  ;;  %v4145_v40 = vadd.f32 %v4144_v26, %v8934_v37  ;;  %v8940_v49 = vld [vmem:[#allocation202_spill] sm:$0xff] }
 0x47e   :  { %v4148_v56 = vpop.f32.mrf.mxu0  ;;  %v4597_v36 = vpop.f32.mrf.mxu1 }
 0x47f   :  { %4906 = vst [vmem:[#allocation10 + $0x110] sm:$0xff] %v4592_v33  ;;  %v4594_v60 = vadd.f32 %v4593_v58, %v4145_v40  ;;  %v4149_v16 = vadd.f32 %v4148_v56, %v8935_v4  ;;  %v8941_v40 = vld [vmem:[#allocation203_spill] sm:$0xff] }
 0x480   :  { %v4150_v38 = vpop.f32.mrf.mxu0  ;;  %v4599_v18 = vpop.f32.mrf.mxu1 }
 0x481   :  { %4907 = vst [vmem:[#allocation10 + $0x118] sm:$0xff] %v4594_v60  ;;  %v4598_v41 = vadd.f32 %v4597_v36, %v4149_v16  ;;  %v4151_v10 = vadd.f32 %v4150_v38, %v8936_v23  ;;  %v8942_v16 = vld [vmem:[#allocation208_spill] sm:$0xff] }
 0x482   :  { %v4154_v55 = vpop.f32.mrf.mxu0  ;;  %v4603_v52 = vpop.f32.mrf.mxu1 }
 0x483   :  { %4908 = vst [vmem:[#allocation10 + $0x120] sm:$0xff] %v4598_v41  ;;  %v4600_v44 = vadd.f32 %v4599_v18, %v4151_v10  ;;  %v4155_v21 = vadd.f32 %v4154_v55, %v8937_v45  ;;  %v8943_v10 = vld [vmem:[#allocation209_spill] sm:$0xff] }
 0x484   :  { %v4156_v19 = vpop.f32.mrf.mxu0  ;;  %v4605_v50 = vpop.f32.mrf.mxu1 }
 0x485   :  { %4909 = vst [vmem:[#allocation10 + $0x128] sm:$0xff] %v4600_v44  ;;  %v4604_v57 = vadd.f32 %v4603_v52, %v4155_v21  ;;  %v4157_v42 = vadd.f32 %v4156_v19, %v8938_v29  ;;  %v8944_v21 = vld [vmem:[#allocation206_spill] sm:$0xff] }
 0x486   :  { %v4160_v48 = vpop.f32.mrf.mxu0  ;;  %v4609_v54 = vpop.f32.mrf.mxu1 }
 0x487   :  { %4910 = vst [vmem:[#allocation10 + $0x130] sm:$0xff] %v4604_v57  ;;  %v4606_v5 = vadd.f32 %v4605_v50, %v4157_v42  ;;  %v4161_v51 = vadd.f32 %v4160_v48, %v8939_v32  ;;  %v8945_v42 = vld [vmem:[#allocation207_spill] sm:$0xff] }
 0x488   :  { %v4162_v3 = vpop.f32.mrf.mxu0  ;;  %v4611_v7 = vpop.f32.mrf.mxu1 }
 0x489   :  { %4911 = vst [vmem:[#allocation10 + $0x138] sm:$0xff] %v4606_v5  ;;  %v4610_v47 = vadd.f32 %v4609_v54, %v4161_v51  ;;  %v4163_v26 = vadd.f32 %v4162_v3, %v8940_v49  ;;  %v8946_v51 = vld [vmem:[#allocation212_spill] sm:$0xff] }
 0x48a   :  { %v4166_v58 = vpop.f32.mrf.mxu0  ;;  %v4615_v33 = vpop.f32.mrf.mxu1 }
 0x48b   :  { %4912 = vst [vmem:[#allocation10 + $0x140] sm:$0xff] %v4610_v47  ;;  %v4612_v37 = vadd.f32 %v4611_v7, %v4163_v26  ;;  %v4167_v56 = vadd.f32 %v4166_v58, %v8941_v40  ;;  %v8947_v26 = vld [vmem:[#allocation213_spill] sm:$0xff] }
 0x48c   :  { %v4168_v36 = vpop.f32.mrf.mxu0  ;;  %v4617_v60 = vpop.f32.mrf.mxu1 }
 0x48d   :  { %4913 = vst [vmem:[#allocation10 + $0x148] sm:$0xff] %v4612_v37  ;;  %v4616_v4 = vadd.f32 %v4615_v33, %v4167_v56  ;;  %v4169_v38 = vadd.f32 %v4168_v36, %v8942_v16  ;;  %v8948_v56 = vld [vmem:[#allocation210_spill] sm:$0xff] }
 0x48e   :  { %v4172_v18 = vpop.f32.mrf.mxu0  ;;  %v4621_v41 = vpop.f32.mrf.mxu1 }
 0x48f   :  { %4914 = vst [vmem:[#allocation10 + $0x150] sm:$0xff] %v4616_v4  ;;  %v4618_v23 = vadd.f32 %v4617_v60, %v4169_v38  ;;  %v4173_v55 = vadd.f32 %v4172_v18, %v8943_v10  ;;  %v8949_v38 = vld [vmem:[#allocation211_spill] sm:$0xff] }
 0x490   :  { %v4174_v52 = vpop.f32.mrf.mxu0  ;;  %v4623_v44 = vpop.f32.mrf.mxu1 }
 0x491   :  { %4915 = vst [vmem:[#allocation10 + $0x158] sm:$0xff] %v4618_v23  ;;  %v4622_v45 = vadd.f32 %v4621_v41, %v4173_v55  ;;  %v4175_v19 = vadd.f32 %v4174_v52, %v8944_v21  ;;  %v8950_v55 = vld [vmem:[#allocation216_spill] sm:$0xff] }
 0x492   :  { %v4178_v50 = vpop.f32.mrf.mxu0  ;;  %v4627_v57 = vpop.f32.mrf.mxu1 }
 0x493   :  { %4916 = vst [vmem:[#allocation10 + $0x160] sm:$0xff] %v4622_v45  ;;  %v4624_v29 = vadd.f32 %v4623_v44, %v4175_v19  ;;  %v4179_v48 = vadd.f32 %v4178_v50, %v8945_v42  ;;  %v8951_v19 = vld [vmem:[#allocation217_spill] sm:$0xff] }
 0x494   :  { %v4180_v54 = vpop.f32.mrf.mxu0  ;;  %v4629_v5 = vpop.f32.mrf.mxu1 }
 0x495   :  { %4917 = vst [vmem:[#allocation10 + $0x168] sm:$0xff] %v4624_v29  ;;  %v4628_v32 = vadd.f32 %v4627_v57, %v4179_v48  ;;  %v4181_v3 = vadd.f32 %v4180_v54, %v8946_v51 }
 0x496   :  { %v4184_v7 = vpop.f32.mrf.mxu0  ;;  %v4633_v47 = vpop.f32.mrf.mxu1 }
 0x497   :  { %4918 = vst [vmem:[#allocation10 + $0x170] sm:$0xff] %v4628_v32  ;;  %v4630_v49 = vadd.f32 %v4629_v5, %v4181_v3  ;;  %v4185_v58 = vadd.f32 %v4184_v7, %v8947_v26 }
 0x498   :  { %v4186_v33 = vpop.f32.mrf.mxu0  ;;  %v4635_v37 = vpop.f32.mrf.mxu1 }
 0x499   :  { %4919 = vst [vmem:[#allocation10 + $0x178] sm:$0xff] %v4630_v49  ;;  %v4634_v40 = vadd.f32 %v4633_v47, %v4185_v58  ;;  %v4187_v36 = vadd.f32 %v4186_v33, %v8948_v56 }
 0x49a   :  { %v4190_v60 = vpop.f32.mrf.mxu0  ;;  %v4639_v4 = vpop.f32.mrf.mxu1 }
 0x49b   :  { %4920 = vst [vmem:[#allocation10 + $0x180] sm:$0xff] %v4634_v40  ;;  %v4636_v16 = vadd.f32 %v4635_v37, %v4187_v36  ;;  %v4191_v18 = vadd.f32 %v4190_v60, %v8949_v38  ;;  %v8952_v37 = vld [vmem:[#allocation214_spill] sm:$0xff] }
 0x49c   :  { %v4192_v41 = vpop.f32.mrf.mxu0  ;;  %v4641_v23 = vpop.f32.mrf.mxu1 }
 0x49d   :  { %4921 = vst [vmem:[#allocation10 + $0x188] sm:$0xff] %v4636_v16  ;;  %v4640_v10 = vadd.f32 %v4639_v4, %v4191_v18  ;;  %v4193_v52 = vadd.f32 %v4192_v41, %v8950_v55 }
 0x49e   :  { %v4196_v44 = vpop.f32.mrf.mxu0  ;;  %v4645_v45 = vpop.f32.mrf.mxu1 }
 0x49f   :  { %4922 = vst [vmem:[#allocation10 + $0x190] sm:$0xff] %v4640_v10  ;;  %v4642_v21 = vadd.f32 %v4641_v23, %v4193_v52  ;;  %v4197_v50 = vadd.f32 %v4196_v44, %v8951_v19 }
 0x4a0   :  { %v4198_v57 = vpop.f32.mrf.mxu0  ;;  %v4647_v29 = vpop.f32.mrf.mxu1 }
 0x4a1   :  { %4923 = vst [vmem:[#allocation10 + $0x198] sm:$0xff] %v4642_v21  ;;  %v4646_v42 = vadd.f32 %v4645_v45, %v4197_v50  ;;  %v4199_v48 = vadd.f32 %v4198_v57, %v7171_v22 }
 0x4a2   :  { %v4202_v54 = vpop.f32.mrf.mxu0  ;;  %v4651_v5 = vpop.f32.mrf.mxu1 }
 0x4a3   :  { %4924 = vst [vmem:[#allocation10 + $0x1a0] sm:$0xff] %v4646_v42  ;;  %v4648_v32 = vadd.f32 %v4647_v29, %v4199_v48  ;;  %v4203_v51 = vadd.f32 %v4202_v54, %v7178_v2 }
 0x4a4   :  { %v4204_v3 = vpop.f32.mrf.mxu0  ;;  %v4653_v7 = vpop.f32.mrf.mxu1 }
 0x4a5   :  { %4925 = vst [vmem:[#allocation10 + $0x1a8] sm:$0xff] %v4648_v32  ;;  %v4652_v47 = vadd.f32 %v4651_v5, %v4203_v51  ;;  %v4205_v49 = vadd.f32 %v4204_v3, %v7181_v27 }
 0x4a6   :  { %v4208_v26 = vpop.f32.mrf.mxu0  ;;  %v4657_v58 = vpop.f32.mrf.mxu1 }
 0x4a7   :  { %4926 = vst [vmem:[#allocation10 + $0x1b0] sm:$0xff] %v4652_v47  ;;  %v4654_v33 = vadd.f32 %v4653_v7, %v4205_v49  ;;  %v4209_v40 = vadd.f32 %v4208_v26, %v8952_v37 }
 0x4a8   :  { %v4210_v56 = vpop.f32.mrf.mxu0  ;;  %v4659_v22 = vpop.f32.mrf.mxu1 }
 0x4a9   :  { %4927 = vst [vmem:[#allocation10 + $0x1b8] sm:$0xff] %v4654_v33  ;;  %v4658_v36 = vadd.f32 %v4657_v58, %v4209_v40  ;;  %v4211_v60 = vadd.f32 %v4210_v56, %v7199_v9 }
 0x4aa   :  { %v4214_v4 = vpop.f32.mrf.mxu0  ;;  %v4663_v2 = vpop.f32.mrf.mxu1 }
 0x4ab   :  { %4928 = vst [vmem:[#allocation10 + $0x1c0] sm:$0xff] %v4658_v36  ;;  %v4660_v16 = vadd.f32 %v4659_v22, %v4211_v60  ;;  %v4215_v38 = vadd.f32 %v4214_v4, %v7206_v14 }
 0x4ac   :  { %v4216_v18 = vpop.f32.mrf.mxu0  ;;  %v4665_v27 = vpop.f32.mrf.mxu1 }
 0x4ad   :  { %4929 = vst [vmem:[#allocation10 + $0x1c8] sm:$0xff] %v4660_v16  ;;  %v4664_v41 = vadd.f32 %v4663_v2, %v4215_v38  ;;  %v4217_v23 = vadd.f32 %v4216_v18, %v7209_v25 }
 0x4ae   :  { %v4220_v10 = vpop.f32.mrf.mxu0  ;;  %v4669_v55 = vpop.f32.mrf.mxu1 }
 0x4af   :  { %4930 = vst [vmem:[#allocation10 + $0x1d0] sm:$0xff] %v4664_v41  ;;  %v4666_v52 = vadd.f32 %v4665_v27, %v4217_v23  ;;  %v4221_v44 = vadd.f32 %v4220_v10, %v7220_v31 }
 0x4b0   :  { %v4222_v45 = vpop.f32.mrf.mxu0  ;;  %v4671_v9 = vpop.f32.mrf.mxu1 }
 0x4b1   :  { %4931 = vst [vmem:[#allocation10 + $0x1d8] sm:$0xff] %v4666_v52  ;;  %v4670_v21 = vadd.f32 %v4669_v55, %v4221_v44  ;;  %v4223_v19 = vadd.f32 %v4222_v45, %v7227_v34 }
 0x4b2   :  { %v4226_v50 = vpop.f32.mrf.mxu0  ;;  %v4675_v14 = vpop.f32.mrf.mxu1 }
 0x4b3   :  { %4932 = vst [vmem:[#allocation10 + $0x1e0] sm:$0xff] %v4670_v21  ;;  %v4672_v57 = vadd.f32 %v4671_v9, %v4223_v19  ;;  %v4227_v29 = vadd.f32 %v4226_v50, %v7234_v15 }
 0x4b4   :  { %v4228_v42 = vpop.f32.mrf.mxu0  ;;  %v4677_v25 = vpop.f32.mrf.mxu1 }
 0x4b5   :  { %4933 = vst [vmem:[#allocation10 + $0x1e8] sm:$0xff] %v4672_v57  ;;  %v4676_v48 = vadd.f32 %v4675_v14, %v4227_v29  ;;  %v4229_v54 = vadd.f32 %v4228_v42, %v7237_v13 }
 0x4b6   :  { %v4232_v5 = vpop.f32.mrf.mxu0  ;;  %v4681_v31 = vpop.f32.mrf.mxu1 }
 0x4b7   :  { %4934 = vst [vmem:[#allocation10 + $0x1f0] sm:$0xff] %v4676_v48  ;;  %v4678_v32 = vadd.f32 %v4677_v25, %v4229_v54  ;;  %v4233_v51 = vadd.f32 %v4232_v5, %v7248_v24 }
 0x4b8   :  { %v4234_v3 = vpop.f32.mrf.mxu0  ;;  %v4683_v34 = vpop.f32.mrf.mxu1 }
 0x4b9   :  { %4935 = vst [vmem:[#allocation10 + $0x1f8] sm:$0xff] %v4678_v32  ;;  %v4682_v7 = vadd.f32 %v4681_v31, %v4233_v51  ;;  %v4235_v47 = vadd.f32 %v4234_v3, %v7255_v17 }
 0x4ba   :  { %v4238_v49 = vpop.f32.mrf.mxu0  ;;  %v4687_v15 = vpop.f32.mrf.mxu1 }
 0x4bb   :  { %4936 = vst [vmem:[#allocation10 + $0x200] sm:$0xff] %v4682_v7  ;;  %v4684_v26 = vadd.f32 %v4683_v34, %v4235_v47  ;;  %v4239_v58 = vadd.f32 %v4238_v49, %v7262_v0 }
 0x4bc   :  { %v4240_v33 = vpop.f32.mrf.mxu0  ;;  %v4689_v13 = vpop.f32.mrf.mxu1 }
 0x4bd   :  { %4937 = vst [vmem:[#allocation10 + $0x208] sm:$0xff] %v4684_v26  ;;  %v4688_v37 = vadd.f32 %v4687_v15, %v4239_v58  ;;  %v4241_v40 = vadd.f32 %v4240_v33, %v7265_v35 }
 0x4be   :  { %v4244_v56 = vpop.f32.mrf.mxu0  ;;  %v4693_v24 = vpop.f32.mrf.mxu1 }
 0x4bf   :  { %4938 = vst [vmem:[#allocation10 + $0x210] sm:$0xff] %v4688_v37  ;;  %v4690_v22 = vadd.f32 %v4689_v13, %v4241_v40  ;;  %v4245_v36 = vadd.f32 %v4244_v56, %v7276_v28 }
 0x4c0   :  { %v4246_v60 = vpop.f32.mrf.mxu0  ;;  %v4695_v17 = vpop.f32.mrf.mxu1 }
 0x4c1   :  { %4939 = vst [vmem:[#allocation10 + $0x218] sm:$0xff] %v4690_v22  ;;  %v4694_v4 = vadd.f32 %v4693_v24, %v4245_v36  ;;  %v4247_v2 = vadd.f32 %v4246_v60, %v7283_v43  ;;  %v8953_v36 = vld [vmem:[#allocation215_spill] sm:$0xff] }
 0x4c2   :  { %v4250_v16 = vpop.f32.mrf.mxu0  ;;  %v4699_v0 = vpop.f32.mrf.mxu1 }
 0x4c3   :  { %4940 = vst [vmem:[#allocation10 + $0x220] sm:$0xff] %v4694_v4  ;;  %v4696_v38 = vadd.f32 %v4695_v17, %v4247_v2  ;;  %v4251_v18 = vadd.f32 %v4250_v16, %v7290_v11  ;;  %v8954_v2 = vld [vmem:[#allocation220_spill] sm:$0xff] }
 0x4c4   :  { %v4252_v27 = vpop.f32.mrf.mxu0  ;;  %v4701_v35 = vpop.f32.mrf.mxu1 }
 0x4c5   :  { %4941 = vst [vmem:[#allocation10 + $0x228] sm:$0xff] %v4696_v38  ;;  %v4700_v41 = vadd.f32 %v4699_v0, %v4251_v18  ;;  %v4253_v23 = vadd.f32 %v4252_v27, %v7293_v62  ;;  %v8955_v18 = vld [vmem:[#allocation221_spill] sm:$0xff] }
 0x4c6   :  { %v4256_v10 = vpop.f32.mrf.mxu0  ;;  %v4705_v28 = vpop.f32.mrf.mxu1 }
 0x4c7   :  { %4942 = vst [vmem:[#allocation10 + $0x230] sm:$0xff] %v4700_v41  ;;  %v4702_v55 = vadd.f32 %v4701_v35, %v4253_v23  ;;  %v4257_v52 = vadd.f32 %v4256_v10, %v7304_v20  ;;  %v8956_v23 = vld [vmem:[#allocation218_spill] sm:$0xff] }
 0x4c8   :  { %v4258_v44 = vpop.f32.mrf.mxu0  ;;  %v4707_v43 = vpop.f32.mrf.mxu1 }
 0x4c9   :  { %4943 = vst [vmem:[#allocation10 + $0x238] sm:$0xff] %v4702_v55  ;;  %v4706_v45 = vadd.f32 %v4705_v28, %v4257_v52  ;;  %v4259_v9 = vadd.f32 %v4258_v44, %v7311_v63  ;;  %v8957_v44 = vld [vmem:[#allocation219_spill] sm:$0xff] }
 0x4ca   :  { %v4262_v21 = vpop.f32.mrf.mxu0  ;;  %v4711_v11 = vpop.f32.mrf.mxu1 }
 0x4cb   :  { %4944 = vst [vmem:[#allocation10 + $0x240] sm:$0xff] %v4706_v45  ;;  %v4708_v19 = vadd.f32 %v4707_v43, %v4259_v9  ;;  %v4263_v50 = vadd.f32 %v4262_v21, %v7318_v39 }
 0x4cc   :  { %v4264_v14 = vpop.f32.mrf.mxu0  ;;  %v4713_v62 = vpop.f32.mrf.mxu1 }
 0x4cd   :  { %4945 = vst [vmem:[#allocation10 + $0x248] sm:$0xff] %v4708_v19  ;;  %v4712_v57 = vadd.f32 %v4711_v11, %v4263_v50  ;;  %v4265_v29 = vadd.f32 %v4264_v14, %v7321_v30  ;;  %v8958_v11 = vld [vmem:[#allocation224_spill] sm:$0xff] }
 0x4ce   :  { %v4268_v42 = vpop.f32.mrf.mxu0  ;;  %v4717_v20 = vpop.f32.mrf.mxu1 }
 0x4cf   :  { %4946 = vst [vmem:[#allocation10 + $0x250] sm:$0xff] %v4712_v57  ;;  %v4714_v25 = vadd.f32 %v4713_v62, %v4265_v29  ;;  %v4269_v48 = vadd.f32 %v4268_v42, %v7332_v8  ;;  %v8959_v57 = vld [vmem:[#allocation225_spill] sm:$0xff] }
 0x4d0   :  { %v4270_v54 = vpop.f32.mrf.mxu0  ;;  %v4719_v63 = vpop.f32.mrf.mxu1 }
 0x4d1   :  { %4947 = vst [vmem:[#allocation10 + $0x258] sm:$0xff] %v4714_v25  ;;  %v4718_v5 = vadd.f32 %v4717_v20, %v4269_v48  ;;  %v4271_v31 = vadd.f32 %v4270_v54, %v7339_v59  ;;  %v8960_v48 = vld [vmem:[#allocation222_spill] sm:$0xff] }
 0x4d2   :  { %v4274_v32 = vpop.f32.mrf.mxu0  ;;  %v4723_v39 = vpop.f32.mrf.mxu1 }
 0x4d3   :  { %4948 = vst [vmem:[#allocation10 + $0x260] sm:$0xff] %v4718_v5  ;;  %v4720_v51 = vadd.f32 %v4719_v63, %v4271_v31  ;;  %v4275_v3 = vadd.f32 %v4274_v32, %v7346_v1  ;;  %v8961_v32 = vld [vmem:[#allocation223_spill] sm:$0xff] }
 0x4d4   :  { %v4276_v34 = vpop.f32.mrf.mxu0  ;;  %v4725_v30 = vpop.f32.mrf.mxu1 }
 0x4d5   :  { %4949 = vst [vmem:[#allocation10 + $0x268] sm:$0xff] %v4720_v51  ;;  %v4724_v7 = vadd.f32 %v4723_v39, %v4275_v3  ;;  %v4277_v47 = vadd.f32 %v4276_v34, %v7349_v6 }
 0x4d6   :  { %v4280_v49 = vpop.f32.mrf.mxu0  ;;  %v4729_v8 = vpop.f32.mrf.mxu1 }
 0x4d7   :  { %4950 = vst [vmem:[#allocation10 + $0x270] sm:$0xff] %v4724_v7  ;;  %v4726_v15 = vadd.f32 %v4725_v30, %v4277_v47  ;;  %v4281_v26 = vadd.f32 %v4280_v49, %v7360_v61  ;;  %v8962_v30 = vld [vmem:[#allocation228_spill] sm:$0xff] }
 0x4d8   :  { %v4282_v58 = vpop.f32.mrf.mxu0  ;;  %v4731_v59 = vpop.f32.mrf.mxu1 }
 0x4d9   :  { %4951 = vst [vmem:[#allocation10 + $0x278] sm:$0xff] %v4726_v15  ;;  %v4730_v33 = vadd.f32 %v4729_v8, %v4281_v26  ;;  %v4283_v13 = vadd.f32 %v4282_v58, %v7367_v46  ;;  %v8963_v15 = vld [vmem:[#allocation229_spill] sm:$0xff] }
 0x4da   :  { %v4286_v37 = vpop.f32.mrf.mxu0  ;;  %v4735_v1 = vpop.f32.mrf.mxu1 }
 0x4db   :  { %4952 = vst [vmem:[#allocation10 + $0x280] sm:$0xff] %v4730_v33  ;;  %v4732_v40 = vadd.f32 %v4731_v59, %v4283_v13  ;;  %v4287_v56 = vadd.f32 %v4286_v37, %v7374_v12  ;;  %v8964_v13 = vld [vmem:[#allocation226_spill] sm:$0xff] }
 0x4dc   :  { %v4288_v24 = vpop.f32.mrf.mxu0  ;;  %v4737_v6 = vpop.f32.mrf.mxu1 }
 0x4dd   :  { %4953 = vst [vmem:[#allocation10 + $0x288] sm:$0xff] %v4732_v40  ;;  %v4736_v22 = vadd.f32 %v4735_v1, %v4287_v56  ;;  %v4289_v60 = vadd.f32 %v4288_v24, %v8953_v36  ;;  %v8965_v24 = vld [vmem:[#allocation227_spill] sm:$0xff] }
 0x4de   :  { %v4292_v17 = vpop.f32.mrf.mxu0  ;;  %v4741_v61 = vpop.f32.mrf.mxu1 }
 0x4df   :  { %4954 = vst [vmem:[#allocation10 + $0x290] sm:$0xff] %v4736_v22  ;;  %v4738_v4 = vadd.f32 %v4737_v6, %v4289_v60  ;;  %v4293_v16 = vadd.f32 %v4292_v17, %v8954_v2  ;;  %v8966_v17 = vld [vmem:[#allocation232_spill] sm:$0xff] }
 0x4e0   :  { %v4294_v0 = vpop.f32.mrf.mxu0  ;;  %v4743_v46 = vpop.f32.mrf.mxu1 }
 0x4e1   :  { %4955 = vst [vmem:[#allocation10 + $0x298] sm:$0xff] %v4738_v4  ;;  %v4742_v38 = vadd.f32 %v4741_v61, %v4293_v16  ;;  %v4295_v27 = vadd.f32 %v4294_v0, %v8955_v18  ;;  %v8967_v0 = vld [vmem:[#allocation233_spill] sm:$0xff] }
 0x4e2   :  { %v4298_v35 = vpop.f32.mrf.mxu0  ;;  %v4747_v12 = vpop.f32.mrf.mxu1 }
 0x4e3   :  { %4956 = vst [vmem:[#allocation10 + $0x2a0] sm:$0xff] %v4742_v38  ;;  %v4744_v41 = vadd.f32 %v4743_v46, %v4295_v27  ;;  %v4299_v10 = vadd.f32 %v4298_v35, %v8956_v23  ;;  %v8968_v35 = vld [vmem:[#allocation230_spill] sm:$0xff] }
 0x4e4   :  { %v4300_v28 = vpop.f32.mrf.mxu0  ;;  %v4749_v55 = vpop.f32.mrf.mxu1 }
 0x4e5   :  { %4957 = vst [vmem:[#allocation10 + $0x2a8] sm:$0xff] %v4744_v41  ;;  %v4748_v52 = vadd.f32 %v4747_v12, %v4299_v10  ;;  %v4301_v43 = vadd.f32 %v4300_v28, %v8957_v44  ;;  %v8969_v28 = vld [vmem:[#allocation231_spill] sm:$0xff] }
 0x4e6   :  { %v4304_v45 = vpop.f32.mrf.mxu0  ;;  %v4753_v9 = vpop.f32.mrf.mxu1 }
 0x4e7   :  { %4958 = vst [vmem:[#allocation10 + $0x2b0] sm:$0xff] %v4748_v52  ;;  %v4750_v21 = vadd.f32 %v4749_v55, %v4301_v43  ;;  %v4305_v19 = vadd.f32 %v4304_v45, %v8958_v11  ;;  %v8970_v45 = vld [vmem:[#allocation236_spill] sm:$0xff] }
 0x4e8   :  { %v4306_v50 = vpop.f32.mrf.mxu0  ;;  %v4755_v14 = vpop.f32.mrf.mxu1 }
 0x4e9   :  { %4959 = vst [vmem:[#allocation10 + $0x2b8] sm:$0xff] %v4750_v21  ;;  %v4754_v62 = vadd.f32 %v4753_v9, %v4305_v19  ;;  %v4307_v29 = vadd.f32 %v4306_v50, %v8959_v57  ;;  %v8971_v50 = vld [vmem:[#allocation237_spill] sm:$0xff] }
 0x4ea   :  { %v4310_v42 = vpop.f32.mrf.mxu0  ;;  %v4759_v20 = vpop.f32.mrf.mxu1 }
 0x4eb   :  { %4960 = vst [vmem:[#allocation10 + $0x2c0] sm:$0xff] %v4754_v62  ;;  %v4756_v25 = vadd.f32 %v4755_v14, %v4307_v29  ;;  %v4311_v54 = vadd.f32 %v4310_v42, %v8960_v48  ;;  %v8972_v42 = vld [vmem:[#allocation234_spill] sm:$0xff] }
 0x4ec   :  { %v4312_v63 = vpop.f32.mrf.mxu0  ;;  %v4761_v5 = vpop.f32.mrf.mxu1 }
 0x4ed   :  { %4961 = vst [vmem:[#allocation10 + $0x2c8] sm:$0xff] %v4756_v25  ;;  %v4760_v31 = vadd.f32 %v4759_v20, %v4311_v54  ;;  %v4313_v39 = vadd.f32 %v4312_v63, %v8961_v32  ;;  %v8973_v63 = vld [vmem:[#allocation235_spill] sm:$0xff] }
 0x4ee   :  { %v4316_v51 = vpop.f32.mrf.mxu0  ;;  %v4765_v3 = vpop.f32.mrf.mxu1 }
 0x4ef   :  { %4962 = vst [vmem:[#allocation10 + $0x2d0] sm:$0xff] %v4760_v31  ;;  %v4762_v34 = vadd.f32 %v4761_v5, %v4313_v39  ;;  %v4317_v7 = vadd.f32 %v4316_v51, %v8962_v30  ;;  %v8974_v51 = vld [vmem:[#allocation240_spill] sm:$0xff] }
 0x4f0   :  { %v4318_v47 = vpop.f32.mrf.mxu0  ;;  %v4767_v49 = vpop.f32.mrf.mxu1 }
 0x4f1   :  { %4963 = vst [vmem:[#allocation10 + $0x2d8] sm:$0xff] %v4762_v34  ;;  %v4766_v8 = vadd.f32 %v4765_v3, %v4317_v7  ;;  %v4319_v26 = vadd.f32 %v4318_v47, %v8963_v15  ;;  %v8975_v47 = vld [vmem:[#allocation241_spill] sm:$0xff] }
 0x4f2   :  { %v4322_v58 = vpop.f32.mrf.mxu0  ;;  %v4771_v59 = vpop.f32.mrf.mxu1 }
 0x4f3   :  { %4964 = vst [vmem:[#allocation10 + $0x2e0] sm:$0xff] %v4766_v8  ;;  %v4768_v33 = vadd.f32 %v4767_v49, %v4319_v26  ;;  %v4323_v37 = vadd.f32 %v4322_v58, %v8964_v13  ;;  %v8976_v58 = vld [vmem:[#allocation238_spill] sm:$0xff] }
 0x4f4   :  { %v4324_v1 = vpop.f32.mrf.mxu0  ;;  %v4773_v40 = vpop.f32.mrf.mxu1 }
 0x4f5   :  { %4965 = vst [vmem:[#allocation10 + $0x2e8] sm:$0xff] %v4768_v33  ;;  %v4772_v56 = vadd.f32 %v4771_v59, %v4323_v37  ;;  %v4325_v6 = vadd.f32 %v4324_v1, %v8965_v24  ;;  %v8977_v1 = vld [vmem:[#allocation239_spill] sm:$0xff] }
 0x4f6   :  { %v4328_v22 = vpop.f32.mrf.mxu0  ;;  %v4777_v36 = vpop.f32.mrf.mxu1 }
 0x4f7   :  { %4966 = vst [vmem:[#allocation10 + $0x2f0] sm:$0xff] %v4772_v56  ;;  %v4774_v60 = vadd.f32 %v4773_v40, %v4325_v6  ;;  %v4329_v61 = vadd.f32 %v4328_v22, %v8966_v17  ;;  %v8978_v22 = vld [vmem:[#allocation244_spill] sm:$0xff] }
 0x4f8   :  { %v4330_v4 = vpop.f32.mrf.mxu0  ;;  %v4779_v2 = vpop.f32.mrf.mxu1 }
 0x4f9   :  { %4967 = vst [vmem:[#allocation10 + $0x2f8] sm:$0xff] %v4774_v60  ;;  %v4778_v16 = vadd.f32 %v4777_v36, %v4329_v61  ;;  %v4331_v46 = vadd.f32 %v4330_v4, %v8967_v0  ;;  %v8979_v4 = vld [vmem:[#allocation245_spill] sm:$0xff] }
 0x4fa   :  { %v4334_v38 = vpop.f32.mrf.mxu0  ;;  %v4783_v18 = vpop.f32.mrf.mxu1 }
 0x4fb   :  { %4968 = vst [vmem:[#allocation10 + $0x300] sm:$0xff] %v4778_v16  ;;  %v4780_v27 = vadd.f32 %v4779_v2, %v4331_v46  ;;  %v4335_v12 = vadd.f32 %v4334_v38, %v8968_v35  ;;  %v8980_v38 = vld [vmem:[#allocation242_spill] sm:$0xff] }
 0x4fc   :  { %v4336_v41 = vpop.f32.mrf.mxu0  ;;  %v4785_v23 = vpop.f32.mrf.mxu1 }
 0x4fd   :  { %4969 = vst [vmem:[#allocation10 + $0x308] sm:$0xff] %v4780_v27  ;;  %v4784_v10 = vadd.f32 %v4783_v18, %v4335_v12  ;;  %v4337_v55 = vadd.f32 %v4336_v41, %v8969_v28  ;;  %v8981_v41 = vld [vmem:[#allocation243_spill] sm:$0xff] }
 0x4fe   :  { %v4340_v52 = vpop.f32.mrf.mxu0  ;;  %v4789_v44 = vpop.f32.mrf.mxu1 }
 0x4ff   :  { %4970 = vst [vmem:[#allocation10 + $0x310] sm:$0xff] %v4784_v10  ;;  %v4786_v43 = vadd.f32 %v4785_v23, %v4337_v55  ;;  %v4341_v9 = vadd.f32 %v4340_v52, %v8970_v45  ;;  %v8982_v52 = vld [vmem:[#allocation248_spill] sm:$0xff] }
 0x500   :  { %v4342_v21 = vpop.f32.mrf.mxu0  ;;  %v4791_v11 = vpop.f32.mrf.mxu1 }
 0x501   :  { %4971 = vst [vmem:[#allocation10 + $0x318] sm:$0xff] %v4786_v43  ;;  %v4790_v19 = vadd.f32 %v4789_v44, %v4341_v9  ;;  %v4343_v14 = vadd.f32 %v4342_v21, %v8971_v50  ;;  %v8983_v21 = vld [vmem:[#allocation249_spill] sm:$0xff] }
 0x502   :  { %v4346_v62 = vpop.f32.mrf.mxu0  ;;  %v4795_v57 = vpop.f32.mrf.mxu1 }
 0x503   :  { %4972 = vst [vmem:[#allocation10 + $0x320] sm:$0xff] %v4790_v19  ;;  %v4792_v29 = vadd.f32 %v4791_v11, %v4343_v14  ;;  %v4347_v20 = vadd.f32 %v4346_v62, %v8972_v42  ;;  %v8984_v62 = vld [vmem:[#allocation246_spill] sm:$0xff] }
 0x504   :  { %v4348_v25 = vpop.f32.mrf.mxu0  ;;  %v4797_v48 = vpop.f32.mrf.mxu1 }
 0x505   :  { %4973 = vst [vmem:[#allocation10 + $0x328] sm:$0xff] %v4792_v29  ;;  %v4796_v54 = vadd.f32 %v4795_v57, %v4347_v20  ;;  %v4349_v5 = vadd.f32 %v4348_v25, %v8973_v63  ;;  %v8985_v25 = vld [vmem:[#allocation247_spill] sm:$0xff] }
 0x506   :  { %v4352_v31 = vpop.f32.mrf.mxu0  ;;  %v4801_v32 = vpop.f32.mrf.mxu1 }
 0x507   :  { %4974 = vst [vmem:[#allocation10 + $0x330] sm:$0xff] %v4796_v54  ;;  %v4798_v39 = vadd.f32 %v4797_v48, %v4349_v5  ;;  %v4353_v3 = vadd.f32 %v4352_v31, %v8974_v51  ;;  %v8986_v31 = vld [vmem:[#allocation252_spill] sm:$0xff] }
 0x508   :  { %v4354_v34 = vpop.f32.mrf.mxu0  ;;  %v4803_v30 = vpop.f32.mrf.mxu1 }
 0x509   :  { %4975 = vst [vmem:[#allocation10 + $0x338] sm:$0xff] %v4798_v39  ;;  %v4802_v7 = vadd.f32 %v4801_v32, %v4353_v3  ;;  %v4355_v49 = vadd.f32 %v4354_v34, %v8975_v47  ;;  %v8987_v34 = vld [vmem:[#allocation253_spill] sm:$0xff] }
 0x50a   :  { %v4358_v8 = vpop.f32.mrf.mxu0  ;;  %v4807_v15 = vpop.f32.mrf.mxu1 }
 0x50b   :  { %4976 = vst [vmem:[#allocation10 + $0x340] sm:$0xff] %v4802_v7  ;;  %v4804_v26 = vadd.f32 %v4803_v30, %v4355_v49  ;;  %v4359_v59 = vadd.f32 %v4358_v8, %v8976_v58  ;;  %v8988_v8 = vld [vmem:[#allocation250_spill] sm:$0xff] }
 0x50c   :  { %v4360_v33 = vpop.f32.mrf.mxu0  ;;  %v4809_v13 = vpop.f32.mrf.mxu1 }
 0x50d   :  { %4977 = vst [vmem:[#allocation10 + $0x348] sm:$0xff] %v4804_v26  ;;  %v4808_v37 = vadd.f32 %v4807_v15, %v4359_v59  ;;  %v4361_v40 = vadd.f32 %v4360_v33, %v8977_v1  ;;  %v8989_v33 = vld [vmem:[#allocation251_spill] sm:$0xff] }
 0x50e   :  { %v4364_v56 = vpop.f32.mrf.mxu0  ;;  %v4813_v24 = vpop.f32.mrf.mxu1 }
 0x50f   :  { %4978 = vst [vmem:[#allocation10 + $0x350] sm:$0xff] %v4808_v37  ;;  %v4810_v6 = vadd.f32 %v4809_v13, %v4361_v40  ;;  %v4365_v36 = vadd.f32 %v4364_v56, %v8978_v22  ;;  %v8990_v56 = vld [vmem:[#allocation256_spill] sm:$0xff] }
 0x510   :  { %v4366_v60 = vpop.f32.mrf.mxu0  ;;  %v4815_v17 = vpop.f32.mrf.mxu1 }
 0x511   :  { %4979 = vst [vmem:[#allocation10 + $0x358] sm:$0xff] %v4810_v6  ;;  %v4814_v61 = vadd.f32 %v4813_v24, %v4365_v36  ;;  %v4367_v2 = vadd.f32 %v4366_v60, %v8979_v4  ;;  %v8991_v60 = vld [vmem:[#allocation257_spill] sm:$0xff] }
 0x512   :  { %v4370_v16 = vpop.f32.mrf.mxu0  ;;  %v4819_v0 = vpop.f32.mrf.mxu1 }
 0x513   :  { %4980 = vst [vmem:[#allocation10 + $0x360] sm:$0xff] %v4814_v61  ;;  %v4816_v46 = vadd.f32 %v4815_v17, %v4367_v2  ;;  %v4371_v18 = vadd.f32 %v4370_v16, %v8980_v38  ;;  %v8992_v16 = vld [vmem:[#allocation254_spill] sm:$0xff] }
 0x514   :  { %v4372_v27 = vpop.f32.mrf.mxu0  ;;  %v4821_v35 = vpop.f32.mrf.mxu1 }
 0x515   :  { %4981 = vst [vmem:[#allocation10 + $0x368] sm:$0xff] %v4816_v46  ;;  %v4820_v12 = vadd.f32 %v4819_v0, %v4371_v18  ;;  %v4373_v23 = vadd.f32 %v4372_v27, %v8981_v41  ;;  %v8993_v27 = vld [vmem:[#allocation255_spill] sm:$0xff] }
 0x516   :  { %v4376_v10 = vpop.f32.mrf.mxu0  ;;  %v4825_v28 = vpop.f32.mrf.mxu1 }
 0x517   :  { %4982 = vst [vmem:[#allocation10 + $0x370] sm:$0xff] %v4820_v12  ;;  %v4822_v55 = vadd.f32 %v4821_v35, %v4373_v23  ;;  %v4377_v44 = vadd.f32 %v4376_v10, %v8982_v52  ;;  %v8994_v10 = vld [vmem:[#allocation260_spill] sm:$0xff] }
 0x518   :  { %v4378_v43 = vpop.f32.mrf.mxu0  ;;  %v4827_v45 = vpop.f32.mrf.mxu1 }
 0x519   :  { %4983 = vst [vmem:[#allocation10 + $0x378] sm:$0xff] %v4822_v55  ;;  %v4826_v9 = vadd.f32 %v4825_v28, %v4377_v44  ;;  %v4379_v11 = vadd.f32 %v4378_v43, %v8983_v21 }
 0x51a   :  { %v4382_v19 = vpop.f32.mrf.mxu0  ;;  %v4831_v50 = vpop.f32.mrf.mxu1 }
 0x51b   :  { %4984 = vst [vmem:[#allocation10 + $0x380] sm:$0xff] %v4826_v9  ;;  %v4828_v14 = vadd.f32 %v4827_v45, %v4379_v11  ;;  %v4383_v57 = vadd.f32 %v4382_v19, %v8984_v62  ;;  %v8995_v11 = vld [vmem:[#allocation261_spill] sm:$0xff]  ;;  %v8996_v62 = vld [vmem:[#allocation258_spill] sm:$0xff] }
 0x51c   :  { %v4384_v29 = vpop.f32.mrf.mxu0  ;;  %v4833_v42 = vpop.f32.mrf.mxu1 }
 0x51d   :  { %4985 = vst [vmem:[#allocation10 + $0x388] sm:$0xff] %v4828_v14  ;;  %v4832_v20 = vadd.f32 %v4831_v50, %v4383_v57  ;;  %v4385_v48 = vadd.f32 %v4384_v29, %v8985_v25 }
 0x51e   :  { %v4388_v54 = vpop.f32.mrf.mxu0  ;;  %v4837_v63 = vpop.f32.mrf.mxu1 }
 0x51f   :  { %4986 = vst [vmem:[#allocation10 + $0x390] sm:$0xff] %v4832_v20  ;;  %v4834_v5 = vadd.f32 %v4833_v42, %v4385_v48  ;;  %v4389_v32 = vadd.f32 %v4388_v54, %v8986_v31 }
 0x520   :  { %v4390_v39 = vpop.f32.mrf.mxu0  ;;  %v4839_v51 = vpop.f32.mrf.mxu1 }
 0x521   :  { %4987 = vst [vmem:[#allocation10 + $0x398] sm:$0xff] %v4834_v5  ;;  %v4838_v3 = vadd.f32 %v4837_v63, %v4389_v32  ;;  %v4391_v30 = vadd.f32 %v4390_v39, %v8987_v34 }
 0x522   :  { %v4394_v7 = vpop.f32.mrf.mxu0  ;;  %v4843_v47 = vpop.f32.mrf.mxu1 }
 0x523   :  { %4988 = vst [vmem:[#allocation10 + $0x3a0] sm:$0xff] %v4838_v3  ;;  %v4840_v49 = vadd.f32 %v4839_v51, %v4391_v30  ;;  %v4395_v15 = vadd.f32 %v4394_v7, %v8988_v8 }
 0x524   :  { %v4396_v26 = vpop.f32.mrf.mxu0  ;;  %v4845_v58 = vpop.f32.mrf.mxu1 }
 0x525   :  { %4989 = vst [vmem:[#allocation10 + $0x3a8] sm:$0xff] %v4840_v49  ;;  %v4844_v59 = vadd.f32 %v4843_v47, %v4395_v15  ;;  %v4397_v13 = vadd.f32 %v4396_v26, %v8989_v33 }
 0x526   :  { %v4400_v37 = vpop.f32.mrf.mxu0  ;;  %v4849_v1 = vpop.f32.mrf.mxu1 }
 0x527   :  { %4990 = vst [vmem:[#allocation10 + $0x3b0] sm:$0xff] %v4844_v59  ;;  %v4846_v40 = vadd.f32 %v4845_v58, %v4397_v13  ;;  %v4401_v24 = vadd.f32 %v4400_v37, %v8990_v56 }
 0x528   :  { %v4402_v6 = vpop.f32.mrf.mxu0  ;;  %v4851_v22 = vpop.f32.mrf.mxu1 }
 0x529   :  { %4991 = vst [vmem:[#allocation10 + $0x3b8] sm:$0xff] %v4846_v40  ;;  %v4850_v36 = vadd.f32 %v4849_v1, %v4401_v24  ;;  %v4403_v17 = vadd.f32 %v4402_v6, %v8991_v60 }
 0x52a   :  { %v4406_v61 = vpop.f32.mrf.mxu0  ;;  %v4855_v4 = vpop.f32.mrf.mxu1 }
 0x52b   :  { %4992 = vst [vmem:[#allocation10 + $0x3c0] sm:$0xff] %v4850_v36  ;;  %v4852_v2 = vadd.f32 %v4851_v22, %v4403_v17  ;;  %v4407_v0 = vadd.f32 %v4406_v61, %v8992_v16 }
 0x52c   :  { %v4408_v46 = vpop.f32.mrf.mxu0  ;;  %v4857_v38 = vpop.f32.mrf.mxu1 }
 0x52d   :  { %4993 = vst [vmem:[#allocation10 + $0x3c8] sm:$0xff] %v4852_v2  ;;  %v4856_v18 = vadd.f32 %v4855_v4, %v4407_v0  ;;  %v4409_v35 = vadd.f32 %v4408_v46, %v8993_v27 }
 0x52e   :  { %v4412_v12 = vpop.f32.mrf.mxu0  ;;  %v4861_v41 = vpop.f32.mrf.mxu1 }
 0x52f   :  { %4994 = vst [vmem:[#allocation10 + $0x3d0] sm:$0xff] %v4856_v18  ;;  %v4858_v23 = vadd.f32 %v4857_v38, %v4409_v35  ;;  %v4413_v28 = vadd.f32 %v4412_v12, %v8994_v10 }
 0x530   :  { %v4414_v55 = vpop.f32.mrf.mxu0  ;;  %v4863_v52 = vpop.f32.mrf.mxu1 }
 0x531   :  { %4995 = vst [vmem:[#allocation10 + $0x3d8] sm:$0xff] %v4858_v23  ;;  %v4862_v44 = vadd.f32 %v4861_v41, %v4413_v28  ;;  %v4415_v43 = vadd.f32 %v4414_v55, %v7675_v53 }
 0x532   :  { %v4418_v45 = vpop.f32.mrf.mxu0  ;;  %v4867_v9 = vpop.f32.mrf.mxu1 }
 0x533   :  { %4996 = vst [vmem:[#allocation10 + $0x3e0] sm:$0xff] %v4862_v44  ;;  %v4864_v21 = vadd.f32 %v4863_v52, %v4415_v43  ;;  %v4419_v19 = vadd.f32 %v4418_v45, %v8995_v11 }
 0x534   :  { %v4420_v50 = vpop.f32.mrf.mxu0  ;;  %v4869_v29 = vpop.f32.mrf.mxu1 }
 0x535   :  { %4997 = vst [vmem:[#allocation10 + $0x3e8] sm:$0xff] %v4864_v21  ;;  %v4868_v14 = vadd.f32 %v4867_v9, %v4419_v19  ;;  %v4421_v57 = vadd.f32 %v4420_v50, %v8996_v62 }
 0x537   :  { %4998 = vst [vmem:[#allocation10 + $0x3f0] sm:$0xff] %v4868_v14  ;;  %v4870_v42 = vadd.f32 %v4869_v29, %v4421_v57 }
 0x539   :  { %4999 = vst [vmem:[#allocation10 + $0x3f8] sm:$0xff] %v4870_v42 }
 0x53a   :  { %5248 = shalt.err (!%p5245_p10)
}
 0x53b   :  { %5011 = dma.vmem_to_hbm [thread:$0]  %s5006_s15, 16384, %s7934_s5, [#allocation4], %s5269_s28, %s5269_s28, %s5270_s29  }
 0x53c   :  { %5263 = dma.done.wait [#allocation4], 16384  }
 0x53d   :  { %5264 = vsyncadd [#allocation4], 4294950912 }
 0x53e   :  { %5015 = vsyncpa [#allocation3], 1 }
 0x53f   :  { %5016 = vsyncpa [#allocation6], 1 }
 0x540   :  { %5017 = vsyncpa [#allocation9], 1 }
 0x541   :  { %5018 = vsyncpa [#allocation4], 1 }

</bundles_post_ra>
